<compile_context>
chip_gen: v7x
topology: tpu7x:2x2x1
jax: 0.10.0
libtpu: 0.0.40
codegen_flags: <defaults>
</compile_context>

<pallas_src>
import jax
import jax.numpy as jnp
from jax import lax
from jax.experimental import pallas as pl
from jax.experimental.pallas import tpu as pltpu


IN_F, HID_F, OUT_F = 28 * 28, 100, 10      # logical sizes
HID_PAD, OUT_PAD = 128, 128                # lane-padded output feature sizes


# ---------------------------------------------------------------------------
# In-kernel Rademacher signs (counter-based hash; no hardware PRNG needed)
# ---------------------------------------------------------------------------
def _rademacher_keep(shape, salt):
    """One Rademacher bit per element from a counter-based uint32 hash.

    Returns bool: True -> keep sign (+1), False -> flip sign (-1).
    Pure integer VPU work (no pltpu.prng_*, which lacks a CPU/interpret
    lowering); the sign arrays never touch HBM.
    """
    r = lax.broadcasted_iota(jnp.int32, shape, 0).astype(jnp.uint32)
    c = lax.broadcasted_iota(jnp.int32, shape, 1).astype(jnp.uint32)
    h = (r * jnp.uint32(0x9E3779B1)) ^ (c * jnp.uint32(0x85EBCA77))
    h = h + salt
    # murmur3-style finalizer
    h = h ^ (h >> 16)
    h = h * jnp.uint32(0x7FEB352D)
    h = h ^ (h >> 15)
    h = h * jnp.uint32(0x846CA68B)
    h = h ^ (h >> 16)
    return ((h >> 9) & jnp.uint32(1)) == jnp.uint32(0)


# ---------------------------------------------------------------------------
# Kernel
# ---------------------------------------------------------------------------
def _flipout_layer(h, wm_ref, wd_ref, b_mu, b_dl, salt_in, salt_out, relu):
    """h: (TB, in_f) activations.  Weights bf16 (MXU operands), biases f32."""
    h32 = h.astype(jnp.float32)
    keep_in = _rademacher_keep(h32.shape, salt_in)
    hs_bf = jnp.where(keep_in, h32, -h32).astype(jnp.bfloat16)    # h * sign_in

    mean = jnp.dot(h.astype(jnp.bfloat16), wm_ref[...],
                   preferred_element_type=jnp.float32) + b_mu
    pert = jnp.dot(hs_bf, wd_ref[...],
                   preferred_element_type=jnp.float32) + b_dl

    keep_out = _rademacher_keep(mean.shape, salt_out)
    out = mean + jnp.where(keep_out, pert, -pert)                 # + pert * sign_out
    if relu:
        out = jnp.maximum(out, 0.0)
    return out


def mlp_kernel(seed_ref, x_ref,
               w1m_ref, w1d_ref, w2m_ref, w2d_ref, w3m_ref, w3d_ref,
               bias_ref, out_ref):
    # Per-tile salt: seed and tile id mixed with large odd constants so the
    # sign streams of adjacent tiles / repeated calls are decorrelated.
    tile = pl.program_id(0).astype(jnp.uint32)
    base = (seed_ref[0].astype(jnp.uint32) * jnp.uint32(0x9E3779B9)) ^ \
           (tile * jnp.uint32(0xB5297A4D))

    def salt(k):                                    # distinct salt per sign draw
        s = base + jnp.uint32(k) * jnp.uint32(0x68E31DA4)
        s = s ^ (s >> 13)
        return s * jnp.uint32(0x01000193)

    b = bias_ref[...]                               # (8, 128) f32 packed biases
    h = x_ref[...]                                  # (TB, 784) bf16
    h = _flipout_layer(h, w1m_ref, w1d_ref, b[0:1], b[1:2], salt(0), salt(1), True)
    h = _flipout_layer(h, w2m_ref, w2d_ref, b[2:3], b[3:4], salt(2), salt(3), True)
    h = _flipout_layer(h, w3m_ref, w3d_ref, b[4:5], b[5:6], salt(4), salt(5), False)
    out_ref[...] = h.astype(out_ref.dtype)          # (TB, OUT_PAD) f32, lane-dense


# ---------------------------------------------------------------------------
# Wrapper
# ---------------------------------------------------------------------------
def dropout_model_pmnist_forward(x_nchw, params, *, seed=0, block_b=512):
    """x_nchw: (B, 1, 28, 28) float.  Returns (B, 10) float32.

    params: (w1m, w1d, w2m, w2d, w3m, w3d, bias_pack) — keep-prob folded,
    outputs lane-padded to 128, weights bf16, biases packed into (8,128) f32.
    """
    w1m, w1d, w2m, w2d, w3m, w3d, bias_pack = params
    B = x_nchw.shape[0]
    x = x_nchw.reshape(B, -1).astype(jnp.bfloat16)       # nn.Flatten; bf16 stream
    assert x.shape[1] == IN_F
    assert block_b % 16 == 0                             # bf16 sublane packing

    # Batch tile: don't exceed the (16-rounded) batch; on v7x pick block_b so
    # the grid has >= 2 tiles (2 TensorCores).
    tb = min(block_b, max(16, pl.cdiv(B, 16) * 16))
    b_pad = pl.cdiv(B, tb) * tb
    if b_pad != B:                                       # batch-only remainder pad
        x = jnp.pad(x, ((0, b_pad - B), (0, 0)))

    seed_arr = jnp.array([seed], dtype=jnp.int32)

    def w_spec(shape):                                   # resident weights
        return pl.BlockSpec(shape, lambda i: (0, 0))

    in_specs = [
        pl.BlockSpec(memory_space=pltpu.MemorySpace.SMEM),    # seed scalar
        pl.BlockSpec((tb, IN_F), lambda i: (i, 0)),           # x batch tile
        w_spec((IN_F, HID_PAD)), w_spec((IN_F, HID_PAD)),
        w_spec((HID_PAD, HID_PAD)), w_spec((HID_PAD, HID_PAD)),
        w_spec((HID_PAD, OUT_PAD)), w_spec((HID_PAD, OUT_PAD)),
        w_spec((8, HID_PAD)),                                 # packed biases
    ]

    weight_bytes = sum(int(p.size) * p.dtype.itemsize
                       for p in (w1m, w1d, w2m, w2d, w3m, w3d, bias_pack))
    cost = pl.CostEstimate(
        flops=4 * b_pad * (IN_F * HID_PAD + HID_PAD * HID_PAD + HID_PAD * OUT_PAD),
        transcendentals=0,
        bytes_accessed=int(x.size) * 2 + b_pad * OUT_PAD * 4 + weight_bytes)

    out = pl.pallas_call(
        mlp_kernel,
        out_shape=jax.ShapeDtypeStruct((b_pad, OUT_PAD), jnp.float32),
        grid=(b_pad // tb,),
        in_specs=in_specs,
        out_specs=pl.BlockSpec((tb, OUT_PAD), lambda i: (i, 0)),
        compiler_params=pltpu.CompilerParams(
            dimension_semantics=("parallel",)),
        cost_estimate=cost,
    )(seed_arr, x, w1m, w1d, w2m, w2d, w3m, w3d, bias_pack)

    return out[:B, :OUT_F]


# ---------------------------------------------------------------------------
# Deterministic parameter construction (glue; mirrors the PyTorch module)
# ---------------------------------------------------------------------------
def make_layer_params(key, in_f, out_f, in_pad, out_pad,
                      inv_sigmoid_droprate=-2.0):
    """Keep-folded, padded, MXU-ready params for one
    VarBernoulliDropout + LinearFlipout block."""
    ks = jax.random.split(key, 4)
    mu_w = 0.1 * jax.random.normal(ks[0], (in_f, out_f), jnp.float32)
    rho_w = jnp.full((in_f, out_f), -3.0, jnp.float32)
    eps_w = jax.random.normal(ks[1], (in_f, out_f), jnp.float32)
    mu_b = 0.1 * jax.random.normal(ks[2], (out_f,), jnp.float32)
    rho_b = jnp.full((out_f,), -3.0, jnp.float32)
    eps_b = jax.random.normal(ks[3], (out_f,), jnp.float32)

    # TODO(synk): VariationalBernoulliDropout's stochastic concrete-relaxation
    # mask sampling path is not in the provided source; the deterministic
    # expected keep-prob, folded into the weight rows (exact: diag(keep) @ W),
    # is used instead.
    keep = jnp.full((in_f, 1),
                    1.0 - jax.nn.sigmoid(inv_sigmoid_droprate), jnp.float32)

    # TODO(synk): eps_W / eps_b (the flipout weight-noise sample) are frozen at
    # parameter-build time; rebuild params with a fresh key per forward call to
    # match PyTorch's per-call resampling.
    w_mu = keep * mu_w
    w_delta = keep * (jax.nn.softplus(rho_w) * eps_w)   # overflow-safe softplus
    b_mu = mu_b
    b_delta = jax.nn.softplus(rho_b) * eps_b

    def pad2(a, r, c):
        return jnp.pad(a, ((0, r - a.shape[0]), (0, c - a.shape[1])))

    return (pad2(w_mu, in_pad, out_pad).astype(jnp.bfloat16),
            pad2(w_delta, in_pad, out_pad).astype(jnp.bfloat16),
            jnp.pad(b_mu, (0, out_pad - out_f)),
            jnp.pad(b_delta, (0, out_pad - out_f)))


def make_params(key):
    k1, k2, k3 = jax.random.split(key, 3)
    w1m, w1d, b1m, b1d = make_layer_params(k1, IN_F, HID_F, IN_F, HID_PAD)
    w2m, w2d, b2m, b2d = make_layer_params(k2, HID_F, HID_F, HID_PAD, HID_PAD)
    w3m, w3d, b3m, b3d = make_layer_params(k3, HID_F, OUT_F, HID_PAD, OUT_PAD)
    bias_pack = jnp.zeros((8, HID_PAD), jnp.float32)
    bias_pack = bias_pack.at[0].set(b1m).at[1].set(b1d)
    bias_pack = bias_pack.at[2].set(b2m).at[3].set(b2d)
    bias_pack = bias_pack.at[4].set(b3m).at[5].set(b3d)
    return (w1m, w1d, w2m, w2d, w3m, w3d, bias_pack)


if __name__ == "__main__":
    B, TB = 256, 128     # two batch tiles -> exercises the grid / v7x 2-TC path
    root = jax.random.PRNGKey(0)
    kx, kp = jax.random.split(root)

    x = jax.random.normal(kx, (B, 1, 28, 28), jnp.float32)   # MNIST-like NCHW
    params = make_params(kp)

    out = dropout_model_pmnist_forward(x, params, seed=0, block_b=TB)
    out = jax.block_until_ready(out)
    assert out.shape == (B, 10) and out.dtype == jnp.float32
    assert bool(jnp.all(jnp.isfinite(out)))
    print("KERNEL_OK")
</pallas_src>

<mosaic_0001>
module attributes {stable_mosaic.version = 11 : i64} {
  func.func @mlp_kernel(%arg0: i32, %arg1: memref<1xi32, #tpu.memory_space<smem>>, %arg2: memref<128x784xbf16, #tpu.memory_space<vmem>>, %arg3: memref<784x128xbf16, #tpu.memory_space<vmem>>, %arg4: memref<784x128xbf16, #tpu.memory_space<vmem>>, %arg5: memref<128x128xbf16, #tpu.memory_space<vmem>>, %arg6: memref<128x128xbf16, #tpu.memory_space<vmem>>, %arg7: memref<128x128xbf16, #tpu.memory_space<vmem>>, %arg8: memref<128x128xbf16, #tpu.memory_space<vmem>>, %arg9: memref<8x128xf32, #tpu.memory_space<vmem>>, %arg10: memref<128x128xf32, #tpu.memory_space<vmem>>) attributes {dimension_semantics = [#tpu.dimension_semantics<parallel>], iteration_bounds = array<i64: 2>, scalar_prefetch = 0 : i64, scratch_operands = 0 : i64, tpu.core_type = #tpu.core_type<tc>, window_params = [{transform_indices = @transform_0, window_bounds = array<i64: 1>}, {transform_indices = @transform_1, window_bounds = array<i64: 128, 784>}, {pipeline_mode = #tpu.pipeline_mode<synchronous>, transform_indices = @transform_2, window_bounds = array<i64: 784, 128>}, {pipeline_mode = #tpu.pipeline_mode<synchronous>, transform_indices = @transform_3, window_bounds = array<i64: 784, 128>}, {pipeline_mode = #tpu.pipeline_mode<synchronous>, transform_indices = @transform_4, window_bounds = array<i64: 128, 128>}, {pipeline_mode = #tpu.pipeline_mode<synchronous>, transform_indices = @transform_5, window_bounds = array<i64: 128, 128>}, {pipeline_mode = #tpu.pipeline_mode<synchronous>, transform_indices = @transform_6, window_bounds = array<i64: 128, 128>}, {pipeline_mode = #tpu.pipeline_mode<synchronous>, transform_indices = @transform_7, window_bounds = array<i64: 128, 128>}, {pipeline_mode = #tpu.pipeline_mode<synchronous>, transform_indices = @transform_8, window_bounds = array<i64: 8, 128>}, {transform_indices = @transform_9, window_bounds = array<i64: 128, 128>}]} {
    %c0 = arith.constant 0 : index
    %0 = memref.load %arg1[%c0] : memref<1xi32, #tpu.memory_space<smem>>
    %c-1640531527_i32 = arith.constant -1640531527 : i32
    %1 = arith.muli %0, %c-1640531527_i32 : i32
    %c-1255572915_i32 = arith.constant -1255572915 : i32
    %2 = arith.muli %arg0, %c-1255572915_i32 : i32
    %3 = arith.xori %1, %2 : i32
    %c0_0 = arith.constant 0 : index
    %c0_1 = arith.constant 0 : index
    %4 = vector.load %arg9[%c0_0, %c0_1] : memref<8x128xf32, #tpu.memory_space<vmem>>, vector<8x128xf32>
    %c0_2 = arith.constant 0 : index
    %c0_3 = arith.constant 0 : index
    %5 = vector.load %arg2[%c0_2, %c0_3] : memref<128x784xbf16, #tpu.memory_space<vmem>>, vector<128x784xbf16>
    %6 = vector.extract_strided_slice %4 {offsets = [0, 0], sizes = [1, 128], strides = [1, 1]} : vector<8x128xf32> to vector<1x128xf32>
    %7 = vector.extract_strided_slice %4 {offsets = [1, 0], sizes = [1, 128], strides = [1, 1]} : vector<8x128xf32> to vector<1x128xf32>
    %c0_i32 = arith.constant 0 : i32
    %c1759714724_i32 = arith.constant 1759714724 : i32
    %8 = arith.muli %c0_i32, %c1759714724_i32 : i32
    %9 = arith.addi %3, %8 : i32
    %c13_i32 = arith.constant 13 : i32
    %10 = arith.shrui %9, %c13_i32 : i32
    %11 = arith.xori %9, %10 : i32
    %c16777619_i32 = arith.constant 16777619 : i32
    %12 = arith.muli %11, %c16777619_i32 : i32
    %c1_i32 = arith.constant 1 : i32
    %c1759714724_i32_4 = arith.constant 1759714724 : i32
    %13 = arith.muli %c1_i32, %c1759714724_i32_4 : i32
    %14 = arith.addi %3, %13 : i32
    %c13_i32_5 = arith.constant 13 : i32
    %15 = arith.shrui %14, %c13_i32_5 : i32
    %16 = arith.xori %14, %15 : i32
    %c16777619_i32_6 = arith.constant 16777619 : i32
    %17 = arith.muli %16, %c16777619_i32_6 : i32
    %18 = arith.extf %5 : vector<128x784xbf16> to vector<128x784xf32>
    %19 = tpu.iota {dimensions = array<i32: 0>} : vector<128x784xi32>
    %20 = tpu.iota {dimensions = array<i32: 1>} : vector<128x784xi32>
    %c-1640531535_i32 = arith.constant -1640531535 : i32
    %21 = vector.broadcast %c-1640531535_i32 : i32 to vector<128x784xi32>
    %22 = arith.muli %19, %21 : vector<128x784xi32>
    %c-2048144777_i32 = arith.constant -2048144777 : i32
    %23 = vector.broadcast %c-2048144777_i32 : i32 to vector<128x784xi32>
    %24 = arith.muli %20, %23 : vector<128x784xi32>
    %25 = arith.xori %22, %24 : vector<128x784xi32>
    %26 = vector.broadcast %12 : i32 to vector<128x784xi32>
    %27 = arith.addi %25, %26 : vector<128x784xi32>
    %c16_i32 = arith.constant 16 : i32
    %28 = vector.broadcast %c16_i32 : i32 to vector<128x784xi32>
    %29 = arith.shrui %27, %28 : vector<128x784xi32>
    %30 = arith.xori %27, %29 : vector<128x784xi32>
    %c2146121005_i32 = arith.constant 2146121005 : i32
    %31 = vector.broadcast %c2146121005_i32 : i32 to vector<128x784xi32>
    %32 = arith.muli %30, %31 : vector<128x784xi32>
    %c15_i32 = arith.constant 15 : i32
    %33 = vector.broadcast %c15_i32 : i32 to vector<128x784xi32>
    %34 = arith.shrui %32, %33 : vector<128x784xi32>
    %35 = arith.xori %32, %34 : vector<128x784xi32>
    %c-2073254261_i32 = arith.constant -2073254261 : i32
    %36 = vector.broadcast %c-2073254261_i32 : i32 to vector<128x784xi32>
    %37 = arith.muli %35, %36 : vector<128x784xi32>
    %c16_i32_7 = arith.constant 16 : i32
    %38 = vector.broadcast %c16_i32_7 : i32 to vector<128x784xi32>
    %39 = arith.shrui %37, %38 : vector<128x784xi32>
    %40 = arith.xori %37, %39 : vector<128x784xi32>
    %c9_i32 = arith.constant 9 : i32
    %41 = vector.broadcast %c9_i32 : i32 to vector<128x784xi32>
    %42 = arith.shrui %40, %41 : vector<128x784xi32>
    %c1_i32_8 = arith.constant 1 : i32
    %43 = vector.broadcast %c1_i32_8 : i32 to vector<128x784xi32>
    %44 = arith.andi %42, %43 : vector<128x784xi32>
    %c0_i32_9 = arith.constant 0 : i32
    %45 = vector.broadcast %c0_i32_9 : i32 to vector<128x784xi32>
    %46 = arith.cmpi eq, %44, %45 : vector<128x784xi32>
    %cst = arith.constant 0.000000e+00 : f32
    %47 = vector.broadcast %cst : f32 to vector<128x784xf32>
    %48 = arith.subf %47, %18 : vector<128x784xf32>
    %49 = arith.select %46, %18, %48 : vector<128x784xi1>, vector<128x784xf32>
    %50 = arith.truncf %49 : vector<128x784xf32> to vector<128x784xbf16>
    %c0_10 = arith.constant 0 : index
    %c0_11 = arith.constant 0 : index
    %51 = vector.load %arg3[%c0_10, %c0_11] : memref<784x128xbf16, #tpu.memory_space<vmem>>, vector<784x128xbf16>
    %cst_12 = arith.constant dense<0.000000e+00> : vector<128x128xf32>
    %52 = tpu.matmul %5, %51, %cst_12 {dimension_numbers = #tpu.dot_dimension_numbers<[1], [0], [0], [1], [0, 0, 1, 1], [], []>} : vector<128x784xbf16>, vector<784x128xbf16>, vector<128x128xf32> -> vector<128x128xf32>
    %53 = vector.broadcast %6 : vector<1x128xf32> to vector<128x128xf32>
    %54 = arith.addf %52, %53 : vector<128x128xf32>
    %c0_13 = arith.constant 0 : index
    %c0_14 = arith.constant 0 : index
    %55 = vector.load %arg4[%c0_13, %c0_14] : memref<784x128xbf16, #tpu.memory_space<vmem>>, vector<784x128xbf16>
    %cst_15 = arith.constant dense<0.000000e+00> : vector<128x128xf32>
    %56 = tpu.matmul %50, %55, %cst_15 {dimension_numbers = #tpu.dot_dimension_numbers<[1], [0], [0], [1], [0, 0, 1, 1], [], []>} : vector<128x784xbf16>, vector<784x128xbf16>, vector<128x128xf32> -> vector<128x128xf32>
    %57 = vector.broadcast %7 : vector<1x128xf32> to vector<128x128xf32>
    %58 = arith.addf %56, %57 : vector<128x128xf32>
    %59 = tpu.iota {dimensions = array<i32: 0>} : vector<128x128xi32>
    %60 = tpu.iota {dimensions = array<i32: 1>} : vector<128x128xi32>
    %c-1640531535_i32_16 = arith.constant -1640531535 : i32
    %61 = vector.broadcast %c-1640531535_i32_16 : i32 to vector<128x128xi32>
    %62 = arith.muli %59, %61 : vector<128x128xi32>
    %c-2048144777_i32_17 = arith.constant -2048144777 : i32
    %63 = vector.broadcast %c-2048144777_i32_17 : i32 to vector<128x128xi32>
    %64 = arith.muli %60, %63 : vector<128x128xi32>
    %65 = arith.xori %62, %64 : vector<128x128xi32>
    %66 = vector.broadcast %17 : i32 to vector<128x128xi32>
    %67 = arith.addi %65, %66 : vector<128x128xi32>
    %c16_i32_18 = arith.constant 16 : i32
    %68 = vector.broadcast %c16_i32_18 : i32 to vector<128x128xi32>
    %69 = arith.shrui %67, %68 : vector<128x128xi32>
    %70 = arith.xori %67, %69 : vector<128x128xi32>
    %c2146121005_i32_19 = arith.constant 2146121005 : i32
    %71 = vector.broadcast %c2146121005_i32_19 : i32 to vector<128x128xi32>
    %72 = arith.muli %70, %71 : vector<128x128xi32>
    %c15_i32_20 = arith.constant 15 : i32
    %73 = vector.broadcast %c15_i32_20 : i32 to vector<128x128xi32>
    %74 = arith.shrui %72, %73 : vector<128x128xi32>
    %75 = arith.xori %72, %74 : vector<128x128xi32>
    %c-2073254261_i32_21 = arith.constant -2073254261 : i32
    %76 = vector.broadcast %c-2073254261_i32_21 : i32 to vector<128x128xi32>
    %77 = arith.muli %75, %76 : vector<128x128xi32>
    %c16_i32_22 = arith.constant 16 : i32
    %78 = vector.broadcast %c16_i32_22 : i32 to vector<128x128xi32>
    %79 = arith.shrui %77, %78 : vector<128x128xi32>
    %80 = arith.xori %77, %79 : vector<128x128xi32>
    %c9_i32_23 = arith.constant 9 : i32
    %81 = vector.broadcast %c9_i32_23 : i32 to vector<128x128xi32>
    %82 = arith.shrui %80, %81 : vector<128x128xi32>
    %c1_i32_24 = arith.constant 1 : i32
    %83 = vector.broadcast %c1_i32_24 : i32 to vector<128x128xi32>
    %84 = arith.andi %82, %83 : vector<128x128xi32>
    %c0_i32_25 = arith.constant 0 : i32
    %85 = vector.broadcast %c0_i32_25 : i32 to vector<128x128xi32>
    %86 = arith.cmpi eq, %84, %85 : vector<128x128xi32>
    %cst_26 = arith.constant 0.000000e+00 : f32
    %87 = vector.broadcast %cst_26 : f32 to vector<128x128xf32>
    %88 = arith.subf %87, %58 : vector<128x128xf32>
    %89 = arith.select %86, %58, %88 : vector<128x128xi1>, vector<128x128xf32>
    %90 = arith.addf %54, %89 : vector<128x128xf32>
    %cst_27 = arith.constant 0.000000e+00 : f32
    %91 = vector.broadcast %cst_27 : f32 to vector<128x128xf32>
    %92 = arith.maximumf %90, %91 : vector<128x128xf32>
    %93 = vector.extract_strided_slice %4 {offsets = [2, 0], sizes = [1, 128], strides = [1, 1]} : vector<8x128xf32> to vector<1x128xf32>
    %94 = vector.extract_strided_slice %4 {offsets = [3, 0], sizes = [1, 128], strides = [1, 1]} : vector<8x128xf32> to vector<1x128xf32>
    %c2_i32 = arith.constant 2 : i32
    %c1759714724_i32_28 = arith.constant 1759714724 : i32
    %95 = arith.muli %c2_i32, %c1759714724_i32_28 : i32
    %96 = arith.addi %3, %95 : i32
    %c13_i32_29 = arith.constant 13 : i32
    %97 = arith.shrui %96, %c13_i32_29 : i32
    %98 = arith.xori %96, %97 : i32
    %c16777619_i32_30 = arith.constant 16777619 : i32
    %99 = arith.muli %98, %c16777619_i32_30 : i32
    %c3_i32 = arith.constant 3 : i32
    %c1759714724_i32_31 = arith.constant 1759714724 : i32
    %100 = arith.muli %c3_i32, %c1759714724_i32_31 : i32
    %101 = arith.addi %3, %100 : i32
    %c13_i32_32 = arith.constant 13 : i32
    %102 = arith.shrui %101, %c13_i32_32 : i32
    %103 = arith.xori %101, %102 : i32
    %c16777619_i32_33 = arith.constant 16777619 : i32
    %104 = arith.muli %103, %c16777619_i32_33 : i32
    %105 = tpu.iota {dimensions = array<i32: 0>} : vector<128x128xi32>
    %106 = tpu.iota {dimensions = array<i32: 1>} : vector<128x128xi32>
    %c-1640531535_i32_34 = arith.constant -1640531535 : i32
    %107 = vector.broadcast %c-1640531535_i32_34 : i32 to vector<128x128xi32>
    %108 = arith.muli %105, %107 : vector<128x128xi32>
    %c-2048144777_i32_35 = arith.constant -2048144777 : i32
    %109 = vector.broadcast %c-2048144777_i32_35 : i32 to vector<128x128xi32>
    %110 = arith.muli %106, %109 : vector<128x128xi32>
    %111 = arith.xori %108, %110 : vector<128x128xi32>
    %112 = vector.broadcast %99 : i32 to vector<128x128xi32>
    %113 = arith.addi %111, %112 : vector<128x128xi32>
    %c16_i32_36 = arith.constant 16 : i32
    %114 = vector.broadcast %c16_i32_36 : i32 to vector<128x128xi32>
    %115 = arith.shrui %113, %114 : vector<128x128xi32>
    %116 = arith.xori %113, %115 : vector<128x128xi32>
    %c2146121005_i32_37 = arith.constant 2146121005 : i32
    %117 = vector.broadcast %c2146121005_i32_37 : i32 to vector<128x128xi32>
    %118 = arith.muli %116, %117 : vector<128x128xi32>
    %c15_i32_38 = arith.constant 15 : i32
    %119 = vector.broadcast %c15_i32_38 : i32 to vector<128x128xi32>
    %120 = arith.shrui %118, %119 : vector<128x128xi32>
    %121 = arith.xori %118, %120 : vector<128x128xi32>
    %c-2073254261_i32_39 = arith.constant -2073254261 : i32
    %122 = vector.broadcast %c-2073254261_i32_39 : i32 to vector<128x128xi32>
    %123 = arith.muli %121, %122 : vector<128x128xi32>
    %c16_i32_40 = arith.constant 16 : i32
    %124 = vector.broadcast %c16_i32_40 : i32 to vector<128x128xi32>
    %125 = arith.shrui %123, %124 : vector<128x128xi32>
    %126 = arith.xori %123, %125 : vector<128x128xi32>
    %c9_i32_41 = arith.constant 9 : i32
    %127 = vector.broadcast %c9_i32_41 : i32 to vector<128x128xi32>
    %128 = arith.shrui %126, %127 : vector<128x128xi32>
    %c1_i32_42 = arith.constant 1 : i32
    %129 = vector.broadcast %c1_i32_42 : i32 to vector<128x128xi32>
    %130 = arith.andi %128, %129 : vector<128x128xi32>
    %c0_i32_43 = arith.constant 0 : i32
    %131 = vector.broadcast %c0_i32_43 : i32 to vector<128x128xi32>
    %132 = arith.cmpi eq, %130, %131 : vector<128x128xi32>
    %cst_44 = arith.constant 0.000000e+00 : f32
    %133 = vector.broadcast %cst_44 : f32 to vector<128x128xf32>
    %134 = arith.subf %133, %92 : vector<128x128xf32>
    %135 = arith.select %132, %92, %134 : vector<128x128xi1>, vector<128x128xf32>
    %136 = arith.truncf %135 : vector<128x128xf32> to vector<128x128xbf16>
    %137 = arith.truncf %92 : vector<128x128xf32> to vector<128x128xbf16>
    %c0_45 = arith.constant 0 : index
    %c0_46 = arith.constant 0 : index
    %138 = vector.load %arg5[%c0_45, %c0_46] : memref<128x128xbf16, #tpu.memory_space<vmem>>, vector<128x128xbf16>
    %cst_47 = arith.constant dense<0.000000e+00> : vector<128x128xf32>
    %139 = tpu.matmul %137, %138, %cst_47 {dimension_numbers = #tpu.dot_dimension_numbers<[1], [0], [0], [1], [0, 0, 1, 1], [], []>} : vector<128x128xbf16>, vector<128x128xbf16>, vector<128x128xf32> -> vector<128x128xf32>
    %140 = vector.broadcast %93 : vector<1x128xf32> to vector<128x128xf32>
    %141 = arith.addf %139, %140 : vector<128x128xf32>
    %c0_48 = arith.constant 0 : index
    %c0_49 = arith.constant 0 : index
    %142 = vector.load %arg6[%c0_48, %c0_49] : memref<128x128xbf16, #tpu.memory_space<vmem>>, vector<128x128xbf16>
    %cst_50 = arith.constant dense<0.000000e+00> : vector<128x128xf32>
    %143 = tpu.matmul %136, %142, %cst_50 {dimension_numbers = #tpu.dot_dimension_numbers<[1], [0], [0], [1], [0, 0, 1, 1], [], []>} : vector<128x128xbf16>, vector<128x128xbf16>, vector<128x128xf32> -> vector<128x128xf32>
    %144 = vector.broadcast %94 : vector<1x128xf32> to vector<128x128xf32>
    %145 = arith.addf %143, %144 : vector<128x128xf32>
    %146 = tpu.iota {dimensions = array<i32: 0>} : vector<128x128xi32>
    %147 = tpu.iota {dimensions = array<i32: 1>} : vector<128x128xi32>
    %c-1640531535_i32_51 = arith.constant -1640531535 : i32
    %148 = vector.broadcast %c-1640531535_i32_51 : i32 to vector<128x128xi32>
    %149 = arith.muli %146, %148 : vector<128x128xi32>
    %c-2048144777_i32_52 = arith.constant -2048144777 : i32
    %150 = vector.broadcast %c-2048144777_i32_52 : i32 to vector<128x128xi32>
    %151 = arith.muli %147, %150 : vector<128x128xi32>
    %152 = arith.xori %149, %151 : vector<128x128xi32>
    %153 = vector.broadcast %104 : i32 to vector<128x128xi32>
    %154 = arith.addi %152, %153 : vector<128x128xi32>
    %c16_i32_53 = arith.constant 16 : i32
    %155 = vector.broadcast %c16_i32_53 : i32 to vector<128x128xi32>
    %156 = arith.shrui %154, %155 : vector<128x128xi32>
    %157 = arith.xori %154, %156 : vector<128x128xi32>
    %c2146121005_i32_54 = arith.constant 2146121005 : i32
    %158 = vector.broadcast %c2146121005_i32_54 : i32 to vector<128x128xi32>
    %159 = arith.muli %157, %158 : vector<128x128xi32>
    %c15_i32_55 = arith.constant 15 : i32
    %160 = vector.broadcast %c15_i32_55 : i32 to vector<128x128xi32>
    %161 = arith.shrui %159, %160 : vector<128x128xi32>
    %162 = arith.xori %159, %161 : vector<128x128xi32>
    %c-2073254261_i32_56 = arith.constant -2073254261 : i32
    %163 = vector.broadcast %c-2073254261_i32_56 : i32 to vector<128x128xi32>
    %164 = arith.muli %162, %163 : vector<128x128xi32>
    %c16_i32_57 = arith.constant 16 : i32
    %165 = vector.broadcast %c16_i32_57 : i32 to vector<128x128xi32>
    %166 = arith.shrui %164, %165 : vector<128x128xi32>
    %167 = arith.xori %164, %166 : vector<128x128xi32>
    %c9_i32_58 = arith.constant 9 : i32
    %168 = vector.broadcast %c9_i32_58 : i32 to vector<128x128xi32>
    %169 = arith.shrui %167, %168 : vector<128x128xi32>
    %c1_i32_59 = arith.constant 1 : i32
    %170 = vector.broadcast %c1_i32_59 : i32 to vector<128x128xi32>
    %171 = arith.andi %169, %170 : vector<128x128xi32>
    %c0_i32_60 = arith.constant 0 : i32
    %172 = vector.broadcast %c0_i32_60 : i32 to vector<128x128xi32>
    %173 = arith.cmpi eq, %171, %172 : vector<128x128xi32>
    %cst_61 = arith.constant 0.000000e+00 : f32
    %174 = vector.broadcast %cst_61 : f32 to vector<128x128xf32>
    %175 = arith.subf %174, %145 : vector<128x128xf32>
    %176 = arith.select %173, %145, %175 : vector<128x128xi1>, vector<128x128xf32>
    %177 = arith.addf %141, %176 : vector<128x128xf32>
    %cst_62 = arith.constant 0.000000e+00 : f32
    %178 = vector.broadcast %cst_62 : f32 to vector<128x128xf32>
    %179 = arith.maximumf %177, %178 : vector<128x128xf32>
    %180 = vector.extract_strided_slice %4 {offsets = [4, 0], sizes = [1, 128], strides = [1, 1]} : vector<8x128xf32> to vector<1x128xf32>
    %181 = vector.extract_strided_slice %4 {offsets = [5, 0], sizes = [1, 128], strides = [1, 1]} : vector<8x128xf32> to vector<1x128xf32>
    %c4_i32 = arith.constant 4 : i32
    %c1759714724_i32_63 = arith.constant 1759714724 : i32
    %182 = arith.muli %c4_i32, %c1759714724_i32_63 : i32
    %183 = arith.addi %3, %182 : i32
    %c13_i32_64 = arith.constant 13 : i32
    %184 = arith.shrui %183, %c13_i32_64 : i32
    %185 = arith.xori %183, %184 : i32
    %c16777619_i32_65 = arith.constant 16777619 : i32
    %186 = arith.muli %185, %c16777619_i32_65 : i32
    %c5_i32 = arith.constant 5 : i32
    %c1759714724_i32_66 = arith.constant 1759714724 : i32
    %187 = arith.muli %c5_i32, %c1759714724_i32_66 : i32
    %188 = arith.addi %3, %187 : i32
    %c13_i32_67 = arith.constant 13 : i32
    %189 = arith.shrui %188, %c13_i32_67 : i32
    %190 = arith.xori %188, %189 : i32
    %c16777619_i32_68 = arith.constant 16777619 : i32
    %191 = arith.muli %190, %c16777619_i32_68 : i32
    %192 = tpu.iota {dimensions = array<i32: 0>} : vector<128x128xi32>
    %193 = tpu.iota {dimensions = array<i32: 1>} : vector<128x128xi32>
    %c-1640531535_i32_69 = arith.constant -1640531535 : i32
    %194 = vector.broadcast %c-1640531535_i32_69 : i32 to vector<128x128xi32>
    %195 = arith.muli %192, %194 : vector<128x128xi32>
    %c-2048144777_i32_70 = arith.constant -2048144777 : i32
    %196 = vector.broadcast %c-2048144777_i32_70 : i32 to vector<128x128xi32>
    %197 = arith.muli %193, %196 : vector<128x128xi32>
    %198 = arith.xori %195, %197 : vector<128x128xi32>
    %199 = vector.broadcast %186 : i32 to vector<128x128xi32>
    %200 = arith.addi %198, %199 : vector<128x128xi32>
    %c16_i32_71 = arith.constant 16 : i32
    %201 = vector.broadcast %c16_i32_71 : i32 to vector<128x128xi32>
    %202 = arith.shrui %200, %201 : vector<128x128xi32>
    %203 = arith.xori %200, %202 : vector<128x128xi32>
    %c2146121005_i32_72 = arith.constant 2146121005 : i32
    %204 = vector.broadcast %c2146121005_i32_72 : i32 to vector<128x128xi32>
    %205 = arith.muli %203, %204 : vector<128x128xi32>
    %c15_i32_73 = arith.constant 15 : i32
    %206 = vector.broadcast %c15_i32_73 : i32 to vector<128x128xi32>
    %207 = arith.shrui %205, %206 : vector<128x128xi32>
    %208 = arith.xori %205, %207 : vector<128x128xi32>
    %c-2073254261_i32_74 = arith.constant -2073254261 : i32
    %209 = vector.broadcast %c-2073254261_i32_74 : i32 to vector<128x128xi32>
    %210 = arith.muli %208, %209 : vector<128x128xi32>
    %c16_i32_75 = arith.constant 16 : i32
    %211 = vector.broadcast %c16_i32_75 : i32 to vector<128x128xi32>
    %212 = arith.shrui %210, %211 : vector<128x128xi32>
    %213 = arith.xori %210, %212 : vector<128x128xi32>
    %c9_i32_76 = arith.constant 9 : i32
    %214 = vector.broadcast %c9_i32_76 : i32 to vector<128x128xi32>
    %215 = arith.shrui %213, %214 : vector<128x128xi32>
    %c1_i32_77 = arith.constant 1 : i32
    %216 = vector.broadcast %c1_i32_77 : i32 to vector<128x128xi32>
    %217 = arith.andi %215, %216 : vector<128x128xi32>
    %c0_i32_78 = arith.constant 0 : i32
    %218 = vector.broadcast %c0_i32_78 : i32 to vector<128x128xi32>
    %219 = arith.cmpi eq, %217, %218 : vector<128x128xi32>
    %cst_79 = arith.constant 0.000000e+00 : f32
    %220 = vector.broadcast %cst_79 : f32 to vector<128x128xf32>
    %221 = arith.subf %220, %179 : vector<128x128xf32>
    %222 = arith.select %219, %179, %221 : vector<128x128xi1>, vector<128x128xf32>
    %223 = arith.truncf %222 : vector<128x128xf32> to vector<128x128xbf16>
    %224 = arith.truncf %179 : vector<128x128xf32> to vector<128x128xbf16>
    %c0_80 = arith.constant 0 : index
    %c0_81 = arith.constant 0 : index
    %225 = vector.load %arg7[%c0_80, %c0_81] : memref<128x128xbf16, #tpu.memory_space<vmem>>, vector<128x128xbf16>
    %cst_82 = arith.constant dense<0.000000e+00> : vector<128x128xf32>
    %226 = tpu.matmul %224, %225, %cst_82 {dimension_numbers = #tpu.dot_dimension_numbers<[1], [0], [0], [1], [0, 0, 1, 1], [], []>} : vector<128x128xbf16>, vector<128x128xbf16>, vector<128x128xf32> -> vector<128x128xf32>
    %227 = vector.broadcast %180 : vector<1x128xf32> to vector<128x128xf32>
    %228 = arith.addf %226, %227 : vector<128x128xf32>
    %c0_83 = arith.constant 0 : index
    %c0_84 = arith.constant 0 : index
    %229 = vector.load %arg8[%c0_83, %c0_84] : memref<128x128xbf16, #tpu.memory_space<vmem>>, vector<128x128xbf16>
    %cst_85 = arith.constant dense<0.000000e+00> : vector<128x128xf32>
    %230 = tpu.matmul %223, %229, %cst_85 {dimension_numbers = #tpu.dot_dimension_numbers<[1], [0], [0], [1], [0, 0, 1, 1], [], []>} : vector<128x128xbf16>, vector<128x128xbf16>, vector<128x128xf32> -> vector<128x128xf32>
    %231 = vector.broadcast %181 : vector<1x128xf32> to vector<128x128xf32>
    %232 = arith.addf %230, %231 : vector<128x128xf32>
    %233 = tpu.iota {dimensions = array<i32: 0>} : vector<128x128xi32>
    %234 = tpu.iota {dimensions = array<i32: 1>} : vector<128x128xi32>
    %c-1640531535_i32_86 = arith.constant -1640531535 : i32
    %235 = vector.broadcast %c-1640531535_i32_86 : i32 to vector<128x128xi32>
    %236 = arith.muli %233, %235 : vector<128x128xi32>
    %c-2048144777_i32_87 = arith.constant -2048144777 : i32
    %237 = vector.broadcast %c-2048144777_i32_87 : i32 to vector<128x128xi32>
    %238 = arith.muli %234, %237 : vector<128x128xi32>
    %239 = arith.xori %236, %238 : vector<128x128xi32>
    %240 = vector.broadcast %191 : i32 to vector<128x128xi32>
    %241 = arith.addi %239, %240 : vector<128x128xi32>
    %c16_i32_88 = arith.constant 16 : i32
    %242 = vector.broadcast %c16_i32_88 : i32 to vector<128x128xi32>
    %243 = arith.shrui %241, %242 : vector<128x128xi32>
    %244 = arith.xori %241, %243 : vector<128x128xi32>
    %c2146121005_i32_89 = arith.constant 2146121005 : i32
    %245 = vector.broadcast %c2146121005_i32_89 : i32 to vector<128x128xi32>
    %246 = arith.muli %244, %245 : vector<128x128xi32>
    %c15_i32_90 = arith.constant 15 : i32
    %247 = vector.broadcast %c15_i32_90 : i32 to vector<128x128xi32>
    %248 = arith.shrui %246, %247 : vector<128x128xi32>
    %249 = arith.xori %246, %248 : vector<128x128xi32>
    %c-2073254261_i32_91 = arith.constant -2073254261 : i32
    %250 = vector.broadcast %c-2073254261_i32_91 : i32 to vector<128x128xi32>
    %251 = arith.muli %249, %250 : vector<128x128xi32>
    %c16_i32_92 = arith.constant 16 : i32
    %252 = vector.broadcast %c16_i32_92 : i32 to vector<128x128xi32>
    %253 = arith.shrui %251, %252 : vector<128x128xi32>
    %254 = arith.xori %251, %253 : vector<128x128xi32>
    %c9_i32_93 = arith.constant 9 : i32
    %255 = vector.broadcast %c9_i32_93 : i32 to vector<128x128xi32>
    %256 = arith.shrui %254, %255 : vector<128x128xi32>
    %c1_i32_94 = arith.constant 1 : i32
    %257 = vector.broadcast %c1_i32_94 : i32 to vector<128x128xi32>
    %258 = arith.andi %256, %257 : vector<128x128xi32>
    %c0_i32_95 = arith.constant 0 : i32
    %259 = vector.broadcast %c0_i32_95 : i32 to vector<128x128xi32>
    %260 = arith.cmpi eq, %258, %259 : vector<128x128xi32>
    %cst_96 = arith.constant 0.000000e+00 : f32
    %261 = vector.broadcast %cst_96 : f32 to vector<128x128xf32>
    %262 = arith.subf %261, %232 : vector<128x128xf32>
    %263 = arith.select %260, %232, %262 : vector<128x128xi1>, vector<128x128xf32>
    %264 = arith.addf %228, %263 : vector<128x128xf32>
    %c0_97 = arith.constant 0 : index
    %c0_98 = arith.constant 0 : index
    %265 = vector.load %arg10[%c0_97, %c0_98] : memref<128x128xf32, #tpu.memory_space<vmem>>, vector<128x128xf32>
    tpu.vector_store %arg10[%c0_97, %c0_98], %264 {strides = array<i32>} : memref<128x128xf32, #tpu.memory_space<vmem>>, vector<128x128xf32>,
    return
  }
  func.func @transform_0(%arg0: i32) -> i32 {
    %c0_i32 = arith.constant 0 : i32
    %c0_i32_0 = arith.constant 0 : i32
    return %c0_i32 : i32
  }
  func.func @transform_1(%arg0: i32) -> (i32, i32) {
    %c0_i32 = arith.constant 0 : i32
    %c0_i32_0 = arith.constant 0 : i32
    return %arg0, %c0_i32 : i32, i32
  }
  func.func @transform_2(%arg0: i32) -> (i32, i32) {
    %c0_i32 = arith.constant 0 : i32
    %c0_i32_0 = arith.constant 0 : i32
    %c0_i32_1 = arith.constant 0 : i32
    return %c0_i32, %c0_i32_0 : i32, i32
  }
  func.func @transform_3(%arg0: i32) -> (i32, i32) {
    %c0_i32 = arith.constant 0 : i32
    %c0_i32_0 = arith.constant 0 : i32
    %c0_i32_1 = arith.constant 0 : i32
    return %c0_i32, %c0_i32_0 : i32, i32
  }
  func.func @transform_4(%arg0: i32) -> (i32, i32) {
    %c0_i32 = arith.constant 0 : i32
    %c0_i32_0 = arith.constant 0 : i32
    %c0_i32_1 = arith.constant 0 : i32
    return %c0_i32, %c0_i32_0 : i32, i32
  }
  func.func @transform_5(%arg0: i32) -> (i32, i32) {
    %c0_i32 = arith.constant 0 : i32
    %c0_i32_0 = arith.constant 0 : i32
    %c0_i32_1 = arith.constant 0 : i32
    return %c0_i32, %c0_i32_0 : i32, i32
  }
  func.func @transform_6(%arg0: i32) -> (i32, i32) {
    %c0_i32 = arith.constant 0 : i32
    %c0_i32_0 = arith.constant 0 : i32
    %c0_i32_1 = arith.constant 0 : i32
    return %c0_i32, %c0_i32_0 : i32, i32
  }
  func.func @transform_7(%arg0: i32) -> (i32, i32) {
    %c0_i32 = arith.constant 0 : i32
    %c0_i32_0 = arith.constant 0 : i32
    %c0_i32_1 = arith.constant 0 : i32
    return %c0_i32, %c0_i32_0 : i32, i32
  }
  func.func @transform_8(%arg0: i32) -> (i32, i32) {
    %c0_i32 = arith.constant 0 : i32
    %c0_i32_0 = arith.constant 0 : i32
    %c0_i32_1 = arith.constant 0 : i32
    return %c0_i32, %c0_i32_0 : i32, i32
  }
  func.func @transform_9(%arg0: i32) -> (i32, i32) {
    %c0_i32 = arith.constant 0 : i32
    %c0_i32_0 = arith.constant 0 : i32
    return %arg0, %c0_i32 : i32, i32
  }
}

</mosaic_0001>

<bundles_post_ra>
// kernel: tpu_custom_call.1
= control target key start
LH: loop header
LB: loop body
LE: loop exit
PB: predicated region body
PF: predicated region fallthrough
CT: control target
= control target key end

     0   :  { %s11243_s0 = inlined_call_operand.<no memory space> [shape: s32[1], index: 0, kind: input, shape index: {}]   ;;  %s11244_s1 = inlined_call_operand.vmem [shape: bf16[256,784], index: 1, kind: input, shape index: {}]   ;;  %s11245_s2 = inlined_call_operand.vmem [shape: bf16[784,128], index: 2, kind: input, shape index: {}]   ;;  %s11246_s3 = inlined_call_operand.vmem [shape: bf16[784,128], index: 3, kind: input, shape index: {}]   ;;  %s11247_s4 = inlined_call_operand.vmem [shape: bf16[128,128], index: 4, kind: input, shape index: {}]   ;;  %s11248_s5 = inlined_call_operand.vmem [shape: bf16[128,128], index: 5, kind: input, shape index: {}]   ;;  %s11249_s6 = inlined_call_operand.vmem [shape: bf16[128,128], index: 6, kind: input, shape index: {}]   ;;  %s11250_s7 = inlined_call_operand.vmem [shape: bf16[128,128], index: 7, kind: input, shape index: {}]   ;;  %s11251_s8 = inlined_call_operand.vmem [shape: f32[8,128], index: 8, kind: input, shape index: {}]   ;;  %s11252_s9 = inlined_call_operand.hbm [shape: f32[256,128], index: 9, kind: output, shape index: {}]  }
   0x1   :  { %14 = sst [smem:[#allocation2]] %s11243_s0 }
   0x2   :  { %15 = vsyncpa [#allocation4], 0 }
   0x3   :  { %17 = vsyncpa [#allocation4 + $0x1], 0  ;;  %s7437_s11 = smov 0   ;;  %s7439_s12 = smov 0  }
   0x4   :  { %s7441_s13 = smov 0   ;;  %s7443_s14 = smov 0  }
   0x5 LB: > { %s7458_s0 = sadd.s32 4294967295, %s7379_s14   ;;  %s6214_s15 = sadd.s32 4294967294, %s7379_s14   ;;  %s7379_s14 = sphi %s7443_s14, %s12093_s14   ;;  %s7375_s13 = sphi %s7441_s13, %s12092_s13   ;;  %s7371_s12 = sphi %s7439_s12, %s12091_s12   ;;  %s7367_s11 = sphi %s7437_s11, %s12090_s11  }
   0x6   : > { %s7462_s16 = sadd.s32 1, %s7379_s14   ;;  %s224_s17 = sadd.s32 1, %s7375_s13 }
   0x7   : > { %s221_s18 = ssub.s32 %s7379_s14, %s7462_s16  ;;  %p234_p0 = scmp.ne.s32.totalorder %s7375_s13, %s7371_s12 }
   0x8   : > { %p222_p1 = scmp.eq.s32.totalorder %s221_s18, 0  ;;  %p235_p2 = scmp.eq.s32.totalorder %s7458_s0, 1 }
   0x9   : > { %p240_p3 = scmp.ne.s32.totalorder %s7371_s12, %s7367_s11  ;;  %p241_p4 = scmp.eq.s32.totalorder %s6214_s15, 1 }
   0xa   : > { %s7473_s19 = scalar_select %p222_p1, %s7375_s13, %s224_s17  }
   0xb   : > { %p7475_p5 = por %p235_p2, %p234_p0  ;;  %p7479_p6 = por %p241_p4, %p240_p3 }
   0xc   : > { %p6217_p7 = scmp.ge.s32.totalorder %s7379_s14, 1  ;;  %p293_p8 = scmp.lt.s32.totalorder %s7379_s14, 3 }
   0xe   : > { %p294_p9 = pnand %p6217_p7, %p293_p8 }
  0x10   : > { %297 = sbr.rel (%p294_p9) target bundleno = 1295 (0x50f), region = 56 }
  0x17   : > { %v7101_v0 = vld [vmem:[%s11245_s2 + $0x40] sm:$0xff]   ;;  %v7105_v4 = vld [vmem:[%s11245_s2 + $0x48] sm:$0xff]   ;;  %v7109_v8 = vld [vmem:[%s11245_s2 + $0x50] sm:$0xff]   ;;  %s6219_s26 = sshll.u32 %s7458_s0, 4  ;;  %v527_v24 = vlaneseq  ;;  %s341_s29 = smul.u32 3039394381, %s7458_s0 }
  0x18   : > { %v7102_v1 = vld [vmem:[%s11245_s2 + $0xc0] sm:$0xff]   ;;  %6429 = vmatprep.subr.bf16.mxu0 %v7101_v0  ;;  %v7106_v5 = vld [vmem:[%s11245_s2 + $0xc8] sm:$0xff]   ;;  %v7110_v9 = vld [vmem:[%s11245_s2 + $0xd0] sm:$0xff]   ;;  %p331_p10 = scmp.lt.s32.totalorder %s6219_s26, 31  ;;  %vm2988_vm4 = vcmask 130048  }
  0x19   : > { %v7103_v2 = vld [vmem:[%s11245_s2] sm:$0xff]   ;;  %6493 = vmatprep.subr.bf16.mxu1 %v7102_v1  ;;  %v7107_v6 = vld [vmem:[%s11245_s2 + $0x8] sm:$0xff]   ;;  %v7111_v10 = vld [vmem:[%s11245_s2 + $0x10] sm:$0xff]   ;;  %v7570_v29 = vshrl.u32 %v527_v24, 7  ;;  %v7586_v33 = vand.u32 127, %v527_v24 }
  0x1a   : > { %v7104_v3 = vld [vmem:[%s11245_s2 + $0x80] sm:$0xff]   ;;  %6430 = vmatpush3.bf16.msra.mxu0 %v7103_v2  ;;  %v7108_v7 = vld [vmem:[%s11245_s2 + $0x88] sm:$0xff]   ;;  %v7112_v11 = vld [vmem:[%s11245_s2 + $0x90] sm:$0xff]   ;;  %s12095_s26 = smov (!%p331_p10, %s6219_s26), 31 }
  0x1b   : > { %6494 = vmatpush3.bf16.msra.mxu1 %v7104_v3  ;;  %6431 = vmatprep.subr.bf16.mxu0 %v7105_v4  ;;  %v7113_v12 = vld [vmem:[%s11245_s2 + $0x58] sm:$0xff]   ;;  %v7117_v16 = vld [vmem:[%s11245_s2 + $0x60] sm:$0xff]   ;;  %v7121_v20 = vld [vmem:[%s11245_s2 + $0x68] sm:$0xff]   ;;  %s7059_s24 = smul.u32 28, %s12095_s26  ;;  %11404 = vst [vmem:[#allocation6_spill] sm:$0xff] %v7570_v29  ;;  %v529_v35 = vadd.s32 8, %v7570_v29 }
  0x1c   : > { %6495 = vmatprep.subr.bf16.mxu1 %v7106_v5  ;;  %v7114_v13 = vld [vmem:[%s11245_s2 + $0xd8] sm:$0xff]   ;;  %v7118_v17 = vld [vmem:[%s11245_s2 + $0xe0] sm:$0xff]   ;;  %v7122_v21 = vld [vmem:[%s11245_s2 + $0xe8] sm:$0xff]   ;;  %11405 = vst [vmem:[#allocation7_spill] sm:$0xff] %v7586_v33  ;;  %v547_v38 = vadd.s32 256, %v7586_v33  ;;  %v7651_v57 = vadd.s32 128, %v7586_v33 }
  0x1d   : > { %v7115_v14 = vld [vmem:[%s11245_s2 + $0x18] sm:$0xff]   ;;  %v7119_v18 = vld [vmem:[%s11245_s2 + $0x20] sm:$0xff]   ;;  %v7123_v22 = vld [vmem:[%s11245_s2 + $0x28] sm:$0xff]   ;;  %s7581_s22 = scalar_lea.vmem %s11244_s1, %s7059_s24  ;;  %s7592_s24 = sld [smem:[#allocation2]]  ;;  %v7603_v39 = vmul.u32 2654435761, %v7570_v29 }
  0x1e   : > { %6432 = vmatpush3.bf16.msra.mxu0 %v7107_v6  ;;  %v7116_v15 = vld [vmem:[%s11245_s2 + $0x98] sm:$0xff]   ;;  %v7120_v19 = vld [vmem:[%s11245_s2 + $0xa0] sm:$0xff]   ;;  %v7124_v23 = vld [vmem:[%s11245_s2 + $0xa8] sm:$0xff]   ;;  %v7613_v43 = vmul.u32 2654435761, %v529_v35  ;;  %v7661_v60 = vadd.s32 16, %v7570_v29 }
  0x1f   : > { %6496 = vmatpush3.bf16.msra.mxu1 %v7108_v7  ;;  %6433 = vmatprep.subr.bf16.mxu0 %v7109_v8  ;;  %v7125_v25 = vld [vmem:[%s11245_s2 + $0x70] sm:$0xff]   ;;  %v7129_v30 = vld [vmem:[%s11245_s2 + $0x78] sm:$0xff]   ;;  %v7595_v36 = vld [vmem:[%s7581_s22] sm:$0xff]  ;;  %11406 = vst [vmem:[#allocation8_spill] sm:$0xff] %v7603_v39  ;;  %v7616_v44 = vmul.u32 2246822519, %v7586_v33 }
  0x20   : > { %6497 = vmatprep.subr.bf16.mxu1 %v7110_v9  ;;  %v7126_v26 = vld [vmem:[%s11245_s2 + $0xf0] sm:$0xff]   ;;  %v7130_v31 = vld [vmem:[%s11245_s2 + $0xf8] sm:$0xff]   ;;  %v7608_v41 = vld [vmem:[%s7581_s22 + $0x8] sm:$0xff]  ;;  %11409 = vst [vmem:[#allocation11_spill] sm:$0xff] %v7613_v43  ;;  %v7624_v47 = vmul.u32 2246822519, %v547_v38  ;;  %v11257_v9 = vunpack.c.l.bf16 %v7595_v36 }
  0x21   : > { %v7127_v27 = vld [vmem:[%s11245_s2 + $0x30] sm:$0xff]   ;;  %v7131_v32 = vld [vmem:[%s11245_s2 + $0x38] sm:$0xff]   ;;  %11407 = vst [vmem:[#allocation9_spill] sm:$0xff] %v7608_v41  ;;  %v7611_v42 = vld [vmem:[%s7581_s22 + $0x24] sm:$0xff]  ;;  %v7666_v61 = vxor.u32 %v7616_v44, %v7603_v39  ;;  %v7678_v1 = vadd.s32 24, %v7570_v29  ;;  %v7681_v2 = vadd.s32 32, %v7570_v29  ;;  %v7686_v3 = vxor.u32 %v7616_v44, %v7613_v43 }
  0x22   : > { %6434 = vmatpush3.bf16.msra.mxu0 %v7111_v10  ;;  %v7128_v28 = vld [vmem:[%s11245_s2 + $0xb0] sm:$0xff]   ;;  %v7132_v34 = vld [vmem:[%s11245_s2 + $0xb8] sm:$0xff]   ;;  %11408 = vst [vmem:[#allocation10_spill] sm:$0xff] %v7611_v42  ;;  %11410 = vst [vmem:[#allocation12_spill] sm:$0xff] %v7616_v44  ;;  %v6224_v49 = vcombine.high %v7608_v41, %v7611_v42  ;;  %v6223_v51 = vcombine.low %v7608_v41, %v7611_v42  ;;  %v577_v4 = vxor.u32 %v7624_v47, %v7603_v39 }
  0x23   : > { %6498 = vmatpush3.bf16.msra.mxu1 %v7112_v11  ;;  %6435 = vmatprep.subr.bf16.mxu0 %v7113_v12  ;;  %v7598_v37 = vld [vmem:[%s7581_s22 + $0x1c] sm:$0xff]  ;;  %11411 = vst [vmem:[#allocation13_spill] sm:$0xff] %v7624_v47  ;;  %s340_s23 = smul.u32 2654435769, %s7592_s24  ;;  %v7640_v53 = vld [vmem:[%s7581_s22 + $0x54] sm:$0xff]  ;;  %v7144_v59 = vld [vmem:[%s11245_s2 + $0x148] sm:$0xff]   ;;  %v584_v5 = vxor.u32 %v7624_v47, %v7613_v43 }
  0x24   : > { %6499 = vmatprep.subr.bf16.mxu1 %v7114_v13  ;;  %v6222_v40 = vcombine.high %v7595_v36, %v7598_v37  ;;  %v7137_v45 = vld [vmem:[%s11245_s2 + $0x180] sm:$0xff]   ;;  %v6221_v50 = vcombine.low %v7595_v36, %v7598_v37  ;;  %v7637_v52 = vld [vmem:[%s7581_s22 + $0x38] sm:$0xff]  ;;  %11413 = vst [vmem:[#allocation15_spill] sm:$0xff] %v7640_v53  ;;  %3142 = vmatprep.mubr.bf16.mxu1 %v6224_v49  ;;  %11415 = vst [vmem:[#allocation17_spill] sm:$0xff] %v7666_v61  ;;  %v7699_v8 = vadd.s32 40, %v7570_v29 }
  0x25   : > { %v7138_v46 = vld [vmem:[%s11245_s2 + $0x140] sm:$0xff]   ;;  %11412 = vst [vmem:[#allocation14_spill] sm:$0xff] %v7637_v52  ;;  %v6229_v55 = vcombine.high %v7637_v52, %v7640_v53  ;;  %s7653_s25 = sxor.u32 %s341_s29, %s340_s23  ;;  %v7145_v62 = vld [vmem:[%s11245_s2 + $0x108] sm:$0xff]   ;;  %v7672_v63 = vld [vmem:[%s7581_s22 + $0x70] sm:$0xff]  ;;  %v6228_v10 = vcombine.low %v7637_v52, %v7640_v53  ;;  %v7708_v12 = vadd.s32 48, %v7570_v29 }
  0x26   : > { %6436 = vmatpush3.bf16.msra.mxu0 %v7115_v14  ;;  %3045 = vmatprep.mubr.bf16.mxu0 %v6222_v40  ;;  %v7139_v48 = vld [vmem:[%s11245_s2 + $0x100] sm:$0xff]   ;;  %s408_s24 = sshrl.u32 %s7653_s25, 13  ;;  %v7675_v0 = vld [vmem:[%s7581_s22 + $0x8c] sm:$0xff]  ;;  %11416 = vst [vmem:[#allocation18_spill] sm:$0xff] %v7686_v3  ;;  %v7693_v6 = vld [vmem:[%s7581_s22 + $0x78] sm:$0xff] }
  0x27   : > { %6500 = vmatpush3.bf16.msra.mxu1 %v7116_v15  ;;  %6437 = vmatprep.subr.bf16.mxu0 %v7117_v16  ;;  %v7643_v54 = vld [vmem:[%s7581_s22 + $0x40] sm:$0xff]  ;;  %s409_s10 = sxor.u32 %s408_s24, %s7653_s25  ;;  %11417 = vst [vmem:[#allocation19_spill] sm:$0xff] %v7693_v6  ;;  %v7696_v7 = vld [vmem:[%s7581_s22 + $0x94] sm:$0xff]  ;;  %11419 = vst [vmem:[#allocation21_spill] sm:$0xff] %v7708_v12  ;;  %v6236_v14 = vcombine.high %v7672_v63, %v7675_v0  ;;  %v7715_v15 = vadd.s32 56, %v7570_v29  ;;  %v7718_v16 = vadd.s32 64, %v7570_v29 }
  0x28   : > { %6501 = vmatprep.subr.bf16.mxu1 %v7118_v17  ;;  %v7648_v56 = vld [vmem:[%s7581_s22 + $0x5c] sm:$0xff]  ;;  %11418 = vst [vmem:[#allocation20_spill] sm:$0xff] %v7696_v7  ;;  %s410_s26 = smul.u32 16777619, %s409_s10  ;;  %v7150_v11 = vld [vmem:[%s11245_s2 + $0x150] sm:$0xff]   ;;  %v7752_v40 = vld [vmem:[%s7581_s22 + $0xc4] sm:$0xff] }
  0x29   : > { %11414 = vst [vmem:[#allocation16_spill] sm:$0xff] %v7648_v56  ;;  %v6231_v58 = vcombine.high %v7643_v54, %v7648_v56  ;;  %v6230_v13 = vcombine.low %v7643_v54, %v7648_v56  ;;  %11420 = vst [vmem:[#allocation22_spill] sm:$0xff] %v7715_v15  ;;  %v7157_v49 = vld [vmem:[%s11245_s2 + $0x118] sm:$0xff]   ;;  %v7985_v12 = vld [vmem:[%s7581_s22 + $0x190] sm:$0xff]  ;;  %s411_s15 = sadd.s32 1759714724, %s7653_s25 }
  0x2a   : > { %6438 = vmatpush3.bf16.msra.mxu0 %v7119_v18  ;;  %11421 = vst [vmem:[#allocation23_spill] sm:$0xff] %v7718_v16  ;;  %v7720_v17 = vstv %s410_s26  ;;  %v6238_v18 = vcombine.high %v7693_v6, %v7696_v7  ;;  %11425 = vst [vmem:[#allocation27_spill] sm:$0xff] %v7752_v40  ;;  %v7961_v16 = vld [vmem:[%s7581_s22 + $0x188] sm:$0xff]  ;;  %s412_s17 = sshrl.u32 %s411_s15, 13  ;;  %s4466_s18 = sadd.s32 3519429448, %s7653_s25 }
  0x2b   : > { %6502 = vmatpush3.bf16.msra.mxu1 %v7120_v19  ;;  %6439 = vmatprep.subr.bf16.mxu0 %v7121_v20  ;;  %v7151_v19 = vld [vmem:[%s11245_s2 + $0x110] sm:$0xff]   ;;  %v7728_v20 = vadd.s32 72, %v7570_v29  ;;  %v690_v24 = vadd.s32 %v7720_v17, %v577_v4  ;;  %s413_s23 = sxor.u32 %s412_s17, %s411_s15  ;;  %s4467_s27 = sshrl.u32 %s4466_s18, 13 }
  0x2c   : > { %6503 = vmatprep.subr.bf16.mxu1 %v7122_v21  ;;  %v7731_v21 = vadd.s32 384, %v7586_v33  ;;  %s414_s28 = smul.u32 16777619, %s413_s23  ;;  %s4468_s24 = sxor.u32 %s4467_s27, %s4466_s18 }
  0x2d   : > { %11422 = vst [vmem:[#allocation24_spill] sm:$0xff] %v7728_v20  ;;  %v802_v35 = vshrl.u32 %v690_v24, 16  ;;  %v7957_v20 = vld [vmem:[%s7581_s22 + $0x34] sm:$0xf]  ;;  %s4469_s29 = smul.u32 16777619, %s4468_s24 }
  0x2e   : > { %6440 = vmatpush3.bf16.msra.mxu0 %v7123_v22  ;;  %11423 = vst [vmem:[#allocation25_spill] sm:$0xff] %v7731_v21  ;;  %v688_v22 = vadd.s32 %v7720_v17, %v7666_v61  ;;  %11443 = vst [vmem:[#allocation39_spill] sm:$0xff] %v7957_v20  ;;  %v11444_v21 = vunpack.c.l.bf16 %v7608_v41  ;;  %s4470_s18 = sadd.s32 984176876, %s7653_s25  ;;  %s5302_s24 = sadd.s32 2743891600, %s7653_s25 }
  0x2f   : > { %6504 = vmatpush3.bf16.msra.mxu1 %v7124_v23  ;;  %6441 = vmatprep.subr.bf16.mxu0 %v7125_v25  ;;  %v695_v23 = vadd.s32 %v7720_v17, %v7686_v3  ;;  %v697_v25 = vadd.s32 %v7720_v17, %v584_v5  ;;  %v11254_v5 = vunpack.c.l.bf16 %v7611_v42 }
  0x30   : > { %6505 = vmatprep.subr.bf16.mxu1 %v7126_v26  ;;  %v7156_v26 = vld [vmem:[%s11245_s2 + $0x158] sm:$0xff]  }
  0x31   : > { %v809_v38 = vshrl.u32 %v697_v25, 16 }
  0x32   : > { %6442 = vmatpush3.bf16.msra.mxu0 %v7127_v27  ;;  %v11256_v27 = vunpack.c.l.bf16 %v7598_v37 }
  0x33   : > { %6506 = vmatpush3.bf16.msra.mxu1 %v7128_v28  ;;  %6443 = vmatprep.subr.bf16.mxu0 %v7129_v30  ;;  %v7745_v28 = vsub.f32 0.0, %v11257_v9  ;;  %v11253_v30 = vunpack.c.l.bf16 %v7608_v41  ;;  %v7840_v9 = vmul.u32 2654435761, %v7678_v1 }
  0x34   : > { %6507 = vmatprep.subr.bf16.mxu1 %v7130_v31  ;;  %v7749_v31 = vld [vmem:[%s7581_s22 + $0xa8] sm:$0xff]  ;;  %v7772_v4 = vsub.f32 0.0, %v11256_v27 }
  0x35   : > { %11424 = vst [vmem:[#allocation26_spill] sm:$0xff] %v7749_v31 }
  0x36   : > { %6444 = vmatpush3.bf16.msra.mxu0 %v7131_v32  ;;  %v800_v32 = vshrl.u32 %v688_v22, 16 }
  0x37   : > { %6508 = vmatpush3.bf16.msra.mxu1 %v7132_v34  ;;  %6557 = vmatprep.subr.bf16.mxu0 %v7138_v46  ;;  %v807_v34 = vshrl.u32 %v695_v23, 16  ;;  %v11255_v46 = vunpack.c.h.bf16 %v7595_v36 }
  0x38   : > { %6895 = vmatprep.subr.bf16.mxu1 %v7137_v45 }
  0x39   : > { %3046 = vmatmul.mubr.bf16.vlgmr.msra.gmra.mrb[0].mxu0 %v6221_v50  ;;  %v7765_v50 = vmul.u32 2246822519, %v7651_v57  ;;  %v6235_v57 = vcombine.low %v7672_v63, %v7675_v0 }
  0x3a   : > { %3143 = vmatmul.mubr.bf16.vlgmr.msra.gmra.mrb[0].mxu1 %v6223_v51  ;;  %6558 = vmatpush3.bf16.msra.mxu0 %v7139_v48  ;;  %v7759_v48 = vld [vmem:[%s7581_s22 + $0xcc] sm:$0xff]  ;;  %v912_v51 = vxor.u32 %v800_v32, %v688_v22 }
  0x3b   : > { %6896 = vmatpush3.bf16.msra.mxu1 %v7137_v45  ;;  %3053 = vmatprep.mubr.bf16.mxu0 %v6229_v55  ;;  %v7755_v45 = vld [vmem:[%s7581_s22 + $0xb0] sm:$0xff]  ;;  %11426 = vst [vmem:[#allocation28_spill] sm:$0xff] %v7765_v50  ;;  %v919_v55 = vxor.u32 %v807_v34, %v695_v23  ;;  %v576_v34 = vxor.u32 %v7765_v50, %v7603_v39 }
  0x3c   : > { %3150 = vmatprep.mubr.bf16.mxu1 %v6231_v58  ;;  %6559 = vmatprep.subr.bf16.mxu0 %v7144_v59  ;;  %v914_v58 = vxor.u32 %v802_v35, %v690_v24  ;;  %v921_v59 = vxor.u32 %v809_v38, %v697_v25  ;;  %v6245_v23 = vcombine.high %v7755_v45, %v7759_v48  ;;  %v7163_v24 = vld [vmem:[%s11245_s2 + $0x120] sm:$0xff]   ;;  %v7168_v25 = vld [vmem:[%s11245_s2 + $0x168] sm:$0xff]  }
  0x3d   : > { %v583_v1 = vxor.u32 %v7765_v50, %v7613_v43 }
  0x3e   : > { %6560 = vmatpush3.bf16.msra.mxu0 %v7145_v62  ;;  %v7162_v62 = vld [vmem:[%s11245_s2 + $0x160] sm:$0xff]   ;;  %v1033_v22 = vmul.u32 2146121005, %v921_v59 }
  0x3f   : > { %6561 = vmatprep.subr.bf16.mxu0 %v7150_v11  ;;  %v1024_v11 = vmul.u32 2146121005, %v912_v51  ;;  %v7803_v59 = vld [vmem:[%s7581_s22 + $0xfc] sm:$0xff]  ;;  %v696_v29 = vadd.s32 %v7720_v17, %v583_v1  ;;  %v11437_v1 = vunpack.c.l.bf16 %v7598_v37 }
  0x40   : > { %v1145_v38 = vshrl.u32 %v1033_v22, 15 }
  0x41   : > { %3054 = vmatmul.mubr.bf16.gmra.mrb[4].mxu0 %v6228_v10  ;;  %v7777_v10 = vsub.f32 0.0, %v11253_v30  ;;  %v7810_v30 = vsub.f32 0.0, %v11255_v46  ;;  %v689_v46 = vadd.s32 %v7720_v17, %v576_v34 }
  0x42   : > { %3151 = vmatmul.mubr.bf16.gmra.mrb[4].mxu1 %v6230_v13  ;;  %3061 = vmatprep.mubr.bf16.mxu0 %v6236_v14  ;;  %v1031_v13 = vmul.u32 2146121005, %v919_v55  ;;  %v6237_v14 = vcombine.low %v7693_v6, %v7696_v7  ;;  %v7797_v55 = vsub.f32 0.0, %v11254_v5 }
  0x43   : > { %3158 = vmatprep.mubr.bf16.mxu1 %v6238_v18  ;;  %6562 = vmatpush3.bf16.msra.mxu0 %v7151_v19  ;;  %v6243_v18 = vcombine.high %v7749_v31, %v7752_v40  ;;  %v1026_v19 = vmul.u32 2146121005, %v914_v58  ;;  %v7800_v58 = vld [vmem:[%s7581_s22 + $0xe0] sm:$0xff] }
  0x44   : > { %6563 = vmatprep.subr.bf16.mxu0 %v7156_v26  ;;  %v1136_v26 = vshrl.u32 %v1024_v11, 15  ;;  %v1143_v32 = vshrl.u32 %v1031_v13, 15  ;;  %11427 = vst [vmem:[#allocation29_spill] sm:$0xff] %v7800_v58  ;;  %v6250_v34 = vcombine.high %v7800_v58, %v7803_v59 }
  0x45   : > { %v1138_v35 = vshrl.u32 %v1026_v19, 15 }
  0x46   : > { %v1255_v51 = vxor.u32 %v1143_v32, %v1031_v13  ;;  %v1257_v13 = vxor.u32 %v1145_v38, %v1033_v22 }
  0x47   : > { %6564 = vmatpush3.bf16.msra.mxu0 %v7157_v49  ;;  %v1248_v49 = vxor.u32 %v1136_v26, %v1024_v11  ;;  %v1250_v11 = vxor.u32 %v1138_v35, %v1026_v19  ;;  %v7814_v26 = vld [vmem:[%s7581_s22 + $0x104] sm:$0xff] }
  0x48   : > { %6565 = vmatprep.subr.bf16.mxu0 %v7162_v62  ;;  %v7806_v62 = vld [vmem:[%s7581_s22 + $0xe8] sm:$0xff]  ;;  %v1367_v5 = vmul.u32 2221713035, %v1255_v51  ;;  %v1369_v22 = vmul.u32 2221713035, %v1257_v13  ;;  %v7175_v13 = vld [vmem:[%s11245_s2 + $0x130] sm:$0xff]  }
  0x49   : > { %3062 = vmatmul.mubr.bf16.gmra.mrb[8].mxu0 %v6235_v57  ;;  %v1360_v32 = vmul.u32 2221713035, %v1248_v49  ;;  %v1362_v19 = vmul.u32 2221713035, %v1250_v11  ;;  %v6252_v11 = vcombine.high %v7806_v62, %v7814_v26 }
  0x4a   : > { %3159 = vmatmul.mubr.bf16.gmra.mrb[8].mxu1 %v6237_v14  ;;  %3069 = vmatprep.mubr.bf16.mxu0 %v6243_v18  ;;  %v7169_v14 = vld [vmem:[%s11245_s2 + $0x128] sm:$0xff]   ;;  %v7820_v18 = vmul.u32 2654435761, %v7661_v60  ;;  %v1479_v38 = vshrl.u32 %v1367_v5, 16  ;;  %v1481_v51 = vshrl.u32 %v1369_v22, 16 }
  0x4b   : > { %3166 = vmatprep.mubr.bf16.mxu1 %v6245_v23  ;;  %6566 = vmatpush3.bf16.msra.mxu0 %v7163_v24  ;;  %v6242_v23 = vcombine.low %v7749_v31, %v7752_v40  ;;  %v7174_v24 = vld [vmem:[%s11245_s2 + $0x170] sm:$0xff]   ;;  %v1472_v60 = vshrl.u32 %v1360_v32, 16  ;;  %v1474_v49 = vshrl.u32 %v1362_v19, 16 }
  0x4c   : > { %6567 = vmatprep.subr.bf16.mxu0 %v7168_v25  ;;  %v6244_v25 = vcombine.low %v7755_v45, %v7759_v48  ;;  %v1591_v45 = vxor.u32 %v1479_v38, %v1367_v5  ;;  %v801_v48 = vshrl.u32 %v689_v46, 16  ;;  %v1593_v3 = vxor.u32 %v1481_v51, %v1369_v22 }
  0x4d   : > { %v1584_v35 = vxor.u32 %v1472_v60, %v1360_v32  ;;  %v1586_v57 = vxor.u32 %v1474_v49, %v1362_v19  ;;  %v590_v32 = vxor.u32 %v7765_v50, %v7820_v18  ;;  %v7851_v60 = vld [vmem:[%s7581_s22 + $0x118] sm:$0xff]  ;;  %v11428_v22 = vunpack.c.h.bf16 %v7598_v37 }
  0x4e   : > { %v7854_v19 = vld [vmem:[%s7581_s22 + $0x134] sm:$0xff]  ;;  %v11429_v38 = vunpack.c.h.bf16 %v7637_v52  ;;  %v1705_v27 = vshrl.u32 %v1593_v3, 9  ;;  %v7879_v3 = vxor.u32 %v801_v48, %v689_v46 }
  0x4f   : > { %6568 = vmatpush3.bf16.msra.mxu0 %v7169_v14  ;;  %v7180_v14 = vld [vmem:[%s11245_s2 + $0x178] sm:$0xff]   ;;  %v1696_v5 = vshrl.u32 %v1584_v35, 9  ;;  %v1698_v51 = vshrl.u32 %v1586_v57, 9  ;;  %v6249_v35 = vcombine.low %v7800_v58, %v7803_v59  ;;  %v6257_v46 = vcombine.high %v7851_v60, %v7854_v19 }
  0x50   : > { %6569 = vmatprep.subr.bf16.mxu0 %v7174_v24  ;;  %v1703_v24 = vshrl.u32 %v1591_v45, 9  ;;  %v7862_v49 = vsub.f32 0.0, %v11429_v38  ;;  %v7181_v45 = vld [vmem:[%s11245_s2 + $0x138] sm:$0xff]   ;;  %v11492_v58 = vunpack.c.l.bf16 %v7672_v63 }
  0x51   : > { %3070 = vmatmul.mubr.bf16.gmra.mrb[12].mxu0 %v6242_v23  ;;  %v7858_v23 = vsub.f32 0.0, %v11428_v22  ;;  %v11431_v22 = vunpack.c.h.bf16 %v7640_v53  ;;  %v1808_v38 = vand.u32 1, %v1696_v5  ;;  %v703_v5 = vadd.s32 %v7720_v17, %v590_v32 }
  0x52   : > { %3167 = vmatmul.mubr.bf16.gmra.mrb[12].mxu1 %v6244_v25  ;;  %3077 = vmatprep.mubr.bf16.mxu0 %v6250_v34  ;;  %11430 = vst [vmem:[#allocation30_spill] sm:$0xff] %v7862_v49  ;;  %v7867_v25 = vld [vmem:[%s7581_s22 + $0x120] sm:$0xff]  ;;  %v1815_v57 = vand.u32 1, %v1703_v24  ;;  %v1810_v24 = vand.u32 1, %v1698_v51  ;;  %v7922_v51 = vld [vmem:[%s7581_s22 + $0x174] sm:$0xff] }
  0x53   : > { %3174 = vmatprep.mubr.bf16.mxu1 %v6252_v11  ;;  %v7870_v34 = vld [vmem:[%s7581_s22 + $0x13c] sm:$0xff]  ;;  %6570 = vmatpush3.bf16.msra.mxu0 %v7175_v13  ;;  %v7877_v61 = vsub.f32 0.0, %v11431_v22  ;;  %v11433_v11 = vunpack.c.l.bf16 %v7637_v52  ;;  %v6251_v13 = vcombine.low %v7806_v62, %v7814_v26  ;;  %v597_v22 = vxor.u32 %v7765_v50, %v7840_v9  ;;  %v8088_v49 = vld [vmem:[%s7581_s22 + $0xf8] sm:$0xf] }
  0x54   : > { %6571 = vmatprep.subr.bf16.mxu0 %v7180_v14  ;;  %vm1920_vm0 = vcmp.eq.s32.totalorder %v1808_v38, 0  ;;  %vm1927_vm1 = vcmp.eq.s32.totalorder %v1815_v57, 0  ;;  %v6259_v48 = vcombine.high %v7867_v25, %v7870_v34  ;;  %v7186_v62 = vld [vmem:[%s11246_s3 + $0x40] sm:$0xff]   ;;  %v11435_v26 = vunpack.c.l.bf16 %v7595_v36  ;;  %v7909_v57 = vld [vmem:[%s7581_s22 + $0x150] sm:$0xff]  ;;  %11466 = vst [vmem:[#allocation55_spill] sm:$0xff] %v8088_v49 }
  0x55   : > { %11432 = vst [vmem:[#allocation31_spill] sm:$0xff] %v7877_v61  ;;  %v7883_v33 = vsub.f32 0.0, %v11433_v11  ;;  %v7906_v32 = vsel %vm1927_vm1, %v11437_v1, %v7772_v4  ;;  %v1817_v38 = vand.u32 1, %v1705_v27  ;;  %v7912_v11 = vld [vmem:[%s7581_s22 + $0x16c] sm:$0xff]  ;;  %6630 = vmatprep.subr.bf16.mxu1 %v7186_v62  ;;  %v7919_v4 = vld [vmem:[%s7581_s22 + $0x158] sm:$0xff]  ;;  %v808_v1 = vshrl.u32 %v696_v29, 16 }
  0x56   : > { %v7901_v14 = vsel %vm1920_vm0, %v11435_v26, %v7745_v28  ;;  %11438 = vst [vmem:[#allocation34_spill] sm:$0xff] %v7906_v32  ;;  %v1025_v28 = vmul.u32 2146121005, %v7879_v3  ;;  %v7925_v27 = vld [vmem:[%s7581_s22 + $0x10] sm:$0xff]  ;;  %v7931_v39 = vadd.s32 %v7720_v17, %v597_v22  ;;  %v7935_v3 = vxor.u32 %v7616_v44, %v7820_v18 }
  0x57   : > { %11434 = vst [vmem:[#allocation32_spill] sm:$0xff] %v7883_v33  ;;  %11436 = vst [vmem:[#allocation33_spill] sm:$0xff] %v7901_v14  ;;  %6572 = vmatpush3.bf16.msra.mxu0 %v7181_v45  ;;  %v7188_v45 = vld [vmem:[%s11246_s3 + $0xc0] sm:$0xff]   ;;  %v7939_v62 = vld [vmem:[%s7581_s22 + $0x2c] sm:$0xff]  ;;  %v815_v26 = vshrl.u32 %v703_v5, 16  ;;  %vm1922_vm2 = vcmp.eq.s32.totalorder %v1810_v24, 0  ;;  %v6264_v43 = vcombine.high %v7909_v57, %v7912_v11  ;;  %v6263_v24 = vcombine.low %v7909_v57, %v7912_v11 }
  0x58   : > { %11439 = vst [vmem:[#allocation35_spill] sm:$0xff] %v7925_v27  ;;  %11440 = vst [vmem:[#allocation36_spill] sm:$0xff] %v7935_v3  ;;  %vm1929_vm3 = vcmp.eq.s32.totalorder %v1817_v38, 0  ;;  %6694 = vmatprep.subr.bf16.mxu0 %v7188_v45  ;;  %v1137_v45 = vshrl.u32 %v1025_v28, 15  ;;  %v822_v14 = vshrl.u32 %v7931_v39, 16  ;;  %v702_v22 = vadd.s32 %v7720_v17, %v7935_v3 }
  0x59   : > { %3078 = vmatmul.mubr.bf16.gmra.mrb[16].mxu0 %v6249_v35  ;;  %11441 = vst [vmem:[#allocation37_spill] sm:$0xff] %v7939_v62  ;;  %v7950_v35 = vld [vmem:[%s7581_s22 + $0x18] sm:$0xf]  ;;  %v7974_v32 = vsel %vm1922_vm2, %v11444_v21, %v7777_v10  ;;  %v7988_v33 = vld [vmem:[%s7581_s22 + $0x50] sm:$0xf]  ;;  %v7990_v3 = vxor.u32 %v808_v1, %v696_v29  ;;  %v6265_v21 = vcombine.low %v7919_v4, %v7922_v51  ;;  %v11452_v29 = vunpack.c.l.bf16 %v7939_v62 }
  0x5a   : > { %3175 = vmatmul.mubr.bf16.gmra.mrb[16].mxu1 %v6251_v13  ;;  %3085 = vmatprep.mubr.bf16.mxu0 %v6257_v46  ;;  %v6256_v13 = vcombine.low %v7851_v60, %v7854_v19  ;;  %v6258_v46 = vcombine.low %v7867_v25, %v7870_v34  ;;  %11442 = vst [vmem:[#allocation38_spill] sm:$0xff] %v7950_v35  ;;  %v7964_v25 = vld [vmem:[%s7581_s22 + $0x1a4] sm:$0xff]  ;;  %11445 = vst [vmem:[#allocation40_spill] sm:$0xff] %v7974_v32  ;;  %v7997_v10 = vld [vmem:[%s7581_s22 + $0x6c] sm:$0xf]  ;;  %v11454_v61 = vunpack.c.l.bf16 %v7950_v35 }
  0x5b   : > { %3182 = vmatprep.mubr.bf16.mxu1 %v6259_v48  ;;  %v11446_v48 = vunpack.c.l.bf16 %v7611_v42  ;;  %v6266_v34 = vcombine.high %v7919_v4, %v7922_v51  ;;  %11448 = vst [vmem:[#allocation42_spill] sm:$0xff] %v7988_v33  ;;  %11449 = vst [vmem:[#allocation43_spill] sm:$0xff] %v7997_v10  ;;  %v8000_v38 = vxor.u32 %v815_v26, %v703_v5  ;;  %v11450_v42 = vunpack.c.l.bf16 %v7925_v27 }
  0x5c   : > { %v8011_v1 = vsub.f32 0.0, %v11452_v29  ;;  %v8015_v52 = vsub.f32 0.0, %v11454_v61  ;;  %v11456_v5 = vunpack.c.l.bf16 %v7957_v20  ;;  %v814_v51 = vshrl.u32 %v702_v22, 16  ;;  %v8059_v29 = vld [vmem:[%s7581_s22 + $0x64] sm:$0xff] }
  0x5d   : > { %v7980_v15 = vsel %vm1929_vm3, %v11446_v48, %v7797_v55  ;;  %v11280_v55 = vunpack.c.l.bf16 %v7988_v33  ;;  %v8003_v48 = vld [vmem:[%s7581_s22 + $0x1ac] sm:$0xff]  ;;  %v8007_v41 = vsub.f32 0.0, %v11450_v42  ;;  %v8024_v42 = vxor.u32 %v7616_v44, %v7840_v9 }
  0x5e   : > { %11447 = vst [vmem:[#allocation41_spill] sm:$0xff] %v7980_v15  ;;  %11453 = vst [vmem:[#allocation45_spill] sm:$0xff] %v8011_v1  ;;  %v8020_v26 = vsub.f32 0.0, %v11456_v5  ;;  %v6271_v61 = vcombine.high %v7961_v16, %v7964_v25  ;;  %v1032_v5 = vmul.u32 2146121005, %v7990_v3  ;;  %v8033_v4 = vxor.u32 %v1137_v45, %v1025_v28 }
  0x5f   : > { %11451 = vst [vmem:[#allocation44_spill] sm:$0xff] %v8007_v41  ;;  %11455 = vst [vmem:[#allocation46_spill] sm:$0xff] %v8015_v52  ;;  %v8068_v52 = vld [vmem:[%s7581_s22 + $0xc0] sm:$0xf]  ;;  %v8071_v28 = vld [vmem:[%s7581_s22 + $0xdc] sm:$0xf]  ;;  %v8074_v3 = vxor.u32 %v822_v14, %v7931_v39 }
  0x60   : > { %11457 = vst [vmem:[#allocation47_spill] sm:$0xff] %v8020_v26  ;;  %11458 = vst [vmem:[#allocation48_spill] sm:$0xff] %v8024_v42  ;;  %v8043_v26 = vsub.f32 0.0, %v11280_v55  ;;  %v8062_v55 = vld [vmem:[%s7581_s22 + $0x88] sm:$0xf]  ;;  %v1144_v32 = vshrl.u32 %v1032_v5, 15 }
  0x61   : > { %3086 = vmatmul.mubr.bf16.gmra.mrb[20].mxu0 %v6256_v13  ;;  %v8046_v13 = vld [vmem:[%s7581_s22 + $0x48] sm:$0xff]  ;;  %11462 = vst [vmem:[#allocation51_spill] sm:$0xff] %v8062_v55  ;;  %11464 = vst [vmem:[#allocation53_spill] sm:$0xff] %v8068_v52  ;;  %v1361_v15 = vmul.u32 2221713035, %v8033_v4  ;;  %v11470_v44 = vunpack.c.l.bf16 %v8062_v55 }
  0x62   : > { %3183 = vmatmul.mubr.bf16.gmra.mrb[20].mxu1 %v6258_v46  ;;  %3093 = vmatprep.mubr.bf16.mxu0 %v6264_v43  ;;  %v6273_v46 = vcombine.high %v7985_v12, %v8003_v48  ;;  %11459 = vst [vmem:[#allocation49_spill] sm:$0xff] %v8043_v26  ;;  %v8065_v26 = vld [vmem:[%s7581_s22 + $0xa4] sm:$0xf]  ;;  %11465 = vst [vmem:[#allocation54_spill] sm:$0xff] %v8071_v28  ;;  %v8098_v1 = vld [vmem:[%s7581_s22 + $0x114] sm:$0xf]  ;;  %v11474_v43 = vunpack.c.l.bf16 %v8068_v52 }
  0x63   : > { %3190 = vmatprep.mubr.bf16.mxu1 %v6266_v34  ;;  %v11460_v34 = vunpack.c.l.bf16 %v7997_v10  ;;  %11463 = vst [vmem:[#allocation52_spill] sm:$0xff] %v8065_v26  ;;  %11467 = vst [vmem:[#allocation56_spill] sm:$0xff] %v8098_v1  ;;  %v8101_v4 = vld [vmem:[%s7581_s22 + $0x130] sm:$0xf]  ;;  %v8115_v50 = vsub.f32 0.0, %v11470_v44  ;;  %v11472_v14 = vunpack.c.l.bf16 %v8065_v26 }
  0x64   : > { %11468 = vst [vmem:[#allocation57_spill] sm:$0xff] %v8101_v4  ;;  %v8125_v41 = vsub.f32 0.0, %v11474_v43 }
  0x65   : > { %v8054_v45 = vsub.f32 0.0, %v11460_v34  ;;  %v8078_v34 = vadd.s32 %v7720_v17, %v8024_v42  ;;  %v8090_v42 = vxor.u32 %v814_v51, %v702_v22  ;;  %11471 = vst [vmem:[#allocation59_spill] sm:$0xff] %v8115_v50  ;;  %v1473_v51 = vshrl.u32 %v1361_v15, 16 }
  0x66   : > { %11475 = vst [vmem:[#allocation61_spill] sm:$0xff] %v8125_v41  ;;  %v11478_v22 = vunpack.c.l.bf16 %v8088_v49  ;;  %v11480_v41 = vunpack.c.l.bf16 %v8098_v1  ;;  %v11486_v50 = vunpack.c.l.bf16 %v8101_v4 }
  0x67   : > { %11461 = vst [vmem:[#allocation50_spill] sm:$0xff] %v8054_v45  ;;  %v8110_v45 = vld [vmem:[%s7581_s22 + $0x14c] sm:$0xf]  ;;  %v821_v39 = vshrl.u32 %v8078_v34, 16  ;;  %v1585_v31 = vxor.u32 %v1473_v51, %v1361_v15 }
  0x68   : > { %11469 = vst [vmem:[#allocation58_spill] sm:$0xff] %v8110_v45  ;;  %v8138_v43 = vsub.f32 0.0, %v11478_v22  ;;  %v8160_v22 = vsub.f32 0.0, %v11486_v50  ;;  %v8192_v50 = vld [vmem:[%s7581_s22 + $0x1a0] sm:$0xf] }
  0x69   : > { %3094 = vmatmul.mubr.bf16.gmra.mrb[24].mxu0 %v6263_v24  ;;  %v8119_v24 = vsub.f32 0.0, %v11472_v14  ;;  %v1256_v14 = vxor.u32 %v1144_v32, %v1032_v5  ;;  %v11484_v32 = vunpack.c.h.bf16 %v7672_v63  ;;  %11495 = vst [vmem:[#allocation71_spill] sm:$0xff] %v8192_v50  ;;  %v8198_v15 = vxor.u32 %v821_v39, %v8078_v34 }
  0x6a   : > { %3191 = vmatmul.mubr.bf16.gmra.mrb[24].mxu1 %v6265_v21  ;;  %3101 = vmatprep.mubr.bf16.mxu0 %v6271_v61  ;;  %v11476_v21 = vunpack.c.l.bf16 %v8071_v28  ;;  %11479 = vst [vmem:[#allocation63_spill] sm:$0xff] %v8138_v43  ;;  %11487 = vst [vmem:[#allocation67_spill] sm:$0xff] %v8160_v22  ;;  %v11488_v43 = vunpack.c.l.bf16 %v8110_v45  ;;  %v598_v34 = vxor.u32 %v7624_v47, %v7840_v9 }
  0x6b   : > { %11473 = vst [vmem:[#allocation60_spill] sm:$0xff] %v8119_v24  ;;  %3198 = vmatprep.mubr.bf16.mxu1 %v6273_v46  ;;  %v8150_v5 = vsub.f32 0.0, %v11484_v32  ;;  %v8153_v24 = vld [vmem:[%s7581_s22 + $0x80] sm:$0xff]  ;;  %v1368_v40 = vmul.u32 2221713035, %v1256_v14  ;;  %v11499_v39 = vcombine.low %v7950_v35, %v7957_v20  ;;  %v11502_v35 = vunpack.c.l.bf16 %v8192_v50 }
  0x6c   : > { %v8129_v44 = vsub.f32 0.0, %v11476_v21  ;;  %v8142_v21 = vsub.f32 0.0, %v11480_v41  ;;  %v8156_v46 = vld [vmem:[%s7581_s22 + $0x9c] sm:$0xff]  ;;  %v8164_v41 = vsub.f32 0.0, %v11488_v43 }
  0x6d   : > { %11485 = vst [vmem:[#allocation66_spill] sm:$0xff] %v8150_v5  ;;  %v8175_v5 = vsub.f32 0.0, %v11492_v58  ;;  %v11494_v58 = vcombine.low %v7961_v16, %v7964_v25  ;;  %v8195_v43 = vld [vmem:[%s7581_s22 + $0x1bc] sm:$0xf]  ;;  %v11498_v16 = vcombine.high %v7925_v27, %v7939_v62  ;;  %v8230_v25 = vld [vmem:[%s7581_s22 + $0xd4] sm:$0xff] }
  0x6e   : > { %11477 = vst [vmem:[#allocation62_spill] sm:$0xff] %v8129_v44  ;;  %11481 = vst [vmem:[#allocation64_spill] sm:$0xff] %v8142_v21  ;;  %v11482_v44 = vunpack.c.l.bf16 %v7640_v53  ;;  %v8167_v21 = vld [vmem:[%s7581_s22 + $0x168] sm:$0xf]  ;;  %v591_v53 = vxor.u32 %v7624_v47, %v7820_v18  ;;  %v8253_v47 = vsub.f32 0.0, %v11502_v35 }
  0x6f   : > { %11489 = vst [vmem:[#allocation68_spill] sm:$0xff] %v8164_v41  ;;  %11490 = vst [vmem:[#allocation69_spill] sm:$0xff] %v8167_v21  ;;  %v8181_v41 = vld [vmem:[%s7581_s22 + $0x184] sm:$0xf]  ;;  %v11303_v14 = vunpack.c.l.bf16 %v8167_v21 }
  0x70   : > { %v8146_v61 = vsub.f32 0.0, %v11482_v44  ;;  %v11491_v44 = vunpack.c.h.bf16 %v7675_v0  ;;  %11493 = vst [vmem:[#allocation70_spill] sm:$0xff] %v8181_v41  ;;  %v11304_v22 = vunpack.c.l.bf16 %v8181_v41  ;;  %11496 = vst [vmem:[#allocation72_spill] sm:$0xff] %v8195_v43 }
  0x71   : > { %3102 = vmatmul.mubr.bf16.gmra.mrb[28].mxu0 %v11494_v58  ;;  %v7190_v58 = vld [vmem:[%s11246_s3 + $0x80] sm:$0xff]   ;;  %v8241_v51 = vsub.f32 0.0, %v11303_v14  ;;  %11503 = vst [vmem:[#allocation75_spill] sm:$0xff] %v8253_v47  ;;  %v8256_v14 = vadd.s32 %v7720_v17, %v591_v53  ;;  %v11508_v47 = vunpack.c.h.bf16 %v7595_v36 }
  0x72   : > { %11483 = vst [vmem:[#allocation65_spill] sm:$0xff] %v8146_v61  ;;  %v8171_v32 = vsub.f32 0.0, %v11491_v44  ;;  %v11497_v44 = vcombine.low %v7985_v12, %v8003_v48  ;;  %3239 = vmatprep.mubr.bf16.mxu0 %v11498_v16  ;;  %v1480_v16 = vshrl.u32 %v1368_v40, 16  ;;  %v1697_v12 = vshrl.u32 %v1585_v31, 9  ;;  %v7187_v48 = vld [vmem:[%s11246_s3] sm:$0xff]  }
  0x73   : > { %11500 = vst [vmem:[#allocation73_spill] sm:$0xff] %v8241_v51  ;;  %v8245_v61 = vsub.f32 0.0, %v11304_v22  ;;  %v1039_v31 = vmul.u32 2146121005, %v8000_v38  ;;  %v8259_v51 = vadd.s32 %v7720_v17, %v598_v34  ;;  %v11504_v38 = vcombine.low %v7925_v27, %v7939_v62 }
  0x74   : > { %3199 = vmatmul.mubr.bf16.gmra.mrb[28].mxu1 %v11497_v44  ;;  %v8222_v44 = vld [vmem:[%s7581_s22 + $0xb8] sm:$0xff]  ;;  %v1592_v20 = vxor.u32 %v1480_v16, %v1368_v40  ;;  %v1809_v56 = vand.u32 1, %v1697_v12  ;;  %v7198_v40 = vld [vmem:[%s11246_s3 + $0xc8] sm:$0xff]   ;;  %v8267_v16 = vld [vmem:[%s7581_s22 + $0xf0] sm:$0xff]  ;;  %v11505_v12 = vunpack.c.l.bf16 %v8195_v43  ;;  %v1045_v62 = vmul.u32 2146121005, %v8198_v15 }
  0x75   : > { %6897 = vmatprep.mubr.msk.bf16.mxu1 %vm2988_vm4, %v11499_v39  ;;  %11501 = vst [vmem:[#allocation74_spill] sm:$0xff] %v8245_v61  ;;  %v7189_v39 = vld [vmem:[%s11246_s3 + $0x48] sm:$0xff]   ;;  %v7210_v15 = vld [vmem:[%s11246_s3 + $0x90] sm:$0xff]  }
  0x76   : > { %v1704_v22 = vshrl.u32 %v1592_v20, 9  ;;  %v8278_v61 = vld [vmem:[%s7581_s22 + $0x10c] sm:$0xff]  ;;  %vm1921_vm5 = vcmp.eq.s32.totalorder %v1809_v56, 0  ;;  %v8288_v35 = vsub.f32 0.0, %v11505_v12  ;;  %v11507_v56 = vcombine.low %v7988_v33, %v7997_v10 }
  0x77   : > { %v7191_v20 = vld [vmem:[%s11246_s3 + $0x8] sm:$0xff]   ;;  %v8308_v34 = vsel %vm1921_vm5, %v11508_v47, %v7810_v30  ;;  %v11510_v33 = vcombine.high %v8046_v13, %v8059_v29  ;;  %v1038_v30 = vmul.u32 2146121005, %v8090_v42  ;;  %v7197_v42 = vld [vmem:[%s11246_s3 + $0x10] sm:$0xff]  }
  0x78   : > { %11506 = vst [vmem:[#allocation76_spill] sm:$0xff] %v8288_v35  ;;  %v1816_v53 = vand.u32 1, %v1704_v22  ;;  %v7200_v12 = vld [vmem:[%s11246_s3 + $0x88] sm:$0xff]   ;;  %v7208_v22 = vld [vmem:[%s11246_s3 + $0xd0] sm:$0xff]   ;;  %v11509_v35 = vunpack.c.l.bf16 %v7675_v0 }
  0x79   : > { %3240 = vmatmul.mubr.bf16.vlgmr.msra.gmra.mrb[32].mxu0 %v11504_v38  ;;  %v7196_v38 = vld [vmem:[%s11246_s3 + $0x50] sm:$0xff]   ;;  %v8323_v47 = vld [vmem:[%s7581_s22 + $0x128] sm:$0xff] }
  0x7a   : > { %6695 = vmatpush3.bf16.msra.mxu0 %v7190_v58  ;;  %v1046_v58 = vmul.u32 2146121005, %v8074_v3  ;;  %v8313_v10 = vsub.f32 0.0, %v11509_v35  ;;  %3247 = vmatprep.mubr.bf16.mxu0 %v11510_v33  ;;  %vm1928_vm6 = vcmp.eq.s32.totalorder %v1816_v53, 0  ;;  %v11511_v3 = vcombine.low %v8062_v55, %v8065_v26  ;;  %v8336_v35 = vld [vmem:[%s7581_s22 + $0x144] sm:$0xff] }
  0x7b   : > { %v11512_v33 = vunpack.c.h.bf16 %v7598_v37  ;;  %6696 = vmatprep.subr.bf16.mxu0 %v7198_v40  ;;  %v8353_v26 = vld [vmem:[%s7581_s22 + $0x160] sm:$0xff]  ;;  %v7201_v37 = vld [vmem:[%s11246_s3 + $0x18] sm:$0xff]  }
  0x7c   : > { %6898 = vmatmul.mubr.msk.bf16.vlgmr.msra.gmra.mrb[32].mxu1 %vm2988_vm4, %v11507_v56  ;;  %v1151_v56 = vshrl.u32 %v1039_v31, 15  ;;  %v1158_v53 = vshrl.u32 %v1046_v58, 15 }
  0x7d   : > { %6631 = vmatpush3.bf16.msra.mxu1 %v7187_v48  ;;  %6901 = vmatprep.mubr.msk.bf16.mxu1 %vm2988_vm4, %v11511_v3  ;;  %v8333_v48 = vsel %vm1928_vm6, %v11512_v33, %v7858_v23  ;;  %v1150_v3 = vshrl.u32 %v1038_v30, 15  ;;  %v7199_v33 = vld [vmem:[%s11246_s3 + $0x58] sm:$0xff]  }
  0x7e   : > { %6632 = vmatprep.subr.bf16.mxu1 %v7189_v39  ;;  %v1263_v36 = vxor.u32 %v1151_v56, %v1039_v31  ;;  %6697 = vmatpush3.bf16.msra.mxu0 %v7200_v12  ;;  %v1270_v31 = vxor.u32 %v1158_v53, %v1046_v58  ;;  %v1157_v56 = vshrl.u32 %v1045_v62, 15  ;;  %v7218_v23 = vld [vmem:[%s11246_s3 + $0xd8] sm:$0xff]  }
  0x7f   : > { %6698 = vmatprep.subr.bf16.mxu0 %v7208_v22  ;;  %v1262_v58 = vxor.u32 %v1150_v3, %v1038_v30  ;;  %v8365_v39 = vld [vmem:[%s7581_s22 + $0x17c] sm:$0xff]  ;;  %v11514_v22 = vcombine.low %v8046_v13, %v8059_v29  ;;  %v8379_v3 = vmul.u32 2654435761, %v7699_v8  ;;  %v11517_v29 = vcombine.high %v8153_v24, %v8156_v46 }
  0x80   : > { %v1375_v40 = vmul.u32 2221713035, %v1263_v36  ;;  %v1382_v53 = vmul.u32 2221713035, %v1270_v31  ;;  %v1269_v27 = vxor.u32 %v1157_v56, %v1045_v62  ;;  %v7206_v13 = vld [vmem:[%s11246_s3 + $0x60] sm:$0xff]   ;;  %v11519_v36 = vcombine.low %v8088_v49, %v8098_v1 }
  0x81   : > { %6633 = vmatpush3.bf16.msra.mxu1 %v7191_v20  ;;  %v8368_v20 = vmul.u32 2654435761, %v7681_v2  ;;  %3248 = vmatmul.mubr.bf16.gmra.mrb[36].mxu0 %v11514_v22  ;;  %v1374_v30 = vmul.u32 2221713035, %v1262_v58  ;;  %11515 = vst [vmem:[#allocation78_spill] sm:$0xff] %v8379_v3  ;;  %v11516_v2 = vcombine.low %v8068_v52, %v8071_v28  ;;  %v11518_v58 = vld [vmem:[#allocation28_spill] sm:$0xff] }
  0x82   : > { %6634 = vmatprep.subr.bf16.mxu1 %v7196_v38  ;;  %v1487_v55 = vshrl.u32 %v1375_v40, 16  ;;  %3255 = vmatprep.mubr.bf16.mxu0 %v11517_v29  ;;  %v1494_v31 = vshrl.u32 %v1382_v53, 16  ;;  %v1381_v8 = vmul.u32 2221713035, %v1269_v27  ;;  %v611_v62 = vxor.u32 %v11518_v58, %v8379_v3  ;;  %v7226_v1 = vld [vmem:[%s11246_s3 + $0xe0] sm:$0xff]  }
  0x83   : > { %11513 = vst [vmem:[#allocation77_spill] sm:$0xff] %v8368_v20  ;;  %v604_v22 = vxor.u32 %v11518_v58, %v8368_v20  ;;  %v1486_v29 = vshrl.u32 %v1374_v30, 16  ;;  %6699 = vmatpush3.bf16.msra.mxu0 %v7210_v15  ;;  %v7207_v15 = vld [vmem:[%s11246_s3 + $0x20] sm:$0xff]  }
  0x84   : > { %6902 = vmatmul.mubr.msk.bf16.gmra.mrb[36].mxu1 %vm2988_vm4, %v11516_v2  ;;  %v1599_v56 = vxor.u32 %v1487_v55, %v1375_v40  ;;  %v7220_v2 = vld [vmem:[%s11246_s3 + $0x98] sm:$0xff]   ;;  %v11520_v55 = vld [vmem:[#allocation12_spill] sm:$0xff]  ;;  %v1606_v40 = vxor.u32 %v1494_v31, %v1382_v53  ;;  %v1493_v38 = vshrl.u32 %v1381_v8, 16  ;;  %6700 = vmatprep.subr.bf16.mxu0 %v7218_v23  ;;  %v724_v28 = vadd.s32 %v7720_v17, %v611_v62  ;;  %v7209_v23 = vld [vmem:[%s11246_s3 + $0x68] sm:$0xff]  }
  0x85   : > { %6635 = vmatpush3.bf16.msra.mxu1 %v7197_v42  ;;  %6905 = vmatprep.mubr.msk.bf16.mxu1 %vm2988_vm4, %v11519_v36  ;;  %v8406_v27 = vxor.u32 %v11520_v55, %v8368_v20  ;;  %v8410_v42 = vxor.u32 %v11520_v55, %v8379_v3  ;;  %v717_v12 = vadd.s32 %v7720_v17, %v604_v22  ;;  %v7227_v53 = vld [vmem:[%s11246_s3 + $0xa0] sm:$0xff]   ;;  %v7232_v3 = vld [vmem:[%s11246_s3 + $0xe8] sm:$0xff]  }
  0x86   : > { %6636 = vmatprep.subr.bf16.mxu1 %v7199_v33  ;;  %v1711_v36 = vshrl.u32 %v1599_v56, 9  ;;  %v1598_v49 = vxor.u32 %v1486_v29, %v1374_v30  ;;  %v1718_v30 = vshrl.u32 %v1606_v40, 9  ;;  %v1605_v31 = vxor.u32 %v1493_v38, %v1381_v8 }
  0x87   : > { %11521 = vst [vmem:[#allocation28_spill] sm:$0xff] %v8406_v27  ;;  %11522 = vst [vmem:[#allocation12_spill] sm:$0xff] %v8410_v42  ;;  %v716_v52 = vadd.s32 %v7720_v17, %v8406_v27  ;;  %v723_v33 = vadd.s32 %v7720_v17, %v8410_v42  ;;  %v829_v56 = vshrl.u32 %v717_v12, 16  ;;  %v836_v29 = vshrl.u32 %v724_v28, 16  ;;  %6701 = vmatpush3.bf16.msra.mxu0 %v7220_v2 }
  0x88   : > { %v1823_v62 = vand.u32 1, %v1711_v36  ;;  %v1710_v22 = vshrl.u32 %v1598_v49, 9  ;;  %v1830_v7 = vand.u32 1, %v1718_v30  ;;  %v1717_v6 = vshrl.u32 %v1605_v31, 9  ;;  %v7211_v49 = vld [vmem:[%s11246_s3 + $0x28] sm:$0xff]   ;;  %6702 = vmatprep.subr.bf16.mxu0 %v7226_v1  ;;  %v7216_v1 = vld [vmem:[%s11246_s3 + $0x70] sm:$0xff]  }
  0x89   : > { %6637 = vmatpush3.bf16.msra.mxu1 %v7201_v37  ;;  %v828_v42 = vshrl.u32 %v716_v52, 16  ;;  %v835_v27 = vshrl.u32 %v723_v33, 16  ;;  %v941_v20 = vxor.u32 %v829_v56, %v717_v12  ;;  %v11523_v38 = vcombine.low %v8153_v24, %v8156_v46  ;;  %v11524_v37 = vld [vmem:[#allocation30_spill] sm:$0xff]  ;;  %v11530_v56 = vld [vmem:[#allocation31_spill] sm:$0xff] }
  0x8a   : > { %6638 = vmatprep.subr.bf16.mxu1 %v7206_v13  ;;  %vm1935_vm7 = vcmp.eq.s32.totalorder %v1823_v62, 0  ;;  %v11525_v13 = vld [vmem:[#allocation14_spill] sm:$0xff]  ;;  %v1822_v40 = vand.u32 1, %v1710_v22  ;;  %v948_v36 = vxor.u32 %v836_v29, %v724_v28  ;;  %v8445_v62 = vld [vmem:[%s7581_s22 + $0x198] sm:$0xff]  ;;  %v11527_v12 = vcombine.low %v8101_v4, %v8110_v45  ;;  %v11531_v22 = vld [vmem:[#allocation15_spill] sm:$0xff] }
  0x8b   : > { %3256 = vmatmul.mubr.bf16.gmra.mrb[40].mxu0 %v11523_v38  ;;  %v11526_v8 = vunpack.c.h.bf16 %v11525_v13  ;;  %v940_v30 = vxor.u32 %v828_v42, %v716_v52  ;;  %v11528_v24 = vcombine.high %v8222_v44, %v8230_v25  ;;  %vm1942_vm8 = vcmp.eq.s32.totalorder %v1830_v7, 0  ;;  %v7233_v52 = vld [vmem:[%s11246_s3 + $0xa8] sm:$0xff]  }
  0x8c   : > { %6906 = vmatmul.mubr.msk.bf16.gmra.mrb[40].mxu1 %vm2988_vm4, %v11527_v12  ;;  %v1829_v46 = vand.u32 1, %v1717_v6  ;;  %v1053_v28 = vmul.u32 2146121005, %v941_v20  ;;  %v947_v42 = vxor.u32 %v835_v27, %v723_v33  ;;  %v11529_v31 = vcombine.low %v8167_v21, %v8181_v41  ;;  %v8473_v20 = vld [vmem:[%s7581_s22 + $0x1b4] sm:$0xff]  ;;  %6703 = vmatpush3.bf16.msra.mxu0 %v7227_v53 }
  0x8d   : > { %v8442_v2 = vsel %vm1935_vm7, %v11526_v8, %v11524_v37  ;;  %3263 = vmatprep.mubr.bf16.mxu0 %v11528_v24  ;;  %6639 = vmatpush3.bf16.msra.mxu1 %v7207_v15  ;;  %v11532_v29 = vunpack.c.h.bf16 %v11531_v22  ;;  %vm1934_vm9 = vcmp.eq.s32.totalorder %v1822_v40, 0  ;;  %v1060_v7 = vmul.u32 2146121005, %v948_v36  ;;  %v7238_v37 = vld [vmem:[%s11246_s3 + $0xf0] sm:$0xff]  }
  0x8e   : > { %6909 = vmatprep.mubr.msk.bf16.mxu1 %vm2988_vm4, %v11529_v31  ;;  %v1052_v6 = vmul.u32 2146121005, %v940_v30  ;;  %6640 = vmatprep.subr.bf16.mxu1 %v7209_v23  ;;  %vm1941_vm10 = vcmp.eq.s32.totalorder %v1829_v46, 0  ;;  %v11533_v33 = vld [vmem:[#allocation32_spill] sm:$0xff]  ;;  %v11534_v15 = vunpack.c.l.bf16 %v11525_v13  ;;  %v1165_v40 = vshrl.u32 %v1053_v28, 15  ;;  %v11535_v30 = vld [vmem:[#allocation65_spill] sm:$0xff] }
  0x8f   : > { %v8467_v38 = vsel %vm1942_vm8, %v11532_v29, %v11530_v56  ;;  %v7217_v36 = vld [vmem:[%s11246_s3 + $0x30] sm:$0xff]   ;;  %v11536_v12 = vunpack.c.l.bf16 %v11531_v22  ;;  %6704 = vmatprep.subr.bf16.mxu0 %v7232_v3  ;;  %v1172_v23 = vshrl.u32 %v1060_v7, 15  ;;  %v1059_v53 = vmul.u32 2146121005, %v947_v42  ;;  %v7219_v13 = vld [vmem:[%s11246_s3 + $0x78] sm:$0xff]   ;;  %v11540_v46 = vld [vmem:[#allocation26_spill] sm:$0xff] }
  0x90   : > { %v8480_v8 = vsel %vm1934_vm9, %v11534_v15, %v11533_v33  ;;  %v1164_v31 = vshrl.u32 %v1052_v6, 15  ;;  %v1277_v56 = vxor.u32 %v1165_v40, %v1053_v28  ;;  %v7239_v29 = vld [vmem:[%s11246_s3 + $0xb0] sm:$0xff]   ;;  %v11537_v33 = vld [vmem:[#allocation21_spill] sm:$0xff]  ;;  %6705 = vmatpush3.bf16.msra.mxu0 %v7233_v52 }
  0x91   : > { %v8488_v24 = vsel %vm1941_vm10, %v11536_v12, %v11535_v30  ;;  %v8501_v3 = vmul.u32 2654435761, %v11537_v33  ;;  %6641 = vmatpush3.bf16.msra.mxu1 %v7211_v49  ;;  %v1284_v42 = vxor.u32 %v1172_v23, %v1060_v7  ;;  %v1171_v15 = vshrl.u32 %v1059_v53, 15  ;;  %v11538_v12 = vld [vmem:[#allocation22_spill] sm:$0xff]  ;;  %v7244_v28 = vld [vmem:[%s11246_s3 + $0xf8] sm:$0xff]   ;;  %v11542_v49 = vld [vmem:[#allocation27_spill] sm:$0xff]  ;;  %6706 = vmatprep.subr.bf16.mxu0 %v7238_v37 }
  0x92   : > { %v1276_v30 = vxor.u32 %v1164_v31, %v1052_v6  ;;  %v8504_v27 = vmul.u32 2654435761, %v11538_v12  ;;  %6642 = vmatprep.subr.bf16.mxu1 %v7216_v1  ;;  %v1389_v40 = vmul.u32 2221713035, %v1277_v56  ;;  %v11541_v33 = vunpack.c.h.bf16 %v11540_v46  ;;  %v7221_v1 = vld [vmem:[%s11246_s3 + $0x38] sm:$0xff]  }
  0x93   : > { %v618_v22 = vxor.u32 %v11518_v58, %v8501_v3  ;;  %v11543_v7 = vunpack.c.h.bf16 %v11542_v49  ;;  %v11544_v23 = vcombine.low %v8222_v44, %v8230_v25  ;;  %v1396_v52 = vmul.u32 2221713035, %v1284_v42  ;;  %v7224_v44 = vld [vmem:[%s11246_s3 + $0x140] sm:$0xff]  }
  0x94   : > { %11539 = vst [vmem:[#allocation30_spill] sm:$0xff] %v8504_v27  ;;  %v8513_v41 = vsub.f32 0.0, %v11541_v33  ;;  %v1283_v31 = vxor.u32 %v1171_v15, %v1059_v53  ;;  %v1388_v56 = vmul.u32 2221713035, %v1276_v30  ;;  %v625_v12 = vxor.u32 %v11518_v58, %v8504_v27  ;;  %6707 = vmatpush3.bf16.msra.mxu0 %v7239_v29 }
  0x95   : > { %v8517_v6 = vsub.f32 0.0, %v11543_v7  ;;  %3264 = vmatmul.mubr.bf16.gmra.mrb[44].mxu0 %v11544_v23  ;;  %v11545_v33 = vcombine.low %v8192_v50, %v8195_v43  ;;  %v11546_v25 = vcombine.high %v8267_v16, %v8278_v61  ;;  %v1501_v42 = vshrl.u32 %v1389_v40, 16  ;;  %6643 = vmatpush3.bf16.msra.mxu1 %v7217_v36 }
  0x96   : > { %v731_v53 = vadd.s32 %v7720_v17, %v618_v22  ;;  %v8542_v15 = vxor.u32 %v11520_v55, %v8501_v3  ;;  %v11548_v30 = vpack.c.bf16 %v8333_v48, %v8308_v34  ;;  %v1508_v7 = vshrl.u32 %v1396_v52, 16  ;;  %6644 = vmatprep.subr.bf16.mxu1 %v7219_v13  ;;  %v7245_v34 = vld [vmem:[%s11246_s3 + $0xb8] sm:$0xff]   ;;  %v7225_v48 = vld [vmem:[%s11246_s3 + $0x100] sm:$0xff]   ;;  %6708 = vmatprep.subr.bf16.mxu0 %v7244_v28  ;;  %v7230_v28 = vld [vmem:[%s11246_s3 + $0x148] sm:$0xff]  }
  0x97   : > { %6910 = vmatmul.mubr.msk.bf16.gmra.mrb[44].mxu1 %vm2988_vm4, %v11545_v33  ;;  %3271 = vmatprep.mubr.bf16.mxu0 %v11546_v25  ;;  %v1395_v23 = vmul.u32 2221713035, %v1283_v31  ;;  %v1500_v33 = vshrl.u32 %v1388_v56, 16  ;;  %v738_v25 = vadd.s32 %v7720_v17, %v625_v12  ;;  %v1613_v43 = vxor.u32 %v1501_v42, %v1389_v40  ;;  %v8563_v12 = vld [vmem:[%s11246_s3 + $0x180] sm:$0xff]  }
  0x98   : > { %11547 = vst [vmem:[#allocation14_spill] sm:$0xff] %v8542_v15  ;;  %3853 = vmatprep.mubr.bf16.mxu1 %v11548_v30  ;;  %v843_v22 = vshrl.u32 %v731_v53, 16  ;;  %v8550_v37 = vxor.u32 %v11520_v55, %v8504_v27  ;;  %v730_v36 = vadd.s32 %v7720_v17, %v8542_v15  ;;  %v1620_v31 = vxor.u32 %v1508_v7, %v1396_v52 }
  0x99   : > { %v1507_v13 = vshrl.u32 %v1395_v23, 16  ;;  %v1612_v40 = vxor.u32 %v1500_v33, %v1388_v56  ;;  %v850_v29 = vshrl.u32 %v738_v25, 16  ;;  %v1725_v42 = vshrl.u32 %v1613_v43, 9  ;;  %6645 = vmatpush3.bf16.msra.mxu1 %v7221_v1  ;;  %6709 = vmatpush3.bf16.msra.mxu0 %v7245_v34 }
  0x9a   : > { %11549 = vst [vmem:[#allocation31_spill] sm:$0xff] %v8550_v37  ;;  %v955_v30 = vxor.u32 %v843_v22, %v731_v53  ;;  %v737_v15 = vadd.s32 %v7720_v17, %v8550_v37  ;;  %v842_v50 = vshrl.u32 %v730_v36, 16  ;;  %v1732_v21 = vshrl.u32 %v1620_v31, 9  ;;  %6758 = vmatprep.subr.bf16.mxu1 %v7224_v44  ;;  %6913 = vmatprep.subr.bf16.mxu0 %v8563_v12  ;;  %v11551_v44 = vld [vmem:[#allocation34_spill] sm:$0xff] }
  0x9b   : > { %v1619_v45 = vxor.u32 %v1507_v13, %v1395_v23  ;;  %v1724_v4 = vshrl.u32 %v1612_v40, 9  ;;  %v962_v52 = vxor.u32 %v850_v29, %v738_v25  ;;  %v1837_v56 = vand.u32 1, %v1725_v42  ;;  %v11552_v25 = vld [vmem:[#allocation33_spill] sm:$0xff] }
  0x9c   : > { %v1067_v7 = vmul.u32 2146121005, %v955_v30  ;;  %v849_v33 = vshrl.u32 %v737_v15, 16  ;;  %v954_v27 = vxor.u32 %v842_v50, %v730_v36  ;;  %v11550_v43 = vcombine.low %v8267_v16, %v8278_v61  ;;  %v11556_v61 = vld [vmem:[#allocation66_spill] sm:$0xff] }
  0x9d   : > { %v1844_v53 = vand.u32 1, %v1732_v21  ;;  %v1731_v1 = vshrl.u32 %v1619_v45, 9  ;;  %v1836_v22 = vand.u32 1, %v1724_v4  ;;  %v1074_v23 = vmul.u32 2146121005, %v962_v52  ;;  %v7231_v4 = vld [vmem:[%s11246_s3 + $0x108] sm:$0xff]  }
  0x9e   : > { %3272 = vmatmul.mubr.bf16.gmra.mrb[48].mxu0 %v11550_v43  ;;  %v11553_v31 = vpack.c.bf16 %v11551_v44, %v11552_v25  ;;  %v11554_v13 = vcombine.high %v8323_v47, %v8336_v35  ;;  %vm1949_vm11 = vcmp.eq.s32.totalorder %v1837_v56, 0  ;;  %v1179_v50 = vshrl.u32 %v1067_v7, 15  ;;  %v7237_v52 = vld [vmem:[%s11246_s3 + $0x110] sm:$0xff]  }
  0x9f   : > { %v961_v36 = vxor.u32 %v849_v33, %v737_v15  ;;  %v1066_v34 = vmul.u32 2146121005, %v954_v27  ;;  %v11555_v45 = vpack.c.bf16 %v8467_v38, %v8442_v2  ;;  %vm1956_vm12 = vcmp.eq.s32.totalorder %v1844_v53, 0 }
  0xa0   : > { %3854 = vmatmul.mubr.bf16.vlgmr.msra.gmra.mrb[48].mxu1 %v11553_v31  ;;  %3279 = vmatprep.mubr.bf16.mxu0 %v11554_v13  ;;  %v11557_v21 = vunpack.c.h.bf16 %v7672_v63  ;;  %v1843_v40 = vand.u32 1, %v1731_v1  ;;  %vm1948_vm13 = vcmp.eq.s32.totalorder %v1836_v22, 0  ;;  %v11558_v27 = vunpack.c.h.bf16 %v7675_v0  ;;  %v11563_v31 = vld [vmem:[#allocation23_spill] sm:$0xff] }
  0xa1   : > { %6759 = vmatpush3.bf16.msra.mxu1 %v7225_v48  ;;  %3861 = vmatprep.mubr.bf16.mxu1 %v11555_v45  ;;  %v11559_v2 = vunpack.c.l.bf16 %v7672_v63  ;;  %v7236_v48 = vld [vmem:[%s11246_s3 + $0x150] sm:$0xff]   ;;  %v1186_v29 = vshrl.u32 %v1074_v23, 15  ;;  %v1291_v42 = vxor.u32 %v1179_v50, %v1067_v7  ;;  %v1178_v56 = vshrl.u32 %v1066_v34, 15  ;;  %v7242_v7 = vld [vmem:[%s11246_s3 + $0x158] sm:$0xff]  }
  0xa2   : > { %v2173_v16 = vsel %vm1949_vm11, %v11557_v21, %v11556_v61  ;;  %6760 = vmatprep.subr.bf16.mxu1 %v7230_v28  ;;  %v2180_v15 = vsel %vm1956_vm12, %v11558_v27, %v8171_v32  ;;  %vm1955_vm14 = vcmp.eq.s32.totalorder %v1843_v40, 0  ;;  %v1073_v28 = vmul.u32 2146121005, %v961_v36  ;;  %v11564_v50 = vld [vmem:[#allocation29_spill] sm:$0xff]  ;;  %v11567_v21 = vld [vmem:[#allocation24_spill] sm:$0xff] }
  0xa3   : > { %v8595_v38 = vsel %vm1948_vm13, %v11559_v2, %v8175_v5  ;;  %v2271_v30 = vpack.c.bf16 %v2180_v15, %v2173_v16  ;;  %v11560_v32 = vunpack.c.l.bf16 %v7675_v0  ;;  %v1298_v5 = vxor.u32 %v1186_v29, %v1074_v23  ;;  %v11571_v29 = vld [vmem:[#allocation25_spill] sm:$0xff] }
  0xa4   : > { %v1403_v33 = vmul.u32 2221713035, %v1291_v42  ;;  %v11561_v43 = vunpack.c.l.bf16 %v11540_v46  ;;  %v1185_v22 = vshrl.u32 %v1073_v28, 15  ;;  %v1290_v44 = vxor.u32 %v1178_v56, %v1066_v34  ;;  %v11572_v56 = vld [vmem:[#allocation9_spill] sm:$0xff] }
  0xa5   : > { %v8606_v63 = vsel %vm1955_vm14, %v11560_v32, %v8313_v10  ;;  %6761 = vmatpush3.bf16.msra.mxu1 %v7231_v4  ;;  %v11562_v0 = vunpack.c.l.bf16 %v11542_v49  ;;  %v1410_v23 = vmul.u32 2221713035, %v1298_v5  ;;  %v8622_v13 = vmul.u32 2654435761, %v11563_v31  ;;  %v11575_v31 = vld [vmem:[#allocation11_spill] sm:$0xff] }
  0xa6   : > { %v8610_v53 = vsub.f32 0.0, %v11561_v43  ;;  %v2270_v1 = vpack.c.bf16 %v8606_v63, %v8595_v38  ;;  %6762 = vmatprep.subr.bf16.mxu1 %v7236_v48  ;;  %v1515_v25 = vshrl.u32 %v1403_v33, 16  ;;  %v11565_v36 = vunpack.c.h.bf16 %v11564_v50 }
  0xa7   : > { %v8619_v10 = vsub.f32 0.0, %v11562_v0  ;;  %v11566_v4 = vcombine.low %v8323_v47, %v8336_v35  ;;  %v1297_v61 = vxor.u32 %v1185_v22, %v1073_v28  ;;  %v1402_v34 = vmul.u32 2221713035, %v1290_v44  ;;  %v7243_v35 = vld [vmem:[%s11246_s3 + $0x118] sm:$0xff]   ;;  %v11574_v22 = vld [vmem:[#allocation8_spill] sm:$0xff] }
  0xa8   : > { %v8626_v45 = vsub.f32 0.0, %v11565_v36  ;;  %v8632_v16 = vmul.u32 2654435761, %v11567_v21  ;;  %v11568_v40 = vunpack.c.h.bf16 %v7803_v59  ;;  %v11569_v15 = vpack.c.bf16 %v8488_v24, %v8480_v8 }
  0xa9   : > { %3280 = vmatmul.mubr.bf16.gmra.mrb[52].mxu0 %v11566_v4  ;;  %v11570_v2 = vcombine.high %v8353_v26, %v8365_v39  ;;  %v1522_v38 = vshrl.u32 %v1410_v23, 16  ;;  %v1627_v47 = vxor.u32 %v1515_v25, %v1403_v33  ;;  %v632_v48 = vxor.u32 %v11518_v58, %v8622_v13  ;;  %6763 = vmatpush3.bf16.msra.mxu1 %v7237_v52 }
  0xaa   : > { %v8636_v27 = vsub.f32 0.0, %v11568_v40  ;;  %3862 = vmatmul.mubr.bf16.gmra.mrb[52].mxu1 %v11569_v15  ;;  %v8650_v42 = vmul.u32 2246822519, %v11571_v29  ;;  %v1409_v8 = vmul.u32 2221713035, %v1297_v61  ;;  %v1514_v24 = vshrl.u32 %v1402_v34, 16  ;;  %6764 = vmatprep.subr.bf16.mxu1 %v7242_v7 }
  0xab   : > { %3287 = vmatprep.mubr.bf16.mxu0 %v11570_v2  ;;  %3869 = vmatprep.mubr.bf16.mxu1 %v2271_v30  ;;  %v639_v28 = vxor.u32 %v11518_v58, %v8632_v16  ;;  %v11573_v32 = vunpack.c.h.bf16 %v11572_v56  ;;  %v1634_v5 = vxor.u32 %v1522_v38, %v1410_v23  ;;  %v1739_v33 = vshrl.u32 %v1627_v47, 9  ;;  %v7246_v30 = vld [vmem:[%s11246_s3 + $0x160] sm:$0xff]   ;;  %v7249_v29 = vld [vmem:[%s11246_s3 + $0x168] sm:$0xff]  }
  0xac   : > { %v745_v43 = vadd.s32 %v7720_v17, %v632_v48  ;;  %v578_v44 = vxor.u32 %v8650_v42, %v11574_v22  ;;  %v1521_v52 = vshrl.u32 %v1409_v8, 16  ;;  %v1626_v0 = vxor.u32 %v1514_v24, %v1402_v34  ;;  %v7247_v34 = vld [vmem:[%s11246_s3 + $0x120] sm:$0xff]  }
  0xad   : > { %v8656_v63 = vsub.f32 0.0, %v11573_v32  ;;  %v752_v25 = vadd.s32 %v7720_v17, %v639_v28  ;;  %v585_v36 = vxor.u32 %v8650_v42, %v11575_v31  ;;  %v1746_v4 = vshrl.u32 %v1634_v5, 9  ;;  %6765 = vmatpush3.bf16.msra.mxu1 %v7243_v35 }
  0xae   : > { %v1851_v23 = vand.u32 1, %v1739_v33  ;;  %v857_v61 = vshrl.u32 %v745_v43, 16  ;;  %v691_v7 = vadd.s32 %v7720_v17, %v578_v44  ;;  %v1633_v21 = vxor.u32 %v1521_v52, %v1409_v8  ;;  %6766 = vmatprep.subr.bf16.mxu1 %v7246_v30  ;;  %v7250_v33 = vld [vmem:[%s11246_s3 + $0x128] sm:$0xff]  }
  0xaf   : > { %v1738_v40 = vshrl.u32 %v1626_v0, 9  ;;  %v864_v15 = vshrl.u32 %v752_v25, 16  ;;  %v698_v2 = vadd.s32 %v7720_v17, %v585_v36  ;;  %v1858_v38 = vand.u32 1, %v1746_v4 }
  0xb0   : > { %vm1963_vm15 = vcmp.eq.s32.totalorder %v1851_v23, 0  ;;  %v969_v47 = vxor.u32 %v857_v61, %v745_v43  ;;  %v803_v48 = vshrl.u32 %v691_v7, 16  ;;  %v11576_v8 = vcombine.low %v8353_v26, %v8365_v39  ;;  %v7251_v61 = vld [vmem:[%s11246_s3 + $0x170] sm:$0xff]  }
  0xb1   : > { %v11577_v35 = vunpack.c.h.bf16 %v11540_v46  ;;  %v1745_v28 = vshrl.u32 %v1633_v21, 9  ;;  %v1850_v32 = vand.u32 1, %v1738_v40  ;;  %v976_v5 = vxor.u32 %v864_v15, %v752_v25  ;;  %6767 = vmatpush3.bf16.msra.mxu1 %v7247_v34  ;;  %v7252_v34 = vld [vmem:[%s11246_s3 + $0x130] sm:$0xff]  }
  0xb2   : > { %3288 = vmatmul.mubr.bf16.gmra.mrb[56].mxu0 %v11576_v8  ;;  %3870 = vmatmul.mubr.bf16.gmra.mrb[56].mxu1 %v2270_v1  ;;  %v11578_v43 = vcombine.high %v8445_v62, %v8473_v20  ;;  %vm1970_vm0 = vcmp.eq.s32.totalorder %v1858_v38, 0  ;;  %v1081_v44 = vmul.u32 2146121005, %v969_v47  ;;  %v810_v26 = vshrl.u32 %v698_v2, 16 }
  0xb3   : > { %v2187_v24 = vsel %vm1963_vm15, %v11577_v35, %v8513_v41  ;;  %v915_v39 = vxor.u32 %v803_v48, %v691_v7  ;;  %v11579_v30 = vunpack.c.h.bf16 %v11542_v49  ;;  %v1857_v52 = vand.u32 1, %v1745_v28  ;;  %6768 = vmatprep.subr.bf16.mxu1 %v7249_v29 }
  0xb4   : > { %3295 = vmatprep.mubr.bf16.mxu0 %v11578_v43  ;;  %vm1962_vm1 = vcmp.eq.s32.totalorder %v1850_v32, 0  ;;  %v1088_v0 = vmul.u32 2146121005, %v976_v5  ;;  %v11580_v1 = vunpack.c.l.bf16 %v11540_v46  ;;  %v1193_v4 = vshrl.u32 %v1081_v44, 15 }
  0xb5   : > { %v2194_v41 = vsel %vm1970_vm0, %v11579_v30, %v8517_v6  ;;  %v922_v23 = vxor.u32 %v810_v26, %v698_v2  ;;  %vm1969_vm2 = vcmp.eq.s32.totalorder %v1857_v52, 0  ;;  %v1027_v21 = vmul.u32 2146121005, %v915_v39  ;;  %v11581_v6 = vld [vmem:[#allocation10_spill] sm:$0xff]  ;;  %6769 = vmatpush3.bf16.msra.mxu1 %v7250_v33 }
  0xb6   : > { %v2278_v25 = vpack.c.bf16 %v2194_v41, %v2187_v24  ;;  %v2186_v36 = vsel %vm1962_vm1, %v11580_v1, %v8610_v53  ;;  %v1200_v7 = vshrl.u32 %v1088_v0, 15  ;;  %v11582_v40 = vunpack.c.h.bf16 %v11581_v6  ;;  %v7253_v24 = vld [vmem:[%s11246_s3 + $0x178] sm:$0xff]   ;;  %6770 = vmatprep.subr.bf16.mxu1 %v7251_v61 }
  0xb7   : > { %v11583_v46 = vunpack.c.l.bf16 %v11542_v49  ;;  %v1305_v2 = vxor.u32 %v1193_v4, %v1081_v44  ;;  %v1034_v38 = vmul.u32 2146121005, %v922_v23  ;;  %v8708_v47 = vxor.u32 %v11520_v55, %v8622_v13 }
  0xb8   : > { %v8698_v15 = vsub.f32 0.0, %v11582_v40  ;;  %3877 = vmatprep.mubr.bf16.mxu1 %v2278_v25  ;;  %v1312_v29 = vxor.u32 %v1200_v7, %v1088_v0  ;;  %v1139_v8 = vshrl.u32 %v1027_v21, 15  ;;  %v8712_v35 = vxor.u32 %v11520_v55, %v8632_v16  ;;  %v11589_v25 = vld [vmem:[#allocation6_spill] sm:$0xff] }
  0xb9   : > { %v2193_v53 = vsel %vm1969_vm2, %v11583_v46, %v8619_v10  ;;  %11584 = vst [vmem:[#allocation15_spill] sm:$0xff] %v8708_v47  ;;  %v1417_v49 = vmul.u32 2221713035, %v1305_v2  ;;  %v1146_v10 = vshrl.u32 %v1034_v38, 15  ;;  %v744_v28 = vadd.s32 %v7720_v17, %v8708_v47  ;;  %6771 = vmatpush3.bf16.msra.mxu1 %v7252_v34 }
  0xba   : > { %v2277_v48 = vpack.c.bf16 %v2193_v53, %v2186_v36  ;;  %11585 = vst [vmem:[#allocation32_spill] sm:$0xff] %v8712_v35  ;;  %v11586_v32 = vunpack.c.l.bf16 %v11564_v50  ;;  %v11587_v43 = vcombine.low %v8445_v62, %v8473_v20  ;;  %v1424_v44 = vmul.u32 2221713035, %v1312_v29  ;;  %v7254_v20 = vld [vmem:[%s11246_s3 + $0x138] sm:$0xff]   ;;  %6772 = vmatprep.subr.bf16.mxu1 %v7253_v24 }
  0xbb   : > { %v1251_v33 = vxor.u32 %v1139_v8, %v1027_v21  ;;  %v751_v26 = vadd.s32 %v7720_v17, %v8712_v35  ;;  %v11588_v39 = vunpack.c.l.bf16 %v7803_v59  ;;  %v1529_v41 = vshrl.u32 %v1417_v49, 16 }
  0xbc   : > { %v8721_v5 = vsub.f32 0.0, %v11586_v32  ;;  %3296 = vmatmul.mubr.bf16.gmra.mrb[60].mxu0 %v11587_v43  ;;  %3878 = vmatmul.mubr.bf16.gmra.mrb[60].mxu1 %v2277_v48  ;;  %v1258_v52 = vxor.u32 %v1146_v10, %v1034_v38  ;;  %v856_v0 = vshrl.u32 %v744_v28, 16  ;;  %v538_v1 = vadd.s32 80, %v11589_v25 }
  0xbd   : > { %v8730_v30 = vsub.f32 0.0, %v11588_v39  ;;  %v1536_v36 = vshrl.u32 %v1424_v44, 16  ;;  %v1363_v4 = vmul.u32 2221713035, %v1251_v33  ;;  %v863_v23 = vshrl.u32 %v751_v26, 16  ;;  %6773 = vmatpush3.bf16.msra.mxu1 %v7254_v20 }
  0xbe   : > { %v539_v62 = vadd.s32 88, %v11589_v25  ;;  %v1641_v61 = vxor.u32 %v1529_v41, %v1417_v49  ;;  %v1370_v7 = vmul.u32 2221713035, %v1258_v52  ;;  %v968_v21 = vxor.u32 %v856_v0, %v744_v28 }
  0xbf   : > { %v8737_v40 = vmul.u32 2654435761, %v538_v1  ;;  %v1648_v46 = vxor.u32 %v1536_v36, %v1424_v44  ;;  %v1475_v53 = vshrl.u32 %v1363_v4, 16  ;;  %v975_v2 = vxor.u32 %v863_v23, %v751_v26 }
  0xc0   : > { %v8739_v38 = vmul.u32 2654435761, %v539_v62  ;;  %v1753_v48 = vshrl.u32 %v1641_v61, 9  ;;  %v1482_v29 = vshrl.u32 %v1370_v7, 16  ;;  %v1080_v8 = vmul.u32 2146121005, %v968_v21 }
  0xc1   : > { %v646_v34 = vxor.u32 %v11518_v58, %v8737_v40  ;;  %v1760_v10 = vshrl.u32 %v1648_v46, 9  ;;  %v1587_v32 = vxor.u32 %v1475_v53, %v1363_v4  ;;  %v1087_v43 = vmul.u32 2146121005, %v975_v2 }
  0xc2   : > { %v653_v49 = vxor.u32 %v11518_v58, %v8739_v38  ;;  %v1865_v28 = vand.u32 1, %v1753_v48  ;;  %v1594_v24 = vxor.u32 %v1482_v29, %v1370_v7  ;;  %v1192_v44 = vshrl.u32 %v1080_v8, 15 }
  0xc3   : > { %v759_v33 = vadd.s32 %v7720_v17, %v646_v34  ;;  %v1872_v26 = vand.u32 1, %v1760_v10  ;;  %v1699_v39 = vshrl.u32 %v1587_v32, 9  ;;  %v1199_v41 = vshrl.u32 %v1087_v43, 15 }
  0xc4   : > { %v766_v52 = vadd.s32 %v7720_v17, %v653_v49  ;;  %vm1977_vm3 = vcmp.eq.s32.totalorder %v1865_v28, 0  ;;  %v1706_v0 = vshrl.u32 %v1594_v24, 9  ;;  %v1304_v1 = vxor.u32 %v1192_v44, %v1080_v8 }
  0xc5   : > { %v871_v36 = vshrl.u32 %v759_v33, 16  ;;  %vm1984_vm5 = vcmp.eq.s32.totalorder %v1872_v26, 0  ;;  %v11590_v4 = vunpack.c.h.bf16 %v11564_v50  ;;  %v1811_v62 = vand.u32 1, %v1699_v39 }
  0xc6   : > { %v1311_v20 = vxor.u32 %v1199_v41, %v1087_v43  ;;  %v11591_v61 = vunpack.c.h.bf16 %v7803_v59  ;;  %v1818_v21 = vand.u32 1, %v1706_v0  ;;  %v1416_v46 = vmul.u32 2221713035, %v1304_v1 }
  0xc7   : > { %v2201_v23 = vsel %vm1977_vm3, %v11590_v4, %v8626_v45  ;;  %v878_v53 = vshrl.u32 %v766_v52, 16  ;;  %vm1923_vm6 = vcmp.eq.s32.totalorder %v1811_v62, 0  ;;  %v983_v29 = vxor.u32 %v871_v36, %v759_v33  ;;  %v11597_v4 = vld [vmem:[#allocation16_spill] sm:$0xff] }
  0xc8   : > { %v2208_v7 = vsel %vm1984_vm5, %v11591_v61, %v8636_v27  ;;  %v1423_v48 = vmul.u32 2221713035, %v1311_v20  ;;  %vm1930_vm7 = vcmp.eq.s32.totalorder %v1818_v21, 0  ;;  %v11592_v8 = vunpack.c.h.bf16 %v11572_v56  ;;  %v11599_v61 = vld [vmem:[#allocation41_spill] sm:$0xff] }
  0xc9   : > { %v2285_v2 = vpack.c.bf16 %v2208_v7, %v2201_v23  ;;  %v1528_v10 = vshrl.u32 %v1416_v46, 16  ;;  %v990_v45 = vxor.u32 %v878_v53, %v766_v52  ;;  %v11593_v32 = vunpack.c.h.bf16 %v11581_v6  ;;  %v11600_v7 = vld [vmem:[#allocation40_spill] sm:$0xff] }
  0xca   : > { %v2147_v34 = vsel %vm1923_vm6, %v11592_v8, %v8656_v63  ;;  %v1535_v27 = vshrl.u32 %v1423_v48, 16  ;;  %v1095_v49 = vmul.u32 2146121005, %v983_v29  ;;  %v11594_v28 = vunpack.c.h.bf16 %v7851_v60 }
  0xcb   : > { %3885 = vmatprep.mubr.bf16.mxu1 %v2285_v2  ;;  %v2154_v43 = vsel %vm1930_vm7, %v11593_v32, %v8698_v15  ;;  %v1640_v33 = vxor.u32 %v1528_v10, %v1416_v46  ;;  %v1102_v26 = vmul.u32 2146121005, %v990_v45  ;;  %v11595_v39 = vunpack.c.h.bf16 %v7854_v19 }
  0xcc   : > { %v8761_v24 = vsub.f32 0.0, %v11594_v28  ;;  %v2259_v44 = vpack.c.bf16 %v2154_v43, %v2147_v34  ;;  %v1647_v63 = vxor.u32 %v1535_v27, %v1423_v48  ;;  %v1207_v41 = vshrl.u32 %v1095_v49, 15 }
  0xcd   : > { %v8765_v56 = vsub.f32 0.0, %v11595_v39  ;;  %v592_v52 = vxor.u32 %v8650_v42, %v7820_v18  ;;  %v599_v6 = vxor.u32 %v8650_v42, %v7840_v9  ;;  %v1752_v15 = vshrl.u32 %v1640_v33, 9 }
  0xce   : > { %3950 = vmatprep.mubr.bf16.mxu0 %v2259_v44  ;;  %v1214_v0 = vshrl.u32 %v1102_v26, 15  ;;  %v11596_v1 = vunpack.c.h.bf16 %v7643_v54  ;;  %v11598_v23 = vunpack.c.h.bf16 %v11597_v4  ;;  %v1759_v20 = vshrl.u32 %v1647_v63, 9 }
  0xcf   : > { %v11601_v21 = vpack.c.bf16 %v11599_v61, %v11600_v7  ;;  %v1319_v46 = vxor.u32 %v1207_v41, %v1095_v49  ;;  %v705_v53 = vadd.s32 %v7720_v17, %v592_v52  ;;  %v712_v2 = vadd.s32 %v7720_v17, %v599_v6 }
  0xd0   : > { %v8773_v36 = vsub.f32 0.0, %v11596_v1  ;;  %v8777_v62 = vsub.f32 0.0, %v11598_v23  ;;  %v1864_v48 = vand.u32 1, %v1752_v15  ;;  %v1326_v29 = vxor.u32 %v1214_v0, %v1102_v26 }
  0xd1   : > { %3951 = vmatmul.mubr.bf16.vlgmr.msra.gmra.mrb[64].mxu0 %v11601_v21  ;;  %v8787_v8 = vxor.u32 %v11520_v55, %v8737_v40  ;;  %v8791_v34 = vxor.u32 %v11520_v55, %v8739_v38  ;;  %v1871_v10 = vand.u32 1, %v1759_v20  ;;  %v1431_v45 = vmul.u32 2221713035, %v1319_v46 }
  0xd2   : > { %6914 = vmatpush3.bf16.msra.mxu0 %v8563_v12  ;;  %v817_v32 = vshrl.u32 %v705_v53, 16  ;;  %v824_v43 = vshrl.u32 %v712_v2, 16  ;;  %vm1976_vm8 = vcmp.eq.s32.totalorder %v1864_v48, 0  ;;  %v1438_v27 = vmul.u32 2221713035, %v1326_v29 }
  0xd3   : > { %11602 = vst [vmem:[#allocation65_spill] sm:$0xff] %v8787_v8  ;;  %11603 = vst [vmem:[#allocation21_spill] sm:$0xff] %v8791_v34  ;;  %v758_v49 = vadd.s32 %v7720_v17, %v8787_v8  ;;  %v765_v12 = vadd.s32 %v7720_v17, %v8791_v34  ;;  %vm1983_vm9 = vcmp.eq.s32.totalorder %v1871_v10, 0  ;;  %v11604_v28 = vunpack.c.l.bf16 %v11564_v50 }
  0xd4   : > { %v1543_v33 = vshrl.u32 %v1431_v45, 16  ;;  %v929_v26 = vxor.u32 %v817_v32, %v705_v53  ;;  %v11605_v39 = vunpack.c.l.bf16 %v7803_v59  ;;  %v1550_v41 = vshrl.u32 %v1438_v27, 16 }
  0xd5   : > { %v2200_v44 = vsel %vm1976_vm8, %v11604_v28, %v8721_v5  ;;  %v936_v52 = vxor.u32 %v824_v43, %v712_v2  ;;  %v870_v6 = vshrl.u32 %v758_v49, 16  ;;  %v877_v23 = vshrl.u32 %v765_v12, 16 }
  0xd6   : > { %v2207_v63 = vsel %vm1983_vm9, %v11605_v39, %v8730_v30  ;;  %v1655_v0 = vxor.u32 %v1543_v33, %v1431_v45  ;;  %v1041_v1 = vmul.u32 2146121005, %v929_v26  ;;  %v1662_v20 = vxor.u32 %v1550_v41, %v1438_v27 }
  0xd7   : > { %v2284_v15 = vpack.c.bf16 %v2207_v63, %v2200_v44  ;;  %v1048_v61 = vmul.u32 2146121005, %v936_v52  ;;  %v982_v7 = vxor.u32 %v870_v6, %v758_v49  ;;  %v11606_v21 = vunpack.c.l.bf16 %v7851_v60 }
  0xd8   : > { %v1767_v5 = vshrl.u32 %v1655_v0, 9  ;;  %v1153_v46 = vshrl.u32 %v1041_v1, 15  ;;  %v989_v53 = vxor.u32 %v877_v23, %v765_v12  ;;  %v11607_v59 = vunpack.c.l.bf16 %v7854_v19 }
  0xd9   : > { %v8805_v50 = vsub.f32 0.0, %v11606_v21  ;;  %3886 = vmatmul.mubr.bf16.gmra.mrb[64].mxu1 %v2284_v15  ;;  %v1774_v2 = vshrl.u32 %v1662_v20, 9  ;;  %v1160_v48 = vshrl.u32 %v1048_v61, 15  ;;  %v1094_v29 = vmul.u32 2146121005, %v982_v7 }
  0xda   : > { %v8809_v30 = vsub.f32 0.0, %v11607_v59  ;;  %v816_v10 = vshrl.u32 %v8256_v14, 16  ;;  %v1879_v45 = vand.u32 1, %v1767_v5  ;;  %v1265_v32 = vxor.u32 %v1153_v46, %v1041_v1 }
  0xdb   : > { %v1101_v43 = vmul.u32 2146121005, %v989_v53  ;;  %v823_v27 = vshrl.u32 %v8259_v51, 16  ;;  %v1886_v49 = vand.u32 1, %v1774_v2  ;;  %v1272_v28 = vxor.u32 %v1160_v48, %v1048_v61 }
  0xdc   : > { %v1206_v44 = vshrl.u32 %v1094_v29, 15  ;;  %v928_v33 = vxor.u32 %v816_v10, %v8256_v14  ;;  %vm1991_vm10 = vcmp.eq.s32.totalorder %v1879_v45, 0  ;;  %v1377_v12 = vmul.u32 2221713035, %v1265_v32 }
  0xdd   : > { %v1213_v26 = vshrl.u32 %v1101_v43, 15  ;;  %v935_v39 = vxor.u32 %v823_v27, %v8259_v51  ;;  %vm1998_vm11 = vcmp.eq.s32.totalorder %v1886_v49, 0  ;;  %v11608_v63 = vunpack.c.h.bf16 %v7851_v60 }
  0xde   : > { %v1384_v52 = vmul.u32 2221713035, %v1272_v28  ;;  %v1318_v6 = vxor.u32 %v1206_v44, %v1094_v29  ;;  %v11609_v15 = vunpack.c.h.bf16 %v7854_v19  ;;  %v1489_v1 = vshrl.u32 %v1377_v12, 16 }
  0xdf   : > { %v2215_v41 = vsel %vm1991_vm10, %v11608_v63, %v8761_v24  ;;  %v1325_v23 = vxor.u32 %v1213_v26, %v1101_v43  ;;  %v1040_v20 = vmul.u32 2146121005, %v928_v33  ;;  %v1047_v21 = vmul.u32 2146121005, %v935_v39 }
  0xe0   : > { %v2222_v0 = vsel %vm1998_vm11, %v11609_v15, %v8765_v56  ;;  %v1496_v61 = vshrl.u32 %v1384_v52, 16  ;;  %v1430_v7 = vmul.u32 2221713035, %v1318_v6  ;;  %v1601_v5 = vxor.u32 %v1489_v1, %v1377_v12 }
  0xe1   : > { %v2292_v14 = vpack.c.bf16 %v2222_v0, %v2215_v41  ;;  %v1437_v51 = vmul.u32 2221713035, %v1325_v23  ;;  %v1152_v46 = vshrl.u32 %v1040_v20, 15  ;;  %v11610_v53 = vunpack.c.l.bf16 %v7643_v54 }
  0xe2   : > { %v1608_v24 = vxor.u32 %v1496_v61, %v1384_v52  ;;  %v1542_v2 = vshrl.u32 %v1430_v7, 16  ;;  %v1159_v48 = vshrl.u32 %v1047_v21, 15  ;;  %v11611_v29 = vunpack.c.l.bf16 %v11597_v4 }
  0xe3   : > { %v2048_v59 = vsub.f32 0.0, %v11610_v53  ;;  %3893 = vmatprep.mubr.bf16.mxu1 %v2292_v14  ;;  %v1713_v10 = vshrl.u32 %v1601_v5, 9  ;;  %v1549_v45 = vshrl.u32 %v1437_v51, 16  ;;  %v1264_v32 = vxor.u32 %v1152_v46, %v1040_v20 }
  0xe4   : > { %v2055_v56 = vsub.f32 0.0, %v11611_v29  ;;  %v540_v43 = vadd.s32 96, %v11589_v25  ;;  %v1720_v27 = vshrl.u32 %v1608_v24, 9  ;;  %v1654_v49 = vxor.u32 %v1542_v2, %v1430_v7 }
  0xe5   : > { %v1271_v28 = vxor.u32 %v1159_v48, %v1047_v21  ;;  %v541_v44 = vadd.s32 104, %v11589_v25  ;;  %v1825_v33 = vand.u32 1, %v1713_v10  ;;  %v1661_v12 = vxor.u32 %v1549_v45, %v1437_v51 }
  0xe6   : > { %v1376_v26 = vmul.u32 2221713035, %v1264_v32  ;;  %v8827_v39 = vmul.u32 2654435761, %v540_v43  ;;  %v1832_v63 = vand.u32 1, %v1720_v27  ;;  %v1766_v41 = vshrl.u32 %v1654_v49, 9 }
  0xe7   : > { %v1383_v52 = vmul.u32 2221713035, %v1271_v28  ;;  %v8829_v6 = vmul.u32 2654435761, %v541_v44  ;;  %vm1937_vm12 = vcmp.eq.s32.totalorder %v1825_v33, 0  ;;  %v1773_v15 = vshrl.u32 %v1661_v12, 9 }
  0xe8   : > { %v1488_v0 = vshrl.u32 %v1376_v26, 16  ;;  %v660_v1 = vxor.u32 %v11518_v58, %v8827_v39  ;;  %vm1944_vm13 = vcmp.eq.s32.totalorder %v1832_v63, 0  ;;  %v11612_v23 = vunpack.c.h.bf16 %v7643_v54  ;;  %v11618_v63 = vld [vmem:[#allocation77_spill] sm:$0xff] }
  0xe9   : > { %v1878_v14 = vand.u32 1, %v1766_v41  ;;  %v1495_v61 = vshrl.u32 %v1383_v52, 16  ;;  %v11613_v7 = vunpack.c.h.bf16 %v11597_v4  ;;  %v1885_v5 = vand.u32 1, %v1773_v15  ;;  %v11620_v15 = vld [vmem:[#allocation19_spill] sm:$0xff] }
  0xea   : > { %v2161_v20 = vsel %vm1937_vm12, %v11612_v23, %v8773_v36  ;;  %v1600_v51 = vxor.u32 %v1488_v0, %v1376_v26  ;;  %v667_v46 = vxor.u32 %v11518_v58, %v8829_v6  ;;  %v773_v2 = vadd.s32 %v7720_v17, %v660_v1  ;;  %v11622_v23 = vld [vmem:[#allocation20_spill] sm:$0xff] }
  0xeb   : > { %v2168_v21 = vsel %vm1944_vm13, %v11613_v7, %v8777_v62  ;;  %vm1990_vm14 = vcmp.eq.s32.totalorder %v1878_v14, 0  ;;  %v1607_v24 = vxor.u32 %v1495_v61, %v1383_v52  ;;  %vm1997_vm15 = vcmp.eq.s32.totalorder %v1885_v5, 0 }
  0xec   : > { %v2266_v53 = vpack.c.bf16 %v2168_v21, %v2161_v20  ;;  %v11614_v36 = vunpack.c.l.bf16 %v7851_v60  ;;  %v1712_v29 = vshrl.u32 %v1600_v51, 9  ;;  %v780_v10 = vadd.s32 %v7720_v17, %v667_v46 }
  0xed   : > { %v11615_v62 = vunpack.c.l.bf16 %v7854_v19  ;;  %v1719_v32 = vshrl.u32 %v1607_v24, 9  ;;  %v885_v43 = vshrl.u32 %v773_v2, 16  ;;  %v11616_v27 = vunpack.c.h.bf16 %v7909_v57  ;;  %v11619_v19 = vld [vmem:[#allocation78_spill] sm:$0xff] }
  0xee   : > { %v2214_v48 = vsel %vm1990_vm14, %v11614_v36, %v8805_v50  ;;  %3958 = vmatprep.mubr.bf16.mxu0 %v2266_v53  ;;  %v1824_v44 = vand.u32 1, %v1712_v29  ;;  %v892_v33 = vshrl.u32 %v780_v10, 16  ;;  %v11617_v60 = vunpack.c.h.bf16 %v7912_v11 }
  0xef   : > { %v2221_v45 = vsel %vm1997_vm15, %v11615_v62, %v8809_v30  ;;  %v8851_v49 = vsub.f32 0.0, %v11616_v27  ;;  %v1831_v12 = vand.u32 1, %v1719_v32  ;;  %v997_v26 = vxor.u32 %v885_v43, %v773_v2 }
  0xf0   : > { %v2291_v28 = vpack.c.bf16 %v2221_v45, %v2214_v48  ;;  %v8855_v50 = vsub.f32 0.0, %v11617_v60  ;;  %v606_v41 = vxor.u32 %v8650_v42, %v11618_v63  ;;  %v613_v30 = vxor.u32 %v8650_v42, %v11619_v19 }
  0xf1   : > { %vm1936_vm0 = vcmp.eq.s32.totalorder %v1824_v44, 0  ;;  %v1004_v52 = vxor.u32 %v892_v33, %v780_v10  ;;  %v11621_v0 = vunpack.c.h.bf16 %v11620_v15  ;;  %v11623_v20 = vunpack.c.h.bf16 %v11622_v23 }
  0xf2   : > { %3894 = vmatmul.mubr.bf16.gmra.mrb[68].mxu1 %v2291_v28  ;;  %vm1943_vm1 = vcmp.eq.s32.totalorder %v1831_v12, 0  ;;  %v11624_v61 = vunpack.c.l.bf16 %v7643_v54  ;;  %v1109_v21 = vmul.u32 2146121005, %v997_v26  ;;  %v719_v5 = vadd.s32 %v7720_v17, %v606_v41  ;;  %v11630_v12 = vld [vmem:[#allocation13_spill] sm:$0xff] }
  0xf3   : > { %v8863_v1 = vsub.f32 0.0, %v11621_v0  ;;  %v8867_v14 = vsub.f32 0.0, %v11623_v20  ;;  %v11625_v51 = vunpack.c.l.bf16 %v11597_v4  ;;  %v1116_v53 = vmul.u32 2146121005, %v1004_v52 }
  0xf4   : > { %v2160_v7 = vsel %vm1936_vm0, %v11624_v61, %v2048_v59  ;;  %v726_v24 = vadd.s32 %v7720_v17, %v613_v30  ;;  %v8877_v2 = vxor.u32 %v11520_v55, %v8827_v39  ;;  %v1221_v48 = vshrl.u32 %v1109_v21, 15 }
  0xf5   : > { %v2167_v46 = vsel %vm1943_vm1, %v11625_v51, %v2055_v56  ;;  %v831_v29 = vshrl.u32 %v719_v5, 16  ;;  %v8881_v54 = vxor.u32 %v11520_v55, %v8829_v6  ;;  %v1228_v59 = vshrl.u32 %v1116_v53, 15 }
  0xf6   : > { %11626 = vst [vmem:[#allocation22_spill] sm:$0xff] %v8877_v2  ;;  %v2265_v36 = vpack.c.bf16 %v2167_v46, %v2160_v7  ;;  %v838_v10 = vshrl.u32 %v726_v24, 16  ;;  %v772_v4 = vadd.s32 %v7720_v17, %v8877_v2  ;;  %v11628_v56 = vunpack.c.l.bf16 %v7909_v57 }
  0xf7   : > { %11627 = vst [vmem:[#allocation26_spill] sm:$0xff] %v8881_v54  ;;  %v1333_v45 = vxor.u32 %v1221_v48, %v1109_v21  ;;  %v943_v32 = vxor.u32 %v831_v29, %v719_v5  ;;  %v779_v43 = vadd.s32 %v7720_v17, %v8881_v54  ;;  %v11629_v27 = vunpack.c.l.bf16 %v7912_v11 }
  0xf8   : > { %v8887_v62 = vsub.f32 0.0, %v11628_v56  ;;  %3959 = vmatmul.mubr.bf16.gmra.mrb[68].mxu0 %v2265_v36  ;;  %v1340_v44 = vxor.u32 %v1228_v59, %v1116_v53  ;;  %v950_v33 = vxor.u32 %v838_v10, %v726_v24  ;;  %v884_v60 = vshrl.u32 %v772_v4, 16 }
  0xf9   : > { %v8893_v28 = vsub.f32 0.0, %v11629_v27  ;;  %v605_v26 = vxor.u32 %v11630_v12, %v11618_v63  ;;  %v1445_v41 = vmul.u32 2221713035, %v1333_v45  ;;  %v1055_v30 = vmul.u32 2146121005, %v943_v32 }
  0xfa   : > { %v891_v52 = vshrl.u32 %v779_v43, 16  ;;  %v612_v0 = vxor.u32 %v11630_v12, %v11619_v19  ;;  %v1452_v20 = vmul.u32 2221713035, %v1340_v44  ;;  %v1062_v61 = vmul.u32 2146121005, %v950_v33 }
  0xfb   : > { %v996_v7 = vxor.u32 %v884_v60, %v772_v4  ;;  %v718_v21 = vadd.s32 %v7720_v17, %v605_v26  ;;  %v1557_v5 = vshrl.u32 %v1445_v41, 16  ;;  %v1167_v51 = vshrl.u32 %v1055_v30, 15 }
  0xfc   : > { %v1003_v46 = vxor.u32 %v891_v52, %v779_v43  ;;  %v725_v53 = vadd.s32 %v7720_v17, %v612_v0  ;;  %v1564_v24 = vshrl.u32 %v1452_v20, 16  ;;  %v1174_v36 = vshrl.u32 %v1062_v61, 15 }
  0xfd   : > { %v1108_v48 = vmul.u32 2146121005, %v996_v7  ;;  %v830_v29 = vshrl.u32 %v718_v21, 16  ;;  %v1669_v59 = vxor.u32 %v1557_v5, %v1445_v41  ;;  %v1279_v10 = vxor.u32 %v1167_v51, %v1055_v30 }
  0xfe   : > { %v1115_v56 = vmul.u32 2146121005, %v1003_v46  ;;  %v837_v45 = vshrl.u32 %v725_v53, 16  ;;  %v1676_v32 = vxor.u32 %v1564_v24, %v1452_v20  ;;  %v1286_v27 = vxor.u32 %v1174_v36, %v1062_v61 }
  0xff   : > { %v1220_v44 = vshrl.u32 %v1108_v48, 15  ;;  %v942_v33 = vxor.u32 %v830_v29, %v718_v21  ;;  %v1781_v4 = vshrl.u32 %v1669_v59, 9  ;;  %v1391_v60 = vmul.u32 2221713035, %v1279_v10 }
 0x100   : > { %v1227_v26 = vshrl.u32 %v1115_v56, 15  ;;  %v949_v54 = vxor.u32 %v837_v45, %v725_v53  ;;  %v1788_v2 = vshrl.u32 %v1676_v32, 9  ;;  %v1398_v43 = vmul.u32 2221713035, %v1286_v27 }
 0x101   : > { %v1332_v52 = vxor.u32 %v1220_v44, %v1108_v48  ;;  %v1054_v0 = vmul.u32 2146121005, %v942_v33  ;;  %v1893_v35 = vand.u32 1, %v1781_v4  ;;  %v1503_v34 = vshrl.u32 %v1391_v60, 16 }
 0x102   : > { %v1339_v7 = vxor.u32 %v1227_v26, %v1115_v56  ;;  %v1061_v47 = vmul.u32 2146121005, %v949_v54  ;;  %v1900_v41 = vand.u32 1, %v1788_v2  ;;  %v1510_v30 = vshrl.u32 %v1398_v43, 16 }
 0x103   : > { %v1444_v5 = vmul.u32 2221713035, %v1332_v52  ;;  %v1166_v51 = vshrl.u32 %v1054_v0, 15  ;;  %vm2005_vm2 = vcmp.eq.s32.totalorder %v1893_v35, 0  ;;  %v1615_v20 = vxor.u32 %v1503_v34, %v1391_v60 }
 0x104   : > { %v1451_v61 = vmul.u32 2221713035, %v1339_v7  ;;  %v1173_v21 = vshrl.u32 %v1061_v47, 15  ;;  %vm2012_vm3 = vcmp.eq.s32.totalorder %v1900_v41, 0  ;;  %v11631_v46 = vunpack.c.h.bf16 %v7909_v57 }
 0x105   : > { %v1622_v24 = vxor.u32 %v1510_v30, %v1398_v43  ;;  %v1556_v36 = vshrl.u32 %v1444_v5, 16  ;;  %v11632_v48 = vunpack.c.h.bf16 %v7912_v11  ;;  %v1727_v54 = vshrl.u32 %v1615_v20, 9 }
 0x106   : > { %v2229_v53 = vsel %vm2005_vm2, %v11631_v46, %v8851_v49  ;;  %v1563_v2 = vshrl.u32 %v1451_v61, 16  ;;  %v1278_v59 = vxor.u32 %v1166_v51, %v1054_v0  ;;  %v1285_v56 = vxor.u32 %v1173_v21, %v1061_v47  ;;  %v8912_v0 = vld [vmem:[%s7581_s22 + $0x188] sm:$0xff] }
 0x107   : > { %v2236_v29 = vsel %vm2012_vm3, %v11632_v48, %v8855_v50  ;;  %v1734_v35 = vshrl.u32 %v1622_v24, 9  ;;  %v1668_v34 = vxor.u32 %v1556_v36, %v1444_v5  ;;  %v1839_v45 = vand.u32 1, %v1727_v54  ;;  %v8922_v46 = vld [vmem:[%s7581_s22 + $0x1a4] sm:$0xff] }
 0x108   : > { %v2299_v10 = vpack.c.bf16 %v2236_v29, %v2229_v53  ;;  %v1675_v32 = vxor.u32 %v1563_v2, %v1451_v61  ;;  %v1390_v27 = vmul.u32 2221713035, %v1278_v59  ;;  %v11633_v44 = vunpack.c.l.bf16 %v11620_v15 }
 0x109   : > { %v1846_v33 = vand.u32 1, %v1734_v35  ;;  %v1780_v4 = vshrl.u32 %v1668_v34, 9  ;;  %v1397_v60 = vmul.u32 2221713035, %v1285_v56  ;;  %v11634_v50 = vunpack.c.l.bf16 %v11622_v23 }
 0x10a   : > { %v2062_v49 = vsub.f32 0.0, %v11633_v44  ;;  %3901 = vmatprep.mubr.bf16.mxu1 %v2299_v10  ;;  %vm1951_vm5 = vcmp.eq.s32.totalorder %v1839_v45, 0  ;;  %v1787_v43 = vshrl.u32 %v1675_v32, 9  ;;  %v1502_v52 = vshrl.u32 %v1390_v27, 16  ;;  %v8952_v44 = vld [vmem:[%s7581_s22 + $0xcc] sm:$0xff] }
 0x10b   : > { %v2069_v26 = vsub.f32 0.0, %v11634_v50  ;;  %v11352_v47 = vunpack.c.h.bf16 %v8912_v0  ;;  %vm1958_vm6 = vcmp.eq.s32.totalorder %v1846_v33, 0  ;;  %v11635_v7 = vunpack.c.h.bf16 %v11620_v15  ;;  %v11639_v50 = vld [vmem:[#allocation30_spill] sm:$0xff] }
 0x10c   : > { %v1892_v30 = vand.u32 1, %v1780_v4  ;;  %v1509_v5 = vshrl.u32 %v1397_v60, 16  ;;  %v11636_v51 = vunpack.c.h.bf16 %v11622_v23  ;;  %v1899_v61 = vand.u32 1, %v1787_v43 }
 0x10d   : > { %v2175_v41 = vsel %vm1951_vm5, %v11635_v7, %v8863_v1  ;;  %v1614_v21 = vxor.u32 %v1502_v52, %v1390_v27  ;;  %v11351_v53 = vunpack.c.h.bf16 %v8922_v46  ;;  %v542_v48 = vadd.s32 112, %v11589_v25 }
 0x10e   : > { %v2182_v20 = vsel %vm1958_vm6, %v11636_v51, %v8867_v14  ;;  %vm2004_vm7 = vcmp.eq.s32.totalorder %v1892_v30, 0  ;;  %v1621_v36 = vxor.u32 %v1509_v5, %v1397_v60  ;;  %vm2011_vm8 = vcmp.eq.s32.totalorder %v1899_v61, 0 }
 0x10f   : > { %v2273_v24 = vpack.c.bf16 %v2182_v20, %v2175_v41  ;;  %v11637_v1 = vunpack.c.l.bf16 %v7909_v57  ;;  %v1726_v54 = vshrl.u32 %v1614_v21, 9  ;;  %v543_v14 = vadd.s32 120, %v11589_v25 }
 0x110   : > { %v11638_v2 = vunpack.c.l.bf16 %v7912_v11  ;;  %v1733_v10 = vshrl.u32 %v1621_v36, 9  ;;  %v8933_v35 = vmul.u32 2654435761, %v542_v48  ;;  %v8937_v34 = vsub.f32 0.0, %v11352_v47 }
 0x111   : > { %v2228_v29 = vsel %vm2004_vm7, %v11637_v1, %v8887_v62  ;;  %3966 = vmatprep.mubr.bf16.mxu0 %v2273_v24  ;;  %v1838_v45 = vand.u32 1, %v1726_v54  ;;  %v8939_v57 = vmul.u32 2654435761, %v543_v14  ;;  %v8943_v62 = vsub.f32 0.0, %v11351_v53 }
 0x112   : > { %v2235_v59 = vsel %vm2011_vm8, %v11638_v2, %v8893_v28  ;;  %v1845_v32 = vand.u32 1, %v1733_v10  ;;  %v674_v11 = vxor.u32 %v11518_v58, %v8933_v35  ;;  %v8948_v28 = vld [vmem:[%s7581_s22 + $0xb0] sm:$0xff]  ;;  %v11349_v33 = vunpack.c.h.bf16 %v8952_v44 }
 0x113   : > { %v2298_v56 = vpack.c.bf16 %v2235_v59, %v2228_v29  ;;  %v11350_v27 = vunpack.c.h.bf16 %v8948_v28  ;;  %vm1950_vm9 = vcmp.eq.s32.totalorder %v1838_v45, 0  ;;  %v681_v4 = vxor.u32 %v11518_v58, %v8939_v57 }
 0x114   : > { %v620_v60 = vxor.u32 %v8650_v42, %v8501_v3  ;;  %v627_v43 = vxor.u32 %v8650_v42, %v11639_v50  ;;  %vm1957_vm10 = vcmp.eq.s32.totalorder %v1845_v32, 0  ;;  %v11640_v52 = vunpack.c.l.bf16 %v11620_v15 }
 0x115   : > { %3902 = vmatmul.mubr.bf16.gmra.mrb[72].mxu1 %v2298_v56  ;;  %v787_v41 = vadd.s32 %v7720_v17, %v674_v11  ;;  %v8966_v30 = vsub.f32 0.0, %v11350_v27  ;;  %v11641_v5 = vunpack.c.l.bf16 %v11622_v23  ;;  %v794_v58 = vadd.s32 %v7720_v17, %v681_v4 }
 0x116   : > { %v2174_v7 = vsel %vm1950_vm9, %v11640_v52, %v2062_v49  ;;  %v733_v20 = vadd.s32 %v7720_v17, %v620_v60  ;;  %v740_v61 = vadd.s32 %v7720_v17, %v627_v43  ;;  %v8975_v15 = vsub.f32 0.0, %v11349_v33 }
 0x117   : > { %v2181_v51 = vsel %vm1957_vm10, %v11641_v5, %v2069_v26  ;;  %v899_v24 = vshrl.u32 %v787_v41, 16  ;;  %v11348_v49 = vunpack.c.l.bf16 %v8912_v0  ;;  %v906_v36 = vshrl.u32 %v794_v58, 16 }
 0x118   : > { %v2272_v21 = vpack.c.bf16 %v2181_v51, %v2174_v7  ;;  %v845_v48 = vshrl.u32 %v733_v20, 16  ;;  %v852_v1 = vshrl.u32 %v740_v61, 16  ;;  %v11347_v23 = vunpack.c.l.bf16 %v8922_v46 }
 0x119   : > { %v1011_v26 = vxor.u32 %v899_v24, %v787_v41  ;;  %v8981_v29 = vxor.u32 %v11520_v55, %v8933_v35  ;;  %v8985_v54 = vxor.u32 %v11520_v55, %v8939_v57  ;;  %v8989_v14 = vsub.f32 0.0, %v11348_v49 }
 0x11a   : > { %3967 = vmatmul.mubr.bf16.gmra.mrb[72].mxu0 %v2272_v21  ;;  %v1018_v2 = vxor.u32 %v906_v36, %v794_v58  ;;  %v957_v59 = vxor.u32 %v845_v48, %v733_v20  ;;  %v964_v10 = vxor.u32 %v852_v1, %v740_v61  ;;  %v8993_v56 = vsub.f32 0.0, %v11347_v23 }
 0x11b   : > { %11642 = vst [vmem:[#allocation27_spill] sm:$0xff] %v8981_v29  ;;  %11643 = vst [vmem:[#allocation34_spill] sm:$0xff] %v8985_v54  ;;  %v1123_v45 = vmul.u32 2146121005, %v1011_v26  ;;  %v786_v32 = vadd.s32 %v7720_v17, %v8981_v29  ;;  %v793_v11 = vadd.s32 %v7720_v17, %v8985_v54  ;;  %v11353_v55 = vunpack.c.l.bf16 %v8948_v28 }
 0x11c   : > { %v1130_v4 = vmul.u32 2146121005, %v1018_v2  ;;  %v1069_v60 = vmul.u32 2146121005, %v957_v59  ;;  %v619_v52 = vxor.u32 %v11630_v12, %v8501_v3  ;;  %v626_v61 = vxor.u32 %v11630_v12, %v11639_v50 }
 0x11d   : > { %v1235_v7 = vshrl.u32 %v1123_v45, 15  ;;  %v1076_v41 = vmul.u32 2146121005, %v964_v10  ;;  %v898_v5 = vshrl.u32 %v786_v32, 16  ;;  %v905_v51 = vshrl.u32 %v793_v11, 16 }
 0x11e   : > { %v1242_v58 = vshrl.u32 %v1130_v4, 15  ;;  %v1181_v20 = vshrl.u32 %v1069_v60, 15  ;;  %v732_v21 = vadd.s32 %v7720_v17, %v619_v52  ;;  %v739_v59 = vadd.s32 %v7720_v17, %v626_v61 }
 0x11f   : > { %v1347_v24 = vxor.u32 %v1235_v7, %v1123_v45  ;;  %v1188_v36 = vshrl.u32 %v1076_v41, 15  ;;  %v1010_v48 = vxor.u32 %v898_v5, %v786_v32  ;;  %v1017_v1 = vxor.u32 %v905_v51, %v793_v11 }
 0x120   : > { %v1354_v26 = vxor.u32 %v1242_v58, %v1130_v4  ;;  %v1293_v2 = vxor.u32 %v1181_v20, %v1069_v60  ;;  %v844_v23 = vshrl.u32 %v732_v21, 16  ;;  %v9009_v33 = vsub.f32 0.0, %v11353_v55 }
 0x121   : > { %v1459_v49 = vmul.u32 2221713035, %v1347_v24  ;;  %v1300_v10 = vxor.u32 %v1188_v36, %v1076_v41  ;;  %v1122_v43 = vmul.u32 2146121005, %v1010_v48  ;;  %v851_v47 = vshrl.u32 %v739_v59, 16 }
 0x122   : > { %v1466_v27 = vmul.u32 2221713035, %v1354_v26  ;;  %v1405_v53 = vmul.u32 2221713035, %v1293_v2  ;;  %v956_v52 = vxor.u32 %v844_v23, %v732_v21 }
 0x123   : > { %v1571_v45 = vshrl.u32 %v1459_v49, 16  ;;  %v1412_v7 = vmul.u32 2221713035, %v1300_v10  ;;  %v1129_v32 = vmul.u32 2146121005, %v1017_v1  ;;  %v1234_v11 = vshrl.u32 %v1122_v43, 15 }
 0x124   : > { %v1578_v4 = vshrl.u32 %v1466_v27, 16  ;;  %v1517_v60 = vshrl.u32 %v1405_v53, 16  ;;  %v963_v5 = vxor.u32 %v851_v47, %v739_v59  ;;  %v1068_v51 = vmul.u32 2146121005, %v956_v52 }
 0x125   : > { %v1683_v58 = vxor.u32 %v1571_v45, %v1459_v49  ;;  %v1524_v20 = vshrl.u32 %v1412_v7, 16  ;;  %v1241_v41 = vshrl.u32 %v1129_v32, 15  ;;  %v1346_v61 = vxor.u32 %v1234_v11, %v1122_v43 }
 0x126   : > { %v1690_v24 = vxor.u32 %v1578_v4, %v1466_v27  ;;  %v1629_v36 = vxor.u32 %v1517_v60, %v1405_v53  ;;  %v1075_v48 = vmul.u32 2146121005, %v963_v5  ;;  %v1180_v55 = vshrl.u32 %v1068_v51, 15 }
 0x127   : > { %v1795_v26 = vshrl.u32 %v1683_v58, 9  ;;  %v1636_v2 = vxor.u32 %v1524_v20, %v1412_v7  ;;  %v1353_v54 = vxor.u32 %v1241_v41, %v1129_v32  ;;  %v1458_v23 = vmul.u32 2221713035, %v1346_v61 }
 0x128   : > { %v1802_v21 = vshrl.u32 %v1690_v24, 9  ;;  %v1741_v10 = vshrl.u32 %v1629_v36, 9  ;;  %v1187_v1 = vshrl.u32 %v1075_v48, 15  ;;  %v1292_v29 = vxor.u32 %v1180_v55, %v1068_v51 }
 0x129   : > { %v1907_v8 = vand.u32 1, %v1795_v26  ;;  %v1748_v37 = vshrl.u32 %v1636_v2, 9  ;;  %v1465_v47 = vmul.u32 2221713035, %v1353_v54  ;;  %v1570_v59 = vshrl.u32 %v1458_v23, 16  ;;  %v9026_v26 = vld [vmem:[%s7581_s22 + $0xe8] sm:$0xff] }
 0x12a   : > { %v1914_v49 = vand.u32 1, %v1802_v21  ;;  %v1853_v52 = vand.u32 1, %v1741_v10  ;;  %v1299_v45 = vxor.u32 %v1187_v1, %v1075_v48  ;;  %v1404_v43 = vmul.u32 2221713035, %v1292_v29  ;;  %v9030_v2 = vld [vmem:[%s7581_s22 + $0x104] sm:$0xff] }
 0x12b   : > { %vm2019_vm11 = vcmp.eq.s32.totalorder %v1907_v8, 0  ;;  %v1860_v53 = vand.u32 1, %v1748_v37  ;;  %v1577_v27 = vshrl.u32 %v1465_v47, 16  ;;  %v1682_v11 = vxor.u32 %v1570_v59, %v1458_v23 }
 0x12c   : > { %vm2026_vm12 = vcmp.eq.s32.totalorder %v1914_v49, 0  ;;  %v11644_v7 = vunpack.c.h.bf16 %v8912_v0  ;;  %vm1965_vm13 = vcmp.eq.s32.totalorder %v1853_v52, 0  ;;  %v1411_v4 = vmul.u32 2221713035, %v1299_v45 }
 0x12d   : > { %v11645_v55 = vunpack.c.h.bf16 %v8922_v46  ;;  %vm1972_vm14 = vcmp.eq.s32.totalorder %v1860_v53, 0  ;;  %v11646_v29 = vunpack.c.h.bf16 %v8948_v28  ;;  %v1689_v8 = vxor.u32 %v1577_v27, %v1465_v47 }
 0x12e   : > { %v2243_v32 = vsel %vm2019_vm11, %v11644_v7, %v8937_v34  ;;  %v11647_v5 = vunpack.c.h.bf16 %v8952_v44  ;;  %v1794_v34 = vshrl.u32 %v1682_v11, 9  ;;  %v1516_v58 = vshrl.u32 %v1404_v43, 16 }
 0x12f   : > { %v2250_v54 = vsel %vm2026_vm12, %v11645_v55, %v8943_v62  ;;  %v2189_v37 = vsel %vm1965_vm13, %v11646_v29, %v8966_v30  ;;  %v1801_v41 = vshrl.u32 %v1689_v8, 9  ;;  %v1523_v61 = vshrl.u32 %v1411_v4, 16  ;;  %v9058_v8 = vld [vmem:[%s7581_s22 + $0x2c] sm:$0xff] }
 0x130   : > { %v2306_v60 = vpack.c.bf16 %v2250_v54, %v2243_v32  ;;  %v2196_v51 = vsel %vm1972_vm14, %v11647_v5, %v8975_v15  ;;  %v11648_v24 = vunpack.c.l.bf16 %v8952_v44  ;;  %v1906_v36 = vand.u32 1, %v1794_v34 }
 0x131   : > { %v2280_v20 = vpack.c.bf16 %v2196_v51, %v2189_v37  ;;  %v1628_v48 = vxor.u32 %v1516_v58, %v1404_v43  ;;  %v11367_v30 = vunpack.c.h.bf16 %v9026_v26  ;;  %v11366_v23 = vunpack.c.h.bf16 %v9030_v2 }
 0x132   : > { %v2083_v62 = vsub.f32 0.0, %v11648_v24  ;;  %3909 = vmatprep.mubr.bf16.mxu1 %v2306_v60  ;;  %v1913_v15 = vand.u32 1, %v1801_v41  ;;  %v1635_v21 = vxor.u32 %v1523_v61, %v1411_v4  ;;  %v634_v10 = vxor.u32 %v8650_v42, %v8622_v13  ;;  %v9054_v4 = vld [vmem:[%s7581_s22 + $0x10] sm:$0xff]  ;;  %v11651_v60 = vld [vmem:[#allocation7_spill] sm:$0xff] }
 0x133   : > { %3974 = vmatprep.mubr.bf16.mxu0 %v2280_v20  ;;  %v641_v1 = vxor.u32 %v8650_v42, %v8632_v16  ;;  %vm2018_vm15 = vcmp.eq.s32.totalorder %v1906_v36, 0  ;;  %v1740_v47 = vshrl.u32 %v1628_v48, 9  ;;  %v9039_v59 = vsub.f32 0.0, %v11367_v30 }
 0x134   : > { %v9043_v49 = vsub.f32 0.0, %v11366_v23  ;;  %vm2025_vm0 = vcmp.eq.s32.totalorder %v1913_v15, 0  ;;  %v11649_v52 = vunpack.c.l.bf16 %v8912_v0  ;;  %v1747_v43 = vshrl.u32 %v1635_v21, 9 }
 0x135   : > { %v747_v53 = vadd.s32 %v7720_v17, %v634_v10  ;;  %v11650_v27 = vunpack.c.l.bf16 %v8922_v46  ;;  %v1852_v7 = vand.u32 1, %v1740_v47  ;;  %v754_v32 = vadd.s32 %v7720_v17, %v641_v1 }
 0x136   : > { %v2242_v45 = vsel %vm2018_vm15, %v11649_v52, %v8989_v14  ;;  %v11364_v55 = vunpack.c.h.bf16 %v9054_v4  ;;  %v1859_v29 = vand.u32 1, %v1747_v43  ;;  %v11363_v0 = vunpack.c.h.bf16 %v9058_v8 }
 0x137   : > { %v2249_v11 = vsel %vm2025_vm0, %v11650_v27, %v8993_v56  ;;  %v859_v37 = vshrl.u32 %v747_v53, 16  ;;  %vm1964_vm1 = vcmp.eq.s32.totalorder %v1852_v7, 0  ;;  %v866_v14 = vshrl.u32 %v754_v32, 16 }
 0x138   : > { %v2305_v54 = vpack.c.bf16 %v2249_v11, %v2242_v45  ;;  %v550_v5 = vadd.s32 640, %v11651_v60  ;;  %v9064_v46 = vsub.f32 0.0, %v11364_v55  ;;  %vm1971_vm2 = vcmp.eq.s32.totalorder %v1859_v29, 0  ;;  %v9101_v29 = vld [vmem:[%s7581_s22 + $0x120] sm:$0xff] }
 0x139   : > { %v11652_v56 = vunpack.c.l.bf16 %v8948_v28  ;;  %v971_v34 = vxor.u32 %v859_v37, %v747_v53  ;;  %v9071_v58 = vsub.f32 0.0, %v11363_v0  ;;  %v11653_v20 = vmov %v11648_v24 }
 0x13a   : > { %3910 = vmatmul.mubr.bf16.gmra.mrb[76].mxu1 %v2305_v54  ;;  %v2195_v41 = vsel %vm1971_vm2, %v11653_v20, %v2083_v62  ;;  %v978_v61 = vxor.u32 %v866_v14, %v754_v32  ;;  %v9075_v24 = vmul.u32 2246822519, %v550_v5  ;;  %v11365_v36 = vunpack.c.l.bf16 %v9026_v26 }
 0x13b   : > { %v2188_v51 = vsel %vm1964_vm1, %v11652_v56, %v9009_v33  ;;  %v1083_v15 = vmul.u32 2146121005, %v971_v34  ;;  %v11362_v21 = vunpack.c.l.bf16 %v9030_v2  ;;  %v633_v28 = vxor.u32 %v11630_v12, %v8622_v13 }
 0x13c   : > { %v2279_v48 = vpack.c.bf16 %v2195_v41, %v2188_v51  ;;  %v1090_v33 = vmul.u32 2146121005, %v978_v61  ;;  %v580_v10 = vxor.u32 %v9075_v24, %v11574_v22  ;;  %v587_v44 = vxor.u32 %v9075_v24, %v11575_v31  ;;  %v9107_v61 = vld [vmem:[%s7581_s22 + $0x13c] sm:$0xff] }
 0x13d   : > { %v640_v62 = vxor.u32 %v11630_v12, %v8632_v16  ;;  %v1195_v1 = vshrl.u32 %v1083_v15, 15  ;;  %v746_v47 = vadd.s32 %v7720_v17, %v633_v28  ;;  %v9090_v52 = vsub.f32 0.0, %v11365_v36 }
 0x13e   : > { %3975 = vmatmul.mubr.bf16.gmra.mrb[76].mxu0 %v2279_v48  ;;  %v9094_v45 = vsub.f32 0.0, %v11362_v21  ;;  %v1202_v43 = vshrl.u32 %v1090_v33, 15  ;;  %v693_v53 = vadd.s32 %v7720_v17, %v580_v10  ;;  %v700_v27 = vadd.s32 %v7720_v17, %v587_v44 }
 0x13f   : > { %v753_v11 = vadd.s32 %v7720_v17, %v640_v62  ;;  %v1307_v7 = vxor.u32 %v1195_v1, %v1083_v15  ;;  %v858_v32 = vshrl.u32 %v746_v47, 16  ;;  %v549_v54 = vadd.s32 512, %v11651_v60 }
 0x140   : > { %v1314_v14 = vxor.u32 %v1202_v43, %v1090_v33  ;;  %v805_v5 = vshrl.u32 %v693_v53, 16  ;;  %v812_v56 = vshrl.u32 %v700_v27, 16 }
 0x141   : > { %v865_v51 = vshrl.u32 %v753_v11, 16  ;;  %v1419_v34 = vmul.u32 2221713035, %v1307_v7  ;;  %v970_v20 = vxor.u32 %v858_v32, %v746_v47  ;;  %v9104_v41 = vmul.u32 2246822519, %v549_v54 }
 0x142   : > { %v1426_v15 = vmul.u32 2221713035, %v1314_v14  ;;  %v917_v28 = vxor.u32 %v805_v5, %v693_v53  ;;  %v924_v10 = vxor.u32 %v812_v56, %v700_v27  ;;  %v648_v54 = vxor.u32 %v8650_v42, %v8737_v40 }
 0x143   : > { %v977_v44 = vxor.u32 %v865_v51, %v753_v11  ;;  %v1531_v62 = vshrl.u32 %v1419_v34, 16  ;;  %v1082_v1 = vmul.u32 2146121005, %v970_v20  ;;  %v579_v33 = vxor.u32 %v9104_v41, %v11574_v22 }
 0x144   : > { %v586_v43 = vxor.u32 %v9104_v41, %v11575_v31  ;;  %v1538_v7 = vshrl.u32 %v1426_v15, 16  ;;  %v1029_v47 = vmul.u32 2146121005, %v917_v28  ;;  %v1036_v32 = vmul.u32 2146121005, %v924_v10 }
 0x145   : > { %v1643_v37 = vxor.u32 %v1531_v62, %v1419_v34  ;;  %v1089_v48 = vmul.u32 2146121005, %v977_v44  ;;  %v1194_v14 = vshrl.u32 %v1082_v1, 15  ;;  %v692_v53 = vadd.s32 %v7720_v17, %v579_v33 }
 0x146   : > { %v1650_v27 = vxor.u32 %v1538_v7, %v1426_v15  ;;  %v1141_v11 = vshrl.u32 %v1029_v47, 15  ;;  %v1148_v5 = vshrl.u32 %v1036_v32, 15  ;;  %v699_v56 = vadd.s32 %v7720_v17, %v586_v43 }
 0x147   : > { %v1755_v51 = vshrl.u32 %v1643_v37, 9  ;;  %v1201_v20 = vshrl.u32 %v1089_v48, 15  ;;  %v1306_v21 = vxor.u32 %v1194_v14, %v1082_v1  ;;  %v804_v0 = vshrl.u32 %v692_v53, 16 }
 0x148   : > { %v1762_v55 = vshrl.u32 %v1650_v27, 9  ;;  %v1253_v28 = vxor.u32 %v1141_v11, %v1029_v47  ;;  %v1260_v10 = vxor.u32 %v1148_v5, %v1036_v32  ;;  %v811_v36 = vshrl.u32 %v699_v56, 16 }
 0x149   : > { %v1867_v23 = vand.u32 1, %v1755_v51  ;;  %v1313_v30 = vxor.u32 %v1201_v20, %v1089_v48  ;;  %v1418_v34 = vmul.u32 2221713035, %v1306_v21  ;;  %v916_v44 = vxor.u32 %v804_v0, %v692_v53 }
 0x14a   : > { %v1874_v62 = vand.u32 1, %v1762_v55  ;;  %v1365_v25 = vmul.u32 2221713035, %v1253_v28  ;;  %v1372_v33 = vmul.u32 2221713035, %v1260_v10  ;;  %v923_v15 = vxor.u32 %v811_v36, %v699_v56 }
 0x14b   : > { %vm1979_vm3 = vcmp.eq.s32.totalorder %v1867_v23, 0  ;;  %v1425_v7 = vmul.u32 2221713035, %v1313_v30  ;;  %v1530_v31 = vshrl.u32 %v1418_v34, 16  ;;  %v1028_v43 = vmul.u32 2146121005, %v916_v44 }
 0x14c   : > { %vm1986_vm5 = vcmp.eq.s32.totalorder %v1874_v62, 0  ;;  %v11654_v37 = vunpack.c.h.bf16 %v9026_v26  ;;  %v1477_v47 = vshrl.u32 %v1365_v25, 16  ;;  %v1484_v32 = vshrl.u32 %v1372_v33, 16 }
 0x14d   : > { %v11655_v48 = vunpack.c.h.bf16 %v9030_v2  ;;  %v1537_v0 = vshrl.u32 %v1425_v7, 16  ;;  %v1642_v55 = vxor.u32 %v1530_v31, %v1418_v34  ;;  %v1035_v14 = vmul.u32 2146121005, %v923_v15 }
 0x14e   : > { %v2203_v1 = vsel %vm1979_vm3, %v11654_v37, %v9039_v59  ;;  %v1589_v36 = vxor.u32 %v1477_v47, %v1365_v25  ;;  %v1596_v23 = vxor.u32 %v1484_v32, %v1372_v33  ;;  %v1140_v30 = vshrl.u32 %v1028_v43, 15 }
 0x14f   : > { %v2210_v21 = vsel %vm1986_vm5, %v11655_v48, %v9043_v49  ;;  %v1649_v27 = vxor.u32 %v1537_v0, %v1425_v7  ;;  %v1754_v11 = vshrl.u32 %v1642_v55, 9  ;;  %v1147_v5 = vshrl.u32 %v1035_v14, 15 }
 0x150   : > { %v2287_v53 = vpack.c.bf16 %v2210_v21, %v2203_v1  ;;  %v655_v56 = vxor.u32 %v8650_v42, %v8739_v38  ;;  %v1701_v59 = vshrl.u32 %v1589_v36, 9  ;;  %v1708_v51 = vshrl.u32 %v1596_v23, 9 }
 0x151   : > { %v1252_v20 = vxor.u32 %v1140_v30, %v1028_v43  ;;  %v761_v28 = vadd.s32 %v7720_v17, %v648_v54  ;;  %v1761_v49 = vshrl.u32 %v1649_v27, 9  ;;  %v1866_v10 = vand.u32 1, %v1754_v11 }
 0x152   : > { %3982 = vmatprep.mubr.bf16.mxu0 %v2287_v53  ;;  %v1259_v31 = vxor.u32 %v1147_v5, %v1035_v14  ;;  %v768_v34 = vadd.s32 %v7720_v17, %v655_v56  ;;  %v1813_v25 = vand.u32 1, %v1701_v59  ;;  %v1820_v44 = vand.u32 1, %v1708_v51  ;;  %v9149_v5 = vld [vmem:[%s7581_s22 + $0x48] sm:$0xff] }
 0x153   : > { %v1364_v62 = vmul.u32 2221713035, %v1252_v20  ;;  %v873_v33 = vshrl.u32 %v761_v28, 16  ;;  %v1873_v15 = vand.u32 1, %v1761_v49  ;;  %vm1978_vm6 = vcmp.eq.s32.totalorder %v1866_v10, 0  ;;  %v9153_v59 = vld [vmem:[%s7581_s22 + $0x64] sm:$0xff] }
 0x154   : > { %v1371_v7 = vmul.u32 2221713035, %v1259_v31  ;;  %v880_v37 = vshrl.u32 %v768_v34, 16  ;;  %vm1925_vm7 = vcmp.eq.s32.totalorder %v1813_v25, 0  ;;  %vm1932_vm8 = vcmp.eq.s32.totalorder %v1820_v44, 0 }
 0x155   : > { %v11656_v43 = vunpack.c.l.bf16 %v9026_v26  ;;  %v1476_v54 = vshrl.u32 %v1364_v62, 16  ;;  %v11657_v47 = vunpack.c.h.bf16 %v9054_v4  ;;  %v11658_v48 = vunpack.c.h.bf16 %v9058_v8 }
 0x156   : > { %vm1985_vm9 = vcmp.eq.s32.totalorder %v1873_v15, 0  ;;  %v1483_v0 = vshrl.u32 %v1371_v7, 16  ;;  %v11659_v14 = vunpack.c.l.bf16 %v9030_v2  ;;  %v992_v30 = vxor.u32 %v880_v37, %v768_v34  ;;  %v11662_v37 = vld [vmem:[#allocation44_spill] sm:$0xff] }
 0x157   : > { %v2202_v1 = vsel %vm1978_vm6, %v11656_v43, %v9090_v52  ;;  %v2149_v32 = vsel %vm1925_vm7, %v11657_v47, %v9064_v46  ;;  %v2156_v21 = vsel %vm1932_vm8, %v11658_v48, %v9071_v58  ;;  %v1588_v26 = vxor.u32 %v1476_v54, %v1364_v62  ;;  %v11663_v43 = vld [vmem:[#allocation35_spill] sm:$0xff]  ;;  %v11665_v48 = vld [vmem:[#allocation45_spill] sm:$0xff] }
 0x158   : > { %v2261_v55 = vpack.c.bf16 %v2156_v21, %v2149_v32  ;;  %v2209_v53 = vsel %vm1985_vm9, %v11659_v14, %v9094_v45  ;;  %v985_v52 = vxor.u32 %v873_v33, %v761_v28  ;;  %v1595_v23 = vxor.u32 %v1483_v0, %v1371_v7  ;;  %v11666_v21 = vld [vmem:[#allocation37_spill] sm:$0xff] }
 0x159   : > { %v2286_v36 = vpack.c.bf16 %v2209_v53, %v2202_v1  ;;  %v11660_v4 = vunpack.c.h.bf16 %v9101_v29  ;;  %v1700_v8 = vshrl.u32 %v1588_v26, 9  ;;  %v11661_v27 = vunpack.c.h.bf16 %v9107_v61 }
 0x15a   : > { %4047 = vmatprep.mubr.bf16.mxu1 %v2261_v55  ;;  %v1097_v58 = vmul.u32 2146121005, %v985_v52  ;;  %v434_v2 = vunpack.c.h.bf16 %v9149_v5  ;;  %v1707_v45 = vshrl.u32 %v1595_v23, 9  ;;  %v1104_v56 = vmul.u32 2146121005, %v992_v30 }
 0x15b   : > { %v9142_v46 = vsub.f32 0.0, %v11660_v4  ;;  %v9146_v11 = vsub.f32 0.0, %v11661_v27  ;;  %3983 = vmatmul.mubr.bf16.gmra.mrb[80].mxu0 %v2286_v36  ;;  %v441_v51 = vunpack.c.h.bf16 %v9153_v59  ;;  %v594_v20 = vxor.u32 %v9075_v24, %v7820_v18 }
 0x15c   : > { %v1812_v28 = vand.u32 1, %v1700_v8  ;;  %v1209_v49 = vshrl.u32 %v1097_v58, 15  ;;  %v601_v10 = vxor.u32 %v9075_v24, %v7840_v9  ;;  %v9162_v31 = vsub.f32 0.0, %v434_v2 }
 0x15d   : > { %v1819_v34 = vand.u32 1, %v1707_v45  ;;  %v1216_v25 = vshrl.u32 %v1104_v56, 15  ;;  %v707_v44 = vadd.s32 %v7720_v17, %v594_v20  ;;  %v9167_v62 = vsub.f32 0.0, %v441_v51 }
 0x15e   : > { %vm1924_vm10 = vcmp.eq.s32.totalorder %v1812_v28, 0  ;;  %v1321_v33 = vxor.u32 %v1209_v49, %v1097_v58  ;;  %v714_v15 = vadd.s32 %v7720_v17, %v601_v10  ;;  %v487_v7 = vunpack.c.l.bf16 %v9101_v29 }
 0x15f   : > { %vm1931_vm11 = vcmp.eq.s32.totalorder %v1819_v34, 0  ;;  %v11664_v1 = vunpack.c.l.bf16 %v11663_v43  ;;  %v1328_v47 = vxor.u32 %v1216_v25, %v1104_v56  ;;  %v819_v32 = vshrl.u32 %v707_v44, 16 }
 0x160   : > { %v11667_v0 = vunpack.c.l.bf16 %v11666_v21  ;;  %v1433_v14 = vmul.u32 2221713035, %v1321_v33  ;;  %v826_v53 = vshrl.u32 %v714_v15, 16  ;;  %v494_v26 = vunpack.c.l.bf16 %v9107_v61 }
 0x161   : > { %v2148_v54 = vsel %vm1924_vm10, %v11664_v1, %v11662_v37  ;;  %v1440_v36 = vmul.u32 2221713035, %v1328_v47  ;;  %v931_v23 = vxor.u32 %v819_v32, %v707_v44  ;;  %v647_v30 = vxor.u32 %v11630_v12, %v8737_v40 }
 0x162   : > { %v2155_v55 = vsel %vm1931_vm11, %v11667_v0, %v11665_v48  ;;  %v1545_v4 = vshrl.u32 %v1433_v14, 16  ;;  %v938_v8 = vxor.u32 %v826_v53, %v714_v15  ;;  %v654_v58 = vxor.u32 %v11630_v12, %v8739_v38 }
 0x163   : > { %v2260_v52 = vpack.c.bf16 %v2155_v55, %v2148_v54  ;;  %v9184_v27 = vsub.f32 0.0, %v487_v7  ;;  %v1552_v45 = vshrl.u32 %v1440_v36, 16  ;;  %v1043_v56 = vmul.u32 2146121005, %v931_v23 }
 0x164   : > { %v760_v20 = vadd.s32 %v7720_v17, %v647_v30  ;;  %v9189_v28 = vsub.f32 0.0, %v494_v26  ;;  %v1657_v49 = vxor.u32 %v1545_v4, %v1433_v14  ;;  %v1050_v10 = vmul.u32 2146121005, %v938_v8 }
 0x165   : > { %4048 = vmatmul.mubr.bf16.vlgmr.msra.gmra.mrb[80].mxu1 %v2260_v52  ;;  %v767_v34 = vadd.s32 %v7720_v17, %v654_v58  ;;  %v433_v25 = vunpack.c.l.bf16 %v9149_v5  ;;  %v1664_v44 = vxor.u32 %v1552_v45, %v1440_v36  ;;  %v1155_v33 = vshrl.u32 %v1043_v56, 15 }
 0x166   : > { %v872_v15 = vshrl.u32 %v760_v20, 16  ;;  %v440_v37 = vunpack.c.l.bf16 %v9153_v59  ;;  %v1769_v43 = vshrl.u32 %v1657_v49, 9  ;;  %v1162_v1 = vshrl.u32 %v1050_v10, 15 }
 0x167   : > { %v879_v54 = vshrl.u32 %v767_v34, 16  ;;  %v593_v47 = vxor.u32 %v9104_v41, %v7820_v18  ;;  %v1776_v32 = vshrl.u32 %v1664_v44, 9  ;;  %v1267_v48 = vxor.u32 %v1155_v33, %v1043_v56 }
 0x168   : > { %v984_v21 = vxor.u32 %v872_v15, %v760_v20  ;;  %v600_v0 = vxor.u32 %v9104_v41, %v7840_v9  ;;  %v1881_v55 = vand.u32 1, %v1769_v43  ;;  %v1274_v14 = vxor.u32 %v1162_v1, %v1050_v10 }
 0x169   : > { %v991_v53 = vxor.u32 %v879_v54, %v767_v34  ;;  %v706_v52 = vadd.s32 %v7720_v17, %v593_v47  ;;  %v1888_v36 = vand.u32 1, %v1776_v32  ;;  %v1379_v23 = vmul.u32 2221713035, %v1267_v48 }
 0x16a   : > { %v1096_v30 = vmul.u32 2146121005, %v984_v21  ;;  %v713_v4 = vadd.s32 %v7720_v17, %v600_v0  ;;  %vm1993_vm12 = vcmp.eq.s32.totalorder %v1881_v55, 0  ;;  %v1386_v8 = vmul.u32 2221713035, %v1274_v14 }
 0x16b   : > { %v1103_v58 = vmul.u32 2146121005, %v991_v53  ;;  %v818_v45 = vshrl.u32 %v706_v52, 16  ;;  %vm2000_vm13 = vcmp.eq.s32.totalorder %v1888_v36, 0  ;;  %v11668_v56 = vunpack.c.h.bf16 %v9101_v29 }
 0x16c   : > { %v1491_v49 = vshrl.u32 %v1379_v23, 16  ;;  %v1208_v44 = vshrl.u32 %v1096_v30, 15  ;;  %v11669_v10 = vunpack.c.h.bf16 %v9107_v61  ;;  %v1498_v33 = vshrl.u32 %v1386_v8, 16 }
 0x16d   : > { %v2217_v20 = vsel %vm1993_vm12, %v11668_v56, %v9142_v46  ;;  %v1215_v15 = vshrl.u32 %v1103_v58, 15  ;;  %v825_v43 = vshrl.u32 %v713_v4, 16  ;;  %v930_v32 = vxor.u32 %v818_v45, %v706_v52  ;;  %v9215_v52 = vld [vmem:[%s7581_s22 + $0x158] sm:$0xff] }
 0x16e   : > { %v2224_v34 = vsel %vm2000_vm13, %v11669_v10, %v9146_v11  ;;  %v1603_v54 = vxor.u32 %v1491_v49, %v1379_v23  ;;  %v1320_v47 = vxor.u32 %v1208_v44, %v1096_v30  ;;  %v1610_v48 = vxor.u32 %v1498_v33, %v1386_v8  ;;  %v9219_v56 = vld [vmem:[%s7581_s22 + $0x174] sm:$0xff] }
 0x16f   : > { %v2294_v1 = vpack.c.bf16 %v2224_v34, %v2217_v20  ;;  %v1327_v21 = vxor.u32 %v1215_v15, %v1103_v58  ;;  %v937_v0 = vxor.u32 %v825_v43, %v713_v4  ;;  %v9208_v46 = vsub.f32 0.0, %v433_v25 }
 0x170   : > { %v1715_v55 = vshrl.u32 %v1603_v54, 9  ;;  %v1432_v14 = vmul.u32 2221713035, %v1320_v47  ;;  %v1042_v11 = vmul.u32 2146121005, %v930_v32  ;;  %v9212_v53 = vsub.f32 0.0, %v440_v37 }
 0x171   : > { %3990 = vmatprep.mubr.bf16.mxu0 %v2294_v1  ;;  %v1722_v36 = vshrl.u32 %v1610_v48, 9  ;;  %v1439_v23 = vmul.u32 2221713035, %v1327_v21  ;;  %v1049_v30 = vmul.u32 2146121005, %v937_v0  ;;  %v502_v8 = vunpack.c.h.bf16 %v9215_v52 }
 0x172   : > { %v1827_v4 = vand.u32 1, %v1715_v55  ;;  %v1544_v58 = vshrl.u32 %v1432_v14, 16  ;;  %v1154_v45 = vshrl.u32 %v1042_v11, 15  ;;  %v509_v20 = vunpack.c.h.bf16 %v9219_v56 }
 0x173   : > { %v1834_v49 = vand.u32 1, %v1722_v36  ;;  %v1551_v44 = vshrl.u32 %v1439_v23, 16  ;;  %v1161_v10 = vshrl.u32 %v1049_v30, 15  ;;  %v662_v34 = vxor.u32 %v8650_v42, %v8827_v39 }
 0x174   : > { %vm1939_vm14 = vcmp.eq.s32.totalorder %v1827_v4, 0  ;;  %v1656_v33 = vxor.u32 %v1544_v58, %v1432_v14  ;;  %v1266_v15 = vxor.u32 %v1154_v45, %v1042_v11  ;;  %v669_v43 = vxor.u32 %v8650_v42, %v8829_v6 }
 0x175   : > { %vm1946_vm15 = vcmp.eq.s32.totalorder %v1834_v49, 0  ;;  %v2163_v1 = vsel %vm1939_vm14, %v434_v2, %v9162_v31  ;;  %v1663_v54 = vxor.u32 %v1551_v44, %v1439_v23  ;;  %v1273_v47 = vxor.u32 %v1161_v10, %v1049_v30  ;;  %v9243_v44 = vld [vmem:[%s7581_s22 + $0x80] sm:$0xff] }
 0x176   : > { %v2170_v32 = vsel %vm1946_vm15, %v441_v51, %v9167_v62  ;;  %v1768_v48 = vshrl.u32 %v1656_v33, 9  ;;  %v1378_v21 = vmul.u32 2221713035, %v1266_v15  ;;  %v775_v0 = vadd.s32 %v7720_v17, %v662_v34 }
 0x177   : > { %v2268_v55 = vpack.c.bf16 %v2170_v32, %v2163_v1  ;;  %v1775_v14 = vshrl.u32 %v1663_v54, 9  ;;  %v1385_v11 = vmul.u32 2221713035, %v1273_v47  ;;  %v782_v36 = vadd.s32 %v7720_v17, %v669_v43  ;;  %v9253_v47 = vld [vmem:[%s7581_s22 + $0x9c] sm:$0xff] }
 0x178   : > { %v1880_v4 = vand.u32 1, %v1768_v48  ;;  %v1490_v58 = vshrl.u32 %v1378_v21, 16  ;;  %v887_v45 = vshrl.u32 %v775_v0, 16  ;;  %v9236_v2 = vsub.f32 0.0, %v502_v8 }
 0x179   : > { %4055 = vmatprep.mubr.bf16.mxu1 %v2268_v55  ;;  %v1887_v31 = vand.u32 1, %v1775_v14  ;;  %v1497_v51 = vshrl.u32 %v1385_v11, 16  ;;  %v894_v62 = vshrl.u32 %v782_v36, 16  ;;  %v9240_v23 = vsub.f32 0.0, %v509_v20 }
 0x17a   : > { %vm1992_vm0 = vcmp.eq.s32.totalorder %v1880_v4, 0  ;;  %v1602_v30 = vxor.u32 %v1490_v58, %v1378_v21  ;;  %v999_v49 = vxor.u32 %v887_v45, %v775_v0  ;;  %v448_v10 = vunpack.c.h.bf16 %v9243_v44 }
 0x17b   : > { %vm1999_vm1 = vcmp.eq.s32.totalorder %v1887_v31, 0  ;;  %v2216_v34 = vsel %vm1992_vm0, %v487_v7, %v9184_v27  ;;  %v1609_v33 = vxor.u32 %v1497_v51, %v1385_v11  ;;  %v1006_v15 = vxor.u32 %v894_v62, %v782_v36 }
 0x17c   : > { %v2223_v43 = vsel %vm1999_vm1, %v494_v26, %v9189_v28  ;;  %v1714_v1 = vshrl.u32 %v1602_v30, 9  ;;  %v1111_v54 = vmul.u32 2146121005, %v999_v49  ;;  %v455_v32 = vunpack.c.h.bf16 %v9253_v47 }
 0x17d   : > { %v2293_v48 = vpack.c.bf16 %v2223_v43, %v2216_v34  ;;  %v1721_v21 = vshrl.u32 %v1609_v33, 9  ;;  %v1118_v0 = vmul.u32 2146121005, %v1006_v15  ;;  %v608_v55 = vxor.u32 %v9075_v24, %v11618_v63 }
 0x17e   : > { %v1826_v29 = vand.u32 1, %v1714_v1  ;;  %v1223_v7 = vshrl.u32 %v1111_v54, 15  ;;  %v615_v27 = vxor.u32 %v9075_v24, %v11619_v19  ;;  %v9262_v61 = vsub.f32 0.0, %v448_v10 }
 0x17f   : > { %3991 = vmatmul.mubr.bf16.gmra.mrb[84].mxu0 %v2293_v48  ;;  %v1833_v26 = vand.u32 1, %v1721_v21  ;;  %v1230_v28 = vshrl.u32 %v1118_v0, 15  ;;  %v721_v14 = vadd.s32 %v7720_v17, %v608_v55  ;;  %v9267_v11 = vsub.f32 0.0, %v455_v32 }
 0x180   : > { %vm1938_vm2 = vcmp.eq.s32.totalorder %v1826_v29, 0  ;;  %v1335_v36 = vxor.u32 %v1223_v7, %v1111_v54  ;;  %v728_v4 = vadd.s32 %v7720_v17, %v615_v27  ;;  %v501_v58 = vunpack.c.l.bf16 %v9215_v52 }
 0x181   : > { %vm1945_vm3 = vcmp.eq.s32.totalorder %v1833_v26, 0  ;;  %v2162_v45 = vsel %vm1938_vm2, %v433_v25, %v9208_v46  ;;  %v1342_v31 = vxor.u32 %v1230_v28, %v1118_v0  ;;  %v833_v51 = vshrl.u32 %v721_v14, 16 }
 0x182   : > { %v2169_v62 = vsel %vm1945_vm3, %v440_v37, %v9212_v53  ;;  %v1447_v30 = vmul.u32 2221713035, %v1335_v36  ;;  %v840_v49 = vshrl.u32 %v728_v4, 16  ;;  %v11370_v34 = vunpack.c.l.bf16 %v9219_v56 }
 0x183   : > { %v2267_v33 = vpack.c.bf16 %v2169_v62, %v2162_v45  ;;  %v1454_v15 = vmul.u32 2221713035, %v1342_v31  ;;  %v945_v43 = vxor.u32 %v833_v51, %v721_v14  ;;  %v661_v1 = vxor.u32 %v11630_v12, %v8827_v39 }
 0x184   : > { %v1559_v54 = vshrl.u32 %v1447_v30, 16  ;;  %v952_v48 = vxor.u32 %v840_v49, %v728_v4  ;;  %v668_v5 = vxor.u32 %v11630_v12, %v8829_v6  ;;  %v9284_v25 = vsub.f32 0.0, %v501_v58 }
 0x185   : > { %4056 = vmatmul.mubr.bf16.gmra.mrb[84].mxu1 %v2267_v33  ;;  %v1566_v59 = vshrl.u32 %v1454_v15, 16  ;;  %v1057_v37 = vmul.u32 2146121005, %v945_v43  ;;  %v774_v46 = vadd.s32 %v7720_v17, %v661_v1  ;;  %v9289_v53 = vsub.f32 0.0, %v11370_v34 }
 0x186   : > { %v1671_v21 = vxor.u32 %v1559_v54, %v1447_v30  ;;  %v1064_v0 = vmul.u32 2146121005, %v952_v48  ;;  %v781_v55 = vadd.s32 %v7720_v17, %v668_v5  ;;  %v447_v29 = vunpack.c.l.bf16 %v9243_v44  ;;  %v9382_v44 = vpop.f32.mrb[0].mxu1 }
 0x187   : > { %v1678_v7 = vxor.u32 %v1566_v59, %v1454_v15  ;;  %v1169_v27 = vshrl.u32 %v1057_v37, 15  ;;  %v886_v26 = vshrl.u32 %v774_v46, 16  ;;  %v454_v28 = vunpack.c.l.bf16 %v9253_v47 }
 0x188   : > { %v1783_v14 = vshrl.u32 %v1671_v21, 9  ;;  %v1176_v36 = vshrl.u32 %v1064_v0, 15  ;;  %v893_v4 = vshrl.u32 %v781_v55, 16  ;;  %v607_v45 = vxor.u32 %v9104_v41, %v11618_v63 }
 0x189   : > { %v1790_v31 = vshrl.u32 %v1678_v7, 9  ;;  %v1281_v51 = vxor.u32 %v1169_v27, %v1057_v37  ;;  %v998_v62 = vxor.u32 %v886_v26, %v774_v46  ;;  %v614_v30 = vxor.u32 %v9104_v41, %v11619_v19 }
 0x18a   : > { %v1895_v49 = vand.u32 1, %v1783_v14  ;;  %v1288_v33 = vxor.u32 %v1176_v36, %v1064_v0  ;;  %v1005_v43 = vxor.u32 %v893_v4, %v781_v55  ;;  %v720_v15 = vadd.s32 %v7720_v17, %v607_v45 }
 0x18b   : > { %v1902_v1 = vand.u32 1, %v1790_v31  ;;  %v1393_v54 = vmul.u32 2221713035, %v1281_v51  ;;  %v1110_v48 = vmul.u32 2146121005, %v998_v62  ;;  %v727_v5 = vadd.s32 %v7720_v17, %v614_v30 }
 0x18c   : > { %vm2007_vm5 = vcmp.eq.s32.totalorder %v1895_v49, 0  ;;  %v1400_v59 = vmul.u32 2221713035, %v1288_v33  ;;  %v1117_v21 = vmul.u32 2146121005, %v1005_v43  ;;  %v832_v34 = vshrl.u32 %v720_v15, 16 }
 0x18d   : > { %vm2014_vm6 = vcmp.eq.s32.totalorder %v1902_v1, 0  ;;  %v2231_v37 = vsel %vm2007_vm5, %v502_v8, %v9236_v2  ;;  %v1505_v46 = vshrl.u32 %v1393_v54, 16  ;;  %v1222_v7 = vshrl.u32 %v1110_v48, 15 }
 0x18e   : > { %v2238_v0 = vsel %vm2014_vm6, %v509_v20, %v9240_v23  ;;  %v1512_v55 = vshrl.u32 %v1400_v59, 16  ;;  %v1229_v27 = vshrl.u32 %v1117_v21, 15  ;;  %v839_v26 = vshrl.u32 %v727_v5, 16 }
 0x18f   : > { %v2301_v14 = vpack.c.bf16 %v2238_v0, %v2231_v37  ;;  %v1617_v36 = vxor.u32 %v1505_v46, %v1393_v54  ;;  %v1334_v4 = vxor.u32 %v1222_v7, %v1110_v48  ;;  %v944_v45 = vxor.u32 %v832_v34, %v720_v15  ;;  %v9315_v34 = vld [vmem:[%s7581_s22 + $0x190] sm:$0xff] }
 0x190   : > { %v1624_v31 = vxor.u32 %v1512_v55, %v1400_v59  ;;  %v1341_v51 = vxor.u32 %v1229_v27, %v1117_v21  ;;  %v951_v62 = vxor.u32 %v839_v26, %v727_v5  ;;  %v9308_v8 = vsub.f32 0.0, %v447_v29  ;;  %v9319_v5 = vld [vmem:[%s7581_s22 + $0x1ac] sm:$0xff] }
 0x191   : > { %3998 = vmatprep.mubr.bf16.mxu0 %v2301_v14  ;;  %v1729_v2 = vshrl.u32 %v1617_v36, 9  ;;  %v1446_v30 = vmul.u32 2221713035, %v1334_v4  ;;  %v1056_v20 = vmul.u32 2146121005, %v944_v45  ;;  %v9312_v23 = vsub.f32 0.0, %v454_v28 }
 0x192   : > { %v1736_v49 = vshrl.u32 %v1624_v31, 9  ;;  %v1453_v33 = vmul.u32 2221713035, %v1341_v51  ;;  %v1063_v43 = vmul.u32 2146121005, %v951_v62  ;;  %v516_v15 = vunpack.c.h.bf16 %v9315_v34 }
 0x193   : > { %v1841_v1 = vand.u32 1, %v1729_v2  ;;  %v1558_v54 = vshrl.u32 %v1446_v30, 16  ;;  %v1168_v48 = vshrl.u32 %v1056_v20, 15  ;;  %v11375_v59 = vunpack.c.h.bf16 %v9319_v5 }
 0x194   : > { %v1848_v21 = vand.u32 1, %v1736_v49  ;;  %v1565_v37 = vshrl.u32 %v1453_v33, 16  ;;  %v1175_v46 = vshrl.u32 %v1063_v43, 15  ;;  %v676_v7 = vxor.u32 %v8650_v42, %v8933_v35 }
 0x195   : > { %vm1953_vm7 = vcmp.eq.s32.totalorder %v1841_v1, 0  ;;  %v1670_v0 = vxor.u32 %v1558_v54, %v1446_v30  ;;  %v1280_v55 = vxor.u32 %v1168_v48, %v1056_v20  ;;  %v683_v27 = vxor.u32 %v8650_v42, %v8939_v57  ;;  %v9343_v48 = vld [vmem:[%s7581_s22 + $0xb8] sm:$0xff] }
 0x196   : > { %vm1960_vm8 = vcmp.eq.s32.totalorder %v1848_v21, 0  ;;  %v2177_v26 = vsel %vm1953_vm7, %v448_v10, %v9262_v61  ;;  %v1677_v14 = vxor.u32 %v1565_v37, %v1453_v33  ;;  %v1287_v36 = vxor.u32 %v1175_v46, %v1063_v43 }
 0x197   : > { %v2184_v4 = vsel %vm1960_vm8, %v455_v32, %v9267_v11  ;;  %v1782_v45 = vshrl.u32 %v1670_v0, 9  ;;  %v1392_v31 = vmul.u32 2221713035, %v1280_v55  ;;  %v789_v51 = vadd.s32 %v7720_v17, %v676_v7 }
 0x198   : > { %v2275_v62 = vpack.c.bf16 %v2184_v4, %v2177_v26  ;;  %v1789_v2 = vshrl.u32 %v1677_v14, 9  ;;  %v1399_v30 = vmul.u32 2221713035, %v1287_v36  ;;  %v796_v42 = vadd.s32 %v7720_v17, %v683_v27  ;;  %v9353_v14 = vld [vmem:[%s7581_s22 + $0xd4] sm:$0xff] }
 0x199   : > { %v1894_v20 = vand.u32 1, %v1782_v45  ;;  %v1504_v49 = vshrl.u32 %v1392_v31, 16  ;;  %v901_v1 = vshrl.u32 %v789_v51, 16  ;;  %v9336_v10 = vsub.f32 0.0, %v516_v15 }
 0x19a   : > { %4063 = vmatprep.mubr.bf16.mxu1 %v2275_v62  ;;  %v1901_v61 = vand.u32 1, %v1789_v2  ;;  %v1511_v32 = vshrl.u32 %v1399_v30, 16  ;;  %v908_v11 = vshrl.u32 %v796_v42, 16  ;;  %v9340_v33 = vsub.f32 0.0, %v11375_v59 }
 0x19b   : > { %vm2006_vm9 = vcmp.eq.s32.totalorder %v1894_v20, 0  ;;  %v1616_v43 = vxor.u32 %v1504_v49, %v1392_v31  ;;  %v1013_v54 = vxor.u32 %v901_v1, %v789_v51  ;;  %v11374_v21 = vunpack.c.h.bf16 %v9343_v48 }
 0x19c   : > { %vm2013_vm10 = vcmp.eq.s32.totalorder %v1901_v61, 0  ;;  %v2230_v37 = vsel %vm2006_vm9, %v501_v58, %v9284_v25  ;;  %v1623_v46 = vxor.u32 %v1511_v32, %v1399_v30  ;;  %v1020_v7 = vxor.u32 %v908_v11, %v796_v42 }
 0x19d   : > { %v11670_v0 = vunpack.c.l.bf16 %v9219_v56  ;;  %v1728_v27 = vshrl.u32 %v1616_v43, 9  ;;  %v1125_v26 = vmul.u32 2146121005, %v1013_v54  ;;  %v11373_v36 = vunpack.c.h.bf16 %v9353_v14 }
 0x19e   : > { %v1735_v45 = vshrl.u32 %v1623_v46, 9  ;;  %v1132_v31 = vmul.u32 2146121005, %v1020_v7  ;;  %v622_v51 = vxor.u32 %v9075_v24, %v8501_v3  ;;  %v629_v25 = vxor.u32 %v9075_v24, %v11639_v50 }
 0x19f   : > { %v2237_v55 = vsel %vm2013_vm10, %v11670_v0, %v9289_v53  ;;  %v1840_v52 = vand.u32 1, %v1728_v27  ;;  %v1237_v58 = vshrl.u32 %v1125_v26, 15  ;;  %v9362_v56 = vsub.f32 0.0, %v11374_v21  ;;  %v9380_v27 = vpop.f32.mrb[0].mxu0 }
 0x1a0   : > { %v2300_v4 = vpack.c.bf16 %v2237_v55, %v2230_v37  ;;  %v1847_v53 = vand.u32 1, %v1735_v45  ;;  %v1244_v62 = vshrl.u32 %v1132_v31, 15  ;;  %v735_v2 = vadd.s32 %v7720_v17, %v622_v51 }
 0x1a1   : > { %v9367_v30 = vsub.f32 0.0, %v11373_v36  ;;  %vm1952_vm11 = vcmp.eq.s32.totalorder %v1840_v52, 0  ;;  %v1349_v42 = vxor.u32 %v1237_v58, %v1125_v26  ;;  %v742_v20 = vadd.s32 %v7720_v17, %v629_v25  ;;  %v9392_v26 = vpop.f32.mrb[1].mxu1 }
 0x1a2   : > { %3999 = vmatmul.mubr.bf16.gmra.mrb[88].mxu0 %v2300_v4  ;;  %v11372_v49 = vunpack.c.l.bf16 %v9315_v34  ;;  %vm1959_vm12 = vcmp.eq.s32.totalorder %v1847_v53, 0  ;;  %v2176_v1 = vsel %vm1952_vm11, %v447_v29, %v9308_v8  ;;  %v1356_v61 = vxor.u32 %v1244_v62, %v1132_v31 }
 0x1a3   : > { %v847_v32 = vshrl.u32 %v735_v2, 16  ;;  %v2183_v11 = vsel %vm1959_vm12, %v454_v28, %v9312_v23  ;;  %v1461_v43 = vmul.u32 2221713035, %v1349_v42  ;;  %v854_v54 = vshrl.u32 %v742_v20, 16  ;;  %v9390_v23 = vpop.f32.mrb[1].mxu0 }
 0x1a4   : > { %v11371_v37 = vunpack.c.l.bf16 %v9319_v5  ;;  %v2274_v46 = vpack.c.bf16 %v2183_v11, %v2176_v1  ;;  %v1468_v7 = vmul.u32 2221713035, %v1356_v61  ;;  %v675_v55 = vxor.u32 %v11630_v12, %v8933_v35  ;;  %v9399_v52 = vpop.f32.mrb[2].mxu0 }
 0x1a5   : > { %v959_v0 = vxor.u32 %v847_v32, %v735_v2  ;;  %v1573_v29 = vshrl.u32 %v1461_v43, 16  ;;  %v966_v8 = vxor.u32 %v854_v54, %v742_v20  ;;  %v682_v47 = vxor.u32 %v11630_v12, %v8939_v57  ;;  %v9401_v12 = vpop.f32.mrb[2].mxu1  ;;  %v9405_v2 = vpop.f32.mrb[3].mxu0 }
 0x1a6   : > { %v9388_v28 = vsub.f32 0.0, %v11372_v49  ;;  %4064 = vmatmul.mubr.bf16.gmra.mrb[88].mxu1 %v2274_v46  ;;  %v1580_v4 = vshrl.u32 %v1468_v7, 16  ;;  %v788_v31 = vadd.s32 %v7720_v17, %v675_v55  ;;  %v9397_v51 = vsub.f32 0.0, %v11371_v37  ;;  %v9407_v42 = vpop.f32.mrb[3].mxu1 }
 0x1a7   : > { %v1071_v45 = vmul.u32 2146121005, %v959_v0  ;;  %v1685_v58 = vxor.u32 %v1573_v29, %v1461_v43  ;;  %v1078_v25 = vmul.u32 2146121005, %v966_v8  ;;  %v795_v53 = vadd.s32 %v7720_v17, %v682_v47 }
 0x1a8   : > { %v1692_v20 = vxor.u32 %v1580_v4, %v1468_v7  ;;  %v900_v61 = vshrl.u32 %v788_v31, 16  ;;  %v621_v43 = vxor.u32 %v9104_v41, %v8501_v3  ;;  %v628_v8 = vxor.u32 %v9104_v41, %v11639_v50 }
 0x1a9   : > { %v1183_v1 = vshrl.u32 %v1071_v45, 15  ;;  %v1797_v11 = vshrl.u32 %v1685_v58, 9  ;;  %v1190_v54 = vshrl.u32 %v1078_v25, 15  ;;  %v907_v46 = vshrl.u32 %v795_v53, 16 }
 0x1aa   : > { %v1804_v0 = vshrl.u32 %v1692_v20, 9  ;;  %v1012_v29 = vxor.u32 %v900_v61, %v788_v31  ;;  %v734_v7 = vadd.s32 %v7720_v17, %v621_v43  ;;  %v741_v58 = vadd.s32 %v7720_v17, %v628_v8 }
 0x1ab   : > { %v1295_v55 = vxor.u32 %v1183_v1, %v1071_v45  ;;  %v1909_v47 = vand.u32 1, %v1797_v11  ;;  %v1302_v37 = vxor.u32 %v1190_v54, %v1078_v25  ;;  %v1019_v49 = vxor.u32 %v907_v46, %v795_v53 }
 0x1ac   : > { %v1916_v4 = vand.u32 1, %v1804_v0  ;;  %v1124_v21 = vmul.u32 2146121005, %v1012_v29  ;;  %v846_v59 = vshrl.u32 %v734_v7, 16  ;;  %v11671_v25 = vunpack.c.h.bf16 %v9319_v5 }
 0x1ad   : > { %v1407_v36 = vmul.u32 2221713035, %v1295_v55  ;;  %vm2021_vm13 = vcmp.eq.s32.totalorder %v1909_v47, 0  ;;  %v1414_v32 = vmul.u32 2221713035, %v1302_v37  ;;  %v853_v11 = vshrl.u32 %v741_v58, 16 }
 0x1ae   : > { %v1131_v62 = vmul.u32 2146121005, %v1019_v49  ;;  %vm2028_vm14 = vcmp.eq.s32.totalorder %v1916_v4, 0  ;;  %v2245_v45 = vsel %vm2021_vm13, %v516_v15, %v9336_v10  ;;  %v1236_v20 = vshrl.u32 %v1124_v21, 15 }
 0x1af   : > { %v1519_v31 = vshrl.u32 %v1407_v36, 16  ;;  %v2252_v53 = vsel %vm2028_vm14, %v11671_v25, %v9340_v33  ;;  %v1526_v1 = vshrl.u32 %v1414_v32, 16  ;;  %v958_v49 = vxor.u32 %v846_v59, %v734_v7  ;;  %v9431_v59 = vld [vmem:[%s7581_s22 + $0xf0] sm:$0xff] }
 0x1b0   : > { %v1243_v61 = vshrl.u32 %v1131_v62, 15  ;;  %v2308_v54 = vpack.c.bf16 %v2252_v53, %v2245_v45  ;;  %v1348_v37 = vxor.u32 %v1236_v20, %v1124_v21  ;;  %v965_v55 = vxor.u32 %v853_v11, %v741_v58 }
 0x1b1   : > { %v1631_v46 = vxor.u32 %v1519_v31, %v1407_v36  ;;  %v1638_v43 = vxor.u32 %v1526_v1, %v1414_v32  ;;  %v11672_v15 = vunpack.c.l.bf16 %v9343_v48  ;;  %v1070_v33 = vmul.u32 2146121005, %v958_v49  ;;  %v9435_v31 = vld [vmem:[%s7581_s22 + $0x10c] sm:$0xff] }
 0x1b2   : > { %v1355_v0 = vxor.u32 %v1243_v61, %v1131_v62  ;;  %4006 = vmatprep.mubr.bf16.mxu0 %v2308_v54  ;;  %v1460_v8 = vmul.u32 2221713035, %v1348_v37  ;;  %v11673_v47 = vunpack.c.l.bf16 %v9353_v14  ;;  %v1077_v21 = vmul.u32 2146121005, %v965_v55 }
 0x1b3   : > { %v9424_v10 = vsub.f32 0.0, %v11672_v15  ;;  %v1743_v29 = vshrl.u32 %v1631_v46, 9  ;;  %v1750_v45 = vshrl.u32 %v1638_v43, 9  ;;  %v11378_v62 = vunpack.c.h.bf16 %v9431_v59 }
 0x1b4   : > { %v9428_v4 = vsub.f32 0.0, %v11673_v47  ;;  %v1467_v36 = vmul.u32 2221713035, %v1355_v0  ;;  %v1572_v7 = vshrl.u32 %v1460_v8, 16  ;;  %v1182_v58 = vshrl.u32 %v1070_v33, 15 }
 0x1b5   : > { %v1855_v32 = vand.u32 1, %v1743_v29  ;;  %v1862_v25 = vand.u32 1, %v1750_v45  ;;  %v1189_v1 = vshrl.u32 %v1077_v21, 15  ;;  %v636_v61 = vxor.u32 %v9075_v24, %v8622_v13 }
 0x1b6   : > { %v1579_v53 = vshrl.u32 %v1467_v36, 16  ;;  %v1684_v11 = vxor.u32 %v1572_v7, %v1460_v8  ;;  %v1294_v54 = vxor.u32 %v1182_v58, %v1070_v33  ;;  %v643_v46 = vxor.u32 %v9075_v24, %v8632_v16 }
 0x1b7   : > { %vm1967_vm15 = vcmp.eq.s32.totalorder %v1855_v32, 0  ;;  %vm1974_vm0 = vcmp.eq.s32.totalorder %v1862_v25, 0  ;;  %v11674_v37 = vunpack.c.h.bf16 %v9343_v48  ;;  %v1301_v0 = vxor.u32 %v1189_v1, %v1077_v21 }
 0x1b8   : > { %v1691_v43 = vxor.u32 %v1579_v53, %v1467_v36  ;;  %v11675_v55 = vunpack.c.h.bf16 %v9353_v14  ;;  %v1796_v29 = vshrl.u32 %v1684_v11, 9  ;;  %v1406_v47 = vmul.u32 2221713035, %v1294_v54 }
 0x1b9   : > { %v2191_v49 = vsel %vm1967_vm15, %v11674_v37, %v9362_v56  ;;  %v749_v45 = vadd.s32 %v7720_v17, %v636_v61  ;;  %v1413_v32 = vmul.u32 2221713035, %v1301_v0  ;;  %v756_v7 = vadd.s32 %v7720_v17, %v643_v46 }
 0x1ba   : > { %v2198_v15 = vsel %vm1974_vm0, %v11675_v55, %v9367_v30  ;;  %v1803_v33 = vshrl.u32 %v1691_v43, 9  ;;  %v1908_v58 = vand.u32 1, %v1796_v29  ;;  %v1518_v25 = vshrl.u32 %v1406_v47, 16 }
 0x1bb   : > { %v2282_v8 = vpack.c.bf16 %v2198_v15, %v2191_v49  ;;  %v861_v20 = vshrl.u32 %v749_v45, 16  ;;  %v9452_v56 = vsub.f32 0.0, %v11378_v62  ;;  %v1525_v21 = vshrl.u32 %v1413_v32, 16 }
 0x1bc   : > { %v1915_v36 = vand.u32 1, %v1803_v33  ;;  %v868_v30 = vshrl.u32 %v756_v7, 16  ;;  %v11676_v53 = vunpack.c.h.bf16 %v9435_v31  ;;  %vm2020_vm1 = vcmp.eq.s32.totalorder %v1908_v58, 0 }
 0x1bd   : > { %4071 = vmatprep.mubr.bf16.mxu1 %v2282_v8  ;;  %v1630_v61 = vxor.u32 %v1518_v25, %v1406_v47  ;;  %v973_v11 = vxor.u32 %v861_v20, %v749_v45  ;;  %v551_v54 = vadd.s32 768, %v11651_v60  ;;  %v11677_v46 = vunpack.c.l.bf16 %v9315_v34 }
 0x1be   : > { %v9456_v1 = vsub.f32 0.0, %v11676_v53  ;;  %vm2027_vm2 = vcmp.eq.s32.totalorder %v1915_v36, 0  ;;  %v1637_v49 = vxor.u32 %v1525_v21, %v1413_v32  ;;  %v980_v43 = vxor.u32 %v868_v30, %v756_v7 }
 0x1bf   : > { %v2244_v37 = vsel %vm2020_vm1, %v11677_v46, %v9388_v28  ;;  %v11678_v0 = vunpack.c.l.bf16 %v9319_v5  ;;  %v1742_v15 = vshrl.u32 %v1630_v61, 9  ;;  %v1085_v29 = vmul.u32 2146121005, %v973_v11  ;;  %v11679_v28 = vld [vmem:[#allocation11_spill] sm:$0xff]  ;;  %v9484_v46 = vpop.f32.mrb[4].mxu1 }
 0x1c0   : > { %v9465_v8 = vmul.u32 2246822519, %v551_v54  ;;  %v1749_v47 = vshrl.u32 %v1637_v49, 9  ;;  %v1092_v20 = vmul.u32 2146121005, %v980_v43  ;;  %v11377_v60 = vunpack.c.l.bf16 %v9431_v59  ;;  %v9482_v54 = vpop.f32.mrb[4].mxu0 }
 0x1c1   : > { %v2251_v55 = vsel %vm2027_vm2, %v11678_v0, %v9397_v51  ;;  %v1854_v45 = vand.u32 1, %v1742_v15  ;;  %v1197_v58 = vshrl.u32 %v1085_v29, 15  ;;  %v11376_v7 = vunpack.c.l.bf16 %v9435_v31  ;;  %v9489_v15 = vpop.f32.mrb[5].mxu0 }
 0x1c2   : > { %v2307_v33 = vpack.c.bf16 %v2251_v55, %v2244_v37  ;;  %v581_v34 = vxor.u32 %v9465_v8, %v11574_v22  ;;  %v588_v32 = vxor.u32 %v9465_v8, %v11679_v28  ;;  %v1861_v5 = vand.u32 1, %v1749_v47 }
 0x1c3   : > { %v1204_v51 = vshrl.u32 %v1092_v20, 15  ;;  %v635_v25 = vxor.u32 %v9104_v41, %v8622_v13  ;;  %vm1966_vm3 = vcmp.eq.s32.totalorder %v1854_v45, 0  ;;  %v1309_v36 = vxor.u32 %v1197_v58, %v1085_v29  ;;  %v9491_v29 = vpop.f32.mrb[5].mxu1 }
 0x1c4   : > { %4007 = vmatmul.mubr.bf16.gmra.mrb[92].mxu0 %v2307_v33  ;;  %v694_v21 = vadd.s32 %v7720_v17, %v581_v34  ;;  %v701_v30 = vadd.s32 %v7720_v17, %v588_v32  ;;  %vm1973_vm5 = vcmp.eq.s32.totalorder %v1861_v5, 0  ;;  %v11680_v22 = vunpack.c.l.bf16 %v9343_v48  ;;  %v9497_v45 = vpop.f32.mrb[6].mxu1 }
 0x1c5   : > { %v1316_v61 = vxor.u32 %v1204_v51, %v1092_v20  ;;  %v642_v11 = vxor.u32 %v9104_v41, %v8632_v16  ;;  %v11681_v37 = vunpack.c.l.bf16 %v9353_v14  ;;  %v1421_v43 = vmul.u32 2221713035, %v1309_v36  ;;  %v9495_v20 = vpop.f32.mrb[6].mxu0  ;;  %v9505_v32 = vpop.f32.mrb[7].mxu1 }
 0x1c6   : > { %v2190_v53 = vsel %vm1966_vm3, %v11680_v22, %v9424_v10  ;;  %v806_v0 = vshrl.u32 %v694_v21, 16  ;;  %v813_v55 = vshrl.u32 %v701_v30, 16  ;;  %v748_v33 = vadd.s32 %v7720_v17, %v635_v25  ;;  %v9503_v28 = vpop.f32.mrb[7].mxu0 }
 0x1c7   : > { %v2197_v49 = vsel %vm1973_vm5, %v11681_v37, %v9428_v4  ;;  %v1428_v10 = vmul.u32 2221713035, %v1316_v61  ;;  %v755_v47 = vadd.s32 %v7720_v17, %v642_v11  ;;  %v1533_v58 = vshrl.u32 %v1421_v43, 16  ;;  %v9511_v22 = vpop.f32.mrb[8].mxu0 }
 0x1c8   : > { %v2281_v48 = vpack.c.bf16 %v2197_v49, %v2190_v53  ;;  %v918_v14 = vxor.u32 %v806_v0, %v694_v21  ;;  %v925_v4 = vxor.u32 %v813_v55, %v701_v30  ;;  %v9501_v34 = vsub.f32 0.0, %v11377_v60  ;;  %11682 = vst [vmem:[#allocation33_spill] sm:$0xff] %v9511_v22  ;;  %v9513_v21 = vpop.f32.mrb[8].mxu1  ;;  %v9517_v37 = vpop.f32.mrb[9].mxu0 }
 0x1c9   : > { %v1540_v5 = vshrl.u32 %v1428_v10, 16  ;;  %v860_v51 = vshrl.u32 %v748_v33, 16  ;;  %v867_v25 = vshrl.u32 %v755_v47, 16  ;;  %v9509_v36 = vsub.f32 0.0, %v11376_v7  ;;  %11683 = vst [vmem:[#allocation66_spill] sm:$0xff] %v9513_v21  ;;  %11684 = vst [vmem:[#allocation23_spill] sm:$0xff] %v9517_v37 }
 0x1ca   : > { %4072 = vmatmul.mubr.bf16.gmra.mrb[92].mxu1 %v2281_v48  ;;  %v1645_v30 = vxor.u32 %v1533_v58, %v1421_v43  ;;  %v1030_v53 = vmul.u32 2146121005, %v918_v14  ;;  %v1037_v61 = vmul.u32 2146121005, %v925_v4  ;;  %v595_v11 = vxor.u32 %v9465_v8, %v7820_v18  ;;  %v9519_v49 = vpop.f32.mrb[9].mxu1  ;;  %v9523_v60 = vpop.f32.mrb[10].mxu0 }
 0x1cb   : > { %11685 = vst [vmem:[#allocation29_spill] sm:$0xff] %v9519_v49  ;;  %v1652_v0 = vxor.u32 %v1540_v5, %v1428_v10  ;;  %v972_v55 = vxor.u32 %v860_v51, %v748_v33  ;;  %v979_v48 = vxor.u32 %v867_v25, %v755_v47  ;;  %v602_v7 = vxor.u32 %v9465_v8, %v7840_v9  ;;  %v9525_v62 = vpop.f32.mrb[10].mxu1  ;;  %v9528_v18 = vpop.f32.mrb[11].mxu0 }
 0x1cc   : > { %11686 = vst [vmem:[#allocation24_spill] sm:$0xff] %v9523_v60  ;;  %11687 = vst [vmem:[#allocation25_spill] sm:$0xff] %v9525_v62  ;;  %v1757_v43 = vshrl.u32 %v1645_v30, 9  ;;  %v1142_v58 = vshrl.u32 %v1030_v53, 15  ;;  %v1149_v14 = vshrl.u32 %v1037_v61, 15  ;;  %v708_v4 = vadd.s32 %v7720_v17, %v595_v11  ;;  %v9530_v21 = vpop.f32.mrb[11].mxu1 }
 0x1cd   : > { %11688 = vst [vmem:[#allocation9_spill] sm:$0xff] %v9528_v18  ;;  %11689 = vst [vmem:[#allocation8_spill] sm:$0xff] %v9530_v21  ;;  %v1764_v49 = vshrl.u32 %v1652_v0, 9  ;;  %v1084_v10 = vmul.u32 2146121005, %v972_v55  ;;  %v715_v47 = vadd.s32 %v7720_v17, %v602_v7  ;;  %v9533_v5 = vpop.f32.mrb[12].mxu0 }
 0x1ce   : > { %v1091_v33 = vmul.u32 2146121005, %v979_v48  ;;  %v1869_v9 = vand.u32 1, %v1757_v43  ;;  %v1254_v51 = vxor.u32 %v1142_v58, %v1030_v53  ;;  %v1261_v25 = vxor.u32 %v1149_v14, %v1037_v61  ;;  %v9535_v30 = vpop.f32.mrb[12].mxu1  ;;  %v9537_v60 = vpop.f32.mrb[13].mxu0 }
 0x1cf   : > { %v820_v62 = vshrl.u32 %v708_v4, 16  ;;  %11690 = vst [vmem:[#allocation10_spill] sm:$0xff] %v9535_v30  ;;  %11691 = vst [vmem:[#allocation16_spill] sm:$0xff] %v9537_v60  ;;  %v1876_v11 = vand.u32 1, %v1764_v49  ;;  %v1196_v37 = vshrl.u32 %v1084_v10, 15  ;;  %v827_v22 = vshrl.u32 %v715_v47, 16 }
 0x1d0   : > { %v1203_v18 = vshrl.u32 %v1091_v33, 15  ;;  %v9539_v21 = vpop.f32.mrb[13].mxu1  ;;  %v9541_v0 = vpop.f32.mrb[14].mxu0  ;;  %vm1981_vm6 = vcmp.eq.s32.totalorder %v1869_v9, 0  ;;  %v1366_v7 = vmul.u32 2221713035, %v1254_v51  ;;  %v11695_v53 = vunpack.c.h.bf16 %v9431_v59 }
 0x1d1   : > { %11692 = vst [vmem:[#allocation41_spill] sm:$0xff] %v9539_v21  ;;  %11693 = vst [vmem:[#allocation40_spill] sm:$0xff] %v9541_v0  ;;  %v1373_v55 = vmul.u32 2221713035, %v1261_v25  ;;  %v932_v48 = vxor.u32 %v820_v62, %v708_v4  ;;  %v9543_v43 = vpop.f32.mrb[14].mxu1  ;;  %vm1988_vm7 = vcmp.eq.s32.totalorder %v1876_v11, 0  ;;  %v1308_v49 = vxor.u32 %v1196_v37, %v1084_v10 }
 0x1d2   : > { %11694 = vst [vmem:[#allocation77_spill] sm:$0xff] %v9543_v43  ;;  %v2205_v61 = vsel %vm1981_vm6, %v11695_v53, %v9452_v56  ;;  %v1315_v58 = vxor.u32 %v1203_v18, %v1091_v33  ;;  %v9548_v14 = vpop.f32.mrb[15].mxu0  ;;  %v9550_v30 = vpop.f32.mrb[15].mxu1  ;;  %v11698_v9 = vunpack.c.h.bf16 %v9435_v31  ;;  %v1478_v25 = vshrl.u32 %v1366_v7, 16  ;;  %v9560_v18 = vld [vmem:[%s7581_s22 + $0x128] sm:$0xff] }
 0x1d3   : > { %11696 = vst [vmem:[#allocation78_spill] sm:$0xff] %v9548_v14  ;;  %11697 = vst [vmem:[#allocation19_spill] sm:$0xff] %v9550_v30  ;;  %v1485_v62 = vshrl.u32 %v1373_v55, 16  ;;  %v939_v4 = vxor.u32 %v827_v22, %v715_v47  ;;  %v9555_v43 = vpop.f32.mrb[16].mxu0  ;;  %v9557_v11 = vpop.f32.mrb[16].mxu1  ;;  %v650_v10 = vxor.u32 %v9075_v24, %v8737_v40 }
 0x1d4   : > { %v2212_v51 = vsel %vm1988_vm7, %v11698_v9, %v9456_v1  ;;  %11699 = vst [vmem:[#allocation20_spill] sm:$0xff] %v9555_v43  ;;  %11700 = vst [vmem:[#allocation13_spill] sm:$0xff] %v9557_v11  ;;  %v1420_v56 = vmul.u32 2221713035, %v1308_v49  ;;  %v1427_v37 = vmul.u32 2221713035, %v1315_v58  ;;  %v1590_v1 = vxor.u32 %v1478_v25, %v1366_v7 }
 0x1d5   : > { %v2289_v0 = vpack.c.bf16 %v2212_v51, %v2205_v61  ;;  %v9563_v33 = vpop.f32.mrb[17].mxu0  ;;  %v9565_v53 = vpop.f32.mrb[17].mxu1  ;;  %v1597_v9 = vxor.u32 %v1485_v62, %v1373_v55  ;;  %v1044_v30 = vmul.u32 2146121005, %v932_v48  ;;  %v1051_v22 = vmul.u32 2146121005, %v939_v4 }
 0x1d6   : > { %11701 = vst [vmem:[#allocation30_spill] sm:$0xff] %v9563_v33  ;;  %11702 = vst [vmem:[#allocation7_spill] sm:$0xff] %v9565_v53  ;;  %v9567_v47 = vpop.f32.mrb[18].mxu0  ;;  %v9569_v43 = vpop.f32.mrb[18].mxu1  ;;  %v1532_v61 = vshrl.u32 %v1420_v56, 16  ;;  %v1539_v49 = vshrl.u32 %v1427_v37, 16  ;;  %v657_v51 = vxor.u32 %v9075_v24, %v8739_v38  ;;  %v763_v53 = vadd.s32 %v7720_v17, %v650_v10 }
 0x1d7   : > { %11703 = vst [vmem:[#allocation44_spill] sm:$0xff] %v9567_v47  ;;  %11704 = vst [vmem:[#allocation35_spill] sm:$0xff] %v9569_v43  ;;  %4079 = vmatprep.mubr.bf16.mxu1 %v2289_v0  ;;  %v9572_v58 = vld [vmem:[%s7581_s22 + $0x144] sm:$0xff]  ;;  %v9577_v11 = vpop.f32.mrb[19].mxu0  ;;  %v9579_v7 = vpop.f32.mrb[19].mxu1  ;;  %v1702_v55 = vshrl.u32 %v1590_v1, 9 }
 0x1d8   : > { %11705 = vst [vmem:[#allocation45_spill] sm:$0xff] %v9577_v11  ;;  %11706 = vst [vmem:[#allocation37_spill] sm:$0xff] %v9579_v7  ;;  %v1709_v48 = vshrl.u32 %v1597_v9, 9  ;;  %v1156_v25 = vshrl.u32 %v1044_v30, 15  ;;  %v1163_v62 = vshrl.u32 %v1051_v22, 15  ;;  %v9581_v4 = vpop.f32.mrb[20].mxu0  ;;  %v1644_v43 = vxor.u32 %v1532_v61, %v1420_v56 }
 0x1d9   : > { %11707 = vst [vmem:[#allocation11_spill] sm:$0xff] %v9581_v4  ;;  %v9583_v0 = vpop.f32.mrb[20].mxu1  ;;  %v1651_v47 = vxor.u32 %v1539_v49, %v1427_v37  ;;  %v9588_v33 = vpop.f32.mrb[21].mxu0  ;;  %v1814_v7 = vand.u32 1, %v1702_v55  ;;  %v770_v37 = vadd.s32 %v7720_v17, %v657_v51  ;;  %v875_v61 = vshrl.u32 %v763_v53, 16 }
 0x1da   : > { %11708 = vst [vmem:[#allocation79_spill] sm:$0xff] %v9583_v0  ;;  %11709 = vst [vmem:[#allocation80_spill] sm:$0xff] %v9588_v33  ;;  %v9590_v11 = vpop.f32.mrb[21].mxu1  ;;  %v1821_v1 = vand.u32 1, %v1709_v48  ;;  %v1268_v9 = vxor.u32 %v1156_v25, %v1044_v30  ;;  %v1275_v14 = vxor.u32 %v1163_v62, %v1051_v22  ;;  %v9592_v21 = vpop.f32.mrb[22].mxu0  ;;  %v1756_v0 = vshrl.u32 %v1644_v43, 9 }
 0x1db   : > { %11710 = vst [vmem:[#allocation81_spill] sm:$0xff] %v9590_v11  ;;  %11711 = vst [vmem:[#allocation82_spill] sm:$0xff] %v9592_v21  ;;  %v9594_v4 = vpop.f32.mrb[22].mxu1  ;;  %v1763_v56 = vshrl.u32 %v1651_v47, 9  ;;  %v9597_v49 = vpop.f32.mrb[23].mxu0  ;;  %vm1926_vm8 = vcmp.eq.s32.totalorder %v1814_v7, 0 }
 0x1dc   : > { %11712 = vst [vmem:[#allocation83_spill] sm:$0xff] %v9594_v4  ;;  %11713 = vst [vmem:[#allocation84_spill] sm:$0xff] %v9597_v49  ;;  %v9599_v10 = vpop.f32.mrb[23].mxu1  ;;  %vm1933_vm9 = vcmp.eq.s32.totalorder %v1821_v1, 0  ;;  %v1380_v11 = vmul.u32 2221713035, %v1268_v9 }
 0x1dd   : > { %11714 = vst [vmem:[#allocation85_spill] sm:$0xff] %v9599_v10  ;;  %v1387_v55 = vmul.u32 2221713035, %v1275_v14  ;;  %v11715_v48 = vld [vmem:[#allocation46_spill] sm:$0xff]  ;;  %v11718_v62 = vld [vmem:[#allocation47_spill] sm:$0xff]  ;;  %v1868_v47 = vand.u32 1, %v1756_v0 }
 0x1de   : > { %v11716_v30 = vld [vmem:[#allocation38_spill] sm:$0xff]  ;;  %v11719_v21 = vld [vmem:[#allocation39_spill] sm:$0xff]  ;;  %v1875_v33 = vand.u32 1, %v1763_v56  ;;  %v9607_v51 = vpop.f32.mrb[24].mxu0  ;;  %v9609_v60 = vpop.f32.mrb[24].mxu1  ;;  %v1492_v10 = vshrl.u32 %v1380_v11, 16 }
 0x1df   : > { %v11717_v22 = vunpack.c.l.bf16 %v11716_v30  ;;  %v11720_v4 = vunpack.c.l.bf16 %v11719_v21  ;;  %11721 = vst [vmem:[#allocation46_spill] sm:$0xff] %v9609_v60  ;;  %v1499_v7 = vshrl.u32 %v1387_v55, 16  ;;  %v882_v1 = vshrl.u32 %v770_v37, 16  ;;  %v9611_v9 = vpop.f32.mrb[25].mxu0  ;;  %v9613_v14 = vpop.f32.mrb[25].mxu1 }
 0x1e0   : > { %11722 = vst [vmem:[#allocation38_spill] sm:$0xff] %v9613_v14  ;;  %vm1980_vm10 = vcmp.eq.s32.totalorder %v1868_v47, 0  ;;  %vm1987_vm11 = vcmp.eq.s32.totalorder %v1875_v33, 0  ;;  %v11723_v21 = vunpack.c.h.bf16 %v9560_v18  ;;  %v9619_v0 = vpop.f32.mrb[26].mxu0  ;;  %v9621_v56 = vpop.f32.mrb[26].mxu1  ;;  %v11726_v30 = vunpack.c.l.bf16 %v9431_v59 }
 0x1e1   : > { %v2150_v25 = vsel %vm1926_vm8, %v11717_v22, %v11715_v48  ;;  %v2157_v43 = vsel %vm1933_vm9, %v11720_v4, %v11718_v62  ;;  %v987_v48 = vxor.u32 %v875_v61, %v763_v53  ;;  %11724 = vst [vmem:[#allocation47_spill] sm:$0xff] %v9619_v0  ;;  %11725 = vst [vmem:[#allocation39_spill] sm:$0xff] %v9621_v56  ;;  %v9630_v61 = vpop.f32.mrb[27].mxu0  ;;  %v11730_v56 = vunpack.c.h.bf16 %v9572_v58 }
 0x1e2   : > { %v2262_v49 = vpack.c.bf16 %v2157_v43, %v2150_v25  ;;  %v9617_v4 = vsub.f32 0.0, %v11723_v21  ;;  %v2204_v22 = vsel %vm1980_vm10, %v11726_v30, %v9501_v34  ;;  %v11727_v25 = vunpack.c.l.bf16 %v9435_v31  ;;  %11728 = vst [vmem:[#allocation86_spill] sm:$0xff] %v9630_v61  ;;  %v9632_v43 = vpop.f32.mrb[27].mxu1  ;;  %v9638_v14 = vpop.f32.mrb[28].mxu0 }
 0x1e3   : > { %v1604_v33 = vxor.u32 %v1492_v10, %v1380_v11  ;;  %v1611_v53 = vxor.u32 %v1499_v7, %v1387_v55  ;;  %11729 = vst [vmem:[#allocation87_spill] sm:$0xff] %v9632_v43  ;;  %v994_v21 = vxor.u32 %v882_v1, %v770_v37  ;;  %v1099_v0 = vmul.u32 2146121005, %v987_v48  ;;  %11731 = vst [vmem:[#allocation88_spill] sm:$0xff] %v9638_v14  ;;  %v9640_v59 = vpop.f32.mrb[28].mxu1  ;;  %v9646_v10 = vpop.f32.mrb[29].mxu0 }
 0x1e4   : > { %6915 = vmatprep.mubr.msk.bf16.mxu0 %vm2988_vm4, %v2262_v49  ;;  %v2211_v62 = vsel %vm1987_vm11, %v11727_v25, %v9509_v36  ;;  %v9636_v49 = vsub.f32 0.0, %v11730_v56  ;;  %11732 = vst [vmem:[#allocation89_spill] sm:$0xff] %v9640_v59  ;;  %v609_v36 = vxor.u32 %v9465_v8, %v11618_v63  ;;  %v616_v11 = vxor.u32 %v9465_v8, %v11619_v19  ;;  %v9648_v37 = vpop.f32.mrb[29].mxu1  ;;  %v9652_v56 = vpop.f32.mrb[30].mxu0 }
 0x1e5   : > { %v2288_v47 = vpack.c.bf16 %v2211_v62, %v2204_v22  ;;  %v1716_v34 = vshrl.u32 %v1604_v33, 9  ;;  %v1723_v31 = vshrl.u32 %v1611_v53, 9  ;;  %11733 = vst [vmem:[#allocation90_spill] sm:$0xff] %v9646_v10  ;;  %11734 = vst [vmem:[#allocation91_spill] sm:$0xff] %v9648_v37  ;;  %v1106_v55 = vmul.u32 2146121005, %v994_v21 }
 0x1e6   : > { %v1211_v7 = vshrl.u32 %v1099_v0, 15  ;;  %11735 = vst [vmem:[#allocation92_spill] sm:$0xff] %v9652_v56  ;;  %v9654_v30 = vpop.f32.mrb[30].mxu1  ;;  %v722_v25 = vadd.s32 %v7720_v17, %v609_v36  ;;  %v729_v19 = vadd.s32 %v7720_v17, %v616_v11  ;;  %v9658_v62 = vpop.f32.mrb[31].mxu0  ;;  %v649_v21 = vxor.u32 %v9104_v41, %v8737_v40  ;;  %v11746_v37 = vld [vmem:[#allocation50_spill] sm:$0xff] }
 0x1e7   : > { %4080 = vmatmul.mubr.bf16.gmra.mrb[96].mxu1 %v2288_v47  ;;  %11736 = vst [vmem:[#allocation93_spill] sm:$0xff] %v9654_v30  ;;  %v1828_v22 = vand.u32 1, %v1716_v34  ;;  %v1835_v63 = vand.u32 1, %v1723_v31  ;;  %11737 = vst [vmem:[#allocation94_spill] sm:$0xff] %v9658_v62  ;;  %v9660_v33 = vpop.f32.mrb[31].mxu1  ;;  %v1218_v53 = vshrl.u32 %v1106_v55, 15  ;;  %v656_v48 = vxor.u32 %v9104_v41, %v8739_v38 }
 0x1e8   : > { %11738 = vst [vmem:[#allocation95_spill] sm:$0xff] %v9660_v33  ;;  %v1323_v47 = vxor.u32 %v1211_v7, %v1099_v0  ;;  %v9666_v1 = vpop.f32.mrb[32].mxu0  ;;  %v9668_v34 = vpop.f32.mrb[32].mxu1  ;;  %v7255_v31 = vld [vmem:[%s11248_s5] sm:$0xff]   ;;  %v834_v36 = vshrl.u32 %v722_v25, 16  ;;  %v841_v11 = vshrl.u32 %v729_v19, 16 }
 0x1e9   : > { %11739 = vst [vmem:[#allocation96_spill] sm:$0xff] %v9666_v1  ;;  %11740 = vst [vmem:[#allocation97_spill] sm:$0xff] %v9668_v34  ;;  %vm1940_vm12 = vcmp.eq.s32.totalorder %v1828_v22, 0  ;;  %vm1947_vm13 = vcmp.eq.s32.totalorder %v1835_v63, 0  ;;  %v9673_v33 = vpop.f32.mrb[33].mxu0  ;;  %v9675_v0 = vpop.f32.mrb[33].mxu1  ;;  %v1330_v10 = vxor.u32 %v1218_v53, %v1106_v55  ;;  %6963 = vmatprep.subr.bf16.mxu1 %v7255_v31  ;;  %v769_v55 = vadd.s32 %v7720_v17, %v656_v48 }
 0x1ea   : > { %11741 = vst [vmem:[#allocation98_spill] sm:$0xff] %v9673_v33  ;;  %11742 = vst [vmem:[#allocation99_spill] sm:$0xff] %v9675_v0  ;;  %v11743_v7 = vld [vmem:[#allocation49_spill] sm:$0xff]  ;;  %v11744_v30 = vld [vmem:[#allocation42_spill] sm:$0xff]  ;;  %v1435_v14 = vmul.u32 2221713035, %v1323_v47  ;;  %v946_v33 = vxor.u32 %v834_v36, %v722_v25  ;;  %v953_v61 = vxor.u32 %v841_v11, %v729_v19  ;;  %6964 = vmatpush3.bf16.msra.mxu1 %v7255_v31  ;;  %v11753_v53 = vunpack.c.l.bf16 %v9560_v18 }
 0x1eb   : > { %v11745_v62 = vunpack.c.l.bf16 %v11744_v30  ;;  %v11747_v1 = vld [vmem:[#allocation43_spill] sm:$0xff]  ;;  %v9683_v43 = vpop.f32.mrb[34].mxu0  ;;  %v9685_v22 = vpop.f32.mrb[34].mxu1  ;;  %v762_v30 = vadd.s32 %v7720_v17, %v649_v21  ;;  %v881_v36 = vshrl.u32 %v769_v55, 16  ;;  %v623_v11 = vxor.u32 %v9465_v8, %v8501_v3 }
 0x1ec   : > { %v11748_v59 = vunpack.c.l.bf16 %v11747_v1  ;;  %11749 = vst [vmem:[#allocation49_spill] sm:$0xff] %v9683_v43  ;;  %11750 = vst [vmem:[#allocation42_spill] sm:$0xff] %v9685_v22  ;;  %v7256_v63 = vld [vmem:[%s11248_s5 + $0x8] sm:$0xff]   ;;  %v9693_v1 = vpop.f32.mrb[35].mxu1  ;;  %v9698_v47 = vsub.f32 0.0, %v11753_v53 }
 0x1ed   : > { %v2164_v56 = vsel %vm1940_vm12, %v11745_v62, %v11743_v7  ;;  %v9691_v62 = vpop.f32.mrb[35].mxu0  ;;  %11752 = vst [vmem:[#allocation43_spill] sm:$0xff] %v9693_v1  ;;  %6965 = vmatprep.subr.bf16.mxu1 %v7256_v63  ;;  %v1058_v25 = vmul.u32 2146121005, %v946_v33  ;;  %v1065_v19 = vmul.u32 2146121005, %v953_v61 }
 0x1ee   : > { %v2171_v34 = vsel %vm1947_vm13, %v11748_v59, %v11746_v37  ;;  %11751 = vst [vmem:[#allocation50_spill] sm:$0xff] %v9691_v62  ;;  %v1442_v59 = vmul.u32 2221713035, %v1330_v10  ;;  %v1547_v37 = vshrl.u32 %v1435_v14, 16  ;;  %v9700_v7 = vpop.f32.mrb[36].mxu0  ;;  %v874_v21 = vshrl.u32 %v762_v30, 16  ;;  %6966 = vmatpush3.bf16.msra.mxu1 %v7256_v63 }
 0x1ef   : > { %v2269_v0 = vpack.c.bf16 %v2171_v34, %v2164_v56  ;;  %11754 = vst [vmem:[#allocation100_spill] sm:$0xff] %v9700_v7  ;;  %v9702_v56 = vpop.f32.mrb[36].mxu1  ;;  %v11756_v34 = vunpack.c.l.bf16 %v9572_v58  ;;  %v9711_v53 = vpop.f32.mrb[37].mxu0  ;;  %v7257_v33 = vld [vmem:[%s11248_s5 + $0x10] sm:$0xff]   ;;  %v1170_v61 = vshrl.u32 %v1058_v25, 15 }
 0x1f0   : > { %11755 = vst [vmem:[#allocation101_spill] sm:$0xff] %v9702_v56  ;;  %v1554_v31 = vshrl.u32 %v1442_v59, 16  ;;  %v1659_v48 = vxor.u32 %v1547_v37, %v1435_v14  ;;  %11757 = vst [vmem:[#allocation102_spill] sm:$0xff] %v9711_v53  ;;  %v9713_v22 = vpop.f32.mrb[37].mxu1  ;;  %v986_v56 = vxor.u32 %v874_v21, %v762_v30  ;;  %v9720_v1 = vpop.f32.mrb[38].mxu0  ;;  %v993_v53 = vxor.u32 %v881_v36, %v769_v55  ;;  %v7258_v30 = vld [vmem:[%s11248_s5 + $0x18] sm:$0xff]  }
 0x1f1   : > { %6916 = vmatmul.mubr.msk.bf16.vlgmr.msra.gmra.mrb[96].mxu0 %vm2988_vm4, %v2269_v0  ;;  %v9707_v10 = vsub.f32 0.0, %v11756_v34  ;;  %11758 = vst [vmem:[#allocation103_spill] sm:$0xff] %v9713_v22  ;;  %v1177_v0 = vshrl.u32 %v1065_v19, 15  ;;  %v630_v34 = vxor.u32 %v9465_v8, %v11639_v50  ;;  %11759 = vst [vmem:[#allocation104_spill] sm:$0xff] %v9720_v1  ;;  %v9722_v14 = vpop.f32.mrb[38].mxu1  ;;  %v736_v22 = vadd.s32 %v7720_v17, %v623_v11  ;;  %v9725_v7 = vpop.f32.mrb[39].mxu0 }
 0x1f2   : > { %11760 = vst [vmem:[#allocation105_spill] sm:$0xff] %v9722_v14  ;;  %v1666_v3 = vxor.u32 %v1554_v31, %v1442_v59  ;;  %v1771_v37 = vshrl.u32 %v1659_v48, 9  ;;  %11761 = vst [vmem:[#allocation106_spill] sm:$0xff] %v9725_v7  ;;  %v9727_v62 = vpop.f32.mrb[39].mxu1  ;;  %6967 = vmatprep.subr.bf16.mxu1 %v7257_v33  ;;  %v1282_v50 = vxor.u32 %v1170_v61, %v1058_v25  ;;  %v1098_v1 = vmul.u32 2146121005, %v986_v56 }
 0x1f3   : > { %11762 = vst [vmem:[#allocation107_spill] sm:$0xff] %v9727_v62  ;;  %v1289_v21 = vxor.u32 %v1177_v0, %v1065_v19  ;;  %v743_v14 = vadd.s32 %v7720_v17, %v630_v34  ;;  %v9733_v63 = vpop.f32.mrb[40].mxu0  ;;  %v9735_v59 = vpop.f32.mrb[40].mxu1  ;;  %v1105_v48 = vmul.u32 2146121005, %v993_v53  ;;  %v848_v36 = vshrl.u32 %v736_v22, 16  ;;  %6968 = vmatpush3.bf16.msra.mxu1 %v7257_v33 }
 0x1f4   : > { %11763 = vst [vmem:[#allocation108_spill] sm:$0xff] %v9735_v59  ;;  %v1778_v55 = vshrl.u32 %v1666_v3, 9  ;;  %v1883_v31 = vand.u32 1, %v1771_v37  ;;  %v9737_v11 = vpop.f32.mrb[41].mxu0  ;;  %v1394_v62 = vmul.u32 2221713035, %v1282_v50  ;;  %6969 = vmatprep.subr.bf16.mxu1 %v7258_v30  ;;  %v11766_v53 = vunpack.c.h.bf16 %v9560_v18 }
 0x1f5   : > { %v1401_v7 = vmul.u32 2221713035, %v1289_v21  ;;  %v1210_v43 = vshrl.u32 %v1098_v1, 15  ;;  %v855_v60 = vshrl.u32 %v743_v14, 16  ;;  %v1217_v56 = vshrl.u32 %v1105_v48, 15  ;;  %v9739_v61 = vpop.f32.mrb[41].mxu1 }
 0x1f6   : > { %v1890_v25 = vand.u32 1, %v1778_v55  ;;  %vm1995_vm14 = vcmp.eq.s32.totalorder %v1883_v31, 0  ;;  %v960_v19 = vxor.u32 %v848_v36, %v736_v22  ;;  %11764 = vst [vmem:[#allocation109_spill] sm:$0xff] %v9739_v61  ;;  %v9741_v0 = vpop.f32.mrb[42].mxu0  ;;  %v1506_v3 = vshrl.u32 %v1394_v62, 16  ;;  %v9746_v21 = vpop.f32.mrb[42].mxu1 }
 0x1f7   : > { %11765 = vst [vmem:[#allocation110_spill] sm:$0xff] %v9741_v0  ;;  %v2219_v34 = vsel %vm1995_vm14, %v11766_v53, %v9617_v4  ;;  %v1513_v37 = vshrl.u32 %v1401_v7, 16  ;;  %v1322_v50 = vxor.u32 %v1210_v43, %v1098_v1  ;;  %11767 = vst [vmem:[#allocation111_spill] sm:$0xff] %v9746_v21  ;;  %v9748_v59 = vpop.f32.mrb[43].mxu0  ;;  %v1329_v33 = vxor.u32 %v1217_v56, %v1105_v48  ;;  %v9750_v31 = vpop.f32.mrb[43].mxu1 }
 0x1f8   : > { %11768 = vst [vmem:[#allocation112_spill] sm:$0xff] %v9748_v59  ;;  %vm2002_vm15 = vcmp.eq.s32.totalorder %v1890_v25, 0  ;;  %v967_v55 = vxor.u32 %v855_v60, %v743_v14  ;;  %v1072_v22 = vmul.u32 2146121005, %v960_v19  ;;  %11769 = vst [vmem:[#allocation113_spill] sm:$0xff] %v9750_v31  ;;  %v9752_v36 = vpop.f32.mrb[44].mxu0  ;;  %v11771_v61 = vunpack.c.h.bf16 %v9572_v58  ;;  %6970 = vmatpush3.bf16.msra.mxu1 %v7258_v30 }
 0x1f9   : > { %11770 = vst [vmem:[#allocation114_spill] sm:$0xff] %v9752_v36  ;;  %v1618_v53 = vxor.u32 %v1506_v3, %v1394_v62  ;;  %v1625_v0 = vxor.u32 %v1513_v37, %v1401_v7  ;;  %v1434_v43 = vmul.u32 2221713035, %v1322_v50  ;;  %v9757_v1 = vpop.f32.mrb[44].mxu1  ;;  %v9759_v21 = vpop.f32.mrb[45].mxu0  ;;  %v9764_v59 = vld [vmem:[%s7581_s22 + $0x160] sm:$0xff]  ;;  %v671_v37 = vxor.u32 %v9075_v24, %v8829_v6 }
 0x1fa   : > { %v2226_v4 = vsel %vm2002_vm15, %v11771_v61, %v9636_v49  ;;  %11772 = vst [vmem:[#allocation115_spill] sm:$0xff] %v9757_v1  ;;  %v1441_v60 = vmul.u32 2221713035, %v1329_v33  ;;  %v1079_v14 = vmul.u32 2146121005, %v967_v55  ;;  %v1184_v25 = vshrl.u32 %v1072_v22, 15 }
 0x1fb   : > { %v2296_v48 = vpack.c.bf16 %v2226_v4, %v2219_v34  ;;  %v9761_v56 = vpop.f32.mrb[45].mxu1  ;;  %v1730_v19 = vshrl.u32 %v1618_v53, 9  ;;  %v1737_v31 = vshrl.u32 %v1625_v0, 9  ;;  %v1546_v36 = vshrl.u32 %v1434_v43, 16  ;;  %v9767_v62 = vpop.f32.mrb[46].mxu0  ;;  %v9772_v3 = vld [vmem:[%s7581_s22 + $0x17c] sm:$0xff] }
 0x1fc   : > { %11773 = vst [vmem:[#allocation116_spill] sm:$0xff] %v9761_v56  ;;  %11774 = vst [vmem:[#allocation117_spill] sm:$0xff] %v9767_v62  ;;  %v9769_v7 = vpop.f32.mrb[46].mxu1  ;;  %v1553_v30 = vshrl.u32 %v1441_v60, 16  ;;  %v1191_v61 = vshrl.u32 %v1079_v14, 15  ;;  %v1296_v34 = vxor.u32 %v1184_v25, %v1072_v22  ;;  %v9775_v50 = vpop.f32.mrb[47].mxu0  ;;  %v664_v53 = vxor.u32 %v9075_v24, %v8827_v39 }
 0x1fd   : > { %11775 = vst [vmem:[#allocation118_spill] sm:$0xff] %v9769_v7  ;;  %4087 = vmatprep.mubr.bf16.mxu1 %v2296_v48  ;;  %11776 = vst [vmem:[#allocation119_spill] sm:$0xff] %v9775_v50  ;;  %v9777_v0 = vpop.f32.mrb[47].mxu1  ;;  %v1842_v33 = vand.u32 1, %v1730_v19  ;;  %v1849_v55 = vand.u32 1, %v1737_v31  ;;  %v1658_v4 = vxor.u32 %v1546_v36, %v1434_v43  ;;  %v9781_v49 = vpop.f32.mrb[48].mxu0 }
 0x1fe   : > { %11777 = vst [vmem:[#allocation120_spill] sm:$0xff] %v9777_v0  ;;  %11778 = vst [vmem:[#allocation121_spill] sm:$0xff] %v9781_v49  ;;  %v9783_v48 = vpop.f32.mrb[48].mxu1  ;;  %v1665_v7 = vxor.u32 %v1553_v30, %v1441_v60  ;;  %v1303_v22 = vxor.u32 %v1191_v61, %v1079_v14  ;;  %v1408_v25 = vmul.u32 2221713035, %v1296_v34  ;;  %v9787_v1 = vpop.f32.mrb[49].mxu0  ;;  %v777_v36 = vadd.s32 %v7720_v17, %v664_v53 }
 0x1ff   : > { %11779 = vst [vmem:[#allocation122_spill] sm:$0xff] %v9783_v48  ;;  %11780 = vst [vmem:[#allocation123_spill] sm:$0xff] %v9787_v1  ;;  %v9789_v56 = vpop.f32.mrb[49].mxu1  ;;  %vm1954_vm0 = vcmp.eq.s32.totalorder %v1842_v33, 0  ;;  %vm1961_vm1 = vcmp.eq.s32.totalorder %v1849_v55, 0  ;;  %v1770_v31 = vshrl.u32 %v1658_v4, 9 }
 0x200   : > { %11781 = vst [vmem:[#allocation124_spill] sm:$0xff] %v9789_v56  ;;  %v9792_v43 = vpop.f32.mrb[50].mxu0  ;;  %v9794_v19 = vpop.f32.mrb[50].mxu1  ;;  %v11784_v0 = vld [vmem:[#allocation59_spill] sm:$0xff]  ;;  %v11787_v61 = vld [vmem:[#allocation60_spill] sm:$0xff]  ;;  %v1777_v1 = vshrl.u32 %v1665_v7, 9 }
 0x201   : > { %11782 = vst [vmem:[#allocation125_spill] sm:$0xff] %v9792_v43  ;;  %11783 = vst [vmem:[#allocation126_spill] sm:$0xff] %v9794_v19  ;;  %v11785_v60 = vld [vmem:[#allocation51_spill] sm:$0xff]  ;;  %v11788_v34 = vld [vmem:[#allocation52_spill] sm:$0xff]  ;;  %v1415_v50 = vmul.u32 2221713035, %v1303_v22  ;;  %v784_v43 = vadd.s32 %v7720_v17, %v671_v37 }
 0x202   : > { %v11786_v14 = vunpack.c.l.bf16 %v11785_v60  ;;  %v11789_v48 = vunpack.c.l.bf16 %v11788_v34  ;;  %v9802_v56 = vpop.f32.mrb[51].mxu0  ;;  %v9804_v33 = vpop.f32.mrb[51].mxu1  ;;  %v1882_v4 = vand.u32 1, %v1770_v31  ;;  %v1520_v53 = vshrl.u32 %v1408_v25, 16 }
 0x203   : > { %11790 = vst [vmem:[#allocation59_spill] sm:$0xff] %v9804_v33  ;;  %v9807_v19 = vpop.f32.mrb[52].mxu0  ;;  %v9809_v62 = vpop.f32.mrb[52].mxu1  ;;  %v1527_v60 = vshrl.u32 %v1415_v50, 16  ;;  %v896_v37 = vshrl.u32 %v784_v43, 16  ;;  %v11796_v31 = vunpack.c.h.bf16 %v9772_v3 }
 0x204   : > { %v2178_v30 = vsel %vm1954_vm0, %v11786_v14, %v11784_v0  ;;  %v2185_v49 = vsel %vm1961_vm1, %v11789_v48, %v11787_v61  ;;  %11791 = vst [vmem:[#allocation51_spill] sm:$0xff] %v9807_v19  ;;  %11792 = vst [vmem:[#allocation60_spill] sm:$0xff] %v9809_v62  ;;  %v1889_v0 = vand.u32 1, %v1777_v1  ;;  %v889_v14 = vshrl.u32 %v777_v36, 16  ;;  %v9815_v22 = vpop.f32.mrb[53].mxu0  ;;  %v9817_v61 = vpop.f32.mrb[53].mxu1 }
 0x205   : > { %v2276_v55 = vpack.c.bf16 %v2185_v49, %v2178_v30  ;;  %v11793_v48 = vunpack.c.h.bf16 %v9764_v59  ;;  %11794 = vst [vmem:[#allocation52_spill] sm:$0xff] %v9815_v22  ;;  %11795 = vst [vmem:[#allocation127_spill] sm:$0xff] %v9817_v61  ;;  %vm1994_vm2 = vcmp.eq.s32.totalorder %v1882_v4, 0  ;;  %v1632_v49 = vxor.u32 %v1520_v53, %v1408_v25  ;;  %v9824_v1 = vpop.f32.mrb[54].mxu0  ;;  %v9826_v34 = vpop.f32.mrb[54].mxu1 }
 0x206   : > { %v9822_v30 = vsub.f32 0.0, %v11796_v31  ;;  %11797 = vst [vmem:[#allocation128_spill] sm:$0xff] %v9824_v1  ;;  %11798 = vst [vmem:[#allocation129_spill] sm:$0xff] %v9826_v34  ;;  %vm2001_vm3 = vcmp.eq.s32.totalorder %v1889_v0, 0  ;;  %v11799_v61 = vunpack.c.l.bf16 %v9560_v18  ;;  %v1639_v4 = vxor.u32 %v1527_v60, %v1415_v50  ;;  %v9834_v53 = vpop.f32.mrb[55].mxu0  ;;  %v9836_v62 = vpop.f32.mrb[55].mxu1 }
 0x207   : > { %v9813_v7 = vsub.f32 0.0, %v11793_v48  ;;  %6919 = vmatprep.mubr.msk.bf16.mxu0 %vm2988_vm4, %v2276_v55  ;;  %v7259_v48 = vld [vmem:[%s11247_s4] sm:$0xff]   ;;  %v1001_v25 = vxor.u32 %v889_v14, %v777_v36  ;;  %11800 = vst [vmem:[#allocation130_spill] sm:$0xff] %v9836_v62  ;;  %v11801_v31 = vunpack.c.l.bf16 %v9572_v58  ;;  %v1744_v34 = vshrl.u32 %v1632_v49, 9  ;;  %v9843_v0 = vpop.f32.mrb[56].mxu0  ;;  %v9845_v33 = vpop.f32.mrb[56].mxu1 }
 0x208   : > { %v2218_v55 = vsel %vm1994_vm2, %v11799_v61, %v9698_v47  ;;  %v1008_v22 = vxor.u32 %v896_v37, %v784_v43  ;;  %v637_v19 = vxor.u32 %v9465_v8, %v8622_v13  ;;  %11802 = vst [vmem:[#allocation131_spill] sm:$0xff] %v9843_v0  ;;  %11803 = vst [vmem:[#allocation132_spill] sm:$0xff] %v9845_v33  ;;  %6931 = vmatprep.subr.bf16.mxu0 %v7259_v48  ;;  %v9849_v60 = vpop.f32.mrb[57].mxu0  ;;  %v9851_v58 = vpop.f32.mrb[57].mxu1  ;;  %v7260_v13 = vld [vmem:[%s11247_s4 + $0x8] sm:$0xff]   ;;  %v11818_v33 = vld [vmem:[#allocation54_spill] sm:$0xff] }
 0x209   : > { %v2225_v1 = vsel %vm2001_vm3, %v11801_v31, %v9707_v10  ;;  %v1751_v47 = vshrl.u32 %v1639_v4, 9  ;;  %v1113_v50 = vmul.u32 2146121005, %v1001_v25  ;;  %v644_v36 = vxor.u32 %v9465_v8, %v8632_v16  ;;  %11804 = vst [vmem:[#allocation133_spill] sm:$0xff] %v9849_v60  ;;  %11805 = vst [vmem:[#allocation134_spill] sm:$0xff] %v9851_v58  ;;  %6932 = vmatpush3.bf16.msra.mxu0 %v7259_v48  ;;  %v9858_v49 = vpop.f32.mrb[58].mxu0 }
 0x20a   : > { %v2295_v18 = vpack.c.bf16 %v2225_v1, %v2218_v55  ;;  %v1856_v10 = vand.u32 1, %v1744_v34  ;;  %v1120_v43 = vmul.u32 2146121005, %v1008_v22  ;;  %v750_v14 = vadd.s32 %v7720_v17, %v637_v19  ;;  %11806 = vst [vmem:[#allocation135_spill] sm:$0xff] %v9858_v49  ;;  %v9860_v37 = vpop.f32.mrb[58].mxu1  ;;  %v7261_v16 = vld [vmem:[%s11248_s5 + $0x20] sm:$0xff]   ;;  %6933 = vmatprep.subr.bf16.mxu0 %v7260_v13 }
 0x20b   : > { %11807 = vst [vmem:[#allocation136_spill] sm:$0xff] %v9860_v37  ;;  %v1863_v1 = vand.u32 1, %v1751_v47  ;;  %v1225_v48 = vshrl.u32 %v1113_v50, 15  ;;  %v757_v55 = vadd.s32 %v7720_v17, %v644_v36  ;;  %v9867_v22 = vpop.f32.mrb[59].mxu0  ;;  %v9869_v19 = vpop.f32.mrb[59].mxu1  ;;  %v663_v31 = vxor.u32 %v9104_v41, %v8827_v39  ;;  %6971 = vmatprep.subr.bf16.mxu1 %v7261_v16  ;;  %v11812_v47 = vld [vmem:[#allocation61_spill] sm:$0xff] }
 0x20c   : > { %4088 = vmatmul.mubr.bf16.gmra.mrb[100].mxu1 %v2295_v18  ;;  %11808 = vst [vmem:[#allocation137_spill] sm:$0xff] %v9867_v22  ;;  %11809 = vst [vmem:[#allocation138_spill] sm:$0xff] %v9869_v19  ;;  %vm1968_vm5 = vcmp.eq.s32.totalorder %v1856_v10, 0  ;;  %v1232_v4 = vshrl.u32 %v1120_v43, 15  ;;  %v862_v25 = vshrl.u32 %v750_v14, 16  ;;  %v9873_v61 = vpop.f32.mrb[60].mxu0  ;;  %v11819_v60 = vunpack.c.l.bf16 %v11818_v33 }
 0x20d   : > { %11810 = vst [vmem:[#allocation139_spill] sm:$0xff] %v9873_v61  ;;  %v9875_v18 = vpop.f32.mrb[60].mxu1  ;;  %vm1975_vm6 = vcmp.eq.s32.totalorder %v1863_v1, 0  ;;  %v11813_v36 = vld [vmem:[#allocation53_spill] sm:$0xff]  ;;  %v1337_v22 = vxor.u32 %v1225_v48, %v1113_v50  ;;  %v869_v49 = vshrl.u32 %v757_v55, 16  ;;  %v9880_v19 = vpop.f32.mrb[61].mxu0  ;;  %6934 = vmatpush3.bf16.msra.mxu0 %v7260_v13  ;;  %6972 = vmatpush3.bf16.msra.mxu1 %v7261_v16  ;;  %v670_v1 = vxor.u32 %v9104_v41, %v8829_v6 }
 0x20e   : > { %11811 = vst [vmem:[#allocation140_spill] sm:$0xff] %v9875_v18  ;;  %v11814_v34 = vunpack.c.l.bf16 %v11813_v36  ;;  %11815 = vst [vmem:[#allocation61_spill] sm:$0xff] %v9880_v19  ;;  %v9882_v10 = vpop.f32.mrb[61].mxu1  ;;  %v11817_v58 = vld [vmem:[#allocation62_spill] sm:$0xff]  ;;  %v1344_v0 = vxor.u32 %v1232_v4, %v1120_v43  ;;  %v974_v18 = vxor.u32 %v862_v25, %v750_v14  ;;  %v9889_v62 = vpop.f32.mrb[62].mxu0  ;;  %v776_v36 = vadd.s32 %v7720_v17, %v663_v31 }
 0x20f   : > { %11816 = vst [vmem:[#allocation53_spill] sm:$0xff] %v9882_v10  ;;  %v2199_v61 = vsel %vm1975_vm6, %v11819_v60, %v11817_v58  ;;  %11820 = vst [vmem:[#allocation62_spill] sm:$0xff] %v9889_v62  ;;  %v1449_v48 = vmul.u32 2221713035, %v1337_v22  ;;  %v9894_v13 = vpop.f32.mrb[63].mxu0  ;;  %v783_v58 = vadd.s32 %v7720_v17, %v670_v1  ;;  %v11824_v43 = vunpack.c.l.bf16 %v9764_v59 }
 0x210   : > { %v2192_v37 = vsel %vm1968_vm5, %v11814_v34, %v11812_v47  ;;  %v9891_v34 = vpop.f32.mrb[62].mxu1  ;;  %v981_v47 = vxor.u32 %v869_v49, %v757_v55  ;;  %11822 = vst [vmem:[#allocation141_spill] sm:$0xff] %v9894_v13  ;;  %v1456_v33 = vmul.u32 2221713035, %v1344_v0  ;;  %v1086_v60 = vmul.u32 2146121005, %v974_v18 }
 0x211   : > { %11821 = vst [vmem:[#allocation54_spill] sm:$0xff] %v9891_v34  ;;  %v2283_v50 = vpack.c.bf16 %v2199_v61, %v2192_v37  ;;  %v9896_v16 = vpop.f32.mrb[63].mxu1  ;;  %v9901_v14 = vsub.f32 0.0, %v11824_v43  ;;  %v1561_v61 = vshrl.u32 %v1449_v48, 16  ;;  %v888_v37 = vshrl.u32 %v776_v36, 16  ;;  %v9910_v25 = vpop.f32.mrb[64].mxu0 }
 0x212   : > { %11823 = vst [vmem:[#allocation142_spill] sm:$0xff] %v9896_v16  ;;  %v9903_v4 = vpop.f32.mrb[64].mxu1  ;;  %v1093_v49 = vmul.u32 2146121005, %v981_v47  ;;  %v11826_v55 = vunpack.c.l.bf16 %v9772_v3  ;;  %11827 = vst [vmem:[#allocation144_spill] sm:$0xff] %v9910_v25  ;;  %v1568_v0 = vshrl.u32 %v1456_v33, 16  ;;  %v651_v1 = vxor.u32 %v9465_v8, %v8737_v40 }
 0x213   : > { %11825 = vst [vmem:[#allocation143_spill] sm:$0xff] %v9903_v4  ;;  %6920 = vmatmul.mubr.msk.bf16.gmra.mrb[100].mxu0 %vm2988_vm4, %v2283_v50  ;;  %v1198_v31 = vshrl.u32 %v1086_v60, 15  ;;  %v895_v18 = vshrl.u32 %v783_v58, 16  ;;  %v9914_v43 = vpop.f32.mrb[65].mxu1  ;;  %v9916_v4 = vpop.f32.mrb[65].mxu0  ;;  %v1673_v50 = vxor.u32 %v1561_v61, %v1449_v48  ;;  %v1000_v47 = vxor.u32 %v888_v37, %v776_v36 }
 0x214   : > { %v9908_v22 = vsub.f32 0.0, %v11826_v55  ;;  %11828 = vst [vmem:[#allocation145_spill] sm:$0xff] %v9914_v43  ;;  %11829 = vst [vmem:[#allocation146_spill] sm:$0xff] %v9916_v4  ;;  %v1205_v16 = vshrl.u32 %v1093_v49, 15  ;;  %v658_v34 = vxor.u32 %v9465_v8, %v8739_v38  ;;  %v9920_v55 = vpop.f32.mrb[66].mxu1  ;;  %v9922_v13 = vpop.f32.mrb[66].mxu0  ;;  %v1680_v25 = vxor.u32 %v1568_v0, %v1456_v33 }
 0x215   : > { %11830 = vst [vmem:[#allocation147_spill] sm:$0xff] %v9920_v55  ;;  %11831 = vst [vmem:[#allocation148_spill] sm:$0xff] %v9922_v13  ;;  %v1310_v62 = vxor.u32 %v1198_v31, %v1086_v60  ;;  %v1007_v10 = vxor.u32 %v895_v18, %v783_v58  ;;  %v764_v19 = vadd.s32 %v7720_v17, %v651_v1  ;;  %v9925_v40 = vpop.f32.mrb[67].mxu1  ;;  %v9927_v43 = vpop.f32.mrb[67].mxu0  ;;  %v1785_v4 = vshrl.u32 %v1673_v50, 9 }
 0x216   : > { %11832 = vst [vmem:[#allocation149_spill] sm:$0xff] %v9925_v40  ;;  %11833 = vst [vmem:[#allocation150_spill] sm:$0xff] %v9927_v43  ;;  %v1317_v48 = vxor.u32 %v1205_v16, %v1093_v49  ;;  %v1112_v61 = vmul.u32 2146121005, %v1000_v47  ;;  %v771_v36 = vadd.s32 %v7720_v17, %v658_v34  ;;  %v9930_v37 = vpop.f32.mrb[68].mxu1  ;;  %v9932_v38 = vpop.f32.mrb[68].mxu0 }
 0x217   : > { %11834 = vst [vmem:[#allocation151_spill] sm:$0xff] %v9930_v37  ;;  %11835 = vst [vmem:[#allocation152_spill] sm:$0xff] %v9932_v38  ;;  %v1792_v55 = vshrl.u32 %v1680_v25, 9  ;;  %v1422_v13 = vmul.u32 2221713035, %v1310_v62  ;;  %v876_v60 = vshrl.u32 %v764_v19, 16 }
 0x218   : > { %v1119_v33 = vmul.u32 2146121005, %v1007_v10  ;;  %v1897_v58 = vand.u32 1, %v1785_v4  ;;  %v1429_v0 = vmul.u32 2221713035, %v1317_v48  ;;  %v1224_v31 = vshrl.u32 %v1112_v61, 15 }
 0x219   : > { %v883_v18 = vshrl.u32 %v771_v36, 16  ;;  %v9934_v1 = vpop.f32.mrb[69].mxu1  ;;  %v1904_v43 = vand.u32 1, %v1792_v55  ;;  %v1534_v50 = vshrl.u32 %v1422_v13, 16  ;;  %v988_v49 = vxor.u32 %v876_v60, %v764_v19  ;;  %v9936_v47 = vpop.f32.mrb[69].mxu0  ;;  %v9950_v19 = vld [vmem:[%s11251_s8] sm:$0xff] }
 0x21a   : > { %11836 = vst [vmem:[#allocation153_spill] sm:$0xff] %v9934_v1  ;;  %v1231_v16 = vshrl.u32 %v1119_v33, 15  ;;  %11837 = vst [vmem:[#allocation154_spill] sm:$0xff] %v9936_v47  ;;  %v9938_v34 = vpop.f32.mrb[70].mxu1  ;;  %vm2009_vm7 = vcmp.eq.s32.totalorder %v1897_v58, 0  ;;  %v1541_v38 = vshrl.u32 %v1429_v0, 16  ;;  %v1336_v25 = vxor.u32 %v1224_v31, %v1112_v61 }
 0x21b   : > { %11838 = vst [vmem:[#allocation155_spill] sm:$0xff] %v9938_v34  ;;  %v995_v62 = vxor.u32 %v883_v18, %v771_v36  ;;  %v9940_v10 = vpop.f32.mrb[70].mxu0  ;;  %v9942_v4 = vpop.f32.mrb[71].mxu1  ;;  %vm2016_vm8 = vcmp.eq.s32.totalorder %v1904_v43, 0  ;;  %v11841_v48 = vunpack.c.h.bf16 %v9764_v59  ;;  %v1646_v1 = vxor.u32 %v1534_v50, %v1422_v13  ;;  %v11845_v34 = vld [vmem:[#allocation6_spill] sm:$0xff] }
 0x21c   : > { %11839 = vst [vmem:[#allocation156_spill] sm:$0xff] %v9940_v10  ;;  %11840 = vst [vmem:[#allocation157_spill] sm:$0xff] %v9942_v4  ;;  %v1343_v37 = vxor.u32 %v1231_v16, %v1119_v33  ;;  %v9952_v60 = vpop.f32.mrb[71].mxu0  ;;  %v9954_v61 = vpop.f32.mrb[72].mxu1  ;;  %v11844_v36 = vunpack.c.h.bf16 %v9772_v3  ;;  %v1653_v43 = vxor.u32 %v1541_v38, %v1429_v0  ;;  %v1448_v31 = vmul.u32 2221713035, %v1336_v25 }
 0x21d   : > { %v2233_v55 = vsel %vm2009_vm7, %v11841_v48, %v9813_v7  ;;  %11842 = vst [vmem:[#allocation158_spill] sm:$0xff] %v9952_v60  ;;  %11843 = vst [vmem:[#allocation159_spill] sm:$0xff] %v9954_v61  ;;  %v1100_v18 = vmul.u32 2146121005, %v988_v49  ;;  %v9959_v10 = vpop.f32.mrb[72].mxu0  ;;  %v9961_v7 = vpop.f32.mrb[73].mxu1 }
 0x21e   : > { %v2240_v58 = vsel %vm2016_vm8, %v11844_v36, %v9822_v30  ;;  %v1758_v33 = vshrl.u32 %v1646_v1, 9  ;;  %v1455_v50 = vmul.u32 2221713035, %v1343_v37  ;;  %v1107_v16 = vmul.u32 2146121005, %v995_v62  ;;  %v9963_v48 = vpop.f32.mrb[73].mxu0 }
 0x21f   : > { %v2303_v13 = vpack.c.bf16 %v2240_v58, %v2233_v55  ;;  %v1765_v60 = vshrl.u32 %v1653_v43, 9  ;;  %v1560_v4 = vshrl.u32 %v1448_v31, 16  ;;  %v1212_v61 = vshrl.u32 %v1100_v18, 15  ;;  %v9966_v40 = vpop.f32.mrb[74].mxu1  ;;  %v9968_v30 = vpop.f32.mrb[74].mxu0 }
 0x220   : > { %v2412_v47 = vsub.s32 0, %v11845_v34  ;;  %11846 = vst [vmem:[#allocation160_spill] sm:$0xff] %v9968_v30  ;;  %v1870_v38 = vand.u32 1, %v1758_v33  ;;  %v1567_v0 = vshrl.u32 %v1455_v50, 16  ;;  %v1219_v49 = vshrl.u32 %v1107_v16, 15  ;;  %v9972_v37 = vpop.f32.mrb[75].mxu1 }
 0x221   : > { %4095 = vmatprep.mubr.bf16.mxu1 %v2303_v13  ;;  %v6447_v1 = vadd.f32 %v9390_v23, %v9380_v27  ;;  %11847 = vst [vmem:[#allocation161_spill] sm:$0xff] %v9972_v37  ;;  %v9974_v25 = vpop.f32.mrb[75].mxu0  ;;  %v1877_v62 = vand.u32 1, %v1765_v60  ;;  %v1672_v55 = vxor.u32 %v1560_v4, %v1448_v31  ;;  %v1324_v36 = vxor.u32 %v1212_v61, %v1100_v18  ;;  %v9979_v43 = vpop.f32.mrb[76].mxu1  ;;  %v11852_v4 = vld [vmem:[#allocation63_spill] sm:$0xff] }
 0x222   : > { %v9977_v58 = vrot.slane %v9950_v19, %v2412_v47  ;;  %11848 = vst [vmem:[#allocation162_spill] sm:$0xff] %v9979_v43  ;;  %v9981_v30 = vpop.f32.mrb[76].mxu0  ;;  %vm1982_vm9 = vcmp.eq.s32.totalorder %v1870_v38, 0  ;;  %v1679_v13 = vxor.u32 %v1567_v0, %v1455_v50  ;;  %v1331_v33 = vxor.u32 %v1219_v49, %v1107_v16  ;;  %v9985_v23 = vpop.f32.mrb[77].mxu1  ;;  %v11853_v60 = vld [vmem:[#allocation55_spill] sm:$0xff]  ;;  %v11857_v50 = vld [vmem:[#allocation64_spill] sm:$0xff] }
 0x223   : > { %11849 = vst [vmem:[#allocation163_spill] sm:$0xff] %v9981_v30  ;;  %v6511_v27 = vadd.f32 %v9392_v26, %v9382_v44  ;;  %11850 = vst [vmem:[#allocation164_spill] sm:$0xff] %v9985_v23  ;;  %v9987_v37 = vpop.f32.mrb[77].mxu0  ;;  %vm1989_vm10 = vcmp.eq.s32.totalorder %v1877_v62, 0  ;;  %v11854_v61 = vunpack.c.l.bf16 %v11853_v60  ;;  %v1784_v31 = vshrl.u32 %v1672_v55, 9  ;;  %v9992_v43 = vpop.f32.mrb[78].mxu1 }
 0x224   : > { %11851 = vst [vmem:[#allocation165_spill] sm:$0xff] %v9987_v37  ;;  %v1436_v18 = vmul.u32 2221713035, %v1324_v36  ;;  %11855 = vst [vmem:[#allocation63_spill] sm:$0xff] %v9992_v43  ;;  %v9994_v30 = vpop.f32.mrb[78].mxu0  ;;  %v11858_v16 = vld [vmem:[#allocation56_spill] sm:$0xff]  ;;  %v3048_v49 = vadd.f32 %v6447_v1, %v9977_v58  ;;  %v6450_v60 = vadd.f32 %v9405_v2, %v9399_v52  ;;  %v11862_v52 = vunpack.c.l.bf16 %v9764_v59 }
 0x225   : > { %v2206_v47 = vsel %vm1982_vm9, %v11854_v61, %v11852_v4  ;;  %11856 = vst [vmem:[#allocation55_spill] sm:$0xff] %v9994_v30  ;;  %v11859_v38 = vunpack.c.l.bf16 %v11858_v16  ;;  %v1791_v44 = vshrl.u32 %v1679_v13, 9  ;;  %v1443_v26 = vmul.u32 2221713035, %v1331_v33  ;;  %v10000_v62 = vpop.f32.mrb[79].mxu1  ;;  %v10002_v37 = vpop.f32.mrb[79].mxu0 }
 0x226   : > { %11860 = vst [vmem:[#allocation64_spill] sm:$0xff] %v10000_v62  ;;  %11861 = vst [vmem:[#allocation56_spill] sm:$0xff] %v10002_v37  ;;  %v1896_v55 = vand.u32 1, %v1784_v31  ;;  %v1548_v36 = vshrl.u32 %v1436_v18, 16  ;;  %v10006_v16 = vadd.f32 %v6511_v27, %v3048_v49  ;;  %v6514_v13 = vadd.f32 %v9407_v42, %v9401_v12  ;;  %v7262_v42 = vld [vmem:[%s11247_s4 + $0x10] sm:$0xff]  }
 0x227   : > { %v2213_v0 = vsel %vm1989_vm10, %v11859_v38, %v11857_v50  ;;  %v1903_v61 = vand.u32 1, %v1791_v44  ;;  %v1555_v30 = vshrl.u32 %v1443_v26, 16  ;;  %v3051_v33 = vadd.f32 %v6450_v60, %v9977_v58  ;;  %v10020_v50 = vld [vmem:[%s7581_s22 + $0x1b4] sm:$0xff]  ;;  %6935 = vmatprep.subr.bf16.mxu0 %v7262_v42 }
 0x228   : > { %v2290_v4 = vpack.c.bf16 %v2213_v0, %v2206_v47  ;;  %vm2008_vm11 = vcmp.eq.s32.totalorder %v1896_v55, 0  ;;  %v1660_v1 = vxor.u32 %v1548_v36, %v1436_v18  ;;  %v10013_v47 = vld [vmem:[%s7581_s22 + $0x198] sm:$0xff]  ;;  %v11379_v12 = vunpack.c.h.bf16 %v10020_v50  ;;  %6936 = vmatpush3.bf16.msra.mxu0 %v7262_v42  ;;  %s5303_s22 = sshrl.u32 %s5302_s24, 13 }
 0x229   : > { %v11380_v31 = vunpack.c.h.bf16 %v10013_v47  ;;  %vm2015_vm12 = vcmp.eq.s32.totalorder %v1903_v61, 0  ;;  %v2232_v2 = vsel %vm2008_vm11, %v11862_v52, %v9901_v14  ;;  %v1667_v27 = vxor.u32 %v1555_v30, %v1443_v26  ;;  %s5304_s10 = sxor.u32 %s5303_s22, %s5302_s24 }
 0x22a   : > { %6923 = vmatprep.mubr.msk.bf16.mxu0 %vm2988_vm4, %v2290_v4  ;;  %v11863_v18 = vunpack.c.l.bf16 %v9772_v3  ;;  %v1772_v0 = vshrl.u32 %v1660_v1, 9  ;;  %v10029_v44 = vadd.f32 %v6514_v13, %v3051_v33  ;;  %v678_v59 = vxor.u32 %v9075_v24, %v8933_v35  ;;  %v7263_v13 = vld [vmem:[%s11247_s4 + $0x18] sm:$0xff]   ;;  %v7264_v1 = vld [vmem:[%s11248_s5 + $0x28] sm:$0xff]   ;;  %s5305_s26 = smul.u32 16777619, %s5304_s10  ;;  %s6428_s10 = sshll.u32 %s7458_s0, 11 }
 0x22b   : > { %v1779_v30 = vshrl.u32 %v1667_v27, 9  ;;  %v685_v26 = vxor.u32 %v9075_v24, %v8939_v57  ;;  %v10037_v49 = vsub.f32 0.0, %v11380_v31  ;;  %v665_v55 = vxor.u32 %v9465_v8, %v8827_v39  ;;  %v11865_v27 = vld [vmem:[#allocation57_spill] sm:$0xff]  ;;  %6937 = vmatprep.subr.bf16.mxu0 %v7263_v13  ;;  %6973 = vmatprep.subr.bf16.mxu1 %v7264_v1  ;;  %s11193_s0 = scalar_lea.hbm %s11252_s9, %s6428_s10 }
 0x22c   : > { %v2239_v38 = vsel %vm2015_vm12, %v11863_v18, %v9908_v22  ;;  %v1884_v4 = vand.u32 1, %v1772_v0  ;;  %v791_v3 = vadd.s32 %v7720_v17, %v678_v59  ;;  %v10042_v22 = vsub.f32 0.0, %v11379_v12  ;;  %v11867_v0 = vld [vmem:[#allocation68_spill] sm:$0xff]  ;;  %v11868_v59 = vld [vmem:[#allocation58_spill] sm:$0xff]  ;;  %6938 = vmatpush3.bf16.msra.mxu0 %v7263_v13  ;;  %6974 = vmatpush3.bf16.msra.mxu1 %v7264_v1 }
 0x22d   : > { %v2302_v14 = vpack.c.bf16 %v2239_v38, %v2232_v2  ;;  %v1891_v36 = vand.u32 1, %v1779_v30  ;;  %v798_v24 = vadd.s32 %v7720_v17, %v685_v26  ;;  %v672_v60 = vxor.u32 %v9465_v8, %v8829_v6  ;;  %v11864_v2 = vld [vmem:[#allocation67_spill] sm:$0xff] }
 0x22e   : > { %v11382_v61 = vunpack.c.l.bf16 %v10013_v47  ;;  %vm1996_vm13 = vcmp.eq.s32.totalorder %v1884_v4, 0  ;;  %v903_v39 = vshrl.u32 %v791_v3, 16  ;;  %v778_v33 = vadd.s32 %v7720_v17, %v665_v55 }
 0x22f   : > { %4096 = vmatmul.mubr.bf16.gmra.mrb[104].mxu1 %v2302_v14  ;;  %v11381_v52 = vunpack.c.l.bf16 %v10020_v50  ;;  %vm2003_vm14 = vcmp.eq.s32.totalorder %v1891_v36, 0  ;;  %v11866_v6 = vunpack.c.l.bf16 %v11865_v27  ;;  %v910_v18 = vshrl.u32 %v798_v24, 16 }
 0x230   : > { %v785_v38 = vadd.s32 %v7720_v17, %v672_v60  ;;  %v11869_v14 = vunpack.c.l.bf16 %v11868_v59  ;;  %v1015_v26 = vxor.u32 %v903_v39, %v791_v3  ;;  %v890_v4 = vshrl.u32 %v778_v33, 16 }
 0x231   : > { %v2220_v42 = vsel %vm1996_vm13, %v11866_v6, %v11864_v2  ;;  %v677_v55 = vxor.u32 %v9104_v41, %v8933_v35  ;;  %v1022_v12 = vxor.u32 %v910_v18, %v798_v24  ;;  %v684_v2 = vxor.u32 %v9104_v41, %v8939_v57 }
 0x232   : > { %v2227_v30 = vsel %vm2003_vm14, %v11869_v14, %v11867_v0  ;;  %v897_v27 = vshrl.u32 %v785_v38, 16  ;;  %v1127_v60 = vmul.u32 2146121005, %v1015_v26  ;;  %v1002_v6 = vxor.u32 %v890_v4, %v778_v33 }
 0x233   : > { %v2297_v36 = vpack.c.bf16 %v2227_v30, %v2220_v42  ;;  %v790_v31 = vadd.s32 %v7720_v17, %v677_v55  ;;  %v10072_v0 = vsub.f32 0.0, %v11382_v61  ;;  %v1134_v3 = vmul.u32 2146121005, %v1022_v12 }
 0x234   : > { %v1009_v39 = vxor.u32 %v897_v27, %v785_v38  ;;  %v797_v13 = vadd.s32 %v7720_v17, %v684_v2  ;;  %v10078_v24 = vsub.f32 0.0, %v11381_v52  ;;  %v1239_v1 = vshrl.u32 %v1127_v60, 15 }
 0x235   : > { %6924 = vmatmul.mubr.msk.bf16.gmra.mrb[104].mxu0 %vm2988_vm4, %v2297_v36  ;;  %v1114_v41 = vmul.u32 2146121005, %v1002_v6  ;;  %v902_v42 = vshrl.u32 %v790_v31, 16  ;;  %v679_v33 = vxor.u32 %v9465_v8, %v8933_v35  ;;  %v1246_v18 = vshrl.u32 %v1134_v3, 15 }
 0x236   : > { %v1121_v59 = vmul.u32 2146121005, %v1009_v39  ;;  %v909_v14 = vshrl.u32 %v797_v13, 16  ;;  %v686_v30 = vxor.u32 %v9465_v8, %v8939_v57  ;;  %v1351_v12 = vxor.u32 %v1239_v1, %v1127_v60 }
 0x237   : > { %v1226_v38 = vshrl.u32 %v1114_v41, 15  ;;  %v1014_v26 = vxor.u32 %v902_v42, %v790_v31  ;;  %v792_v4 = vadd.s32 %v7720_v17, %v679_v33  ;;  %v1358_v55 = vxor.u32 %v1246_v18, %v1134_v3 }
 0x238   : > { %v1233_v36 = vshrl.u32 %v1121_v59, 15  ;;  %v1021_v27 = vxor.u32 %v909_v14, %v797_v13  ;;  %v799_v2 = vadd.s32 %v7720_v17, %v686_v30  ;;  %v1463_v6 = vmul.u32 2221713035, %v1351_v12 }
 0x239   : > { %v1338_v52 = vxor.u32 %v1226_v38, %v1114_v41  ;;  %v1126_v61 = vmul.u32 2146121005, %v1014_v26  ;;  %v904_v35 = vshrl.u32 %v792_v4, 16  ;;  %v1470_v37 = vmul.u32 2221713035, %v1358_v55 }
 0x23a   : > { %v1345_v39 = vxor.u32 %v1233_v36, %v1121_v59  ;;  %v1133_v62 = vmul.u32 2146121005, %v1021_v27  ;;  %v911_v43 = vshrl.u32 %v799_v2, 16  ;;  %v1575_v23 = vshrl.u32 %v1463_v6, 16  ;;  %v10086_v36 = vpop.f32.mrb[80].mxu0 }
 0x23b   : > { %v1450_v57 = vmul.u32 2221713035, %v1338_v52  ;;  %v1238_v8 = vshrl.u32 %v1126_v61, 15  ;;  %v1016_v60 = vxor.u32 %v904_v35, %v792_v4  ;;  %v1582_v31 = vshrl.u32 %v1470_v37, 16 }
 0x23c   : > { %v1457_v1 = vmul.u32 2221713035, %v1345_v39  ;;  %v1245_v42 = vshrl.u32 %v1133_v62, 15  ;;  %v1023_v3 = vxor.u32 %v911_v43, %v799_v2  ;;  %v1687_v33 = vxor.u32 %v1575_v23, %v1463_v6  ;;  %v10088_v39 = vpop.f32.mrb[81].mxu0 }
 0x23d   : > { %v1562_v13 = vshrl.u32 %v1450_v57, 16  ;;  %v1350_v18 = vxor.u32 %v1238_v8, %v1126_v61  ;;  %v1128_v17 = vmul.u32 2146121005, %v1016_v60  ;;  %v1694_v14 = vxor.u32 %v1582_v31, %v1470_v37  ;;  %v10090_v37 = vpop.f32.mrb[82].mxu0 }
 0x23e   : > { %v1569_v41 = vshrl.u32 %v1457_v1, 16  ;;  %v1357_v30 = vxor.u32 %v1245_v42, %v1133_v62  ;;  %v1135_v12 = vmul.u32 2146121005, %v1023_v3  ;;  %v1799_v38 = vshrl.u32 %v1687_v33, 9  ;;  %v10092_v60 = vpop.f32.mrb[83].mxu0 }
 0x23f   : > { %v1674_v59 = vxor.u32 %v1562_v13, %v1450_v57  ;;  %v1462_v26 = vmul.u32 2221713035, %v1350_v18  ;;  %v1240_v55 = vshrl.u32 %v1128_v17, 15  ;;  %v1806_v52 = vshrl.u32 %v1694_v14, 9 }
 0x240   : > { %v1681_v4 = vxor.u32 %v1569_v41, %v1457_v1  ;;  %v1469_v27 = vmul.u32 2221713035, %v1357_v30  ;;  %v1247_v35 = vshrl.u32 %v1135_v12, 15  ;;  %v1911_v43 = vand.u32 1, %v1799_v38  ;;  %v11872_v38 = vld [vmem:[#allocation73_spill] sm:$0xff] }
 0x241   : > { %v1786_v23 = vshrl.u32 %v1674_v59, 9  ;;  %v1574_v61 = vshrl.u32 %v1462_v26, 16  ;;  %v1352_v2 = vxor.u32 %v1240_v55, %v1128_v17  ;;  %v1918_v62 = vand.u32 1, %v1806_v52  ;;  %v11873_v59 = vld [vmem:[#allocation69_spill] sm:$0xff] }
 0x242   : > { %v1793_v6 = vshrl.u32 %v1681_v4, 9  ;;  %v1581_v8 = vshrl.u32 %v1469_v27, 16  ;;  %v1359_v57 = vxor.u32 %v1247_v35, %v1135_v12  ;;  %vm2023_vm15 = vcmp.eq.s32.totalorder %v1911_v43, 0  ;;  %v11875_v4 = vld [vmem:[#allocation74_spill] sm:$0xff] }
 0x243   : > { %v1898_v31 = vand.u32 1, %v1786_v23  ;;  %v1686_v42 = vxor.u32 %v1574_v61, %v1462_v26  ;;  %v1464_v1 = vmul.u32 2221713035, %v1352_v2  ;;  %vm2030_vm0 = vcmp.eq.s32.totalorder %v1918_v62, 0  ;;  %v11876_v35 = vld [vmem:[#allocation70_spill] sm:$0xff]  ;;  %v10106_v2 = vpop.f32.mrb[80].mxu1 }
 0x244   : > { %v11870_v3 = vunpack.c.h.bf16 %v10013_v47  ;;  %v1905_v13 = vand.u32 1, %v1793_v6  ;;  %v1693_v18 = vxor.u32 %v1581_v8, %v1469_v27  ;;  %v11871_v17 = vunpack.c.h.bf16 %v10020_v50 }
 0x245   : > { %vm2010_vm1 = vcmp.eq.s32.totalorder %v1898_v31, 0  ;;  %v1798_v41 = vshrl.u32 %v1686_v42, 9  ;;  %v1471_v30 = vmul.u32 2221713035, %v1359_v57  ;;  %v11874_v26 = vunpack.c.l.bf16 %v11873_v59  ;;  %v10112_v57 = vpop.f32.mrb[81].mxu1 }
 0x246   : > { %v2247_v33 = vsel %vm2023_vm15, %v11870_v3, %v10037_v49  ;;  %v2254_v14 = vsel %vm2030_vm0, %v11871_v17, %v10042_v22  ;;  %vm2017_vm2 = vcmp.eq.s32.totalorder %v1905_v13, 0  ;;  %v1805_v52 = vshrl.u32 %v1693_v18, 9 }
 0x247   : > { %v2310_v12 = vpack.c.bf16 %v2254_v14, %v2247_v33  ;;  %v2234_v55 = vsel %vm2010_vm1, %v11874_v26, %v11872_v38  ;;  %v11877_v43 = vunpack.c.l.bf16 %v11876_v35  ;;  %v1910_v23 = vand.u32 1, %v1798_v41  ;;  %v10116_v33 = vpop.f32.mrb[82].mxu1  ;;  %v11883_v38 = vld [vmem:[#allocation29_spill] sm:$0xff]  ;;  %v11887_v35 = vld [vmem:[#allocation8_spill] sm:$0xff] }
 0x248   : > { %v1576_v27 = vshrl.u32 %v1464_v1, 16  ;;  %v1583_v61 = vshrl.u32 %v1471_v30, 16  ;;  %v1917_v62 = vand.u32 1, %v1805_v52  ;;  %v6453_v6 = vadd.f32 %v9489_v15, %v9482_v54 }
 0x249   : > { %v2241_v49 = vsel %vm2017_vm2, %v11877_v43, %v11875_v4  ;;  %4103 = vmatprep.mubr.bf16.mxu1 %v2310_v12  ;;  %v6517_v8 = vadd.f32 %v9491_v29, %v9484_v46  ;;  %vm2022_vm3 = vcmp.eq.s32.totalorder %v1910_v23, 0  ;;  %v6456_v3 = vadd.f32 %v9503_v28, %v9495_v20  ;;  %v10125_v29 = vpop.f32.mrb[83].mxu1  ;;  %v11882_v12 = vld [vmem:[#allocation66_spill] sm:$0xff]  ;;  %v11886_v4 = vld [vmem:[#allocation25_spill] sm:$0xff] }
 0x24a   : > { %v2304_v22 = vpack.c.bf16 %v2241_v49, %v2234_v55  ;;  %v1688_v31 = vxor.u32 %v1576_v27, %v1464_v1  ;;  %v1695_v42 = vxor.u32 %v1583_v61, %v1471_v30  ;;  %vm2029_vm5 = vcmp.eq.s32.totalorder %v1917_v62, 0  ;;  %v11884_v55 = vld [vmem:[#allocation24_spill] sm:$0xff]  ;;  %v11889_v27 = vld [vmem:[#allocation10_spill] sm:$0xff]  ;;  %v11890_v61 = vld [vmem:[#allocation41_spill] sm:$0xff] }
 0x24b   : > { %v11878_v13 = vunpack.c.l.bf16 %v10013_v47  ;;  %v3056_v15 = vadd.f32 %v6453_v6, %v9977_v58  ;;  %v6520_v46 = vadd.f32 %v9505_v32, %v9497_v45  ;;  %v11879_v1 = vunpack.c.l.bf16 %v10020_v50  ;;  %v11880_v47 = vld [vmem:[#allocation33_spill] sm:$0xff]  ;;  %v11888_v49 = vld [vmem:[#allocation16_spill] sm:$0xff] }
 0x24c   : > { %6927 = vmatprep.mubr.msk.bf16.mxu0 %vm2988_vm4, %v2304_v22  ;;  %v1800_v28 = vshrl.u32 %v1688_v31, 9  ;;  %v1807_v18 = vshrl.u32 %v1695_v42, 9  ;;  %v3059_v17 = vadd.f32 %v6456_v3, %v9977_v58  ;;  %v6523_v59 = vadd.f32 %v11883_v38, %v11882_v12  ;;  %v11885_v50 = vld [vmem:[#allocation9_spill] sm:$0xff]  ;;  %v11891_v6 = vld [vmem:[#allocation40_spill] sm:$0xff]  ;;  %v11893_v42 = vld [vmem:[#allocation75_spill] sm:$0xff] }
 0x24d   : > { %v2246_v54 = vsel %vm2022_vm3, %v11878_v13, %v10072_v0  ;;  %v2253_v20 = vsel %vm2029_vm5, %v11879_v1, %v10078_v24  ;;  %v10131_v41 = vadd.f32 %v6517_v8, %v3056_v15  ;;  %v11881_v0 = vld [vmem:[#allocation23_spill] sm:$0xff]  ;;  %v6462_v24 = vadd.f32 %v11885_v50, %v11884_v55  ;;  %v11892_v8 = vld [vmem:[#allocation78_spill] sm:$0xff]  ;;  %v11896_v15 = vld [vmem:[#allocation76_spill] sm:$0xff] }
 0x24e   : > { %v2309_v14 = vpack.c.bf16 %v2253_v20, %v2246_v54  ;;  %v6459_v30 = vadd.f32 %v11881_v0, %v11880_v47  ;;  %v1912_v45 = vand.u32 1, %v1800_v28  ;;  %v1919_v32 = vand.u32 1, %v1807_v18  ;;  %v11894_v3 = vld [vmem:[#allocation71_spill] sm:$0xff]  ;;  %v11899_v47 = vld [vmem:[#allocation77_spill] sm:$0xff]  ;;  %v11901_v38 = vld [vmem:[#allocation20_spill] sm:$0xff] }
 0x24f   : > { %v10137_v26 = vadd.f32 %v6520_v46, %v3059_v17  ;;  %v6526_v43 = vadd.f32 %v11887_v35, %v11886_v4  ;;  %v6465_v23 = vadd.f32 %v11888_v49, %v9533_v5  ;;  %v6529_v22 = vadd.f32 %v11890_v61, %v11889_v27  ;;  %v11897_v46 = vld [vmem:[#allocation72_spill] sm:$0xff]  ;;  %v11900_v0 = vld [vmem:[#allocation19_spill] sm:$0xff]  ;;  %v11903_v55 = vld [vmem:[#allocation13_spill] sm:$0xff] }
 0x250   : > { %4104 = vmatmul.mubr.bf16.gmra.mrb[108].mxu1 %v2309_v14  ;;  %v3064_v52 = vadd.f32 %v6459_v30, %v9977_v58  ;;  %vm2024_vm6 = vcmp.eq.s32.totalorder %v1912_v45, 0  ;;  %vm2031_vm7 = vcmp.eq.s32.totalorder %v1919_v32, 0  ;;  %v3067_v62 = vadd.f32 %v6462_v24, %v9977_v58  ;;  %v11902_v45 = vld [vmem:[#allocation30_spill] sm:$0xff]  ;;  %v11904_v50 = vld [vmem:[#allocation7_spill] sm:$0xff]  ;;  %v11905_v4 = vld [vmem:[#allocation44_spill] sm:$0xff] }
 0x251   : > { %v6468_v31 = vadd.f32 %v11892_v8, %v11891_v6  ;;  %v11895_v13 = vunpack.c.l.bf16 %v11894_v3  ;;  %v11898_v1 = vunpack.c.l.bf16 %v11897_v46  ;;  %v3072_v5 = vadd.f32 %v6465_v23, %v9977_v58  ;;  %v11906_v35 = vld [vmem:[#allocation45_spill] sm:$0xff]  ;;  %v11909_v27 = vld [vmem:[#allocation11_spill] sm:$0xff]  ;;  %v11910_v61 = vld [vmem:[#allocation80_spill] sm:$0xff] }
 0x252   : > { %v3161_v28 = vadd.f32 %v6523_v59, %v3064_v52  ;;  %v3164_v17 = vadd.f32 %v6526_v43, %v3067_v62  ;;  %v6532_v30 = vadd.f32 %v11900_v0, %v11899_v47  ;;  %v6471_v32 = vadd.f32 %v11902_v45, %v11901_v38  ;;  %v11907_v43 = vld [vmem:[#allocation35_spill] sm:$0xff]  ;;  %v11908_v49 = vld [vmem:[#allocation37_spill] sm:$0xff]  ;;  %v11913_v3 = vld [vmem:[#allocation82_spill] sm:$0xff] }
 0x253   : > { %v2248_v54 = vsel %vm2024_vm6, %v11895_v13, %v11893_v42  ;;  %v2255_v20 = vsel %vm2031_vm7, %v11898_v1, %v11896_v15  ;;  %v3075_v14 = vadd.f32 %v6468_v31, %v9977_v58  ;;  %v10161_v12 = vadd.f32 %v6529_v22, %v3072_v5  ;;  %v11911_v22 = vld [vmem:[#allocation79_spill] sm:$0xff]  ;;  %v11912_v6 = vld [vmem:[#allocation81_spill] sm:$0xff]  ;;  %v11914_v13 = vld [vmem:[#allocation84_spill] sm:$0xff] }
 0x254   : > { %v2311_v18 = vpack.c.bf16 %v2255_v20, %v2248_v54  ;;  %v6535_v24 = vadd.f32 %v11904_v50, %v11903_v55  ;;  %v6474_v59 = vadd.f32 %v11906_v35, %v11905_v4  ;;  %v6538_v23 = vadd.f32 %v11908_v49, %v11907_v43  ;;  %v11915_v15 = vld [vmem:[#allocation83_spill] sm:$0xff]  ;;  %v11916_v46 = vld [vmem:[#allocation85_spill] sm:$0xff]  ;;  %v7265_v45 = vld [vmem:[%s11247_s4 + $0x20] sm:$0xff]  }
 0x255   : > { %v3172_v52 = vadd.f32 %v6532_v30, %v3075_v14  ;;  %v6477_v62 = vadd.f32 %v11910_v61, %v11909_v27  ;;  %v6541_v8 = vadd.f32 %v11912_v6, %v11911_v22  ;;  %v3080_v31 = vadd.f32 %v6471_v32, %v9977_v58  ;;  %v11918_v14 = vld [vmem:[#allocation38_spill] sm:$0xff]  ;;  %v11919_v0 = vld [vmem:[#allocation47_spill] sm:$0xff]  ;;  %v11923_v49 = vld [vmem:[#allocation88_spill] sm:$0xff]  ;;  %6939 = vmatprep.subr.bf16.mxu0 %v7265_v45 }
 0x256   : > { %6928 = vmatmul.mubr.msk.bf16.gmra.mrb[108].mxu0 %vm2988_vm4, %v2311_v18  ;;  %v3083_v42 = vadd.f32 %v6474_v59, %v9977_v58  ;;  %v6480_v54 = vadd.f32 %v11914_v13, %v11913_v3  ;;  %v6544_v1 = vadd.f32 %v11916_v46, %v11915_v15  ;;  %v6483_v5 = vadd.f32 %v9611_v9, %v9607_v51  ;;  %v11917_v18 = vld [vmem:[#allocation46_spill] sm:$0xff]  ;;  %v11921_v4 = vld [vmem:[#allocation39_spill] sm:$0xff]  ;;  %v11925_v22 = vld [vmem:[#allocation89_spill] sm:$0xff] }
 0x257   : > { %v3088_v20 = vadd.f32 %v6477_v62, %v9977_v58  ;;  %v6547_v47 = vadd.f32 %v11918_v14, %v11917_v18  ;;  %v11920_v30 = vld [vmem:[#allocation86_spill] sm:$0xff]  ;;  %v3177_v32 = vadd.f32 %v6535_v24, %v3080_v31  ;;  %v11922_v35 = vld [vmem:[#allocation87_spill] sm:$0xff]  ;;  %v7267_v24 = vld [vmem:[%s11248_s5 + $0x30] sm:$0xff]   ;;  %6940 = vmatpush3.bf16.msra.mxu0 %v7265_v45 }
 0x258   : > { %v6486_v38 = vadd.f32 %v11920_v30, %v11919_v0  ;;  %v3180_v55 = vadd.f32 %v6538_v23, %v3083_v42  ;;  %v3091_v50 = vadd.f32 %v6480_v54, %v9977_v58  ;;  %v6550_v59 = vadd.f32 %v11922_v35, %v11921_v4  ;;  %v11924_v27 = vld [vmem:[#allocation90_spill] sm:$0xff]  ;;  %v7266_v62 = vld [vmem:[%s11247_s4 + $0x28] sm:$0xff]   ;;  %v11927_v31 = vld [vmem:[#allocation92_spill] sm:$0xff]  ;;  %6975 = vmatprep.subr.bf16.mxu1 %v7267_v24 }
 0x259   : > { %v3185_v43 = vadd.f32 %v6541_v8, %v3088_v20  ;;  %v3096_v51 = vadd.f32 %v6483_v5, %v9977_v58  ;;  %v6489_v61 = vadd.f32 %v11924_v27, %v11923_v49  ;;  %v11926_v6 = vld [vmem:[#allocation91_spill] sm:$0xff]  ;;  %v11928_v42 = vld [vmem:[#allocation94_spill] sm:$0xff]  ;;  %v11929_v13 = vld [vmem:[#allocation93_spill] sm:$0xff]  ;;  %6941 = vmatprep.subr.bf16.mxu0 %v7266_v62  ;;  %6976 = vmatpush3.bf16.msra.mxu1 %v7267_v24 }
 0x25a   : > { %v3099_v9 = vadd.f32 %v6486_v38, %v9977_v58  ;;  %v3188_v23 = vadd.f32 %v6544_v1, %v3091_v50  ;;  %v6553_v8 = vadd.f32 %v11926_v6, %v11925_v22  ;;  %v6492_v3 = vadd.f32 %v11928_v42, %v11927_v31  ;;  %v11930_v54 = vld [vmem:[#allocation95_spill] sm:$0xff]  ;;  %v11931_v18 = vld [vmem:[#allocation96_spill] sm:$0xff]  ;;  %v11932_v14 = vld [vmem:[#allocation98_spill] sm:$0xff] }
 0x25b   : > { %v6556_v15 = vadd.f32 %v11930_v54, %v11929_v13  ;;  %v10211_v46 = vadd.f32 %v6547_v47, %v3096_v51  ;;  %v3104_v5 = vadd.f32 %v6489_v61, %v9977_v58  ;;  %v6575_v0 = vadd.f32 %v11932_v14, %v11931_v18  ;;  %v11933_v30 = vld [vmem:[#allocation49_spill] sm:$0xff]  ;;  %v11934_v38 = vld [vmem:[#allocation50_spill] sm:$0xff]  ;;  %v11935_v4 = vld [vmem:[#allocation100_spill] sm:$0xff]  ;;  %6942 = vmatpush3.bf16.msra.mxu0 %v7266_v62 }
 0x25c   : > { %v10213_v20 = vadd.f32 %v6550_v59, %v3099_v9  ;;  %v3107_v1 = vadd.f32 %v6492_v3, %v9977_v58  ;;  %v6578_v50 = vadd.f32 %v11934_v38, %v11933_v30  ;;  %v11936_v35 = vld [vmem:[#allocation102_spill] sm:$0xff]  ;;  %v11937_v27 = vld [vmem:[#allocation104_spill] sm:$0xff]  ;;  %v6587_v9 = vadd.f32 %v9737_v11, %v9733_v63  ;;  %v11941_v13 = vld [vmem:[#allocation99_spill] sm:$0xff] }
 0x25d   : > { %v6581_v49 = vadd.f32 %v11936_v35, %v11935_v4  ;;  %v11938_v45 = vld [vmem:[#allocation106_spill] sm:$0xff]  ;;  %v3201_v59 = vadd.f32 %v6553_v8, %v3104_v5  ;;  %v3242_v51 = vadd.f32 %v6575_v0, %v10006_v16  ;;  %v11940_v22 = vld [vmem:[#allocation112_spill] sm:$0xff]  ;;  %v11943_v11 = vld [vmem:[#allocation43_spill] sm:$0xff]  ;;  %v3501_v35 = vsub.s32 1, %v11845_v34 }
 0x25e   : > { %v6584_v47 = vadd.f32 %v11938_v45, %v11937_v27  ;;  %v11939_v61 = vld [vmem:[#allocation110_spill] sm:$0xff]  ;;  %v3204_v58 = vadd.f32 %v6556_v15, %v3107_v1  ;;  %v3245_v31 = vadd.f32 %v6578_v50, %v10029_v44  ;;  %v3258_v8 = vadd.f32 %v6587_v9, %v3161_v28  ;;  %v11944_v24 = vld [vmem:[#allocation97_spill] sm:$0xff]  ;;  %v11948_v0 = vld [vmem:[#allocation103_spill] sm:$0xff] }
 0x25f   : > { %v6590_v6 = vadd.f32 %v11940_v22, %v11939_v61  ;;  %v3250_v42 = vadd.f32 %v6581_v49, %v10131_v41  ;;  %v10234_v54 = vadd.f32 %v11941_v13, %v3242_v51  ;;  %v11942_v5 = vld [vmem:[#allocation114_spill] sm:$0xff]  ;;  %v11946_v41 = vld [vmem:[#allocation117_spill] sm:$0xff]  ;;  %v11950_v28 = vld [vmem:[#allocation107_spill] sm:$0xff] }
 0x260   : > { %v3253_v3 = vadd.f32 %v6584_v47, %v10137_v26  ;;  %v6593_v63 = vadd.f32 %v9759_v21, %v11942_v5  ;;  %v10239_v18 = vadd.f32 %v11943_v11, %v3245_v31  ;;  %v11945_v44 = vld [vmem:[#allocation42_spill] sm:$0xff]  ;;  %v11947_v26 = vld [vmem:[#allocation119_spill] sm:$0xff]  ;;  %v10250_v1 = vadd.f32 %v11948_v0, %v3258_v8  ;;  %v11952_v30 = vld [vmem:[#allocation121_spill] sm:$0xff] }
 0x261   : > { %v3261_v16 = vadd.f32 %v6590_v6, %v3164_v17  ;;  %v10242_v15 = vadd.f32 %v11944_v24, %v3250_v42  ;;  %v6596_v62 = vadd.f32 %v11947_v26, %v11946_v41  ;;  %v11953_v38 = vld [vmem:[#allocation123_spill] sm:$0xff]  ;;  %v11954_v49 = vld [vmem:[#allocation122_spill] sm:$0xff]  ;;  %v11955_v27 = vld [vmem:[#allocation124_spill] sm:$0xff]  ;;  %v10278_v24 = vpop.f32.mrb[84].mxu0 }
 0x262   : > { %v10245_v14 = vadd.f32 %v11945_v44, %v3253_v3  ;;  %11949 = vst [vmem:[#allocation67_spill] sm:$0xff] %v10250_v1  ;;  %v3266_v21 = vadd.f32 %v6593_v63, %v10161_v12  ;;  %v6599_v50 = vadd.f32 %v11953_v38, %v11952_v30  ;;  %v6648_v45 = vadd.f32 %v11955_v27, %v11954_v49  ;;  %v11956_v47 = vld [vmem:[#allocation125_spill] sm:$0xff]  ;;  %v11959_v6 = vld [vmem:[#allocation126_spill] sm:$0xff]  ;;  %v11960_v31 = vld [vmem:[#allocation59_spill] sm:$0xff]  ;;  %v10287_v30 = vpop.f32.mrb[85].mxu0 }
 0x263   : > { %v10253_v17 = vadd.f32 %v11950_v28, %v3261_v16  ;;  %v3269_v4 = vadd.f32 %v6596_v62, %v3172_v52  ;;  %v6602_v51 = vadd.f32 %v9802_v56, %v11956_v47  ;;  %v11957_v9 = vld [vmem:[#allocation101_spill] sm:$0xff]  ;;  %v6651_v42 = vadd.f32 %v11960_v31, %v11959_v6  ;;  %v11961_v12 = vld [vmem:[#allocation51_spill] sm:$0xff]  ;;  %v11962_v3 = vld [vmem:[#allocation52_spill] sm:$0xff] }
 0x264   : > { %v10264_v61 = vadd.f32 %v11957_v9, %v3266_v21  ;;  %v3274_v22 = vadd.f32 %v6599_v50, %v3177_v32  ;;  %v6605_v13 = vadd.f32 %v11962_v3, %v11961_v12  ;;  %v11963_v8 = vld [vmem:[#allocation105_spill] sm:$0xff]  ;;  %v10274_v16 = vrot.slane %v9950_v19, %v3501_v35  ;;  %v11965_v63 = vld [vmem:[#allocation60_spill] sm:$0xff]  ;;  %v11966_v11 = vld [vmem:[#allocation127_spill] sm:$0xff]  ;;  %v10295_v35 = vpop.f32.mrb[86].mxu0 }
 0x265   : > { %11951 = vst [vmem:[#allocation57_spill] sm:$0xff] %v10253_v17  ;;  %v10271_v52 = vadd.f32 %v11963_v8, %v3269_v4  ;;  %v3277_v5 = vadd.f32 %v6602_v51, %v3180_v55  ;;  %v6654_v56 = vadd.f32 %v11966_v11, %v11965_v63  ;;  %v11967_v44 = vld [vmem:[#allocation109_spill] sm:$0xff]  ;;  %v11969_v26 = vld [vmem:[#allocation128_spill] sm:$0xff]  ;;  %v11971_v28 = vld [vmem:[#allocation130_spill] sm:$0xff] }
 0x266   : > { %11958 = vst [vmem:[#allocation68_spill] sm:$0xff] %v10264_v61  ;;  %v10281_v32 = vadd.f32 %v11967_v44, %v3274_v22  ;;  %v3282_v41 = vadd.f32 %v6605_v13, %v3185_v43  ;;  %v6608_v62 = vadd.f32 %v9834_v53, %v11969_v26  ;;  %v11970_v0 = vld [vmem:[#allocation129_spill] sm:$0xff]  ;;  %v3856_v19 = vadd.f32 %v6648_v45, %v10274_v16  ;;  %v11974_v43 = vld [vmem:[#allocation108_spill] sm:$0xff]  ;;  %v11976_v47 = vld [vmem:[#allocation131_spill] sm:$0xff]  ;;  %v10303_v22 = vpop.f32.mrb[87].mxu0 }
 0x267   : > { %11964 = vst [vmem:[#allocation58_spill] sm:$0xff] %v10271_v52  ;;  %v6657_v21 = vadd.f32 %v11971_v28, %v11970_v0  ;;  %v11972_v55 = vld [vmem:[#allocation113_spill] sm:$0xff]  ;;  %v3859_v50 = vadd.f32 %v6651_v42, %v10274_v16  ;;  %v3864_v4 = vadd.f32 %v6654_v56, %v10274_v16  ;;  %v11978_v45 = vld [vmem:[#allocation132_spill] sm:$0xff]  ;;  %v11979_v6 = vld [vmem:[#allocation134_spill] sm:$0xff] }
 0x268   : > { %11968 = vst [vmem:[#allocation73_spill] sm:$0xff] %v10281_v32  ;;  %v10291_v38 = vadd.f32 %v11972_v55, %v3277_v5  ;;  %v10298_v49 = vadd.f32 %v11974_v43, %v3282_v41  ;;  %v3285_v53 = vadd.f32 %v6608_v62, %v3188_v23  ;;  %v11977_v51 = vld [vmem:[#allocation133_spill] sm:$0xff]  ;;  %v6660_v31 = vadd.f32 %v11979_v6, %v11978_v45  ;;  %v11980_v12 = vld [vmem:[#allocation135_spill] sm:$0xff]  ;;  %v11982_v13 = vld [vmem:[#allocation136_spill] sm:$0xff]  ;;  %v6780_v6 = vpop.f32.mrb[84].mxu1 }
 0x269   : > { %v3867_v27 = vadd.f32 %v6657_v21, %v10274_v16  ;;  %v6611_v9 = vadd.f32 %v11977_v51, %v11976_v47  ;;  %v11981_v42 = vld [vmem:[#allocation137_spill] sm:$0xff]  ;;  %v11983_v8 = vld [vmem:[#allocation138_spill] sm:$0xff]  ;;  %v11984_v63 = vld [vmem:[#allocation139_spill] sm:$0xff] }
 0x26a   : > { %11973 = vst [vmem:[#allocation69_spill] sm:$0xff] %v10291_v38  ;;  %11975 = vst [vmem:[#allocation74_spill] sm:$0xff] %v10298_v49  ;;  %v6614_v3 = vadd.f32 %v11981_v42, %v11980_v12  ;;  %v6663_v5 = vadd.f32 %v11983_v8, %v11982_v13  ;;  %v11985_v11 = vld [vmem:[#allocation61_spill] sm:$0xff]  ;;  %v11986_v23 = vld [vmem:[#allocation111_spill] sm:$0xff]  ;;  %v3872_v43 = vadd.f32 %v6660_v31, %v10274_v16 }
 0x26b   : > { %v6617_v56 = vadd.f32 %v11985_v11, %v11984_v63  ;;  %v10314_v44 = vadd.f32 %v11986_v23, %v3285_v53  ;;  %v3290_v41 = vadd.f32 %v6611_v9, %v10211_v46  ;;  %v11988_v26 = vld [vmem:[#allocation140_spill] sm:$0xff]  ;;  %v11989_v62 = vld [vmem:[#allocation53_spill] sm:$0xff]  ;;  %v11990_v28 = vld [vmem:[#allocation62_spill] sm:$0xff]  ;;  %v6781_v63 = vpop.f32.mrb[85].mxu1 }
 0x26c   : > { %v6666_v0 = vadd.f32 %v11989_v62, %v11988_v26  ;;  %v11991_v21 = vld [vmem:[#allocation141_spill] sm:$0xff]  ;;  %v3293_v47 = vadd.f32 %v6614_v3, %v10213_v20  ;;  %v3875_v51 = vadd.f32 %v6663_v5, %v10274_v16  ;;  %v11992_v12 = vld [vmem:[#allocation116_spill] sm:$0xff]  ;;  %v11994_v9 = vld [vmem:[#allocation54_spill] sm:$0xff]  ;;  %v6783_v62 = vpop.f32.mrb[86].mxu1 }
 0x26d   : > { %11987 = vst [vmem:[#allocation70_spill] sm:$0xff] %v10314_v44  ;;  %v6620_v55 = vadd.f32 %v11991_v21, %v11990_v28  ;;  %v3298_v45 = vadd.f32 %v6617_v56, %v3201_v59  ;;  %v10325_v42 = vadd.f32 %v11992_v12, %v3290_v41  ;;  %v11995_v13 = vld [vmem:[#allocation142_spill] sm:$0xff]  ;;  %v11996_v11 = vld [vmem:[#allocation120_spill] sm:$0xff]  ;;  %v11998_v31 = vld [vmem:[#allocation115_spill] sm:$0xff] }
 0x26e   : > { %v3880_v53 = vadd.f32 %v6666_v0, %v10274_v16  ;;  %v6669_v8 = vadd.f32 %v11995_v13, %v11994_v9  ;;  %v10331_v23 = vadd.f32 %v11996_v11, %v3293_v47  ;;  %v12000_v20 = vld [vmem:[#allocation143_spill] sm:$0xff]  ;;  %v12001_v3 = vld [vmem:[#allocation145_spill] sm:$0xff]  ;;  %v12002_v5 = vld [vmem:[#allocation144_spill] sm:$0xff] }
 0x26f   : > { %11993 = vst [vmem:[#allocation33_spill] sm:$0xff] %v10325_v42  ;;  %v3301_v46 = vadd.f32 %v6620_v55, %v3204_v58  ;;  %v10334_v26 = vadd.f32 %v11998_v31, %v3298_v45  ;;  %v6672_v59 = vadd.f32 %v12001_v3, %v12000_v20  ;;  %v12003_v56 = vld [vmem:[#allocation146_spill] sm:$0xff]  ;;  %v12006_v21 = vld [vmem:[#allocation147_spill] sm:$0xff]  ;;  %v12007_v55 = vld [vmem:[#allocation149_spill] sm:$0xff]  ;;  %v6784_v45 = vpop.f32.mrb[87].mxu1 }
 0x270   : > { %11997 = vst [vmem:[#allocation23_spill] sm:$0xff] %v10331_v23  ;;  %v6712_v41 = vadd.f32 %v12003_v56, %v12002_v5  ;;  %v12004_v28 = vld [vmem:[#allocation118_spill] sm:$0xff]  ;;  %v3883_v58 = vadd.f32 %v6669_v8, %v10274_v16  ;;  %v6675_v12 = vadd.f32 %v12007_v55, %v12006_v21  ;;  %v12008_v47 = vld [vmem:[#allocation148_spill] sm:$0xff]  ;;  %v12010_v20 = vld [vmem:[#allocation151_spill] sm:$0xff] }
 0x271   : > { %11999 = vst [vmem:[#allocation66_spill] sm:$0xff] %v10334_v26  ;;  %v10341_v0 = vadd.f32 %v12004_v28, %v3301_v46  ;;  %v12009_v9 = vld [vmem:[#allocation150_spill] sm:$0xff]  ;;  %v3888_v11 = vadd.f32 %v6672_v59, %v10274_v16  ;;  %v12011_v3 = vld [vmem:[#allocation153_spill] sm:$0xff]  ;;  %v12012_v5 = vld [vmem:[#allocation152_spill] sm:$0xff] }
 0x272   : > { %v6715_v13 = vadd.f32 %v12009_v9, %v12008_v47  ;;  %v3953_v31 = vadd.f32 %v6712_v41, %v3856_v19  ;;  %v6678_v34 = vadd.f32 %v12011_v3, %v12010_v20  ;;  %v12013_v56 = vld [vmem:[#allocation154_spill] sm:$0xff]  ;;  %v3891_v46 = vadd.f32 %v6675_v12, %v10274_v16  ;;  %v12014_v8 = vld [vmem:[#allocation155_spill] sm:$0xff]  ;;  %v12016_v21 = vld [vmem:[#allocation156_spill] sm:$0xff] }
 0x273   : > { %12005 = vst [vmem:[#allocation29_spill] sm:$0xff] %v10341_v0  ;;  %v6718_v23 = vadd.f32 %v12013_v56, %v12012_v5  ;;  %v12015_v0 = vld [vmem:[#allocation157_spill] sm:$0xff]  ;;  %v12017_v55 = vld [vmem:[#allocation158_spill] sm:$0xff]  ;;  %v12018_v59 = vld [vmem:[#allocation159_spill] sm:$0xff]  ;;  %v6724_v41 = vadd.f32 %v9963_v48, %v9959_v10 }
 0x274   : > { %v3956_v28 = vadd.f32 %v6715_v13, %v3859_v50  ;;  %v6681_v42 = vadd.f32 %v12015_v0, %v12014_v8  ;;  %v6721_v26 = vadd.f32 %v12017_v55, %v12016_v21  ;;  %v3896_v47 = vadd.f32 %v6678_v34, %v10274_v16  ;;  %v12019_v50 = vld [vmem:[#allocation161_spill] sm:$0xff]  ;;  %v12020_v13 = vld [vmem:[#allocation160_spill] sm:$0xff]  ;;  %v12021_v34 = vld [vmem:[#allocation162_spill] sm:$0xff] }
 0x275   : > { %v3961_v9 = vadd.f32 %v6718_v23, %v3864_v4  ;;  %v6684_v19 = vadd.f32 %v9961_v7, %v12018_v59  ;;  %v6687_v12 = vadd.f32 %v12019_v50, %v9966_v40  ;;  %v6727_v0 = vadd.f32 %v9974_v25, %v12020_v13  ;;  %v12022_v4 = vld [vmem:[#allocation164_spill] sm:$0xff]  ;;  %v12023_v8 = vld [vmem:[#allocation163_spill] sm:$0xff]  ;;  %v12024_v7 = vld [vmem:[#allocation165_spill] sm:$0xff] }
 0x276   : > { %v3899_v20 = vadd.f32 %v6681_v42, %v10274_v16  ;;  %v3964_v3 = vadd.f32 %v6721_v26, %v3867_v27  ;;  %v3969_v56 = vadd.f32 %v6724_v41, %v3872_v43  ;;  %v6690_v23 = vadd.f32 %v12022_v4, %v12021_v34  ;;  %v7268_v10 = vld [vmem:[%s11247_s4 + $0x30] sm:$0xff]   ;;  %v12025_v40 = vld [vmem:[#allocation63_spill] sm:$0xff]  ;;  %v10484_v1 = vld [vmem:[%s11249_s6] sm:$0xff]  }
 0x277   : > { %v3904_v5 = vadd.f32 %v6684_v19, %v10274_v16  ;;  %v6730_v21 = vadd.f32 %v12024_v7, %v12023_v8  ;;  %v3907_v48 = vadd.f32 %v6687_v12, %v10274_v16  ;;  %v3972_v27 = vadd.f32 %v6727_v0, %v3875_v51  ;;  %v12026_v42 = vld [vmem:[#allocation64_spill] sm:$0xff]  ;;  %v12027_v25 = vld [vmem:[#allocation55_spill] sm:$0xff]  ;;  %6943 = vmatprep.subr.bf16.mxu0 %v7268_v10 }
 0x278   : > { %v6693_v26 = vadd.f32 %v12026_v42, %v12025_v40  ;;  %v12028_v55 = vld [vmem:[#allocation56_spill] sm:$0xff]  ;;  %v10382_v43 = vadd.f32 %v6690_v23, %v10274_v16  ;;  %v6736_v41 = vadd.f32 %v10088_v39, %v10086_v36  ;;  %v6776_v50 = vadd.f32 %v10112_v57, %v10106_v2  ;;  %6944 = vmatpush3.bf16.msra.mxu0 %v7268_v10  ;;  %v7269_v36 = vld [vmem:[%s11247_s4 + $0x38] sm:$0xff]  }
 0x279   : > { %v6733_v59 = vadd.f32 %v12028_v55, %v12027_v25  ;;  %v10384_v19 = vadd.f32 %v6730_v21, %v3880_v53  ;;  %v6739_v13 = vadd.f32 %v10092_v60, %v10090_v37  ;;  %v6779_v0 = vadd.f32 %v10125_v29, %v10116_v33  ;;  %v7270_v39 = vld [vmem:[%s11248_s5 + $0x38] sm:$0xff]   ;;  %6945 = vmatprep.subr.bf16.mxu0 %v7269_v36  ;;  %v12033_v8 = vld [vmem:[#allocation36_spill] sm:$0xff]  ;;  %v12036_v25 = vld [vmem:[#allocation18_spill] sm:$0xff] }
 0x27a   : > { %v10391_v51 = vadd.f32 %v6693_v26, %v10274_v16  ;;  %v10405_v2 = vadd.f32 %v6736_v41, %v3888_v11  ;;  %v6742_v57 = vadd.f32 %v10287_v30, %v10278_v24  ;;  %v6782_v16 = vadd.f32 %v6781_v63, %v6780_v6  ;;  %6977 = vmatprep.subr.bf16.mxu1 %v7270_v39  ;;  %v12034_v10 = vld [vmem:[#allocation17_spill] sm:$0xff] }
 0x27b   : > { %v10393_v12 = vadd.f32 %v6733_v59, %v3883_v58  ;;  %v6745_v37 = vadd.f32 %v10303_v22, %v10295_v35  ;;  %v10411_v60 = vadd.f32 %v6739_v13, %v3891_v46  ;;  %v6785_v33 = vadd.f32 %v6784_v45, %v6783_v62  ;;  %6978 = vmatpush3.bf16.msra.mxu1 %v7270_v39  ;;  %v6746_v35 = vpop.f32.mrb[88].mxu0 }
 0x27c   : > { %v10413_v29 = vadd.f32 %v6742_v57, %v3896_v47  ;;  %v10417_v58 = vadd.f32 %v6782_v16, %v3961_v9  ;;  %v10419_v11 = vadd.f32 %v6776_v50, %v3953_v31  ;;  %6946 = vmatpush3.bf16.msra.mxu0 %v7269_v36  ;;  %v10423_v30 = vadd.f32 %v6779_v0, %v3956_v28  ;;  %v6747_v22 = vpop.f32.mrb[89].mxu0  ;;  %v6786_v47 = vpop.f32.mrb[88].mxu1 }
 0x27d   : > { %v10415_v53 = vadd.f32 %v6745_v37, %v3899_v20  ;;  %v10421_v24 = vadd.f32 %v6785_v33, %v3964_v3  ;;  %v6748_v6 = vadd.f32 %v6747_v22, %v6746_v35  ;;  %v6749_v63 = vpop.f32.mrb[90].mxu0  ;;  %v6787_v31 = vpop.f32.mrb[89].mxu1  ;;  %v10439_v21 = vstv %s4469_s29  ;;  %v12037_v37 = vld [vmem:[#allocation14_spill] sm:$0xff]  ;;  %6995 = vmatprep.subr.bf16.mxu0 %v10484_v1 }
 0x27e   : > { %v6750_v62 = vpop.f32.mrb[91].mxu0  ;;  %v6788_v20 = vadd.f32 %v6787_v31, %v6786_v47  ;;  %v6789_v3 = vpop.f32.mrb[90].mxu1  ;;  %v4477_v40 = vadd.s32 %v10439_v21, %v12033_v8 }
 0x27f   : > { %v10426_v45 = vadd.f32 %v6748_v6, %v3904_v5  ;;  %v6751_v46 = vadd.f32 %v6750_v62, %v6749_v63  ;;  %v6790_v34 = vpop.f32.mrb[91].mxu1  ;;  %v10435_v5 = vstv %s414_s28  ;;  %v12038_v63 = vld [vmem:[#allocation28_spill] sm:$0xff]  ;;  %s4471_s28 = sshrl.u32 %s4470_s18, 13 }
 0x280   : > { %v6791_v28 = vadd.f32 %v6790_v34, %v6789_v3  ;;  %v10431_v4 = vadd.f32 %v6788_v20, %v3969_v56  ;;  %v4212_v7 = vadd.s32 %v10435_v5, %v12033_v8  ;;  %v12035_v56 = vld [vmem:[#allocation48_spill] sm:$0xff]  ;;  %v4211_v55 = vadd.s32 %v10435_v5, %v12036_v25  ;;  %s4472_s29 = sxor.u32 %s4471_s28, %s4470_s18  ;;  %s5306_s18 = sadd.s32 208639028, %s7653_s25 }
 0x281   : > { %12029 = vst [vmem:[#allocation24_spill] sm:$0xff] %v10426_v45  ;;  %v10428_v9 = vadd.f32 %v6751_v46, %v3907_v48  ;;  %v4210_v48 = vadd.s32 %v10435_v5, %v12034_v10  ;;  %v4213_v42 = vadd.s32 %v10435_v5, %v12035_v56  ;;  %v4493_v41 = vshrl.u32 %v4477_v40, 16  ;;  %s4473_s30 = smul.u32 16777619, %s4472_s29  ;;  %s5307_s23 = sshrl.u32 %s5306_s18, 13 }
 0x282   : > { %12031 = vst [vmem:[#allocation25_spill] sm:$0xff] %v10431_v4  ;;  %v10433_v23 = vadd.f32 %v6791_v28, %v3972_v27  ;;  %v4228_v26 = vshrl.u32 %v4212_v7, 16  ;;  %v4478_v27 = vadd.s32 %v10439_v21, %v12035_v56  ;;  %v4227_v36 = vshrl.u32 %v4211_v55, 16  ;;  %s5308_s27 = sxor.u32 %s5307_s23, %s5306_s18  ;;  %s327_s29 = sand.u32 1, %s7371_s12  }
 0x283   : > { %12030 = vst [vmem:[#allocation9_spill] sm:$0xff] %v10428_v9  ;;  %v4226_v59 = vshrl.u32 %v4210_v48, 16  ;;  %v4229_v50 = vshrl.u32 %v4213_v42, 16  ;;  %v4509_v57 = vxor.u32 %v4493_v41, %v4477_v40  ;;  %v4216_v33 = vadd.s32 %v10435_v5, %v12037_v37  ;;  %s5309_s28 = smul.u32 16777619, %s5308_s27  ;;  %s6218_s22 = sshll.u32 %s327_s29, 7 }
 0x284   : > { %12032 = vst [vmem:[#allocation8_spill] sm:$0xff] %v10433_v23  ;;  %v4244_v13 = vxor.u32 %v4228_v26, %v4212_v7  ;;  %v4494_v0 = vshrl.u32 %v4478_v27, 16  ;;  %v4243_v6 = vxor.u32 %v4227_v36, %v4211_v55  ;;  %v4214_v62 = vadd.s32 %v10435_v5, %v12038_v63  ;;  %s11202_s18 = scalar_lea.sflag [#allocation4], %s327_s29  ;;  %s7381_s27 = smov [#allocation3]  }
 0x285   : > { %v4242_v39 = vxor.u32 %v4226_v59, %v4210_v48  ;;  %v4245_v16 = vxor.u32 %v4229_v50, %v4213_v42  ;;  %v4525_v20 = vmul.u32 2146121005, %v4509_v57  ;;  %v4232_v34 = vshrl.u32 %v4216_v33, 16 }
 0x286   : > { %v4260_v35 = vmul.u32 2146121005, %v4244_v13  ;;  %v4510_v22 = vxor.u32 %v4494_v0, %v4478_v27  ;;  %v4259_v26 = vmul.u32 2146121005, %v4243_v6  ;;  %v4230_v59 = vshrl.u32 %v4214_v62, 16 }
 0x287   : > { %v4258_v47 = vmul.u32 2146121005, %v4242_v39  ;;  %v4261_v3 = vmul.u32 2146121005, %v4245_v16  ;;  %v4475_v50 = vadd.s32 %v10439_v21, %v12034_v10  ;;  %v4541_v13 = vshrl.u32 %v4525_v20, 15 }
 0x288   : > { %v4276_v48 = vshrl.u32 %v4260_v35, 15  ;;  %v4526_v40 = vmul.u32 2146121005, %v4510_v22  ;;  %v4248_v36 = vxor.u32 %v4232_v34, %v4216_v33  ;;  %v4476_v39 = vadd.s32 %v10439_v21, %v12036_v25 }
 0x289   : > { %v4274_v55 = vshrl.u32 %v4258_v47, 15  ;;  %v4277_v0 = vshrl.u32 %v4261_v3, 15  ;;  %v4491_v56 = vshrl.u32 %v4475_v50, 16  ;;  %v4557_v8 = vxor.u32 %v4541_v13, %v4525_v20 }
 0x28a   : > { %v4292_v22 = vxor.u32 %v4276_v48, %v4260_v35  ;;  %v4542_v6 = vshrl.u32 %v4526_v40, 15  ;;  %v4264_v33 = vmul.u32 2146121005, %v4248_v36  ;;  %v4492_v34 = vshrl.u32 %v4476_v39, 16  ;;  %v12041_v48 = vld [vmem:[#allocation31_spill] sm:$0xff] }
 0x28c   : > { %v4308_v25 = vmul.u32 2221713035, %v4292_v22  ;;  %v4558_v44 = vxor.u32 %v4542_v6, %v4526_v40  ;;  %v12044_v22 = vld [vmem:[#allocation65_spill] sm:$0xff] }
 0x28d   : > { %v4220_v6 = vadd.s32 %v10435_v5, %v12044_v22 }
 0x28e   : > { %v4574_v13 = vmul.u32 2221713035, %v4558_v44 }
 0x297   : > { %v6752_v46 = vpop.f32.mrb[92].mxu0 }
 0x298   : > { %v6753_v31 = vpop.f32.mrb[93].mxu0 }
 0x299   : > { %v6754_v28 = vadd.f32 %v6753_v31, %v6752_v46  ;;  %v6755_v7 = vpop.f32.mrb[94].mxu0 }
 0x29a   : > { %v6756_v42 = vpop.f32.mrb[95].mxu0 }
 0x29b   : > { %v10456_v41 = vadd.f32 %v6754_v28, %v10382_v43  ;;  %v6757_v27 = vadd.f32 %v6756_v42, %v6755_v7  ;;  %v4275_v43 = vshrl.u32 %v4259_v26, 15  ;;  %v4290_v7 = vxor.u32 %v4274_v55, %v4258_v47 }
 0x29c   : > { %v4246_v42 = vxor.u32 %v4230_v59, %v4214_v62  ;;  %v4507_v62 = vxor.u32 %v4491_v56, %v4475_v50  ;;  %v4573_v59 = vmul.u32 2221713035, %v4557_v8  ;;  %v4324_v55 = vshrl.u32 %v4308_v25, 16 }
 0x29d   : > { %12039 = vst [vmem:[#allocation16_spill] sm:$0xff] %v10456_v41  ;;  %v6792_v57 = vpop.f32.mrb[92].mxu1  ;;  %v10463_v16 = vadd.f32 %v6757_v27, %v10391_v51  ;;  %v4293_v41 = vxor.u32 %v4277_v0, %v4261_v3  ;;  %v4291_v35 = vxor.u32 %v4275_v43, %v4259_v26  ;;  %v4217_v27 = vadd.s32 %v10435_v5, %v12041_v48  ;;  %v12045_v43 = vld [vmem:[#allocation15_spill] sm:$0xff] }
 0x29e   : > { %v6793_v46 = vpop.f32.mrb[93].mxu1  ;;  %v4508_v3 = vxor.u32 %v4492_v34, %v4476_v39  ;;  %v4262_v0 = vmul.u32 2146121005, %v4246_v42  ;;  %v4589_v8 = vshrl.u32 %v4573_v59, 16  ;;  %v4340_v39 = vxor.u32 %v4324_v55, %v4308_v25  ;;  %v10489_v25 = vld [vmem:[%s11250_s7] sm:$0xff]  }
 0x29f   : > { %12040 = vst [vmem:[#allocation10_spill] sm:$0xff] %v10463_v16  ;;  %v6794_v31 = vadd.f32 %v6793_v46, %v6792_v57  ;;  %v6795_v28 = vpop.f32.mrb[94].mxu1  ;;  %v4306_v57 = vmul.u32 2221713035, %v4290_v7  ;;  %v4309_v20 = vmul.u32 2221713035, %v4293_v41  ;;  %7027 = vmatprep.subr.bf16.mxu1 %v10489_v25 }
 0x2a0   : > { %v6796_v10 = vpop.f32.mrb[95].mxu1  ;;  %v4307_v40 = vmul.u32 2221713035, %v4291_v35  ;;  %v4233_v36 = vshrl.u32 %v4217_v27, 16  ;;  %v12046_v41 = vld [vmem:[#allocation21_spill] sm:$0xff]  ;;  %v4278_v7 = vshrl.u32 %v4262_v0, 15  ;;  %v4605_v45 = vxor.u32 %v4589_v8, %v4573_v59 }
 0x2a1   : > { %v6797_v38 = vadd.f32 %v6796_v10, %v6795_v28  ;;  %v10466_v51 = vadd.f32 %v6794_v31, %v10384_v19  ;;  %v4280_v10 = vshrl.u32 %v4264_v33, 15  ;;  %v12043_v19 = vld [vmem:[#allocation12_spill] sm:$0xff]  ;;  %v4322_v46 = vshrl.u32 %v4306_v57, 16 }
 0x2a2   : > { %v4215_v26 = vadd.s32 %v10435_v5, %v12043_v19  ;;  %v4325_v56 = vshrl.u32 %v4309_v20, 16  ;;  %v4221_v44 = vadd.s32 %v10435_v5, %v12046_v41  ;;  %v4524_v50 = vmul.u32 2146121005, %v4508_v3 }
 0x2a3   : > { %v10471_v47 = vadd.f32 %v6797_v38, %v10393_v12  ;;  %v4218_v38 = vadd.s32 %v10435_v5, %v12045_v43  ;;  %v4523_v12 = vmul.u32 2146121005, %v4507_v62  ;;  %v4590_v31 = vshrl.u32 %v4574_v13, 16 }
 0x2a4   : > { %v4296_v28 = vxor.u32 %v4280_v10, %v4264_v33  ;;  %v4323_v42 = vshrl.u32 %v4307_v40, 16  ;;  %v4249_v34 = vxor.u32 %v4233_v36, %v4217_v27  ;;  %v4231_v35 = vshrl.u32 %v4215_v26, 16 }
 0x2a5   : > { %12042 = vst [vmem:[#allocation41_spill] sm:$0xff] %v10471_v47  ;;  %v4236_v16 = vshrl.u32 %v4220_v6, 16  ;;  %v4338_v32 = vxor.u32 %v4322_v46, %v4306_v57  ;;  %v4234_v49 = vshrl.u32 %v4218_v38, 16  ;;  %v4539_v9 = vshrl.u32 %v4523_v12, 15 }
 0x2a6   : > { %v4341_v17 = vxor.u32 %v4325_v56, %v4309_v20  ;;  %v4237_v62 = vshrl.u32 %v4221_v44, 16  ;;  %v4540_v52 = vshrl.u32 %v4524_v50, 15  ;;  %v4356_v33 = vshrl.u32 %v4340_v39, 9 }
 0x2a7   : > { %v4606_v27 = vxor.u32 %v4590_v31, %v4574_v13  ;;  %v4312_v3 = vmul.u32 2221713035, %v4296_v28  ;;  %v4294_v57 = vxor.u32 %v4278_v7, %v4262_v0  ;;  %v4339_v55 = vxor.u32 %v4323_v42, %v4307_v40 }
 0x2a8   : > { %v4265_v10 = vmul.u32 2146121005, %v4249_v34  ;;  %v4247_v59 = vxor.u32 %v4231_v35, %v4215_v26  ;;  %v4252_v20 = vxor.u32 %v4236_v16, %v4220_v6  ;;  %v4354_v36 = vshrl.u32 %v4338_v32, 9 }
 0x2a9   : > { %v4250_v46 = vxor.u32 %v4234_v49, %v4218_v38  ;;  %v4555_v8 = vxor.u32 %v4539_v9, %v4523_v12  ;;  %v4621_v56 = vshrl.u32 %v4605_v45, 9  ;;  %v4357_v61 = vshrl.u32 %v4341_v17, 9 }
 0x2aa   : > { %v4253_v23 = vxor.u32 %v4237_v62, %v4221_v44  ;;  %v4556_v47 = vxor.u32 %v4540_v52, %v4524_v50  ;;  %v10493_v4 = vand.u32 1, %v4356_v33  ;;  %v4622_v13 = vshrl.u32 %v4606_v27, 9  ;;  %v12047_v62 = vld [vmem:[#allocation32_spill] sm:$0xff] }
 0x2ab   : > { %v4328_v39 = vshrl.u32 %v4312_v3, 16  ;;  %v4310_v0 = vmul.u32 2221713035, %v4294_v57  ;;  %v4355_v40 = vshrl.u32 %v4339_v55, 9  ;;  %v4281_v31 = vshrl.u32 %v4265_v10, 15 }
 0x2ac   : > { %v4263_v26 = vmul.u32 2146121005, %v4247_v59  ;;  %v4268_v16 = vmul.u32 2146121005, %v4252_v20  ;;  %v10495_v6 = vand.u32 1, %v4354_v36  ;;  %v10497_v32 = vand.u32 1, %v4357_v61 }
 0x2ad   : > { %v4266_v28 = vmul.u32 2146121005, %v4250_v46  ;;  %v4571_v7 = vmul.u32 2221713035, %v4555_v8  ;;  %v10499_v9 = vand.u32 1, %v4621_v56  ;;  %v10501_v52 = vand.u32 1, %v4622_v13 }
 0x2ae   : > { %v4269_v49 = vmul.u32 2146121005, %v4253_v23  ;;  %v4572_v45 = vmul.u32 2221713035, %v4556_v47  ;;  %v10503_v38 = vxor.u32 %v4328_v39, %v4312_v3  ;;  %v4479_v12 = vadd.s32 %v10439_v21, %v12038_v63 }
 0x2af   : > { %vm4388_vm4 = vcmp.eq.s32.totalorder %v10493_v4, 0  ;;  %v10508_v50 = vand.u32 1, %v4355_v40  ;;  %v4326_v42 = vshrl.u32 %v4310_v0, 16  ;;  %v10510_v61 = vxor.u32 %v4281_v31, %v4265_v10 }
 0x2b0   : > { %v4279_v23 = vshrl.u32 %v4263_v26, 15  ;;  %vm4386_vm8 = vcmp.eq.s32.totalorder %v10495_v6, 0  ;;  %v4587_v35 = vshrl.u32 %v4571_v7, 16  ;;  %v4219_v33 = vadd.s32 %v10435_v5, %v12047_v62 }
 0x2b1   : > { %v4481_v27 = vadd.s32 %v10439_v21, %v12037_v37  ;;  %vm4389_vm9 = vcmp.eq.s32.totalorder %v10497_v32, 0  ;;  %v4284_v57 = vshrl.u32 %v4268_v16, 15  ;;  %v4282_v55 = vshrl.u32 %v4266_v28, 15 }
 0x2b2   : > { %v4285_v59 = vshrl.u32 %v4269_v49, 15  ;;  %v4588_v10 = vshrl.u32 %v4572_v45, 16  ;;  %v4480_v46 = vadd.s32 %v10439_v21, %v12043_v19  ;;  %v4495_v8 = vshrl.u32 %v4479_v12, 16 }
 0x2b3   : > { %vm4387_vm10 = vcmp.eq.s32.totalorder %v10508_v50, 0  ;;  %v4313_v56 = vmul.u32 2221713035, %v10510_v61  ;;  %v10525_v13 = vxor.u32 %v4279_v23, %v4263_v26  ;;  %v4482_v39 = vadd.s32 %v10439_v21, %v12041_v48 }
 0x2b4   : > { %v10529_v40 = vxor.u32 %v4326_v42, %v4310_v0  ;;  %v4603_v31 = vxor.u32 %v4587_v35, %v4571_v7  ;;  %v4235_v19 = vshrl.u32 %v4219_v33, 16  ;;  %v10539_v23 = vxor.u32 %v4285_v59, %v4269_v49 }
 0x2b5   : > { %v4496_v48 = vshrl.u32 %v4480_v46, 16  ;;  %v4511_v0 = vxor.u32 %v4495_v8, %v4479_v12  ;;  %v4311_v35 = vmul.u32 2221713035, %v10525_v13  ;;  %vm4653_vm11 = vcmp.eq.s32.totalorder %v10499_v9, 0 }
 0x2b6   : > { %vm4654_vm12 = vcmp.eq.s32.totalorder %v10501_v52, 0 }
 0x2b7   : > { %v4512_v8 = vxor.u32 %v4496_v48, %v4480_v46  ;;  %v4527_v13 = vmul.u32 2146121005, %v4511_v0 }
 0x2ba   : > { %v6798_v17 = vpop.f32.mrb[96].mxu1 }
 0x2bb   : > { %v6799_v44 = vpop.f32.mrb[97].mxu1 }
 0x2bc   : > { %v6800_v47 = vadd.f32 %v6799_v44, %v6798_v17  ;;  %v6801_v34 = vpop.f32.mrb[98].mxu1 }
 0x2bd   : > { %v6802_v3 = vpop.f32.mrb[99].mxu1 }
 0x2be   : > { %v6803_v20 = vadd.f32 %v6802_v3, %v6801_v34  ;;  %v10519_v36 = vadd.f32 %v6800_v47, %v10405_v2  ;;  %v4497_v2 = vshrl.u32 %v4481_v27, 16  ;;  %v10534_v47 = vxor.u32 %v4284_v57, %v4268_v16 }
 0x2bf   : > { %v10536_v34 = vxor.u32 %v4282_v55, %v4266_v28  ;;  %v4604_v3 = vxor.u32 %v4588_v10, %v4572_v45  ;;  %v4619_v45 = vshrl.u32 %v4603_v31, 9 }
 0x2c0   : > { %v10532_v17 = vadd.f32 %v6803_v20, %v10411_v60  ;;  %v4329_v60 = vshrl.u32 %v4313_v56, 16  ;;  %v4498_v20 = vshrl.u32 %v4482_v39, 16  ;;  %v4513_v49 = vxor.u32 %v4497_v2, %v4481_v27 }
 0x2c1   : > { %v4620_v55 = vshrl.u32 %v4604_v3, 9  ;;  %v4327_v3 = vshrl.u32 %v4311_v35, 16  ;;  %v4316_v9 = vmul.u32 2221713035, %v10534_v47  ;;  %v7275_v47 = vld [vmem:[%s11249_s6 + $0x10] sm:$0xff]  }
 0x2c2   : > { %v4514_v31 = vxor.u32 %v4498_v20, %v4482_v39 }
 0x2c3   : > { %v4636_v46 = vand.u32 1, %v4620_v55 }
 0x2c4   : > { %v6917_v44 = vpop.f32.mrb[96].mxu0 }
 0x2c5   : > { %v4155_v26 = vadd.f32 %v6917_v44, %v10417_v58  ;;  %v4146_v61 = vpop.f32.mrb[97].mxu0  ;;  %vm4652_vm14 = vcmp.eq.s32.totalorder %v4636_v46, 0 }
 0x2c6   : > { %v4147_v7 = vadd.f32 %v4146_v61, %v10419_v11  ;;  %v6918_v42 = vpop.f32.mrb[98].mxu0  ;;  %v10547_v11 = vxor.u32 %v4235_v19, %v4219_v33  ;;  %v4635_v19 = vand.u32 1, %v4619_v45  ;;  %v4529_v33 = vmul.u32 2146121005, %v4513_v49 }
 0x2c7   : > { %v4404_v16 = vsub.f32 0.0, %v4155_v26  ;;  %v4158_v28 = vadd.f32 %v6918_v42, %v10421_v24  ;;  %v4149_v58 = vpop.f32.mrb[99].mxu0  ;;  %v4345_v42 = vxor.u32 %v4329_v60, %v4313_v56  ;;  %v7273_v60 = vld [vmem:[%s11249_s6 + $0x8] sm:$0xff]  }
 0x2c8   : > { %v4402_v57 = vsub.f32 0.0, %v4147_v7  ;;  %v4150_v12 = vadd.f32 %v4149_v58, %v10423_v30  ;;  %vm4651_vm13 = vcmp.eq.s32.totalorder %v4635_v19, 0  ;;  %v4267_v45 = vmul.u32 2146121005, %v10547_v11 }
 0x2c9   : > { %v4420_v59 = vsel %vm4388_vm4, %v4155_v26, %v4404_v16  ;;  %v4405_v10 = vsub.f32 0.0, %v4158_v28  ;;  %v4528_v26 = vmul.u32 2146121005, %v4512_v8  ;;  %v4545_v16 = vshrl.u32 %v4529_v33, 15 }
 0x2ca   : > { %v4436_v44 = vadd.f32 %v4420_v59, %v10242_v15  ;;  %v4418_v24 = vsel %vm4386_vm8, %v4147_v7, %v4402_v57  ;;  %v4403_v61 = vsub.f32 0.0, %v4150_v12  ;;  %v4530_v7 = vmul.u32 2146121005, %v4514_v31  ;;  %v7274_v31 = vld [vmem:[%s11250_s7 + $0x8] sm:$0xff]  }
 0x2cb   : > { %v4434_v27 = vadd.f32 %v4418_v24, %v10234_v54  ;;  %v4421_v30 = vsel %vm4389_vm9, %v4158_v28, %v4405_v10  ;;  %v4543_v54 = vshrl.u32 %v4527_v13, 15  ;;  %v4544_v49 = vshrl.u32 %v4528_v26, 15 }
 0x2cc   : > { %v4452_v2 = vmax.f32 %v4436_v44, 0.0  ;;  %v4437_v4 = vadd.f32 %v4421_v30, %v10245_v14  ;;  %v4419_v48 = vsel %vm4387_vm10, %v4150_v12, %v4403_v61  ;;  %v4546_v56 = vshrl.u32 %v4530_v7, 15 }
 0x2cd   : > { %v4450_v15 = vmax.f32 %v4434_v27, 0.0  ;;  %v4435_v6 = vadd.f32 %v4419_v48, %v10239_v18  ;;  %v10566_v12 = vxor.u32 %v4543_v54, %v4527_v13  ;;  %v4561_v8 = vxor.u32 %v4545_v16, %v4529_v33  ;;  %v7276_v48 = vld [vmem:[%s11250_s7 + $0x10] sm:$0xff]   ;;  %v12048_v54 = vld [vmem:[#allocation27_spill] sm:$0xff] }
 0x2ce   : > { %v4669_v39 = vsub.f32 0.0, %v4452_v2  ;;  %v4453_v0 = vmax.f32 %v4437_v4, 0.0  ;;  %v4360_v11 = vshrl.u32 %v10503_v38, 9  ;;  %v4343_v44 = vxor.u32 %v4327_v3, %v4311_v35 }
 0x2cf   : > { %v4451_v32 = vmax.f32 %v4435_v6, 0.0  ;;  %v4667_v20 = vsub.f32 0.0, %v4450_v15  ;;  %v4314_v13 = vmul.u32 2221713035, %v10536_v34  ;;  %v4317_v24 = vmul.u32 2221713035, %v10539_v23 }
 0x2d0   : > { %v4670_v28 = vsub.f32 0.0, %v4453_v0  ;;  %v4708_v58 = vpack.c.bf16 %v4453_v0, %v4452_v2  ;;  %v4685_v18 = vsel %vm4653_vm11, %v4452_v2, %v4669_v39  ;;  %v10575_v61 = vxor.u32 %v4544_v49, %v4528_v26 }
 0x2d1   : > { %v4707_v14 = vpack.c.bf16 %v4451_v32, %v4450_v15  ;;  %v4668_v50 = vsub.f32 0.0, %v4451_v32  ;;  %v4683_v55 = vsel %vm4651_vm13, %v4450_v15, %v4667_v20  ;;  %v4358_v27 = vshrl.u32 %v10529_v40, 9 }
 0x2d2   : > { %v4686_v57 = vsel %vm4654_vm12, %v4453_v0, %v4670_v28  ;;  %v4283_v38 = vshrl.u32 %v4267_v45, 15  ;;  %v4562_v35 = vxor.u32 %v4546_v56, %v4530_v7  ;;  %v4361_v34 = vshrl.u32 %v4345_v42, 9 }
 0x2d3   : > { %6947 = vmatprep.mubr.bf16.mxu0 %v4707_v14  ;;  %v4684_v59 = vsel %vm4652_vm14, %v4451_v32, %v4668_v50  ;;  %v4700_v10 = vpack.c.bf16 %v4686_v57, %v4685_v18  ;;  %v4575_v23 = vmul.u32 2221713035, %v10566_v12  ;;  %v4577_v30 = vmul.u32 2221713035, %v4561_v8  ;;  %v12049_v50 = vld [vmem:[#allocation22_spill] sm:$0xff] }
 0x2d4   : > { %6948 = vmatmul.mubr.bf16.vlgmr.msra.gmra.mrb[112].mxu0 %v4708_v58  ;;  %v4699_v52 = vpack.c.bf16 %v4684_v59, %v4683_v55  ;;  %v4359_v19 = vshrl.u32 %v4343_v44, 9  ;;  %v4332_v33 = vshrl.u32 %v4316_v9, 16  ;;  %v4330_v40 = vshrl.u32 %v4314_v13, 16 }
 0x2d5   : > { %6996 = vmatpush3.bf16.msra.mxu0 %v10484_v1  ;;  %v10586_v1 = vand.u32 1, %v4360_v11  ;;  %v4333_v2 = vshrl.u32 %v4317_v24, 16  ;;  %v4576_v4 = vmul.u32 2221713035, %v10575_v61  ;;  %v10593_v46 = vand.u32 1, %v4358_v27 }
 0x2d6   : > { %6979 = vmatprep.mubr.bf16.mxu1 %v4699_v52  ;;  %6997 = vmatprep.subr.bf16.mxu0 %v7273_v60  ;;  %v10595_v15 = vxor.u32 %v4283_v38, %v4267_v45  ;;  %v4578_v6 = vmul.u32 2221713035, %v4562_v35  ;;  %v10600_v3 = vand.u32 1, %v4361_v34  ;;  %v4591_v26 = vshrl.u32 %v4575_v23, 16 }
 0x2d7   : > { %6980 = vmatmul.mubr.bf16.vlgmr.msra.gmra.mrb[112].mxu1 %v4700_v10  ;;  %v4593_v39 = vshrl.u32 %v4577_v30, 16  ;;  %v10602_v0 = vand.u32 1, %v4359_v19  ;;  %v4224_v7 = vadd.s32 %v10435_v5, %v12048_v54  ;;  %vm4392_vm15 = vcmp.eq.s32.totalorder %v10586_v1, 0  ;;  %v12057_v1 = vld [vmem:[#allocation58_spill] sm:$0xff] }
 0x2d8   : > { %7028 = vmatpush3.bf16.msra.mxu1 %v10489_v25  ;;  %v7277_v25 = vld [vmem:[%s11249_s6 + $0x18] sm:$0xff]   ;;  %v10607_v42 = vxor.u32 %v4332_v33, %v4316_v9  ;;  %v10609_v20 = vxor.u32 %v4330_v40, %v4314_v13  ;;  %v10611_v16 = vxor.u32 %v4333_v2, %v4317_v24  ;;  %v4592_v28 = vshrl.u32 %v4576_v4, 16 }
 0x2d9   : > { %6998 = vmatpush3.bf16.msra.mxu0 %v7273_v60  ;;  %7029 = vmatprep.subr.bf16.mxu1 %v7274_v31  ;;  %vm4390_vm0 = vcmp.eq.s32.totalorder %v10593_v46, 0  ;;  %v4315_v14 = vmul.u32 2221713035, %v10595_v15  ;;  %v10617_v45 = vadd.s32 %v10435_v5, %v12049_v50  ;;  %v4594_v49 = vshrl.u32 %v4578_v6, 16  ;;  %v12051_v2 = vld [vmem:[#allocation25_spill] sm:$0xff] }
 0x2da   : > { %6999 = vmatprep.subr.bf16.mxu0 %v7275_v47  ;;  %v4483_v18 = vadd.s32 %v10439_v21, %v12045_v43  ;;  %vm4393_vm1 = vcmp.eq.s32.totalorder %v10600_v3, 0  ;;  %v4607_v56 = vxor.u32 %v4591_v26, %v4575_v23  ;;  %v4609_v60 = vxor.u32 %v4593_v39, %v4577_v30 }
 0x2db   : > { %vm4391_vm2 = vcmp.eq.s32.totalorder %v10602_v0, 0  ;;  %v4240_v59 = vshrl.u32 %v4224_v7, 16  ;;  %v4484_v10 = vadd.s32 %v10439_v21, %v12047_v62  ;;  %v4485_v8 = vadd.s32 %v10439_v21, %v12044_v22 }
 0x2dc   : > { %7030 = vmatpush3.bf16.msra.mxu1 %v7274_v31  ;;  %v4608_v9 = vxor.u32 %v4592_v28, %v4576_v4  ;;  %v4486_v52 = vadd.s32 %v10439_v21, %v12046_v41  ;;  %v10634_v13 = vshrl.u32 %v4315_v14, 16  ;;  %v4238_v24 = vshrl.u32 %v10617_v45, 16 }
 0x2dd   : > { %7000 = vmatpush3.bf16.msra.mxu0 %v7275_v47  ;;  %7031 = vmatprep.subr.bf16.mxu1 %v7276_v48  ;;  %v4610_v61 = vxor.u32 %v4594_v49, %v4578_v6  ;;  %v4499_v31 = vshrl.u32 %v4483_v18, 16  ;;  %v4623_v35 = vshrl.u32 %v4607_v56, 9  ;;  %v4625_v34 = vshrl.u32 %v4609_v60, 9 }
 0x2de   : > { %7001 = vmatprep.subr.bf16.mxu0 %v7277_v25  ;;  %v10645_v19 = vxor.u32 %v4240_v59, %v4224_v7  ;;  %v4500_v33 = vshrl.u32 %v4484_v10, 16  ;;  %v4501_v40 = vshrl.u32 %v4485_v8, 16  ;;  %v4624_v6 = vshrl.u32 %v4608_v9, 9  ;;  %v12054_v7 = vld [vmem:[#allocation8_spill] sm:$0xff] }
 0x2df   : > { %v6804_v32 = vpop.f32.mrb[100].mxu1  ;;  %v4502_v26 = vshrl.u32 %v4486_v52, 16  ;;  %v4626_v49 = vshrl.u32 %v4610_v61, 9  ;;  %v4639_v56 = vand.u32 1, %v4623_v35  ;;  %v4641_v60 = vand.u32 1, %v4625_v34  ;;  %v12056_v61 = vld [vmem:[#allocation67_spill] sm:$0xff] }
 0x2e0   : > { %v6805_v58 = vpop.f32.mrb[101].mxu1  ;;  %7032 = vmatpush3.bf16.msra.mxu1 %v7276_v48  ;;  %v4517_v9 = vxor.u32 %v4501_v40, %v4485_v8  ;;  %v4640_v8 = vand.u32 1, %v4624_v6  ;;  %v12058_v40 = vld [vmem:[#allocation57_spill] sm:$0xff]  ;;  %v4254_v6 = vxor.u32 %v4238_v24, %v10617_v45  ;;  %v4364_v45 = vshrl.u32 %v10607_v42, 9 }
 0x2e1   : > { %v6806_v57 = vadd.f32 %v6805_v58, %v6804_v32  ;;  %v6807_v12 = vpop.f32.mrb[102].mxu1  ;;  %7002 = vmatpush3.bf16.msra.mxu0 %v7277_v25  ;;  %v12052_v25 = vld [vmem:[#allocation26_spill] sm:$0xff]  ;;  %v12053_v32 = vld [vmem:[#allocation41_spill] sm:$0xff]  ;;  %v4642_v35 = vand.u32 1, %v4626_v49  ;;  %vm4657_vm3 = vcmp.eq.s32.totalorder %v4641_v60, 0  ;;  %vm4655_vm6 = vcmp.eq.s32.totalorder %v4639_v56, 0 }
 0x2e2   : > { %v6808_v55 = vpop.f32.mrb[103].mxu1  ;;  %vm4656_vm7 = vcmp.eq.s32.totalorder %v4640_v8, 0  ;;  %v4362_v24 = vshrl.u32 %v10609_v20, 9  ;;  %v4347_v60 = vxor.u32 %v10634_v13, %v4315_v14  ;;  %v10679_v20 = vand.u32 1, %v4364_v45 }
 0x2e3   : > { %v6809_v11 = vadd.f32 %v6808_v55, %v6807_v12  ;;  %v10628_v44 = vadd.f32 %v6806_v57, %v10413_v29  ;;  %v12050_v29 = vld [vmem:[#allocation34_spill] sm:$0xff]  ;;  %vm4658_vm5 = vcmp.eq.s32.totalorder %v4642_v35, 0 }
 0x2e4   : > { %v10642_v47 = vadd.s32 %v10435_v5, %v12050_v29  ;;  %v10681_v15 = vand.u32 1, %v4362_v24  ;;  %v4363_v14 = vshrl.u32 %v4347_v60, 9  ;;  %vm4396_vm4 = vcmp.eq.s32.totalorder %v10679_v20, 0  ;;  %v12060_v60 = vld [vmem:[#allocation9_spill] sm:$0xff]  ;;  %v12063_v20 = vld [vmem:[#allocation70_spill] sm:$0xff] }
 0x2e5   : > { %v10638_v38 = vadd.f32 %v6809_v11, %v10415_v53  ;;  %v10650_v53 = vadd.s32 %v10435_v5, %v12052_v25  ;;  %v4516_v11 = vxor.u32 %v4500_v33, %v4484_v10  ;;  %v12055_v5 = vld [vmem:[#allocation68_spill] sm:$0xff] }
 0x2e6   : > { %v6921_v27 = vpop.f32.mrb[100].mxu0  ;;  %v4241_v56 = vshrl.u32 %v10642_v47, 16  ;;  %vm4394_vm8 = vcmp.eq.s32.totalorder %v10681_v15, 0 }
 0x2e7   : > { %v4171_v23 = vadd.f32 %v6921_v27, %v10466_v51  ;;  %v4162_v30 = vpop.f32.mrb[101].mxu0  ;;  %v4515_v51 = vxor.u32 %v4499_v31, %v4483_v18 }
 0x2e8   : > { %v4163_v4 = vadd.f32 %v4162_v30, %v12051_v2  ;;  %v6922_v48 = vpop.f32.mrb[102].mxu0 }
 0x2e9   : > { %v4408_v39 = vsub.f32 0.0, %v4171_v23  ;;  %v4174_v28 = vadd.f32 %v6922_v48, %v12053_v32  ;;  %v4165_v58 = vpop.f32.mrb[103].mxu0  ;;  %v4518_v48 = vxor.u32 %v4502_v26, %v4486_v52  ;;  %v4531_v34 = vmul.u32 2146121005, %v4515_v51 }
 0x2ea   : > { %v4406_v57 = vsub.f32 0.0, %v4163_v4  ;;  %v4166_v12 = vadd.f32 %v4165_v58, %v12054_v7 }
 0x2eb   : > { %v4424_v55 = vsel %vm4392_vm15, %v4171_v23, %v4408_v39  ;;  %v4409_v59 = vsub.f32 0.0, %v4174_v28  ;;  %v4533_v39 = vmul.u32 2146121005, %v4517_v9  ;;  %v4534_v58 = vmul.u32 2146121005, %v4518_v48 }
 0x2ec   : > { %v4440_v27 = vadd.f32 %v4424_v55, %v12055_v5  ;;  %v4422_v30 = vsel %vm4390_vm0, %v4163_v4, %v4406_v57  ;;  %v4407_v2 = vsub.f32 0.0, %v4166_v12  ;;  %v4532_v4 = vmul.u32 2146121005, %v4516_v11 }
 0x2ed   : > { %v4438_v18 = vadd.f32 %v4422_v30, %v12056_v61  ;;  %v4425_v31 = vsel %vm4393_vm1, %v4174_v28, %v4409_v59  ;;  %v4547_v49 = vshrl.u32 %v4531_v34, 15  ;;  %v4549_v11 = vshrl.u32 %v4533_v39, 15 }
 0x2ee   : > { %v4456_v32 = vmax.f32 %v4440_v27, 0.0  ;;  %v4441_v23 = vadd.f32 %v4425_v31, %v12057_v1  ;;  %v4423_v10 = vsel %vm4391_vm2, %v4166_v12, %v4407_v2  ;;  %v4548_v12 = vshrl.u32 %v4532_v4, 15 }
 0x2ef   : > { %v4454_v33 = vmax.f32 %v4438_v18, 0.0  ;;  %v4439_v46 = vadd.f32 %v4423_v10, %v12058_v40  ;;  %v4550_v5 = vshrl.u32 %v4534_v58, 15  ;;  %v4563_v2 = vxor.u32 %v4547_v49, %v4531_v34 }
 0x2f0   : > { %v4457_v52 = vmax.f32 %v4441_v23, 0.0  ;;  %v4673_v26 = vsub.f32 0.0, %v4456_v32  ;;  %v4239_v61 = vshrl.u32 %v10650_v53, 16  ;;  %v4272_v18 = vmul.u32 2146121005, %v10645_v19 }
 0x2f1   : > { %v4455_v3 = vmax.f32 %v4439_v46, 0.0  ;;  %v4671_v28 = vsub.f32 0.0, %v4454_v33  ;;  %v4565_v31 = vxor.u32 %v4549_v11, %v4533_v39  ;;  %v4566_v35 = vxor.u32 %v4550_v5, %v4534_v58 }
 0x2f2   : > { %v4710_v51 = vpack.c.bf16 %v4457_v52, %v4456_v32  ;;  %v4674_v57 = vsub.f32 0.0, %v4457_v52  ;;  %v4689_v55 = vsel %vm4657_vm3, %v4456_v32, %v4673_v26  ;;  %v4365_v34 = vshrl.u32 %v10611_v16, 9 }
 0x2f3   : > { %v4709_v0 = vpack.c.bf16 %v4455_v3, %v4454_v33  ;;  %v4672_v7 = vsub.f32 0.0, %v4455_v3  ;;  %v4687_v9 = vsel %vm4655_vm6, %v4454_v33, %v4671_v28  ;;  %v4270_v32 = vmul.u32 2146121005, %v4254_v6 }
 0x2f4   : > { %v4690_v59 = vsel %vm4658_vm5, %v4457_v52, %v4674_v57  ;;  %v4564_v1 = vxor.u32 %v4548_v12, %v4532_v4  ;;  %v4579_v23 = vmul.u32 2221713035, %v4563_v2  ;;  %v4257_v10 = vxor.u32 %v4241_v56, %v10642_v47 }
 0x2f5   : > { %6951 = vmatprep.mubr.bf16.mxu0 %v4709_v0  ;;  %v4688_v27 = vsel %vm4656_vm7, %v4455_v3, %v4672_v7  ;;  %v4702_v30 = vpack.c.bf16 %v4690_v59, %v4689_v55  ;;  %v4255_v42 = vxor.u32 %v4239_v61, %v10650_v53  ;;  %v4288_v13 = vshrl.u32 %v4272_v18, 15 }
 0x2f6   : > { %6952 = vmatmul.mubr.bf16.gmra.mrb[116].mxu0 %v4710_v51  ;;  %v4701_v48 = vpack.c.bf16 %v4688_v27, %v4687_v9  ;;  %v4581_v19 = vmul.u32 2221713035, %v4565_v31  ;;  %v4582_v8 = vmul.u32 2221713035, %v4566_v35  ;;  %v10683_v33 = vand.u32 1, %v4365_v34  ;;  %v12059_v9 = vld [vmem:[#allocation24_spill] sm:$0xff] }
 0x2f7   : > { %v4286_v40 = vshrl.u32 %v4270_v32, 15  ;;  %v4580_v16 = vmul.u32 2221713035, %v4564_v1  ;;  %v4595_v46 = vshrl.u32 %v4579_v23, 16  ;;  %v4273_v52 = vmul.u32 2146121005, %v4257_v10 }
 0x2f8   : > { %6983 = vmatprep.mubr.bf16.mxu1 %v4701_v48  ;;  %v4271_v4 = vmul.u32 2146121005, %v4255_v42  ;;  %v4487_v47 = vadd.s32 %v10439_v21, %v12049_v50  ;;  %v10689_v39 = vand.u32 1, %v4363_v14  ;;  %v10691_v58 = vxor.u32 %v4288_v13, %v4272_v18 }
 0x2f9   : > { %6984 = vmatmul.mubr.bf16.gmra.mrb[116].mxu1 %v4702_v30  ;;  %v4597_v3 = vshrl.u32 %v4581_v19, 16  ;;  %v4598_v28 = vshrl.u32 %v4582_v8, 16  ;;  %vm4397_vm9 = vcmp.eq.s32.totalorder %v10683_v33, 0  ;;  %v10694_v57 = vxor.u32 %v4286_v40, %v4270_v32 }
 0x2fa   : > { %v4596_v0 = vshrl.u32 %v4580_v16, 16  ;;  %v4611_v6 = vxor.u32 %v4595_v46, %v4579_v23  ;;  %v4289_v12 = vshrl.u32 %v4273_v52, 15  ;;  %v4287_v55 = vshrl.u32 %v4271_v4, 15 }
 0x2fb   : > { %v4488_v59 = vadd.s32 %v10439_v21, %v12052_v25  ;;  %v4489_v11 = vadd.s32 %v10439_v21, %v12048_v54  ;;  %v4503_v30 = vshrl.u32 %v4487_v47, 16  ;;  %v4490_v2 = vadd.s32 %v10439_v21, %v12050_v29 }
 0x2fc   : > { %vm4395_vm10 = vcmp.eq.s32.totalorder %v10689_v39, 0  ;;  %v4320_v48 = vmul.u32 2221713035, %v10691_v58  ;;  %v4613_v56 = vxor.u32 %v4597_v3, %v4581_v19  ;;  %v4614_v61 = vxor.u32 %v4598_v28, %v4582_v8 }
 0x2fd   : > { %v4318_v24 = vmul.u32 2221713035, %v10694_v57  ;;  %v4612_v31 = vxor.u32 %v4596_v0, %v4580_v16  ;;  %v4627_v35 = vshrl.u32 %v4611_v6, 9  ;;  %v10712_v1 = vxor.u32 %v4289_v12, %v4273_v52 }
 0x2fe   : > { %v4504_v21 = vshrl.u32 %v4488_v59, 16  ;;  %v4505_v23 = vshrl.u32 %v4489_v11, 16  ;;  %v10715_v14 = vxor.u32 %v4287_v55, %v4271_v4  ;;  %v4519_v13 = vxor.u32 %v4503_v30, %v4487_v47 }
 0x2ff   : > { %v4506_v19 = vshrl.u32 %v4490_v2, 16  ;;  %v4629_v16 = vshrl.u32 %v4613_v56, 9  ;;  %v4628_v52 = vshrl.u32 %v4612_v31, 9  ;;  %v4643_v3 = vand.u32 1, %v4627_v35 }
 0x300   : > { %v4521_v4 = vxor.u32 %v4505_v23, %v4489_v11  ;;  %v4321_v39 = vmul.u32 2221713035, %v10712_v1  ;;  %v4334_v1 = vshrl.u32 %v4318_v24, 16 }
 0x301   : > { %v4522_v6 = vxor.u32 %v4506_v19, %v4490_v2  ;;  %v4645_v55 = vand.u32 1, %v4629_v16  ;;  %v4644_v11 = vand.u32 1, %v4628_v52  ;;  %vm4659_vm13 = vcmp.eq.s32.totalorder %v4643_v3, 0 }
 0x302   : > { %v6810_v26 = vpop.f32.mrb[104].mxu1  ;;  %v4537_v35 = vmul.u32 2146121005, %v4521_v4  ;;  %v4319_v52 = vmul.u32 2221713035, %v10715_v14  ;;  %v4350_v14 = vxor.u32 %v4334_v1, %v4318_v24 }
 0x303   : > { %v6811_v53 = vpop.f32.mrb[105].mxu1  ;;  %vm4661_vm11 = vcmp.eq.s32.totalorder %v4645_v55, 0  ;;  %vm4660_vm14 = vcmp.eq.s32.totalorder %v4644_v11, 0 }
 0x304   : > { %v6812_v49 = vadd.f32 %v6811_v53, %v6810_v26  ;;  %v6813_v51 = vpop.f32.mrb[106].mxu1  ;;  %v4630_v26 = vshrl.u32 %v4614_v61, 9  ;;  %v12064_v61 = vld [vmem:[#allocation69_spill] sm:$0xff] }
 0x305   : > { %v6814_v7 = vpop.f32.mrb[107].mxu1 }
 0x306   : > { %v6815_v5 = vadd.f32 %v6814_v7, %v6813_v51  ;;  %v10701_v27 = vadd.f32 %v6812_v49, %v12059_v9  ;;  %v4520_v49 = vxor.u32 %v4504_v21, %v4488_v59  ;;  %v12061_v51 = vld [vmem:[#allocation74_spill] sm:$0xff]  ;;  %v12062_v7 = vld [vmem:[#allocation73_spill] sm:$0xff] }
 0x308   : > { %v6925_v45 = vpop.f32.mrb[104].mxu0  ;;  %v10709_v18 = vadd.f32 %v6815_v5, %v12060_v60  ;;  %v4646_v5 = vand.u32 1, %v4630_v26  ;;  %v4536_v60 = vmul.u32 2146121005, %v4520_v49 }
 0x309   : > { %v4187_v34 = vadd.f32 %v6925_v45, %v10628_v44  ;;  %v4178_v32 = vpop.f32.mrb[105].mxu0  ;;  %v4535_v45 = vmul.u32 2146121005, %v4519_v13 }
 0x30a   : > { %v4179_v10 = vadd.f32 %v4178_v32, %v10519_v36  ;;  %v6926_v42 = vpop.f32.mrb[106].mxu0  ;;  %vm4662_vm12 = vcmp.eq.s32.totalorder %v4646_v5, 0 }
 0x30b   : > { %v4412_v8 = vsub.f32 0.0, %v4187_v34  ;;  %v4190_v40 = vadd.f32 %v6926_v42, %v10638_v38  ;;  %v4181_v46 = vpop.f32.mrb[107].mxu0  ;;  %v4551_v19 = vshrl.u32 %v4535_v45, 15 }
 0x30c   : > { %v4410_v53 = vsub.f32 0.0, %v4179_v10  ;;  %v4182_v44 = vadd.f32 %v4181_v46, %v10532_v17 }
 0x30d   : > { %v4428_v28 = vsel %vm4396_vm4, %v4187_v34, %v4412_v8  ;;  %v4413_v36 = vsub.f32 0.0, %v4190_v40  ;;  %v4538_v34 = vmul.u32 2146121005, %v4522_v6 }
 0x30e   : > { %v4444_v47 = vadd.f32 %v4428_v28, %v12061_v51  ;;  %v4426_v0 = vsel %vm4394_vm8, %v4179_v10, %v4410_v53  ;;  %v4411_v38 = vsub.f32 0.0, %v4182_v44  ;;  %v4336_v28 = vshrl.u32 %v4320_v48, 16 }
 0x30f   : > { %v4442_v12 = vadd.f32 %v4426_v0, %v12062_v7  ;;  %v4429_v17 = vsel %vm4397_vm9, %v4190_v40, %v4413_v36  ;;  %v4553_v40 = vshrl.u32 %v4537_v35, 15  ;;  %v4554_v46 = vshrl.u32 %v4538_v34, 15 }
 0x310   : > { %v4460_v9 = vmax.f32 %v4444_v47, 0.0  ;;  %v4445_v30 = vadd.f32 %v4429_v17, %v12063_v20  ;;  %v4427_v59 = vsel %vm4395_vm10, %v4182_v44, %v4411_v38  ;;  %v4552_v44 = vshrl.u32 %v4536_v60, 15 }
 0x311   : > { %v4458_v56 = vmax.f32 %v4442_v12, 0.0  ;;  %v4443_v15 = vadd.f32 %v4427_v59, %v12064_v61  ;;  %v4567_v36 = vxor.u32 %v4551_v19, %v4535_v45  ;;  %v4569_v49 = vxor.u32 %v4553_v40, %v4537_v35  ;;  %v12065_v35 = vld [vmem:[#allocation16_spill] sm:$0xff] }
 0x312   : > { %v4461_v2 = vmax.f32 %v4445_v30, 0.0  ;;  %v4677_v31 = vsub.f32 0.0, %v4460_v9  ;;  %v4570_v4 = vxor.u32 %v4554_v46, %v4538_v34  ;;  %v4337_v51 = vshrl.u32 %v4321_v39, 16 }
 0x313   : > { %v4459_v33 = vmax.f32 %v4443_v15, 0.0  ;;  %v4675_v32 = vsub.f32 0.0, %v4458_v56  ;;  %v4568_v47 = vxor.u32 %v4552_v44, %v4536_v60  ;;  %v4335_v0 = vshrl.u32 %v4319_v52, 16 }
 0x314   : > { %v4712_v21 = vpack.c.bf16 %v4461_v2, %v4460_v9  ;;  %v4678_v23 = vsub.f32 0.0, %v4461_v2  ;;  %v4693_v8 = vsel %vm4661_vm11, %v4460_v9, %v4677_v31  ;;  %v4352_v38 = vxor.u32 %v4336_v28, %v4320_v48 }
 0x315   : > { %v4711_v10 = vpack.c.bf16 %v4459_v33, %v4458_v56  ;;  %v4676_v42 = vsub.f32 0.0, %v4459_v33  ;;  %v4691_v16 = vsel %vm4659_vm13, %v4458_v56, %v4675_v32  ;;  %v4583_v6 = vmul.u32 2221713035, %v4567_v36 }
 0x316   : > { %v4694_v13 = vsel %vm4662_vm12, %v4461_v2, %v4678_v23  ;;  %v4585_v7 = vmul.u32 2221713035, %v4569_v49  ;;  %v4586_v12 = vmul.u32 2221713035, %v4570_v4  ;;  %v4353_v17 = vxor.u32 %v4337_v51, %v4321_v39 }
 0x317   : > { %6955 = vmatprep.mubr.bf16.mxu0 %v4711_v10  ;;  %v4692_v26 = vsel %vm4660_vm14, %v4459_v33, %v4676_v42  ;;  %v4704_v53 = vpack.c.bf16 %v4694_v13, %v4693_v8  ;;  %v4584_v55 = vmul.u32 2221713035, %v4568_v47  ;;  %v4351_v5 = vxor.u32 %v4335_v0, %v4319_v52  ;;  %v12066_v8 = vld [vmem:[#allocation10_spill] sm:$0xff] }
 0x318   : > { %6956 = vmatmul.mubr.bf16.gmra.mrb[120].mxu0 %v4712_v21  ;;  %v4703_v3 = vpack.c.bf16 %v4692_v26, %v4691_v16  ;;  %v4368_v9 = vshrl.u32 %v4352_v38, 9  ;;  %v4366_v20 = vshrl.u32 %v4350_v14, 9  ;;  %v4599_v30 = vshrl.u32 %v4583_v6, 16 }
 0x319   : > { %v4601_v11 = vshrl.u32 %v4585_v7, 16  ;;  %v4602_v56 = vshrl.u32 %v4586_v12, 16  ;;  %v4369_v15 = vshrl.u32 %v4353_v17, 9  ;;  %v4600_v45 = vshrl.u32 %v4584_v55, 16 }
 0x31a   : > { %6987 = vmatprep.mubr.bf16.mxu1 %v4703_v3  ;;  %v4367_v60 = vshrl.u32 %v4351_v5, 9  ;;  %v4384_v57 = vand.u32 1, %v4368_v9  ;;  %v4382_v24 = vand.u32 1, %v4366_v20  ;;  %v4615_v31 = vxor.u32 %v4599_v30, %v4583_v6  ;;  %v12068_v6 = vld [vmem:[#allocation33_spill] sm:$0xff] }
 0x31b   : > { %6988 = vmatmul.mubr.bf16.gmra.mrb[120].mxu1 %v4704_v53  ;;  %v4617_v32 = vxor.u32 %v4601_v11, %v4585_v7  ;;  %v4618_v21 = vxor.u32 %v4602_v56, %v4586_v12  ;;  %v4385_v39 = vand.u32 1, %v4369_v15  ;;  %v4616_v10 = vxor.u32 %v4600_v45, %v4584_v55  ;;  %v12069_v20 = vld [vmem:[#allocation29_spill] sm:$0xff]  ;;  %v12070_v11 = vld [vmem:[#allocation23_spill] sm:$0xff] }
 0x31c   : > { %v4383_v40 = vand.u32 1, %v4367_v60  ;;  %vm4400_vm15 = vcmp.eq.s32.totalorder %v4384_v57, 0  ;;  %vm4398_vm0 = vcmp.eq.s32.totalorder %v4382_v24, 0  ;;  %v4631_v26 = vshrl.u32 %v4615_v31, 9 }
 0x31d   : > { %v4633_v3 = vshrl.u32 %v4617_v32, 9  ;;  %v4634_v28 = vshrl.u32 %v4618_v21, 9  ;;  %vm4401_vm1 = vcmp.eq.s32.totalorder %v4385_v39, 0  ;;  %v4632_v49 = vshrl.u32 %v4616_v10, 9  ;;  %v7280_v39 = vld [vmem:[%s11250_s7 + $0x20] sm:$0xff]   ;;  %v7281_v10 = vld [vmem:[%s11249_s6 + $0x28] sm:$0xff]  }
 0x31e   : > { %vm4399_vm2 = vcmp.eq.s32.totalorder %v4383_v40, 0  ;;  %v4647_v38 = vand.u32 1, %v4631_v26  ;;  %v7286_v40 = vld [vmem:[%s11250_s7 + $0x38] sm:$0xff]  }
 0x31f   : > { %v4649_v17 = vand.u32 1, %v4633_v3  ;;  %v4650_v55 = vand.u32 1, %v4634_v28  ;;  %v4648_v9 = vand.u32 1, %v4632_v49  ;;  %v12073_v3 = vld [vmem:[#allocation48_spill] sm:$0xff] }
 0x320   : > { %vm4663_vm6 = vcmp.eq.s32.totalorder %v4647_v38, 0 }
 0x321   : > { %vm4665_vm3 = vcmp.eq.s32.totalorder %v4649_v17, 0  ;;  %vm4666_vm5 = vcmp.eq.s32.totalorder %v4650_v55, 0  ;;  %vm4664_vm7 = vcmp.eq.s32.totalorder %v4648_v9, 0 }
 0x323   : > { %v6816_v59 = vpop.f32.mrb[108].mxu1 }
 0x324   : > { %v6817_v61 = vpop.f32.mrb[109].mxu1 }
 0x325   : > { %v6818_v58 = vadd.f32 %v6817_v61, %v6816_v59  ;;  %v6819_v48 = vpop.f32.mrb[110].mxu1  ;;  %v7278_v61 = vld [vmem:[%s11250_s7 + $0x18] sm:$0xff]  }
 0x326   : > { %v6820_v2 = vpop.f32.mrb[111].mxu1  ;;  %7033 = vmatprep.subr.bf16.mxu1 %v7278_v61 }
 0x327   : > { %v4106_v34 = vadd.f32 %v6818_v58, %v12065_v35  ;;  %v6821_v33 = vadd.f32 %v6820_v2, %v6819_v48  ;;  %7034 = vmatpush3.bf16.msra.mxu1 %v7278_v61 }
 0x328   : > { %7035 = vmatprep.subr.bf16.mxu1 %v7280_v39 }
 0x329   : > { %v6929_v23 = vpop.f32.mrb[108].mxu0  ;;  %v4109_v13 = vadd.f32 %v6821_v33, %v12066_v8  ;;  %v7284_v8 = vld [vmem:[%s11250_s7 + $0x30] sm:$0xff]  }
 0x32a   : > { %v4203_v42 = vadd.f32 %v6929_v23, %v4106_v34  ;;  %v4194_v19 = vpop.f32.mrb[109].mxu0  ;;  %v7279_v23 = vld [vmem:[%s11249_s6 + $0x20] sm:$0xff]  }
 0x32b   : > { %v4195_v46 = vadd.f32 %v4194_v19, %v10701_v27  ;;  %v6930_v16 = vpop.f32.mrb[110].mxu0  ;;  %v12067_v27 = vld [vmem:[#allocation66_spill] sm:$0xff]  ;;  %7003 = vmatprep.subr.bf16.mxu0 %v7279_v23  ;;  %7036 = vmatpush3.bf16.msra.mxu1 %v7280_v39  ;;  %v7283_v19 = vld [vmem:[%s11249_s6 + $0x30] sm:$0xff]  }
 0x32c   : > { %v4416_v53 = vsub.f32 0.0, %v4203_v42  ;;  %v4206_v44 = vadd.f32 %v6930_v16, %v4109_v13  ;;  %v4197_v52 = vpop.f32.mrb[111].mxu0  ;;  %7004 = vmatpush3.bf16.msra.mxu0 %v7279_v23  ;;  %v7285_v13 = vld [vmem:[%s11249_s6 + $0x38] sm:$0xff]   ;;  %v12071_v16 = vld [vmem:[#allocation36_spill] sm:$0xff] }
 0x32d   : > { %v4414_v1 = vsub.f32 0.0, %v4195_v46  ;;  %v4198_v36 = vadd.f32 %v4197_v52, %v10709_v18  ;;  %7005 = vmatprep.subr.bf16.mxu0 %v7281_v10 }
 0x32e   : > { %v4432_v4 = vsel %vm4400_vm15, %v4203_v42, %v4416_v53  ;;  %v4417_v51 = vsub.f32 0.0, %v4206_v44  ;;  %v7282_v42 = vld [vmem:[%s11250_s7 + $0x28] sm:$0xff]   ;;  %v10782_v53 = vstv %s5305_s26 }
 0x32f   : > { %v4430_v47 = vsel %vm4398_vm0, %v4195_v46, %v4414_v1  ;;  %v4415_v0 = vsub.f32 0.0, %v4198_v36  ;;  %v4448_v14 = vadd.f32 %v4432_v4, %v12067_v27  ;;  %7037 = vmatprep.subr.bf16.mxu1 %v7282_v42  ;;  %v10778_v46 = vstv %s4473_s30  ;;  %v12074_v4 = vld [vmem:[#allocation18_spill] sm:$0xff]  ;;  %s11127_s30 = scalar_lea.vmem [#allocation3], %s6218_s22 }
 0x330   : > { %v4446_v7 = vadd.f32 %v4430_v47, %v12068_v6  ;;  %v4433_v12 = vsel %vm4401_vm1, %v4206_v44, %v4417_v51  ;;  %7006 = vmatpush3.bf16.msra.mxu0 %v7281_v10  ;;  %7038 = vmatpush3.bf16.msra.mxu1 %v7282_v42  ;;  %v5048_v26 = vadd.s32 %v10778_v46, %v12071_v16  ;;  %v12072_v44 = vld [vmem:[#allocation17_spill] sm:$0xff]  ;;  %v12076_v10 = vld [vmem:[#allocation12_spill] sm:$0xff]  ;;  %s6152_s26 = sshll.u32 %s11127_s30, 4  ;;  %s11195_s26 = int_to_ptr.vmem [resolvable:$true] %s6152_s26 }
 0x331   : > { %v4431_v5 = vsel %vm4399_vm2, %v4198_v36, %v4415_v0  ;;  %v4449_v30 = vadd.f32 %v4433_v12, %v12069_v20  ;;  %v4464_v59 = vmax.f32 %v4448_v14, 0.0  ;;  %7007 = vmatprep.subr.bf16.mxu0 %v7283_v19  ;;  %7039 = vmatprep.subr.bf16.mxu1 %v7284_v8  ;;  %v5046_v52 = vadd.s32 %v10778_v46, %v12072_v44  ;;  %s7317_s23 = scalar_lea.vmem %s11195_s26, 2048 }
 0x332   : > { %v4462_v18 = vmax.f32 %v4446_v7, 0.0  ;;  %v4447_v56 = vadd.f32 %v4431_v5, %v12070_v11  ;;  %v5049_v28 = vadd.s32 %v10778_v46, %v12073_v3  ;;  %v5064_v1 = vshrl.u32 %v5048_v26, 16  ;;  %p7318_p11 = scmp.ne.s32.totalorder %s11195_s26, %s7317_s23 }
 0x333   : > { %v4465_v15 = vmax.f32 %v4449_v30, 0.0  ;;  %v4681_v45 = vsub.f32 0.0, %v4464_v59  ;;  %v5313_v36 = vadd.s32 %v10782_v53, %v12071_v16  ;;  %v5062_v49 = vshrl.u32 %v5046_v52, 16 }
 0x334   : > { %v4463_v58 = vmax.f32 %v4447_v56, 0.0  ;;  %v4679_v48 = vsub.f32 0.0, %v4462_v18  ;;  %7008 = vmatpush3.bf16.msra.mxu0 %v7283_v19  ;;  %7040 = vmatpush3.bf16.msra.mxu1 %v7284_v8  ;;  %v5047_v51 = vadd.s32 %v10778_v46, %v12074_v4  ;;  %v5065_v47 = vshrl.u32 %v5049_v28, 16  ;;  %p7319_p12 = pnand %p7318_p11, %p7475_p5 }
 0x335   : > { %v4714_v60 = vpack.c.bf16 %v4465_v15, %v4464_v59  ;;  %v4682_v57 = vsub.f32 0.0, %v4465_v15  ;;  %v4697_v31 = vsel %vm4665_vm3, %v4464_v59, %v4681_v45  ;;  %7009 = vmatprep.subr.bf16.mxu0 %v7285_v13  ;;  %7041 = vmatprep.subr.bf16.mxu1 %v7286_v40  ;;  %v5080_v0 = vxor.u32 %v5064_v1, %v5048_v26 }
 0x336   : > { %v4713_v24 = vpack.c.bf16 %v4463_v58, %v4462_v18  ;;  %v4680_v2 = vsub.f32 0.0, %v4463_v58  ;;  %v4695_v34 = vsel %vm4663_vm6, %v4462_v18, %v4679_v48  ;;  %v5329_v38 = vshrl.u32 %v5313_v36, 16  ;;  %p7320_p13 = pneg %p7319_p12 }
 0x337   : > { %v4698_v35 = vsel %vm4666_vm5, %v4465_v15, %v4682_v57  ;;  %v5314_v27 = vadd.s32 %v10782_v53, %v12073_v3  ;;  %v5078_v14 = vxor.u32 %v5062_v49, %v5046_v52  ;;  %v5063_v6 = vshrl.u32 %v5047_v51, 16 }
 0x338   : > { %6959 = vmatprep.mubr.bf16.mxu0 %v4713_v24  ;;  %v4696_v33 = vsel %vm4664_vm7, %v4463_v58, %v4680_v2  ;;  %v4706_v32 = vpack.c.bf16 %v4698_v35, %v4697_v31  ;;  %7010 = vmatpush3.bf16.msra.mxu0 %v7285_v13  ;;  %v5081_v7 = vxor.u32 %v5065_v47, %v5049_v28  ;;  %v5096_v12 = vmul.u32 2146121005, %v5080_v0 }
 0x339   : > { %v4705_v21 = vpack.c.bf16 %v4696_v33, %v4695_v34  ;;  %6960 = vmatmul.mubr.bf16.gmra.mrb[124].mxu0 %v4714_v60  ;;  %7042 = vmatpush3.bf16.msra.mxu1 %v7286_v40  ;;  %v5345_v17 = vxor.u32 %v5329_v38, %v5313_v36  ;;  %v5330_v55 = vshrl.u32 %v5314_v27, 16  ;;  %v5094_v5 = vmul.u32 2146121005, %v5078_v14  ;;  %v12075_v33 = vld [vmem:[#allocation31_spill] sm:$0xff] }
 0x33a   : > { %v5079_v9 = vxor.u32 %v5063_v6, %v5047_v51  ;;  %v5097_v20 = vmul.u32 2146121005, %v5081_v7  ;;  %v5112_v30 = vshrl.u32 %v5096_v12, 15  ;;  %v5311_v61 = vadd.s32 %v10782_v53, %v12072_v44 }
 0x33b   : > { %6991 = vmatprep.mubr.bf16.mxu1 %v4705_v21  ;;  %v5361_v59 = vmul.u32 2146121005, %v5345_v17  ;;  %v5346_v18 = vxor.u32 %v5330_v55, %v5314_v27  ;;  %v5110_v11 = vshrl.u32 %v5094_v5, 15  ;;  %v5052_v15 = vadd.s32 %v10778_v46, %v12037_v37 }
 0x33c   : > { %6992 = vmatmul.mubr.bf16.gmra.mrb[124].mxu1 %v4706_v32  ;;  %v5095_v56 = vmul.u32 2146121005, %v5079_v9  ;;  %v5312_v45 = vadd.s32 %v10782_v53, %v12074_v4  ;;  %v5113_v58 = vshrl.u32 %v5097_v20, 15  ;;  %v5050_v48 = vadd.s32 %v10778_v46, %v12038_v63 }
 0x33d   : > { %v5128_v60 = vxor.u32 %v5112_v30, %v5096_v12  ;;  %v5377_v57 = vshrl.u32 %v5361_v59, 15  ;;  %v5362_v24 = vmul.u32 2146121005, %v5346_v18  ;;  %v5126_v2 = vxor.u32 %v5110_v11, %v5094_v5  ;;  %v12077_v12 = vld [vmem:[#allocation6_spill] sm:$0xff] }
 0x33e   : > { %v5111_v31 = vshrl.u32 %v5095_v56, 15  ;;  %v5327_v35 = vshrl.u32 %v5311_v61, 16  ;;  %v5068_v34 = vshrl.u32 %v5052_v15, 16  ;;  %v5053_v32 = vadd.s32 %v10778_v46, %v12075_v33 }
 0x33f   : > { %v5328_v21 = vshrl.u32 %v5312_v45, 16  ;;  %v5129_v23 = vxor.u32 %v5113_v58, %v5097_v20  ;;  %v5066_v39 = vshrl.u32 %v5050_v48, 16  ;;  %v5051_v42 = vadd.s32 %v10778_v46, %v12076_v10  ;;  %v7315_v58 = vld [vmem:[%s11251_s8] sm:$0xff] }
 0x340   : > { %v5144_v19 = vmul.u32 2221713035, %v5128_v60  ;;  %v5393_v8 = vxor.u32 %v5377_v57, %v5361_v59  ;;  %v5378_v13 = vshrl.u32 %v5362_v24, 15  ;;  %v5142_v40 = vmul.u32 2221713035, %v5126_v2 }
 0x341   : > { %v5127_v26 = vxor.u32 %v5111_v31, %v5095_v56  ;;  %v5343_v52 = vxor.u32 %v5327_v35, %v5311_v61  ;;  %v5084_v28 = vxor.u32 %v5068_v34, %v5052_v15  ;;  %v5069_v1 = vshrl.u32 %v5053_v32, 16 }
 0x342   : > { %v5344_v36 = vxor.u32 %v5328_v21, %v5312_v45  ;;  %v5145_v49 = vmul.u32 2221713035, %v5129_v23  ;;  %v5082_v51 = vxor.u32 %v5066_v39, %v5050_v48  ;;  %v5067_v47 = vshrl.u32 %v5051_v42, 16 }
 0x343   : > { %v5160_v0 = vshrl.u32 %v5144_v19, 16  ;;  %v5409_v38 = vmul.u32 2221713035, %v5393_v8  ;;  %v5394_v27 = vxor.u32 %v5378_v13, %v5362_v24  ;;  %v5158_v14 = vshrl.u32 %v5142_v40, 16 }
 0x344   : > { %v5143_v6 = vmul.u32 2221713035, %v5127_v26  ;;  %v5359_v7 = vmul.u32 2146121005, %v5343_v52  ;;  %v4733_v17 = vsub.s32 2, %v12077_v12  ;;  %v5085_v5 = vxor.u32 %v5069_v1, %v5053_v32 }
 0x345   : > { %v5100_v55 = vmul.u32 2146121005, %v5084_v28  ;;  %v5360_v9 = vmul.u32 2146121005, %v5344_v36  ;;  %v5161_v20 = vshrl.u32 %v5145_v49, 16  ;;  %v5083_v59 = vxor.u32 %v5067_v47, %v5051_v42 }
 0x346   : > { %v5098_v30 = vmul.u32 2146121005, %v5082_v51  ;;  %v5176_v18 = vxor.u32 %v5160_v0, %v5144_v19  ;;  %v5425_v11 = vshrl.u32 %v5409_v38, 16  ;;  %v5410_v56 = vmul.u32 2221713035, %v5394_v27 }
 0x347   : > { %v5174_v61 = vxor.u32 %v5158_v14, %v5142_v40  ;;  %v5159_v15 = vshrl.u32 %v5143_v6, 16  ;;  %v5375_v45 = vshrl.u32 %v5359_v7, 15  ;;  %v10810_v48 = vrot.slane %v7315_v58, %v4733_v17 }
 0x348   : > { %v5116_v60 = vshrl.u32 %v5100_v55, 15  ;;  %v5101_v57 = vmul.u32 2146121005, %v5085_v5  ;;  %v5376_v24 = vshrl.u32 %v5360_v9, 15  ;;  %v5177_v2 = vxor.u32 %v5161_v20, %v5145_v49 }
 0x349   : > { %v5114_v31 = vshrl.u32 %v5098_v30, 15  ;;  %v5099_v35 = vmul.u32 2146121005, %v5083_v59  ;;  %v5056_v34 = vadd.s32 %v10778_v46, %v12044_v22  ;;  %v4898_v32 = vsub.s32 3, %v12077_v12 }
 0x34a   : > { %v5192_v21 = vshrl.u32 %v5176_v18, 9  ;;  %v5441_v23 = vxor.u32 %v5425_v11, %v5409_v38  ;;  %v5426_v39 = vshrl.u32 %v5410_v56, 16  ;;  %v5190_v42 = vshrl.u32 %v5174_v61, 9 }
 0x34b   : > { %v5175_v19 = vxor.u32 %v5159_v15, %v5143_v6  ;;  %v5391_v8 = vxor.u32 %v5375_v45, %v5359_v7  ;;  %v5315_v13 = vadd.s32 %v10782_v53, %v12038_v63  ;;  %v5132_v40 = vxor.u32 %v5116_v60, %v5100_v55 }
 0x34c   : > { %v5117_v26 = vshrl.u32 %v5101_v57, 15  ;;  %v5392_v52 = vxor.u32 %v5376_v24, %v5360_v9  ;;  %v5316_v28 = vadd.s32 %v10782_v53, %v12076_v10  ;;  %v5193_v1 = vshrl.u32 %v5177_v2, 9 }
 0x34d   : > { %v5130_v36 = vxor.u32 %v5114_v31, %v5098_v30  ;;  %v5115_v49 = vshrl.u32 %v5099_v35, 15  ;;  %v5072_v51 = vshrl.u32 %v5056_v34, 16  ;;  %v10819_v47 = vrot.slane %v7315_v58, %v4898_v32 }
 0x34e   : > { %v10821_v0 = vand.u32 1, %v5192_v21  ;;  %v5457_v38 = vshrl.u32 %v5441_v23, 9  ;;  %v5442_v27 = vxor.u32 %v5426_v39, %v5410_v56  ;;  %v10823_v14 = vand.u32 1, %v5190_v42 }
 0x34f   : > { %v5191_v6 = vshrl.u32 %v5175_v19, 9  ;;  %v5407_v7 = vmul.u32 2221713035, %v5391_v8  ;;  %v5331_v17 = vshrl.u32 %v5315_v13, 16  ;;  %v5148_v55 = vmul.u32 2221713035, %v5132_v40 }
 0x350   : > { %v10825_v5 = vxor.u32 %v5117_v26, %v5101_v57  ;;  %v5408_v9 = vmul.u32 2221713035, %v5392_v52  ;;  %v5332_v20 = vshrl.u32 %v5316_v28, 16  ;;  %v10827_v59 = vand.u32 1, %v5193_v1 }
 0x351   : > { %v5146_v30 = vmul.u32 2221713035, %v5130_v36  ;;  %v10829_v18 = vxor.u32 %v5115_v49, %v5099_v35  ;;  %v10831_v11 = vxor.u32 %v5072_v51, %v5056_v34  ;;  %v10833_v61 = vand.u32 1, %v5457_v38 }
 0x352   : > { %v5458_v56 = vshrl.u32 %v5442_v27, 9  ;;  %v5054_v15 = vadd.s32 %v10778_v46, %v12045_v43  ;;  %v5317_v45 = vadd.s32 %v10782_v53, %v12037_v37  ;;  %vm5224_vm4 = vcmp.eq.s32.totalorder %v10821_v0, 0 }
 0x353   : > { %v10840_v58 = vand.u32 1, %v5191_v6  ;;  %v5057_v60 = vadd.s32 %v10778_v46, %v12046_v41  ;;  %v5423_v57 = vshrl.u32 %v5407_v7, 16  ;;  %v10844_v24 = vxor.u32 %v5331_v17, %v5315_v13 }
 0x354   : > { %vm5222_vm8 = vcmp.eq.s32.totalorder %v10823_v14, 0  ;;  %v5164_v2 = vshrl.u32 %v5148_v55, 16  ;;  %v11391_v31 = vmul.u32 2221713035, %v10825_v5  ;;  %v5424_v35 = vshrl.u32 %v5408_v9, 16 }
 0x355   : > { %v10848_v34 = vxor.u32 %v5332_v20, %v5316_v28  ;;  %vm5225_vm9 = vcmp.eq.s32.totalorder %v10827_v59, 0  ;;  %v5162_v32 = vshrl.u32 %v5146_v30, 16  ;;  %v11390_v21 = vmul.u32 2221713035, %v10829_v18 }
 0x356   : > { %v11393_v23 = vmul.u32 2146121005, %v10831_v11  ;;  %v5318_v39 = vadd.s32 %v10782_v53, %v12075_v33  ;;  %v10855_v19 = vand.u32 1, %v5458_v56  ;;  %v5070_v8 = vshrl.u32 %v5054_v15, 16 }
 0x357   : > { %v10859_v13 = vadd.s32 %v10778_v46, %v12047_v62  ;;  %v5333_v40 = vshrl.u32 %v5317_v45, 16  ;;  %vm5223_vm10 = vcmp.eq.s32.totalorder %v10840_v58, 0  ;;  %v5073_v52 = vshrl.u32 %v5057_v60, 16 }
 0x358   : > { %v5439_v28 = vxor.u32 %v5423_v57, %v5407_v7  ;;  %v5363_v1 = vmul.u32 2146121005, %v10844_v24  ;;  %v10863_v49 = vxor.u32 %v5164_v2, %v5148_v55  ;;  %v10867_v51 = vshrl.u32 %v11391_v31, 16 }
 0x359   : > { %v5440_v38 = vxor.u32 %v5424_v35, %v5408_v9  ;;  %v5364_v27 = vmul.u32 2146121005, %v10848_v34  ;;  %v10870_v20 = vxor.u32 %v5162_v32, %v5146_v30  ;;  %v10874_v56 = vshrl.u32 %v11390_v21, 16 }
 0x35a   : > { %v10878_v7 = vshrl.u32 %v11393_v23, 15  ;;  %v5334_v55 = vshrl.u32 %v5318_v39, 16  ;;  %v10881_v2 = vxor.u32 %v5070_v8, %v5054_v15  ;;  %v5071_v9 = vshrl.u32 %v10859_v13, 16 }
 0x35b   : > { %v5349_v35 = vxor.u32 %v5333_v40, %v5317_v45  ;;  %v10885_v32 = vxor.u32 %v5073_v52, %v5057_v60  ;;  %v5455_v21 = vshrl.u32 %v5439_v28, 9  ;;  %v5379_v31 = vshrl.u32 %v5363_v1, 15 }
 0x35c   : > { %vm5489_vm11 = vcmp.eq.s32.totalorder %v10833_v61, 0  ;;  %vm5490_vm12 = vcmp.eq.s32.totalorder %v10855_v19, 0  ;;  %v5456_v15 = vshrl.u32 %v5440_v38, 9  ;;  %v5380_v8 = vshrl.u32 %v5364_v27, 15 }
 0x35d   : > { %v5365_v33 = vmul.u32 2146121005, %v5349_v35  ;;  %v5395_v14 = vxor.u32 %v5379_v31, %v5363_v1  ;;  %v5087_v59 = vxor.u32 %v5071_v9, %v10859_v13  ;;  %v12079_v19 = vmul.u32 2221713035, %v10829_v18 }
 0x35e   : > { %v5472_v0 = vand.u32 1, %v5456_v15 }
 0x35f   : > { %v5411_v15 = vmul.u32 2221713035, %v5395_v14  ;;  %v5103_v61 = vmul.u32 2146121005, %v5087_v59 }
 0x360   : > { %vm5488_vm14 = vcmp.eq.s32.totalorder %v5472_v0, 0 }
 0x361   : > { %v5119_v0 = vshrl.u32 %v5103_v61, 15 }
 0x363   : > { %v10935_v59 = vxor.u32 %v5119_v0, %v5103_v61 }
 0x3a7   : > { %v6949_v42 = vpop.f32.mrb[112].mxu0 }
 0x3a8   : > { %v4817_v26 = vpop.f32.mrb[113].mxu0  ;;  %v4826_v10 = vadd.f32 %v6949_v42, %v10810_v48 }
 0x3a9   : > { %v6950_v36 = vpop.f32.mrb[114].mxu0  ;;  %v4818_v60 = vadd.f32 %v4817_v26, %v10810_v48 }
 0x3aa   : > { %v4820_v6 = vpop.f32.mrb[115].mxu0  ;;  %v6981_v17 = vpop.f32.mrb[112].mxu1 }
 0x3ab   : > { %v4991_v57 = vadd.f32 %v6981_v17, %v10819_v47  ;;  %v4982_v24 = vpop.f32.mrb[113].mxu1  ;;  %v4821_v42 = vadd.f32 %v4820_v6, %v10810_v48  ;;  %v5381_v6 = vshrl.u32 %v5365_v33, 15 }
 0x3ac   : > { %v4983_v30 = vadd.f32 %v4982_v24, %v10819_v47  ;;  %v6982_v34 = vpop.f32.mrb[114].mxu1  ;;  %v5350_v24 = vxor.u32 %v5334_v55, %v5318_v39  ;;  %v5471_v55 = vand.u32 1, %v5455_v21  ;;  %v5396_v21 = vxor.u32 %v5380_v8, %v5364_v27 }
 0x3ad   : > { %v5240_v12 = vsub.f32 0.0, %v4991_v57  ;;  %v4994_v23 = vadd.f32 %v6982_v34, %v10819_v47  ;;  %v4985_v17 = vpop.f32.mrb[115].mxu1  ;;  %v4829_v34 = vadd.f32 %v6950_v36, %v10810_v48 }
 0x3ae   : > { %v5238_v45 = vsub.f32 0.0, %v4983_v30  ;;  %v4986_v40 = vadd.f32 %v4985_v17, %v10819_v47  ;;  %vm5487_vm13 = vcmp.eq.s32.totalorder %v5471_v55, 0  ;;  %v5412_v8 = vmul.u32 2221713035, %v5396_v21 }
 0x3af   : > { %v5256_v52 = vsel %vm5224_vm4, %v4991_v57, %v5240_v12  ;;  %v5241_v28 = vsub.f32 0.0, %v4994_v23 }
 0x3b0   : > { %v5272_v63 = vadd.f32 %v5256_v52, %v4826_v10  ;;  %v5254_v38 = vsel %vm5222_vm8, %v4983_v30, %v5238_v45  ;;  %v5239_v37 = vsub.f32 0.0, %v4986_v40  ;;  %v5102_v10 = vmul.u32 2146121005, %v10881_v2 }
 0x3b1   : > { %v5270_v4 = vadd.f32 %v5254_v38, %v4818_v60  ;;  %v5257_v39 = vsel %vm5225_vm9, %v4994_v23, %v5241_v28  ;;  %v5366_v45 = vmul.u32 2146121005, %v5350_v24  ;;  %v5196_v24 = vshrl.u32 %v10863_v49, 9 }
 0x3b2   : > { %v5288_v26 = vmax.f32 %v5272_v63, 0.0  ;;  %v5273_v17 = vadd.f32 %v5257_v39, %v4829_v34  ;;  %v5255_v12 = vsel %vm5223_vm10, %v4986_v40, %v5239_v37  ;;  %v5397_v40 = vxor.u32 %v5381_v6, %v5365_v33 }
 0x3b3   : > { %v5286_v57 = vmax.f32 %v5270_v4, 0.0  ;;  %v5271_v36 = vadd.f32 %v5255_v12, %v4821_v42  ;;  %v5105_v4 = vmul.u32 2146121005, %v10885_v32  ;;  %v5382_v2 = vshrl.u32 %v5366_v45, 15 }
 0x3b4   : > { %v5505_v35 = vsub.f32 0.0, %v5288_v26  ;;  %v5289_v30 = vmax.f32 %v5273_v17, 0.0  ;;  %v12078_v28 = vmul.u32 2221713035, %v10825_v5  ;;  %v5194_v38 = vshrl.u32 %v10870_v20, 9 }
 0x3b5   : > { %v5287_v60 = vmax.f32 %v5271_v36, 0.0  ;;  %v5503_v52 = vsub.f32 0.0, %v5286_v57  ;;  %v5179_v33 = vxor.u32 %v10874_v56, %v12079_v19  ;;  %v5319_v42 = vadd.s32 %v10782_v53, %v12045_v43 }
 0x3b6   : > { %v5506_v63 = vsub.f32 0.0, %v5289_v30  ;;  %v5544_v23 = vpack.c.bf16 %v5289_v30, %v5288_v26  ;;  %v5521_v31 = vsel %vm5489_vm11, %v5288_v26, %v5505_v35  ;;  %v5181_v32 = vxor.u32 %v10867_v51, %v12078_v28 }
 0x3b7   : > { %v5543_v37 = vpack.c.bf16 %v5287_v60, %v5286_v57  ;;  %v5504_v58 = vsub.f32 0.0, %v5287_v60  ;;  %v5519_v13 = vsel %vm5487_vm13, %v5286_v57, %v5503_v52  ;;  %v12080_v39 = vmul.u32 2146121005, %v10831_v11 }
 0x3b8   : > { %v5522_v1 = vsel %vm5490_vm12, %v5289_v30, %v5506_v63  ;;  %v5118_v55 = vshrl.u32 %v5102_v10, 15  ;;  %v5398_v5 = vxor.u32 %v5382_v2, %v5366_v45  ;;  %v5413_v51 = vmul.u32 2221713035, %v5397_v40 }
 0x3b9   : > { %7011 = vmatprep.mubr.bf16.mxu0 %v5543_v37  ;;  %v5520_v27 = vsel %vm5488_vm14, %v5287_v60, %v5504_v58  ;;  %v5536_v9 = vpack.c.bf16 %v5522_v1, %v5521_v31  ;;  %v5136_v49 = vxor.u32 %v10878_v7, %v12080_v39  ;;  %v5121_v26 = vshrl.u32 %v5105_v4, 15 }
 0x3ba   : > { %7012 = vmatmul.mubr.bf16.vlgmr.msra.gmra.mrb[128].mxu0 %v5544_v23  ;;  %v5535_v34 = vpack.c.bf16 %v5520_v27, %v5519_v13  ;;  %v5427_v17 = vshrl.u32 %v5411_v15, 16  ;;  %v5428_v12 = vshrl.u32 %v5412_v8, 16  ;;  %v10923_v20 = vand.u32 1, %v5196_v24 }
 0x3bb   : > { %v5197_v18 = vshrl.u32 %v5181_v32, 9  ;;  %v10925_v56 = vand.u32 1, %v5194_v38  ;;  %v5195_v57 = vshrl.u32 %v5179_v33, 9  ;;  %v5320_v11 = vadd.s32 %v10782_v53, %v12047_v62 }
 0x3bc   : > { %7043 = vmatprep.mubr.bf16.mxu1 %v5535_v34  ;;  %v5335_v36 = vshrl.u32 %v5319_v42, 16  ;;  %v5152_v7 = vmul.u32 2221713035, %v5136_v49  ;;  %v10929_v14 = vxor.u32 %v5118_v55, %v5102_v10  ;;  %v5414_v35 = vmul.u32 2221713035, %v5398_v5 }
 0x3bd   : > { %7044 = vmatmul.mubr.bf16.vlgmr.msra.gmra.mrb[128].mxu1 %v5536_v9  ;;  %v5429_v30 = vshrl.u32 %v5413_v51, 16  ;;  %v10931_v45 = vxor.u32 %v5121_v26, %v5105_v4  ;;  %v5443_v6 = vxor.u32 %v5427_v17, %v5411_v15  ;;  %v5444_v60 = vxor.u32 %v5428_v12, %v5412_v8 }
 0x3be   : > { %v10933_v52 = vand.u32 1, %v5197_v18  ;;  %vm5228_vm15 = vcmp.eq.s32.totalorder %v10923_v20, 0  ;;  %v10938_v21 = vand.u32 1, %v5195_v57  ;;  %v5336_v63 = vshrl.u32 %v5320_v11, 16 }
 0x3bf   : > { %v10940_v23 = vxor.u32 %v5335_v36, %v5319_v42  ;;  %vm5226_vm0 = vcmp.eq.s32.totalorder %v10925_v56, 0  ;;  %v5168_v10 = vshrl.u32 %v5152_v7, 16  ;;  %v11401_v37 = vmul.u32 2221713035, %v10929_v14 }
 0x3c0   : > { %v5430_v4 = vshrl.u32 %v5414_v35, 16  ;;  %v5445_v58 = vxor.u32 %v5429_v30, %v5413_v51  ;;  %v11400_v15 = vmul.u32 2221713035, %v10931_v45  ;;  %v5459_v31 = vshrl.u32 %v5443_v6, 9 }
 0x3c1   : > { %v5460_v1 = vshrl.u32 %v5444_v60, 9  ;;  %v5321_v2 = vadd.s32 %v10782_v53, %v12044_v22  ;;  %vm5229_vm1 = vcmp.eq.s32.totalorder %v10933_v52, 0  ;;  %v11399_v13 = vmul.u32 2221713035, %v10935_v59 }
 0x3c2   : > { %v10951_v27 = vadd.s32 %v10778_v46, %v12048_v54  ;;  %v5322_v9 = vadd.s32 %v10782_v53, %v12046_v41  ;;  %vm5227_vm2 = vcmp.eq.s32.totalorder %v10938_v21, 0  ;;  %v10958_v24 = vadd.s32 %v10778_v46, %v12049_v50 }
 0x3c3   : > { %v10960_v28 = vxor.u32 %v5336_v63, %v5320_v11  ;;  %v5367_v32 = vmul.u32 2146121005, %v10940_v23  ;;  %v10963_v61 = vxor.u32 %v5168_v10, %v5152_v7  ;;  %v10967_v38 = vshrl.u32 %v11401_v37, 16 }
 0x3c4   : > { %v5446_v19 = vxor.u32 %v5430_v4, %v5414_v35  ;;  %v5461_v33 = vshrl.u32 %v5445_v58, 9  ;;  %v10971_v49 = vshrl.u32 %v11400_v15, 16  ;;  %v10973_v55 = vand.u32 1, %v5459_v31 }
 0x3c5   : > { %v10975_v5 = vand.u32 1, %v5460_v1  ;;  %v5337_v51 = vshrl.u32 %v5321_v2, 16  ;;  %v10980_v12 = vshrl.u32 %v11399_v13, 16  ;;  %v5076_v18 = vshrl.u32 %v10951_v27, 16 }
 0x3c6   : > { %v5338_v0 = vshrl.u32 %v5322_v9, 16  ;;  %v5074_v36 = vshrl.u32 %v10958_v24, 16  ;;  %v5368_v7 = vmul.u32 2146121005, %v10960_v28  ;;  %v5383_v35 = vshrl.u32 %v5367_v32, 15 }
 0x3c7   : > { %v5462_v63 = vshrl.u32 %v5446_v19, 9  ;;  %v5477_v10 = vand.u32 1, %v5461_v33  ;;  %vm5491_vm3 = vcmp.eq.s32.totalorder %v10973_v55, 0  ;;  %vm5492_vm5 = vcmp.eq.s32.totalorder %v10975_v5, 0 }
 0x3c8   : > { %v5353_v1 = vxor.u32 %v5337_v51, %v5321_v2  ;;  %v5061_v56 = vadd.s32 %v10778_v46, %v12050_v29 }
 0x3c9   : > { %v6953_v40 = vpop.f32.mrb[116].mxu0  ;;  %v5478_v51 = vand.u32 1, %v5462_v63  ;;  %vm5493_vm6 = vcmp.eq.s32.totalorder %v5477_v10, 0 }
 0x3ca   : > { %v4833_v8 = vpop.f32.mrb[117].mxu0  ;;  %v4842_v4 = vadd.f32 %v6953_v40, %v10810_v48 }
 0x3cb   : > { %v6954_v34 = vpop.f32.mrb[118].mxu0  ;;  %v4834_v28 = vadd.f32 %v4833_v8, %v10810_v48  ;;  %vm5494_vm7 = vcmp.eq.s32.totalorder %v5478_v51, 0 }
 0x3cc   : > { %v4836_v42 = vpop.f32.mrb[119].mxu0  ;;  %v6985_v39 = vpop.f32.mrb[116].mxu1  ;;  %v4845_v19 = vadd.f32 %v6954_v34, %v10810_v48 }
 0x3cd   : > { %v5007_v26 = vadd.f32 %v6985_v39, %v10819_v47  ;;  %v4998_v17 = vpop.f32.mrb[117].mxu1 }
 0x3ce   : > { %v4999_v57 = vadd.f32 %v4998_v17, %v10819_v47  ;;  %v6986_v11 = vpop.f32.mrb[118].mxu1 }
 0x3cf   : > { %v5244_v30 = vsub.f32 0.0, %v5007_v26  ;;  %v5010_v6 = vadd.f32 %v6986_v11, %v10819_v47  ;;  %v5001_v60 = vpop.f32.mrb[119].mxu1  ;;  %v5354_v11 = vxor.u32 %v5338_v0, %v5322_v9  ;;  %v5369_v9 = vmul.u32 2146121005, %v5353_v1 }
 0x3d0   : > { %v5242_v58 = vsub.f32 0.0, %v4999_v57  ;;  %v5002_v31 = vadd.f32 %v5001_v60, %v10819_v47  ;;  %v4837_v60 = vadd.f32 %v4836_v42, %v10810_v48  ;;  %v5384_v0 = vshrl.u32 %v5368_v7, 15 }
 0x3d1   : > { %v5260_v39 = vsel %vm5228_vm15, %v5007_v26, %v5244_v30  ;;  %v5245_v17 = vsub.f32 0.0, %v5010_v6  ;;  %v5059_v42 = vadd.s32 %v10778_v46, %v12052_v25  ;;  %v5370_v52 = vmul.u32 2146121005, %v5354_v11 }
 0x3d2   : > { %v5276_v33 = vadd.f32 %v5260_v39, %v4842_v4  ;;  %v5258_v40 = vsel %vm5226_vm0, %v4999_v57, %v5242_v58  ;;  %v5243_v13 = vsub.f32 0.0, %v5002_v31  ;;  %v5092_v1 = vxor.u32 %v5076_v18, %v10951_v27 }
 0x3d3   : > { %v5274_v15 = vadd.f32 %v5258_v40, %v4834_v28  ;;  %v5261_v2 = vsel %vm5229_vm1, %v5010_v6, %v5245_v17  ;;  %v5090_v46 = vxor.u32 %v5074_v36, %v10958_v24  ;;  %v5386_v17 = vshrl.u32 %v5370_v52, 15 }
 0x3d4   : > { %v5292_v8 = vmax.f32 %v5276_v33, 0.0  ;;  %v5277_v37 = vadd.f32 %v5261_v2, %v4845_v19  ;;  %v5259_v20 = vsel %vm5227_vm2, %v5002_v31, %v5243_v13  ;;  %v5385_v13 = vshrl.u32 %v5369_v9, 15 }
 0x3d5   : > { %v5290_v26 = vmax.f32 %v5274_v15, 0.0  ;;  %v5275_v34 = vadd.f32 %v5259_v20, %v4837_v60  ;;  %v5399_v15 = vxor.u32 %v5383_v35, %v5367_v32  ;;  %v5077_v32 = vshrl.u32 %v5061_v56, 16 }
 0x3d6   : > { %v5293_v57 = vmax.f32 %v5277_v37, 0.0  ;;  %v5509_v30 = vsub.f32 0.0, %v5292_v8  ;;  %v5400_v37 = vxor.u32 %v5384_v0, %v5368_v7  ;;  %v5075_v19 = vshrl.u32 %v5059_v42, 16 }
 0x3d7   : > { %v5291_v6 = vmax.f32 %v5275_v34, 0.0  ;;  %v5507_v63 = vsub.f32 0.0, %v5290_v26  ;;  %v5415_v33 = vmul.u32 2221713035, %v5399_v15  ;;  %v5401_v27 = vxor.u32 %v5385_v13, %v5369_v9 }
 0x3d8   : > { %v5546_v4 = vpack.c.bf16 %v5293_v57, %v5292_v8  ;;  %v5510_v21 = vsub.f32 0.0, %v5293_v57  ;;  %v5525_v28 = vsel %vm5493_vm6, %v5292_v8, %v5509_v30  ;;  %v12081_v18 = vmul.u32 2221713035, %v10929_v14 }
 0x3d9   : > { %v5545_v58 = vpack.c.bf16 %v5291_v6, %v5290_v26  ;;  %v5508_v31 = vsub.f32 0.0, %v5291_v6  ;;  %v5523_v10 = vsel %vm5491_vm3, %v5290_v26, %v5507_v63  ;;  %v5416_v24 = vmul.u32 2221713035, %v5400_v37 }
 0x3da   : > { %v5526_v39 = vsel %vm5494_vm7, %v5293_v57, %v5510_v21  ;;  %v5182_v7 = vxor.u32 %v10967_v38, %v12081_v18  ;;  %v12082_v36 = vmul.u32 2221713035, %v10931_v45  ;;  %v5108_v40 = vmul.u32 2146121005, %v5092_v1 }
 0x3db   : > { %7015 = vmatprep.mubr.bf16.mxu0 %v5545_v58  ;;  %v5524_v11 = vsel %vm5492_vm5, %v5291_v6, %v5508_v31  ;;  %v5538_v23 = vpack.c.bf16 %v5526_v39, %v5525_v28  ;;  %v5402_v5 = vxor.u32 %v5386_v17, %v5370_v52  ;;  %v12083_v60 = vmul.u32 2221713035, %v10935_v59 }
 0x3dc   : > { %7016 = vmatmul.mubr.bf16.gmra.mrb[132].mxu0 %v5546_v4  ;;  %v5537_v35 = vpack.c.bf16 %v5524_v11, %v5523_v10  ;;  %v5185_v55 = vxor.u32 %v10971_v49, %v12082_v36  ;;  %v5106_v51 = vmul.u32 2146121005, %v5090_v46  ;;  %v5093_v8 = vxor.u32 %v5077_v32, %v5061_v56 }
 0x3dd   : > { %v5183_v2 = vxor.u32 %v10980_v12, %v12083_v60  ;;  %v5200_v20 = vshrl.u32 %v10963_v61, 9  ;;  %v5091_v14 = vxor.u32 %v5075_v19, %v5059_v42  ;;  %v5431_v9 = vshrl.u32 %v5415_v33, 16 }
 0x3de   : > { %7047 = vmatprep.mubr.bf16.mxu1 %v5537_v35  ;;  %v5417_v38 = vmul.u32 2221713035, %v5401_v27  ;;  %v5198_v26 = vshrl.u32 %v5182_v7, 9  ;;  %v5432_v34 = vshrl.u32 %v5416_v24, 16  ;;  %v5323_v45 = vadd.s32 %v10782_v53, %v12049_v50 }
 0x3df   : > { %7048 = vmatmul.mubr.bf16.gmra.mrb[132].mxu1 %v5538_v23  ;;  %v5201_v49 = vshrl.u32 %v5185_v55, 9  ;;  %v5124_v0 = vshrl.u32 %v5108_v40, 15  ;;  %v5418_v57 = vmul.u32 2221713035, %v5402_v5  ;;  %v5199_v30 = vshrl.u32 %v5183_v2, 9 }
 0x3e0   : > { %v5122_v59 = vshrl.u32 %v5106_v51, 15  ;;  %v5109_v52 = vmul.u32 2146121005, %v5093_v8  ;;  %v5216_v12 = vand.u32 1, %v5200_v20  ;;  %v5107_v6 = vmul.u32 2146121005, %v5091_v14 }
 0x3e1   : > { %v5447_v63 = vxor.u32 %v5431_v9, %v5415_v33  ;;  %v5433_v56 = vshrl.u32 %v5417_v38, 16  ;;  %v5214_v4 = vand.u32 1, %v5198_v26  ;;  %v5448_v61 = vxor.u32 %v5432_v34, %v5416_v24 }
 0x3e2   : > { %v5324_v42 = vadd.s32 %v10782_v53, %v12052_v25  ;;  %v5339_v21 = vshrl.u32 %v5323_v45, 16  ;;  %v5217_v15 = vand.u32 1, %v5201_v49  ;;  %v11030_v13 = vxor.u32 %v5124_v0, %v5108_v40 }
 0x3e3   : > { %v5434_v58 = vshrl.u32 %v5418_v57, 16  ;;  %v5325_v31 = vadd.s32 %v10782_v53, %v12048_v54  ;;  %v5215_v1 = vand.u32 1, %v5199_v30  ;;  %v11034_v37 = vxor.u32 %v5122_v59, %v5106_v51 }
 0x3e4   : > { %v5125_v28 = vshrl.u32 %v5109_v52, 15  ;;  %v5326_v39 = vadd.s32 %v10782_v53, %v12050_v29  ;;  %vm5232_vm4 = vcmp.eq.s32.totalorder %v5216_v12, 0  ;;  %v5123_v17 = vshrl.u32 %v5107_v6, 15 }
 0x3e5   : > { %v5463_v10 = vshrl.u32 %v5447_v63, 9  ;;  %v5449_v11 = vxor.u32 %v5433_v56, %v5417_v38  ;;  %vm5230_vm8 = vcmp.eq.s32.totalorder %v5214_v4, 0  ;;  %v5464_v32 = vshrl.u32 %v5448_v61, 9 }
 0x3e6   : > { %v5340_v35 = vshrl.u32 %v5324_v42, 16  ;;  %v11038_v19 = vxor.u32 %v5339_v21, %v5323_v45  ;;  %vm5233_vm9 = vcmp.eq.s32.totalorder %v5217_v15, 0  ;;  %v5156_v27 = vmul.u32 2221713035, %v11030_v13 }
 0x3e7   : > { %v5450_v18 = vxor.u32 %v5434_v58, %v5418_v57  ;;  %v5341_v7 = vshrl.u32 %v5325_v31, 16  ;;  %vm5231_vm10 = vcmp.eq.s32.totalorder %v5215_v1, 0  ;;  %v5154_v53 = vmul.u32 2221713035, %v11034_v37 }
 0x3e8   : > { %v11042_v55 = vxor.u32 %v5125_v28, %v5109_v52  ;;  %v5342_v40 = vshrl.u32 %v5326_v39, 16  ;;  %v11045_v2 = vxor.u32 %v5123_v17, %v5107_v6  ;;  %v5479_v51 = vand.u32 1, %v5463_v10 }
 0x3e9   : > { %v5465_v8 = vshrl.u32 %v5449_v11, 9  ;;  %v5480_v9 = vand.u32 1, %v5464_v32  ;;  %v11048_v38 = vxor.u32 %v5340_v35, %v5324_v42  ;;  %v5371_v26 = vmul.u32 2146121005, %v11038_v19 }
 0x3ea   : > { %v5466_v0 = vshrl.u32 %v5450_v18, 9  ;;  %v5357_v57 = vxor.u32 %v5341_v7, %v5325_v31  ;;  %v5358_v6 = vxor.u32 %v5342_v40, %v5326_v39  ;;  %vm5495_vm11 = vcmp.eq.s32.totalorder %v5479_v51, 0 }
 0x3eb   : > { %v6957_v46 = vpop.f32.mrb[120].mxu0  ;;  %v5481_v42 = vand.u32 1, %v5465_v8  ;;  %v5387_v7 = vshrl.u32 %v5371_v26, 15  ;;  %vm5496_vm14 = vcmp.eq.s32.totalorder %v5480_v9, 0  ;;  %v5157_v1 = vmul.u32 2221713035, %v11042_v55 }
 0x3ec   : > { %v4849_v23 = vpop.f32.mrb[121].mxu0  ;;  %v4858_v30 = vadd.f32 %v6957_v46, %v10810_v48  ;;  %v5482_v11 = vand.u32 1, %v5466_v0  ;;  %v5373_v12 = vmul.u32 2146121005, %v5357_v57  ;;  %v5155_v8 = vmul.u32 2221713035, %v11045_v2 }
 0x3ed   : > { %v6958_v33 = vpop.f32.mrb[122].mxu0  ;;  %v4850_v63 = vadd.f32 %v4849_v23, %v10810_v48  ;;  %vm5497_vm12 = vcmp.eq.s32.totalorder %v5481_v42, 0  ;;  %v5172_v9 = vshrl.u32 %v5156_v27, 16  ;;  %v5170_v2 = vshrl.u32 %v5154_v53, 16 }
 0x3ee   : > { %v4852_v24 = vpop.f32.mrb[123].mxu0  ;;  %v6989_v36 = vpop.f32.mrb[120].mxu1  ;;  %v4861_v21 = vadd.f32 %v6958_v33, %v10810_v48  ;;  %v5372_v33 = vmul.u32 2146121005, %v11048_v38  ;;  %vm5498_vm13 = vcmp.eq.s32.totalorder %v5482_v11, 0 }
 0x3ef   : > { %v5023_v5 = vadd.f32 %v6989_v36, %v10819_v47  ;;  %v5014_v60 = vpop.f32.mrb[121].mxu1  ;;  %v4853_v31 = vadd.f32 %v4852_v24, %v10810_v48  ;;  %v5374_v36 = vmul.u32 2146121005, %v5358_v6  ;;  %v5173_v6 = vshrl.u32 %v5157_v1, 16 }
 0x3f0   : > { %v5015_v20 = vadd.f32 %v5014_v60, %v10819_v47  ;;  %v6990_v14 = vpop.f32.mrb[122].mxu1  ;;  %v5389_v60 = vshrl.u32 %v5373_v12, 15  ;;  %v5188_v42 = vxor.u32 %v5172_v9, %v5156_v27 }
 0x3f1   : > { %v5248_v34 = vsub.f32 0.0, %v5023_v5  ;;  %v5026_v45 = vadd.f32 %v6990_v14, %v10819_v47  ;;  %v5017_v49 = vpop.f32.mrb[123].mxu1 }
 0x3f2   : > { %v5246_v59 = vsub.f32 0.0, %v5015_v20  ;;  %v5018_v52 = vadd.f32 %v5017_v49, %v10819_v47  ;;  %v5390_v49 = vshrl.u32 %v5374_v36, 15  ;;  %v5405_v55 = vxor.u32 %v5389_v60, %v5373_v12 }
 0x3f3   : > { %v5264_v56 = vsel %vm5232_vm4, %v5023_v5, %v5248_v34  ;;  %v5249_v61 = vsub.f32 0.0, %v5026_v45 }
 0x3f4   : > { %v5280_v58 = vadd.f32 %v5264_v56, %v4858_v30  ;;  %v5262_v28 = vsel %vm5230_vm8, %v5015_v20, %v5246_v59  ;;  %v5247_v17 = vsub.f32 0.0, %v5018_v52  ;;  %v5403_v59 = vxor.u32 %v5387_v7, %v5371_v26 }
 0x3f5   : > { %v5278_v10 = vadd.f32 %v5262_v28, %v4850_v63  ;;  %v5265_v46 = vsel %vm5233_vm9, %v5026_v45, %v5249_v61  ;;  %v5388_v45 = vshrl.u32 %v5372_v33, 15  ;;  %v5171_v63 = vshrl.u32 %v5155_v8, 16 }
 0x3f6   : > { %v5296_v32 = vmax.f32 %v5280_v58, 0.0  ;;  %v5281_v39 = vadd.f32 %v5265_v46, %v4861_v21  ;;  %v5263_v23 = vsel %vm5231_vm10, %v5018_v52, %v5247_v17  ;;  %v5406_v61 = vxor.u32 %v5390_v49, %v5374_v36 }
 0x3f7   : > { %v5294_v35 = vmax.f32 %v5278_v10, 0.0  ;;  %v5279_v19 = vadd.f32 %v5263_v23, %v4853_v31  ;;  %v5404_v56 = vxor.u32 %v5388_v45, %v5372_v33  ;;  %v5419_v51 = vmul.u32 2221713035, %v5403_v59 }
 0x3f8   : > { %v5297_v18 = vmax.f32 %v5281_v39, 0.0  ;;  %v5513_v4 = vsub.f32 0.0, %v5296_v32  ;;  %v5421_v26 = vmul.u32 2221713035, %v5405_v55  ;;  %v5186_v21 = vxor.u32 %v5170_v2, %v5154_v53 }
 0x3f9   : > { %v5295_v40 = vmax.f32 %v5279_v19, 0.0  ;;  %v5511_v24 = vsub.f32 0.0, %v5294_v35  ;;  %v5189_v58 = vxor.u32 %v5173_v6, %v5157_v1  ;;  %v5187_v28 = vxor.u32 %v5171_v63, %v5155_v8 }
 0x3fa   : > { %v5548_v15 = vpack.c.bf16 %v5297_v18, %v5296_v32  ;;  %v5514_v5 = vsub.f32 0.0, %v5297_v18  ;;  %v5529_v34 = vsel %vm5497_vm12, %v5296_v32, %v5513_v4  ;;  %v5420_v17 = vmul.u32 2221713035, %v5404_v56 }
 0x3fb   : > { %v5547_v20 = vpack.c.bf16 %v5295_v40, %v5294_v35  ;;  %v5512_v14 = vsub.f32 0.0, %v5295_v40  ;;  %v5527_v0 = vsel %vm5495_vm11, %v5294_v35, %v5511_v24  ;;  %v5422_v31 = vmul.u32 2221713035, %v5406_v61 }
 0x3fc   : > { %v5530_v38 = vsel %vm5498_vm13, %v5297_v18, %v5514_v5  ;;  %v5435_v10 = vshrl.u32 %v5419_v51, 16  ;;  %v5204_v46 = vshrl.u32 %v5188_v42, 9  ;;  %v5437_v11 = vshrl.u32 %v5421_v26, 16 }
 0x3fd   : > { %7019 = vmatprep.mubr.bf16.mxu0 %v5547_v20  ;;  %v5528_v57 = vsel %vm5496_vm14, %v5295_v40, %v5512_v14  ;;  %v5540_v30 = vpack.c.bf16 %v5530_v38, %v5529_v34  ;;  %v5202_v32 = vshrl.u32 %v5186_v21, 9  ;;  %v5205_v39 = vshrl.u32 %v5189_v58, 9 }
 0x3fe   : > { %7020 = vmatmul.mubr.bf16.gmra.mrb[136].mxu0 %v5548_v15  ;;  %v5539_v52 = vpack.c.bf16 %v5528_v57, %v5527_v0  ;;  %v5203_v23 = vshrl.u32 %v5187_v28, 9  ;;  %v5436_v12 = vshrl.u32 %v5420_v17, 16  ;;  %v5438_v35 = vshrl.u32 %v5422_v31, 16 }
 0x3ff   : > { %v5451_v19 = vxor.u32 %v5435_v10, %v5419_v51  ;;  %v5220_v13 = vand.u32 1, %v5204_v46  ;;  %v5453_v27 = vxor.u32 %v5437_v11, %v5421_v26  ;;  %v5218_v4 = vand.u32 1, %v5202_v32 }
 0x400   : > { %7051 = vmatprep.mubr.bf16.mxu1 %v5539_v52  ;;  %v5221_v37 = vand.u32 1, %v5205_v39  ;;  %v5219_v53 = vand.u32 1, %v5203_v23  ;;  %v5452_v36 = vxor.u32 %v5436_v12, %v5420_v17  ;;  %v5454_v40 = vxor.u32 %v5438_v35, %v5422_v31 }
 0x401   : > { %7052 = vmatmul.mubr.bf16.gmra.mrb[136].mxu1 %v5540_v30  ;;  %v5467_v5 = vshrl.u32 %v5451_v19, 9  ;;  %vm5236_vm15 = vcmp.eq.s32.totalorder %v5220_v13, 0  ;;  %v5469_v8 = vshrl.u32 %v5453_v27, 9  ;;  %vm5234_vm0 = vcmp.eq.s32.totalorder %v5218_v4, 0 }
 0x402   : > { %vm5237_vm1 = vcmp.eq.s32.totalorder %v5221_v37, 0  ;;  %vm5235_vm2 = vcmp.eq.s32.totalorder %v5219_v53, 0  ;;  %v5468_v49 = vshrl.u32 %v5452_v36, 9  ;;  %v5470_v0 = vshrl.u32 %v5454_v40, 9 }
 0x403   : > { %v5483_v9 = vand.u32 1, %v5467_v5  ;;  %v5485_v6 = vand.u32 1, %v5469_v8  ;;  %v11086_v53 = vstv %s5309_s28  ;;  %s7321_s28 = sshll.u32 %s7381_s27, 4  ;;  %s7322_s28 = int_to_ptr.vmem [resolvable:$false] %s7321_s28 }
 0x404   : > { %v5486_v58 = vand.u32 1, %v5470_v0  ;;  %v5484_v31 = vand.u32 1, %v5468_v49  ;;  %v5882_v36 = vadd.s32 %v11086_v53, %v12072_v44  ;;  %v5885_v40 = vadd.s32 %v11086_v53, %v12073_v3  ;;  %s7323_s25 = scalar_lea.vmem %s7322_s28, 4096  ;;  %p7324_p0 = scmp.lt.s32.totalorder %s11195_s26, %s7322_s28 }
 0x405   : > { %vm5501_vm3 = vcmp.eq.s32.totalorder %v5485_v6, 0  ;;  %vm5499_vm6 = vcmp.eq.s32.totalorder %v5483_v9, 0  ;;  %p7325_p1 = scmp.lt.s32.totalorder %s7323_s25, %s7317_s23 }
 0x406   : > { %vm5502_vm5 = vcmp.eq.s32.totalorder %v5486_v58, 0  ;;  %vm5500_vm7 = vcmp.eq.s32.totalorder %v5484_v31, 0 }
 0x407   : > { %p7326_p2 = por %p7325_p1, %p7324_p0 }
 0x409   : > { %p7327_p3 = pnand %p7326_p2, %p7320_p13 }
 0x40c   : > { %v6961_v33 = vpop.f32.mrb[124].mxu0 }
 0x40d   : > { %v4865_v18 = vpop.f32.mrb[125].mxu0  ;;  %v4874_v57 = vadd.f32 %v6961_v33, %v10810_v48 }
 0x40e   : > { %v6962_v7 = vpop.f32.mrb[126].mxu0  ;;  %v4866_v52 = vadd.f32 %v4865_v18, %v10810_v48 }
 0x40f   : > { %v4868_v24 = vpop.f32.mrb[127].mxu0  ;;  %v6993_v15 = vpop.f32.mrb[124].mxu1  ;;  %v4877_v63 = vadd.f32 %v6962_v7, %v10810_v48  ;;  %v5884_v7 = vadd.s32 %v11086_v53, %v12071_v16 }
 0x410   : > { %v5039_v60 = vadd.f32 %v6993_v15, %v10819_v47  ;;  %v5030_v1 = vpop.f32.mrb[125].mxu1  ;;  %v4869_v42 = vadd.f32 %v4868_v24, %v10810_v48  ;;  %v12084_v24 = vld [vmem:[#allocation18_spill] sm:$0xff] }
 0x411   : > { %v5031_v20 = vadd.f32 %v5030_v1, %v10819_v47  ;;  %v6994_v14 = vpop.f32.mrb[126].mxu1  ;;  %v5883_v15 = vadd.s32 %v11086_v53, %v12084_v24  ;;  %v5900_v5 = vshrl.u32 %v5884_v7, 16  ;;  %v5901_v1 = vshrl.u32 %v5885_v40, 16 }
 0x412   : > { %v5252_v34 = vsub.f32 0.0, %v5039_v60  ;;  %v5042_v38 = vadd.f32 %v6994_v14, %v10819_v47  ;;  %v5033_v45 = vpop.f32.mrb[127].mxu1 }
 0x413   : > { %v5250_v30 = vsub.f32 0.0, %v5031_v20  ;;  %v5034_v59 = vadd.f32 %v5033_v45, %v10819_v47  ;;  %v5899_v8 = vshrl.u32 %v5883_v15, 16 }
 0x414   : > { %v5268_v55 = vsel %vm5236_vm15, %v5039_v60, %v5252_v34  ;;  %v5253_v2 = vsub.f32 0.0, %v5042_v38  ;;  %v5898_v60 = vshrl.u32 %v5882_v36, 16  ;;  %v5917_v34 = vxor.u32 %v5901_v1, %v5885_v40 }
 0x415   : > { %v5284_v56 = vadd.f32 %v5268_v55, %v4874_v57  ;;  %v5266_v61 = vsel %vm5234_vm0, %v5031_v20, %v5250_v30  ;;  %v5251_v51 = vsub.f32 0.0, %v5034_v59  ;;  %v5916_v20 = vxor.u32 %v5900_v5, %v5884_v7  ;;  %v7316_v5 = vld [vmem:[%s11251_s8] sm:$0xff] }
 0x416   : > { %v5282_v26 = vadd.f32 %v5266_v61, %v4866_v52  ;;  %v5269_v21 = vsel %vm5237_vm1, %v5042_v38, %v5253_v2  ;;  %v5914_v14 = vxor.u32 %v5898_v60, %v5882_v36  ;;  %v5915_v38 = vxor.u32 %v5899_v8, %v5883_v15 }
 0x417   : > { %v5300_v47 = vmax.f32 %v5284_v56, 0.0  ;;  %v5285_v28 = vadd.f32 %v5269_v21, %v4877_v63  ;;  %v5267_v17 = vsel %vm5235_vm2, %v5034_v59, %v5251_v51  ;;  %v5932_v45 = vmul.u32 2146121005, %v5916_v20  ;;  %v12085_v21 = vld [vmem:[#allocation14_spill] sm:$0xff] }
 0x418   : > { %v5298_v10 = vmax.f32 %v5282_v26, 0.0  ;;  %v5283_v46 = vadd.f32 %v5267_v17, %v4869_v42  ;;  %v5930_v49 = vmul.u32 2146121005, %v5914_v14  ;;  %v5933_v16 = vmul.u32 2146121005, %v5917_v34  ;;  %v12087_v17 = vld [vmem:[#allocation31_spill] sm:$0xff] }
 0x419   : > { %v5301_v11 = vmax.f32 %v5285_v28, 0.0  ;;  %v5517_v32 = vsub.f32 0.0, %v5300_v47  ;;  %v5931_v0 = vmul.u32 2146121005, %v5915_v38  ;;  %v5948_v57 = vshrl.u32 %v5932_v45, 15 }
 0x41a   : > { %v5299_v39 = vmax.f32 %v5283_v46, 0.0  ;;  %v5515_v23 = vsub.f32 0.0, %v5298_v10  ;;  %v5946_v44 = vshrl.u32 %v5930_v49, 15  ;;  %v5949_v30 = vshrl.u32 %v5933_v16, 15  ;;  %v12088_v46 = vld [vmem:[#allocation12_spill] sm:$0xff] }
 0x41b   : > { %v5550_v12 = vpack.c.bf16 %v5301_v11, %v5300_v47  ;;  %v5518_v48 = vsub.f32 0.0, %v5301_v11  ;;  %v5533_v33 = vsel %vm5501_vm3, %v5300_v47, %v5517_v32  ;;  %v5947_v59 = vshrl.u32 %v5931_v0, 15  ;;  %v12086_v47 = vld [vmem:[#allocation28_spill] sm:$0xff] }
 0x41c   : > { %v5549_v35 = vpack.c.bf16 %v5299_v39, %v5298_v10  ;;  %v5516_v19 = vsub.f32 0.0, %v5299_v39  ;;  %v5531_v27 = vsel %vm5499_vm6, %v5298_v10, %v5515_v23  ;;  %v5964_v3 = vxor.u32 %v5948_v57, %v5932_v45 }
 0x41d   : > { %v5534_v13 = vsel %vm5502_vm5, %v5301_v11, %v5518_v48  ;;  %v5962_v9 = vxor.u32 %v5946_v44, %v5930_v49  ;;  %v5965_v52 = vxor.u32 %v5949_v30, %v5933_v16  ;;  %v5963_v55 = vxor.u32 %v5947_v59, %v5931_v0 }
 0x41e   : > { %7023 = vmatprep.mubr.bf16.mxu0 %v5549_v35  ;;  %v5532_v18 = vsel %vm5500_vm7, %v5299_v39, %v5516_v19  ;;  %v5542_v4 = vpack.c.bf16 %v5534_v13, %v5533_v33  ;;  %v5980_v2 = vmul.u32 2221713035, %v5964_v3  ;;  %v5888_v58 = vadd.s32 %v11086_v53, %v12085_v21  ;;  %v12089_v19 = vld [vmem:[#allocation6_spill] sm:$0xff] }
 0x41f   : > { %7024 = vmatmul.mubr.bf16.gmra.mrb[140].mxu0 %v5550_v12  ;;  %v5541_v37 = vpack.c.bf16 %v5532_v18, %v5531_v27  ;;  %v5978_v6 = vmul.u32 2221713035, %v5962_v9  ;;  %v5981_v63 = vmul.u32 2221713035, %v5965_v52  ;;  %v5886_v28 = vadd.s32 %v11086_v53, %v12086_v47 }
 0x420   : > { %v5979_v56 = vmul.u32 2221713035, %v5963_v55  ;;  %v5996_v61 = vshrl.u32 %v5980_v2, 16  ;;  %v5889_v31 = vadd.s32 %v11086_v53, %v12087_v17  ;;  %v5887_v11 = vadd.s32 %v11086_v53, %v12088_v46 }
 0x421   : > { %7055 = vmatprep.mubr.bf16.mxu1 %v5541_v37  ;;  %v5994_v51 = vshrl.u32 %v5978_v6, 16  ;;  %v5997_v42 = vshrl.u32 %v5981_v63, 16  ;;  %v5904_v12 = vshrl.u32 %v5888_v58, 16  ;;  %v5902_v48 = vshrl.u32 %v5886_v28, 16 }
 0x422   : > { %7056 = vmatmul.mubr.bf16.gmra.mrb[140].mxu1 %v5542_v4  ;;  %v5995_v26 = vshrl.u32 %v5979_v56, 16  ;;  %v6012_v10 = vxor.u32 %v5996_v61, %v5980_v2  ;;  %v5905_v35 = vshrl.u32 %v5889_v31, 16  ;;  %v5734_v33 = vsub.s32 5, %v12089_v19 }
 0x423   : > { %v6010_v32 = vxor.u32 %v5994_v51, %v5978_v6  ;;  %v6013_v39 = vxor.u32 %v5997_v42, %v5981_v63  ;;  %v5903_v27 = vshrl.u32 %v5887_v11, 16  ;;  %v5920_v7 = vxor.u32 %v5904_v12, %v5888_v58 }
 0x424   : > { %v6011_v23 = vxor.u32 %v5995_v26, %v5979_v56  ;;  %v6028_v13 = vshrl.u32 %v6012_v10, 9  ;;  %v5918_v36 = vxor.u32 %v5902_v48, %v5886_v28  ;;  %v5569_v40 = vsub.s32 4, %v12089_v19 }
 0x425   : > { %v6026_v18 = vshrl.u32 %v6010_v32, 9  ;;  %v6029_v4 = vshrl.u32 %v6013_v39, 9  ;;  %v5921_v24 = vxor.u32 %v5905_v35, %v5889_v31  ;;  %v11109_v60 = vrot.slane %v7316_v5, %v5734_v33 }
 0x426   : > { %v6027_v37 = vshrl.u32 %v6011_v23, 9  ;;  %v6044_v1 = vand.u32 1, %v6028_v13  ;;  %v5919_v8 = vxor.u32 %v5903_v27, %v5887_v11  ;;  %v5936_v49 = vmul.u32 2146121005, %v5920_v7 }
 0x427   : > { %v6042_v14 = vand.u32 1, %v6026_v18  ;;  %v6045_v34 = vand.u32 1, %v6029_v4  ;;  %v5934_v16 = vmul.u32 2146121005, %v5918_v36  ;;  %v11112_v0 = vrot.slane %v7316_v5, %v5569_v40 }
 0x428   : > { %v6043_v38 = vand.u32 1, %v6027_v37  ;;  %v5937_v30 = vmul.u32 2146121005, %v5921_v24  ;;  %vm6060_vm4 = vcmp.eq.s32.totalorder %v6044_v1, 0  ;;  %v5935_v9 = vmul.u32 2146121005, %v5919_v8 }
 0x429   : > { %vm6058_vm8 = vcmp.eq.s32.totalorder %v6042_v14, 0  ;;  %vm6061_vm9 = vcmp.eq.s32.totalorder %v6045_v34, 0  ;;  %v5952_v56 = vshrl.u32 %v5936_v49, 15  ;;  %v5950_v61 = vshrl.u32 %v5934_v16, 15 }
 0x42a   : > { %vm6059_vm10 = vcmp.eq.s32.totalorder %v6043_v38, 0  ;;  %v5953_v21 = vshrl.u32 %v5937_v30, 15  ;;  %v5951_v17 = vshrl.u32 %v5935_v9, 15  ;;  %v5892_v5 = vadd.s32 %v11086_v53, %v12044_v22 }
 0x42b   : > { %v5968_v35 = vxor.u32 %v5952_v56, %v5936_v49  ;;  %v5966_v19 = vxor.u32 %v5950_v61, %v5934_v16  ;;  %v5890_v8 = vadd.s32 %v11086_v53, %v12045_v43  ;;  %v5891_v49 = vadd.s32 %v11086_v53, %v12047_v62 }
 0x42c   : > { %v5969_v13 = vxor.u32 %v5953_v21, %v5937_v30  ;;  %v5967_v27 = vxor.u32 %v5951_v17, %v5935_v9  ;;  %v5908_v38 = vshrl.u32 %v5892_v5, 16 }
 0x42d   : > { %v5984_v18 = vmul.u32 2221713035, %v5968_v35  ;;  %v5982_v4 = vmul.u32 2221713035, %v5966_v19  ;;  %v5907_v9 = vshrl.u32 %v5891_v49, 16 }
 0x42e   : > { %v5985_v37 = vmul.u32 2221713035, %v5969_v13  ;;  %v5983_v7 = vmul.u32 2221713035, %v5967_v27  ;;  %v5924_v22 = vxor.u32 %v5908_v38, %v5892_v5 }
 0x42f   : > { %v6000_v36 = vshrl.u32 %v5984_v18, 16  ;;  %v5998_v40 = vshrl.u32 %v5982_v4, 16 }
 0x430   : > { %v6001_v24 = vshrl.u32 %v5985_v37, 16 }
 0x431   : > { %v6016_v1 = vxor.u32 %v6000_v36, %v5984_v18 }
 0x432   : > { %v6017_v14 = vxor.u32 %v6001_v24, %v5985_v37 }
 0x433   : > { %v6032_v16 = vshrl.u32 %v6016_v1, 9 }
 0x434   : > { %v6033_v30 = vshrl.u32 %v6017_v14, 9 }
 0x435   : > { %v6048_v43 = vand.u32 1, %v6032_v16 }
 0x437   : > { %vm6064_vm11 = vcmp.eq.s32.totalorder %v6048_v43, 0 }
 0x48d   : > { %v7013_v15 = vpop.f32.mrb[128].mxu0 }
 0x48e   : > { %v5653_v20 = vpop.f32.mrb[129].mxu0  ;;  %v5662_v51 = vadd.f32 %v7013_v15, %v11112_v0  ;;  %v5999_v15 = vshrl.u32 %v5983_v7, 16 }
 0x48f   : > { %v7014_v45 = vpop.f32.mrb[130].mxu0  ;;  %v5654_v58 = vadd.f32 %v5653_v20, %v11112_v0  ;;  %v6014_v20 = vxor.u32 %v5998_v40, %v5982_v4 }
 0x490   : > { %v5656_v57 = vpop.f32.mrb[131].mxu0  ;;  %v7045_v44 = vpop.f32.mrb[128].mxu1  ;;  %v5665_v31 = vadd.f32 %v7014_v45, %v11112_v0  ;;  %v6015_v34 = vxor.u32 %v5999_v15, %v5983_v7  ;;  %v5893_v45 = vadd.s32 %v11086_v53, %v12046_v41  ;;  %v5940_v41 = vmul.u32 2146121005, %v5924_v22 }
 0x491   : > { %v5827_v59 = vadd.f32 %v7045_v44, %v11109_v60  ;;  %v5818_v3 = vpop.f32.mrb[129].mxu1  ;;  %v5657_v32 = vadd.f32 %v5656_v57, %v11112_v0  ;;  %v5906_v57 = vshrl.u32 %v5890_v8, 16  ;;  %v6030_v44 = vshrl.u32 %v6014_v20, 9 }
 0x492   : > { %v5819_v52 = vadd.f32 %v5818_v3, %v11109_v60  ;;  %v7046_v55 = vpop.f32.mrb[130].mxu1  ;;  %v5909_v3 = vshrl.u32 %v5893_v45, 16 }
 0x493   : > { %v6076_v2 = vsub.f32 0.0, %v5827_v59  ;;  %v5830_v6 = vadd.f32 %v7046_v55, %v11109_v60  ;;  %v5821_v63 = vpop.f32.mrb[131].mxu1  ;;  %v5922_v55 = vxor.u32 %v5906_v57, %v5890_v8 }
 0x494   : > { %v6074_v42 = vsub.f32 0.0, %v5819_v52  ;;  %v5822_v26 = vadd.f32 %v5821_v63, %v11109_v60  ;;  %v6049_v63 = vand.u32 1, %v6033_v30  ;;  %v5896_v30 = vadd.s32 %v11086_v53, %v12048_v54 }
 0x495   : > { %v6092_v47 = vsel %vm6060_vm4, %v5827_v59, %v6076_v2  ;;  %v6077_v28 = vsub.f32 0.0, %v5830_v6  ;;  %v6031_v59 = vshrl.u32 %v6015_v34, 9 }
 0x496   : > { %v6108_v10 = vadd.f32 %v6092_v47, %v5662_v51  ;;  %v6090_v46 = vsel %vm6058_vm8, %v5819_v52, %v6074_v42  ;;  %v6075_v11 = vsub.f32 0.0, %v5822_v26  ;;  %v5925_v51 = vxor.u32 %v5909_v3, %v5893_v45 }
 0x497   : > { %v6106_v39 = vadd.f32 %v6090_v46, %v5654_v58  ;;  %v6093_v23 = vsel %vm6061_vm9, %v5830_v6, %v6077_v28  ;;  %v6046_v6 = vand.u32 1, %v6030_v44  ;;  %v6047_v56 = vand.u32 1, %v6031_v59 }
 0x498   : > { %6124 = vst [vmem:[%s11127_s30 + $0x10] sm:$0xff] %v6108_v10  ;;  %v6109_v12 = vadd.f32 %v6093_v23, %v5665_v31  ;;  %v6091_v48 = vsel %vm6059_vm10, %v5822_v26, %v6075_v11  ;;  %v5923_v26 = vxor.u32 %v5907_v9, %v5891_v49  ;;  %v5938_v47 = vmul.u32 2146121005, %v5922_v55 }
 0x499   : > { %6122 = vst [vmem:[%s11127_s30] sm:$0xff] %v6106_v39  ;;  %v6107_v33 = vadd.f32 %v6091_v48, %v5657_v32  ;;  %vm6062_vm12 = vcmp.eq.s32.totalorder %v6046_v6, 0  ;;  %vm6065_vm13 = vcmp.eq.s32.totalorder %v6049_v63, 0  ;;  %vm6063_vm14 = vcmp.eq.s32.totalorder %v6047_v56, 0 }
 0x49a   : > { %6125 = vst [vmem:[%s11127_s30 + $0x18] sm:$0xff] %v6109_v12  ;;  %v5956_v11 = vshrl.u32 %v5940_v41, 15  ;;  %v5941_v32 = vmul.u32 2146121005, %v5925_v51  ;;  %v5939_v48 = vmul.u32 2146121005, %v5923_v26  ;;  %v5894_v59 = vadd.s32 %v11086_v53, %v12049_v50 }
 0x49b   : > { %6123 = vst [vmem:[%s11127_s30 + $0x8] sm:$0xff] %v6107_v33  ;;  %v5954_v13 = vshrl.u32 %v5938_v47, 15  ;;  %v5912_v43 = vshrl.u32 %v5896_v30, 16  ;;  %v5895_v63 = vadd.s32 %v11086_v53, %v12052_v25 }
 0x49c   : > { %v5957_v24 = vshrl.u32 %v5941_v32, 15  ;;  %v5972_v1 = vxor.u32 %v5956_v11, %v5940_v41  ;;  %v5955_v8 = vshrl.u32 %v5939_v48, 15  ;;  %v5910_v55 = vshrl.u32 %v5894_v59, 16 }
 0x49d   : > { %v5970_v14 = vxor.u32 %v5954_v13, %v5938_v47  ;;  %v5928_v54 = vxor.u32 %v5912_v43, %v5896_v30 }
 0x49e   : > { %v5973_v34 = vxor.u32 %v5957_v24, %v5941_v32  ;;  %v5988_v38 = vmul.u32 2221713035, %v5972_v1  ;;  %v5971_v45 = vxor.u32 %v5955_v8, %v5939_v48  ;;  %v5926_v51 = vxor.u32 %v5910_v55, %v5894_v59 }
 0x49f   : > { %v5986_v49 = vmul.u32 2221713035, %v5970_v14 }
 0x4a0   : > { %v5989_v16 = vmul.u32 2221713035, %v5973_v34  ;;  %v6004_v57 = vshrl.u32 %v5988_v38, 16  ;;  %v5987_v44 = vmul.u32 2221713035, %v5971_v45 }
 0x4a1   : > { %v6002_v22 = vshrl.u32 %v5986_v49, 16 }
 0x4a2   : > { %v6005_v3 = vshrl.u32 %v5989_v16, 16  ;;  %v6020_v9 = vxor.u32 %v6004_v57, %v5988_v38 }
 0x4a3   : > { %v6018_v6 = vxor.u32 %v6002_v22, %v5986_v49 }
 0x4a4   : > { %v6021_v56 = vxor.u32 %v6005_v3, %v5989_v16 }
 0x4a5   : > { %v6034_v50 = vshrl.u32 %v6018_v6, 9 }
 0x4a6   : > { %v6037_v26 = vshrl.u32 %v6021_v56, 9 }
 0x4a8   : > { %v6053_v32 = vand.u32 1, %v6037_v26 }
 0x4aa   : > { %vm6069_vm1 = vcmp.eq.s32.totalorder %v6053_v32, 0 }
 0x4af   : > { %v7017_v52 = vpop.f32.mrb[132].mxu0 }
 0x4b0   : > { %v5669_v2 = vpop.f32.mrb[133].mxu0  ;;  %v5678_v39 = vadd.f32 %v7017_v52, %v11112_v0  ;;  %v6003_v52 = vshrl.u32 %v5987_v44, 16 }
 0x4b1   : > { %v7018_v61 = vpop.f32.mrb[134].mxu0  ;;  %v5670_v35 = vadd.f32 %v5669_v2, %v11112_v0  ;;  %v5897_v2 = vadd.s32 %v11086_v53, %v12050_v29 }
 0x4b2   : > { %v5672_v42 = vpop.f32.mrb[135].mxu0  ;;  %v7049_v62 = vpop.f32.mrb[132].mxu1  ;;  %v5681_v27 = vadd.f32 %v7018_v61, %v11112_v0  ;;  %v6036_v61 = vshrl.u32 %v6020_v9, 9  ;;  %v6019_v41 = vxor.u32 %v6003_v52, %v5987_v44 }
 0x4b3   : > { %v5843_v21 = vadd.f32 %v7049_v62, %v11109_v60  ;;  %v5834_v58 = vpop.f32.mrb[133].mxu1  ;;  %v5673_v7 = vadd.f32 %v5672_v42, %v11112_v0  ;;  %v5913_v42 = vshrl.u32 %v5897_v2, 16  ;;  %v5911_v62 = vshrl.u32 %v5895_v63, 16 }
 0x4b4   : > { %v5835_v28 = vadd.f32 %v5834_v58, %v11109_v60  ;;  %v7050_v17 = vpop.f32.mrb[134].mxu1  ;;  %v6052_v58 = vand.u32 1, %v6036_v61  ;;  %v6035_v47 = vshrl.u32 %v6019_v41, 9 }
 0x4b5   : > { %v6080_v31 = vsub.f32 0.0, %v5843_v21  ;;  %v5846_v10 = vadd.f32 %v7050_v17, %v11109_v60  ;;  %v5837_v46 = vpop.f32.mrb[135].mxu1  ;;  %v5944_v17 = vmul.u32 2146121005, %v5928_v54  ;;  %v5929_v29 = vxor.u32 %v5913_v42, %v5897_v2 }
 0x4b6   : > { %v6078_v23 = vsub.f32 0.0, %v5835_v28  ;;  %v5838_v12 = vadd.f32 %v5837_v46, %v11109_v60  ;;  %v6050_v46 = vand.u32 1, %v6034_v50  ;;  %v5927_v11 = vxor.u32 %v5911_v62, %v5895_v63 }
 0x4b7   : > { %v6096_v19 = vsel %vm6064_vm11, %v5843_v21, %v6080_v31  ;;  %v6081_v33 = vsub.f32 0.0, %v5846_v10  ;;  %v5942_v31 = vmul.u32 2146121005, %v5926_v51  ;;  %vm6068_vm15 = vcmp.eq.s32.totalorder %v6052_v58, 0 }
 0x4b8   : > { %v6112_v18 = vadd.f32 %v6096_v19, %v5678_v39  ;;  %v6094_v4 = vsel %vm6062_vm12, %v5835_v28, %v6078_v23  ;;  %v6079_v37 = vsub.f32 0.0, %v5838_v12  ;;  %v5960_v19 = vshrl.u32 %v5944_v17, 15 }
 0x4b9   : > { %v6110_v36 = vadd.f32 %v6094_v4, %v5670_v35  ;;  %v6097_v40 = vsel %vm6065_vm13, %v5846_v10, %v6081_v33  ;;  %v5958_v33 = vshrl.u32 %v5942_v31, 15  ;;  %v5945_v13 = vmul.u32 2146121005, %v5929_v29 }
 0x4ba   : > { %6128 = vst [vmem:[%s11127_s30 + $0x30] sm:$0xff] %v6112_v18  ;;  %v6113_v15 = vadd.f32 %v6097_v40, %v5681_v27  ;;  %v6095_v5 = vsel %vm6063_vm14, %v5838_v12, %v6079_v37  ;;  %v6051_v12 = vand.u32 1, %v6035_v47  ;;  %vm6066_vm0 = vcmp.eq.s32.totalorder %v6050_v46, 0 }
 0x4bb   : > { %6126 = vst [vmem:[%s11127_s30 + $0x20] sm:$0xff] %v6110_v36  ;;  %v6111_v20 = vadd.f32 %v6095_v5, %v5673_v7  ;;  %v5943_v37 = vmul.u32 2146121005, %v5927_v11  ;;  %v5961_v49 = vshrl.u32 %v5945_v13, 15  ;;  %v5976_v59 = vxor.u32 %v5960_v19, %v5944_v17 }
 0x4bc   : > { %6129 = vst [vmem:[%s11127_s30 + $0x38] sm:$0xff] %v6113_v15  ;;  %vm6067_vm2 = vcmp.eq.s32.totalorder %v6051_v12, 0  ;;  %v5974_v22 = vxor.u32 %v5958_v33, %v5942_v31 }
 0x4bd   : > { %6127 = vst [vmem:[%s11127_s30 + $0x28] sm:$0xff] %v6111_v20  ;;  %v5959_v44 = vshrl.u32 %v5943_v37, 15  ;;  %v5977_v3 = vxor.u32 %v5961_v49, %v5945_v13  ;;  %v5992_v52 = vmul.u32 2221713035, %v5976_v59 }
 0x4be   : > { %v5990_v43 = vmul.u32 2221713035, %v5974_v22 }
 0x4bf   : > { %v5975_v9 = vxor.u32 %v5959_v44, %v5943_v37  ;;  %v5993_v55 = vmul.u32 2221713035, %v5977_v3  ;;  %v6008_v6 = vshrl.u32 %v5992_v52, 16 }
 0x4c0   : > { %v6006_v63 = vshrl.u32 %v5990_v43, 16 }
 0x4c1   : > { %v5991_v2 = vmul.u32 2221713035, %v5975_v9  ;;  %v6009_v56 = vshrl.u32 %v5993_v55, 16  ;;  %v6024_v41 = vxor.u32 %v6008_v6, %v5992_v52 }
 0x4c2   : > { %v6022_v54 = vxor.u32 %v6006_v63, %v5990_v43 }
 0x4c3   : > { %v6007_v61 = vshrl.u32 %v5991_v2, 16  ;;  %v6025_v51 = vxor.u32 %v6009_v56, %v5993_v55  ;;  %v6040_v50 = vshrl.u32 %v6024_v41, 9 }
 0x4c4   : > { %v6038_v62 = vshrl.u32 %v6022_v54, 9 }
 0x4c5   : > { %v6023_v42 = vxor.u32 %v6007_v61, %v5991_v2  ;;  %v6041_v26 = vshrl.u32 %v6025_v51, 9 }
 0x4c6   : > { %v6054_v31 = vand.u32 1, %v6038_v62 }
 0x4c7   : > { %v6039_v58 = vshrl.u32 %v6023_v42, 9  ;;  %v6057_v46 = vand.u32 1, %v6041_v26 }
 0x4c8   : > { %vm6070_vm5 = vcmp.eq.s32.totalorder %v6054_v31, 0 }
 0x4c9   : > { %vm6073_vm6 = vcmp.eq.s32.totalorder %v6057_v46, 0 }
 0x4d1   : > { %v7021_v21 = vpop.f32.mrb[136].mxu0 }
 0x4d2   : > { %v5685_v28 = vpop.f32.mrb[137].mxu0  ;;  %v5694_v7 = vadd.f32 %v7021_v21, %v11112_v0 }
 0x4d3   : > { %v7022_v10 = vpop.f32.mrb[138].mxu0  ;;  %v5686_v24 = vadd.f32 %v5685_v28, %v11112_v0  ;;  %v6056_v28 = vand.u32 1, %v6040_v50 }
 0x4d4   : > { %v5688_v25 = vpop.f32.mrb[139].mxu0  ;;  %v7053_v53 = vpop.f32.mrb[136].mxu1  ;;  %v5697_v1 = vadd.f32 %v7022_v10, %v11112_v0 }
 0x4d5   : > { %v5859_v39 = vadd.f32 %v7053_v53, %v11109_v60  ;;  %v5850_v23 = vpop.f32.mrb[137].mxu1  ;;  %v5689_v34 = vadd.f32 %v5688_v25, %v11112_v0  ;;  %v6055_v53 = vand.u32 1, %v6039_v58  ;;  %vm6072_vm3 = vcmp.eq.s32.totalorder %v6056_v28, 0 }
 0x4d6   : > { %v5851_v48 = vadd.f32 %v5850_v23, %v11109_v60  ;;  %v7054_v35 = vpop.f32.mrb[138].mxu1 }
 0x4d7   : > { %v6084_v27 = vsub.f32 0.0, %v5859_v39  ;;  %v5862_v18 = vadd.f32 %v7054_v35, %v11109_v60  ;;  %v5853_v4 = vpop.f32.mrb[139].mxu1  ;;  %vm6071_vm7 = vcmp.eq.s32.totalorder %v6055_v53, 0 }
 0x4d8   : > { %v6082_v36 = vsub.f32 0.0, %v5851_v48  ;;  %v5854_v40 = vadd.f32 %v5853_v4, %v11109_v60 }
 0x4d9   : > { %v6100_v15 = vsel %vm6068_vm15, %v5859_v39, %v6084_v27  ;;  %v6085_v5 = vsub.f32 0.0, %v5862_v18 }
 0x4da   : > { %v6116_v8 = vadd.f32 %v6100_v15, %v5694_v7  ;;  %v6098_v20 = vsel %vm6066_vm0, %v5851_v48, %v6082_v36  ;;  %v6083_v14 = vsub.f32 0.0, %v5854_v40 }
 0x4db   : > { %v6114_v38 = vadd.f32 %v6098_v20, %v5686_v24  ;;  %v6101_v45 = vsel %vm6069_vm1, %v5862_v18, %v6085_v5 }
 0x4dc   : > { %6132 = vst [vmem:[%s11127_s30 + $0x50] sm:$0xff] %v6116_v8  ;;  %v6117_v16 = vadd.f32 %v6101_v45, %v5697_v1  ;;  %v6099_v57 = vsel %vm6067_vm2, %v5854_v40, %v6083_v14 }
 0x4dd   : > { %6130 = vst [vmem:[%s11127_s30 + $0x40] sm:$0xff] %v6114_v38  ;;  %v6115_v30 = vadd.f32 %v6099_v57, %v5689_v34 }
 0x4de   : > { %6133 = vst [vmem:[%s11127_s30 + $0x58] sm:$0xff] %v6117_v16 }
 0x4df   : > { %6131 = vst [vmem:[%s11127_s30 + $0x48] sm:$0xff] %v6115_v30 }
 0x4f2   : > { %v7025_v21 = vpop.f32.mrb[140].mxu0 }
 0x4f3   : > { %v5701_v47 = vpop.f32.mrb[141].mxu0  ;;  %v5710_v35 = vadd.f32 %v7025_v21, %v11112_v0 }
 0x4f4   : > { %v7026_v17 = vpop.f32.mrb[142].mxu0  ;;  %v5702_v13 = vadd.f32 %v5701_v47, %v11112_v0 }
 0x4f5   : > { %v5704_v29 = vpop.f32.mrb[143].mxu0  ;;  %v7057_v10 = vpop.f32.mrb[140].mxu1  ;;  %v5713_v4 = vadd.f32 %v7026_v17, %v11112_v0 }
 0x4f6   : > { %v5875_v11 = vadd.f32 %v7057_v10, %v11109_v60  ;;  %v5866_v25 = vpop.f32.mrb[141].mxu1  ;;  %v5705_v40 = vadd.f32 %v5704_v29, %v11112_v0 }
 0x4f7   : > { %v5867_v32 = vadd.f32 %v5866_v25, %v11109_v60  ;;  %v7058_v39 = vpop.f32.mrb[142].mxu1 }
 0x4f8   : > { %v6088_v23 = vsub.f32 0.0, %v5875_v11  ;;  %v5878_v12 = vadd.f32 %v7058_v39, %v11109_v60  ;;  %v5869_v48 = vpop.f32.mrb[143].mxu1 }
 0x4f9   : > { %v6086_v19 = vsub.f32 0.0, %v5867_v32  ;;  %v5870_v33 = vadd.f32 %v5869_v48, %v11109_v60 }
 0x4fa   : > { %v6104_v27 = vsel %vm6072_vm3, %v5875_v11, %v6088_v23  ;;  %v6089_v18 = vsub.f32 0.0, %v5878_v12 }
 0x4fb   : > { %v6120_v37 = vadd.f32 %v6104_v27, %v5710_v35  ;;  %v6102_v7 = vsel %vm6070_vm5, %v5867_v32, %v6086_v19  ;;  %v6087_v36 = vsub.f32 0.0, %v5870_v33 }
 0x4fc   : > { %v6118_v60 = vadd.f32 %v6102_v7, %v5702_v13  ;;  %v6105_v24 = vsel %vm6073_vm6, %v5878_v12, %v6089_v18 }
 0x4fd   : > { %6136 = vst [vmem:[%s11127_s30 + $0x70] sm:$0xff] %v6120_v37  ;;  %v6121_v15 = vadd.f32 %v6105_v24, %v5713_v4  ;;  %v6103_v5 = vsel %vm6071_vm7, %v5870_v33, %v6087_v36 }
 0x4fe   : > { %6134 = vst [vmem:[%s11127_s30 + $0x60] sm:$0xff] %v6118_v60  ;;  %v6119_v1 = vadd.f32 %v6103_v5, %v5705_v40 }
 0x4ff   : > { %6137 = vst [vmem:[%s11127_s30 + $0x78] sm:$0xff] %v6121_v15 }
 0x500   : > { %6135 = vst [vmem:[%s11127_s30 + $0x68] sm:$0xff] %v6119_v1 }
 0x501   : > { %7330 = shalt.err (!%p7327_p3)
}
 0x502   : > { %s7331_s24 = scalar_lea.hbm %s11193_s0, 2048  ;;  %s7335_s30 = scalar_lea.hbm %s11252_s9, 4096 }
 0x503   : > { %p7332_p4 = scmp.ne.s32.totalorder %s11193_s0, %s7331_s24  ;;  %p7336_p9 = scmp.lt.u32.totalorder %s11193_s0, %s11252_s9 }
 0x504   : > { %p7337_p10 = scmp.lt.u32.totalorder %s7335_s30, %s7331_s24  ;;  %p7339_p12 = scmp.lt.u32.totalorder %s7331_s24, %s11193_s0 }
 0x505   : > { %p7333_p7 = pnand %p7332_p4, %p7475_p5 }
 0x506   : > { %p7338_p11 = por %p7337_p10, %p7336_p9 }
 0x507   : > { %p7334_p8 = pneg %p7333_p7 }
 0x508   : > { %p7340_p13 = por %p7339_p12, %p7338_p11 }
 0x50a   : > { %p7341_p0 = pnand %p7340_p13, %p7334_p8 }
 0x50c   : > { %7344 = shalt.err (!%p7341_p0)
}
 0x50d   : > { %s7382_s17 = smov 128   ;;  %s7383_s23 = smov 8  }
 0x50e   : > { %7060 = dma.vmem_to_hbm [thread:$0]  (%p7475_p5), %s11195_s26, 2048, %s11193_s0, %s11202_s18, %s7382_s17, %s7382_s17, %s7383_s23  }
 0x50f PF: > { %p7066_p1 = scmp.ge.s32.totalorder %s7379_s14, 2  ;;  %s6167_s27 = sand.u32 1, %s7367_s11  }
 0x510   : > { %s6168_s28 = scalar_lea.sflag [#allocation4], %s6167_s27 }
 0x511   : > { %p7063_p2 = pnand %p7066_p1, %p7479_p6 }
 0x513   : > { %7362 = dma.done.wait (!%p7063_p2), %s6168_s28, 2048  }
 0x514   : > { %7364 = vsyncadd (!%p7063_p2), %s6168_s28, 4294965248  ;;  %p20_p3 = scmp.ge.s32.totalorder %s7462_s16, 4   ;;  %s12090_s11 = smov %s7371_s12 }
 0x515   : > { %s12091_s12 = smov %s7375_s13  ;;  %s12092_s13 = smov %s7473_s19 }
 0x516   : > { %s12093_s14 = smov %s7462_s16  ;;  %22 = sbr.rel (!%p20_p3) target bundleno = 5 (0x5), region = 91 }
 0x51d   :  { %6173 = vsyncpa [#allocation4], 1 }
 0x51e   :  { %6175 = vsyncpa [#allocation4 + $0x1], 1 }

</bundles_post_ra>
